<compile_context>
chip_gen: v5e
topology: v5e:2x2
jax: 0.10.0
libtpu: 0.0.40
codegen_flags: <defaults>
</compile_context>

<pallas_src>
import functools

import jax
import jax.numpy as jnp
from jax.experimental import pallas as pl
from jax.experimental.pallas import tpu as pltpu

# dtype used for MXU matmul operands (accumulation is always f32).
# jnp.bfloat16 = TPU-native MXU peak + half the weight bytes; jnp.float32 = exact reference numerics.
MATMUL_DTYPE = jnp.bfloat16
VMEM_LIMIT_BYTES = 32 * 1024 * 1024


def _layer_norm(h, gamma, beta):
    """nn.LayerNorm over the last axis, eps=1e-5 (PyTorch default). h: (rows, E) f32."""
    mu = jnp.mean(h, axis=-1, keepdims=True)
    var = jnp.mean(jnp.square(h - mu), axis=-1, keepdims=True)
    return (h - mu) * jax.lax.rsqrt(var + 1e-5) * gamma + beta


def _multi_head_attention(q_bf, kv_bf, nb, sq, sk, wq, wk, wv, wo, bo, heads):
    """SelfAttention(values=kv_x, keys=kv_x, queries=q_x, mask=None).

    q_bf : (nb*sq, E) MATMUL_DTYPE   flattened query stream
    kv_bf: (nb*sk, E) MATMUL_DTYPE   flattened key/value stream
    wq/wk/wv: (E, E) block-diagonal, pre-transposed per-head projection weights
              (the reference 2/head_dim energy scale is already folded into wq)
    wo: (E, E) pre-transposed fc_out weight; bo: (1, E) f32 bias
    returns (nb*sq, E) f32
    """
    e = q_bf.shape[-1]
    d = e // heads

    # One lane-dense matmul per projection (all heads + all rows at once).
    qp = jnp.dot(q_bf, wq, preferred_element_type=jnp.float32)
    kp = jnp.dot(kv_bf, wk, preferred_element_type=jnp.float32)
    vp = jnp.dot(kv_bf, wv, preferred_element_type=jnp.float32)
    # Cast once; per-head slices below reuse these (no per-head re-cast passes).
    qp = qp.astype(MATMUL_DTYPE)
    kp = kp.astype(MATMUL_DTYPE)
    vp = vp.astype(MATMUL_DTYPE)

    ctx_heads = []
    for h in range(heads):            # static unroll; each iteration is batched over nb rows
        cols = slice(h * d, (h + 1) * d)
        qh = qp[:, cols].reshape(nb, sq, d)
        kh = kp[:, cols].reshape(nb, sk, d)
        vh = vp[:, cols].reshape(nb, sk, d)

        # Energy already carries the reference's 2/head_dim factor (folded into wq at init).
        energy = jnp.einsum('nqd,nkd->nqk', qh, kh,
                            preferred_element_type=jnp.float32)             # (nb, sq, sk) f32
        s = energy - jnp.max(energy, axis=-1, keepdims=True)                # stable softmax (f32)
        p = jnp.exp(s)
        attn = p * pl.reciprocal(jnp.sum(p, axis=-1, keepdims=True), approx=True)
        ctx = jnp.einsum('nqk,nkd->nqd', attn.astype(MATMUL_DTYPE), vh,
                         preferred_element_type=jnp.float32)                # (nb, sq, d)
        ctx_heads.append(ctx.reshape(nb * sq, d))

    ctx = jnp.concatenate(ctx_heads, axis=-1).astype(MATMUL_DTYPE)          # (nb*sq, E), torch head order
    return jnp.dot(ctx, wo, preferred_element_type=jnp.float32) + bo


def decoder_stack_kernel(
    x_ref, enc_ref,
    # stacked per-layer weights, fully VMEM-resident (leading axis = num_layers):
    sa_wq_ref, sa_wk_ref, sa_wv_ref, sa_wo_ref, sa_bo_ref, n0_g_ref, n0_b_ref,
    ca_wq_ref, ca_wk_ref, ca_wv_ref, ca_wo_ref, ca_bo_ref, n1_g_ref, n1_b_ref,
    ff_w1_ref, ff_b1_ref, ff_w2_ref, ff_b2_ref, n2_g_ref, n2_b_ref,
    o_ref,            # (nb*seq_q, E) f32 hidden-state output (fc_out runs in its own kernel)
    *, heads, seq_q, seq_kv,
):
    rows_q, e = x_ref.shape
    nb = rows_q // seq_q
    num_layers = sa_wq_ref.shape[0]

    x = x_ref[...]                                     # (nb*seq_q, E) f32
    enc_bf = enc_ref[...].astype(MATMUL_DTYPE)         # layer-invariant: cast once per batch block

    # Static layer unroll: all stacked weights are already resident in VMEM, so there is
    # nothing to pipeline along a layer axis; this avoids per-step grid overhead entirely.
    for layer in range(num_layers):
        x_bf = x.astype(MATMUL_DTYPE)

        # --- DecoderBlock.attention: self-attention over the decoder stream (trg_mask=None) ---
        sa = _multi_head_attention(x_bf, x_bf, nb, seq_q, seq_q,
                                   sa_wq_ref[layer], sa_wk_ref[layer], sa_wv_ref[layer],
                                   sa_wo_ref[layer], sa_bo_ref[layer], heads)
        q = _layer_norm(sa + x, n0_g_ref[layer], n0_b_ref[layer])

        # --- TransformerBlock.attention: cross-attention, values=keys=enc_out, queries=q ---
        q_bf = q.astype(MATMUL_DTYPE)
        ca = _multi_head_attention(q_bf, enc_bf, nb, seq_q, seq_kv,
                                   ca_wq_ref[layer], ca_wk_ref[layer], ca_wv_ref[layer],
                                   ca_wo_ref[layer], ca_bo_ref[layer], heads)
        h1 = _layer_norm(ca + q, n1_g_ref[layer], n1_b_ref[layer])

        # --- feed-forward ---
        ff = jnp.dot(h1.astype(MATMUL_DTYPE), ff_w1_ref[layer],
                     preferred_element_type=jnp.float32) + ff_b1_ref[layer]
        ff = jnp.maximum(ff, 0.0)
        ff = jnp.dot(ff.astype(MATMUL_DTYPE), ff_w2_ref[layer],
                     preferred_element_type=jnp.float32) + ff_b2_ref[layer]

        x = _layer_norm(ff + h1, n2_g_ref[layer], n2_b_ref[layer])

    o_ref[...] = x.astype(o_ref.dtype)


def decoder_stack(x_emb, enc_out, params, heads, batch_block=None):
    """All DecoderBlocks in ONE pallas_call, gridded only over batch blocks.

    Returns the flattened hidden state (N*S, E) f32; fc_out is applied by a second,
    vocab-tiled kernel (fc_out_proj)."""
    n, s, e = x_emb.shape
    s_enc = enc_out.shape[1]

    nb = n if batch_block is None else batch_block
    assert n % nb == 0, "batch must be divisible by batch_block"
    assert e % heads == 0, "embedding_size must be divisible by heads"
    if nb != n:
        assert (nb * s) % 8 == 0 and (nb * s_enc) % 8 == 0, "sub-batch blocks must be 8-row aligned"

    # Flatten once in the wrapper (free XLA layout work) so the kernel sees 2-D blocks.
    x_flat = x_emb.reshape(n * s, e)
    enc_flat = enc_out.reshape(n * s_enc, e)

    def batch_spec(rows_per_block, width):
        return pl.BlockSpec((rows_per_block, width), lambda b: (b, 0))

    def full_spec(arr):
        nd = arr.ndim
        return pl.BlockSpec(arr.shape, lambda b, _nd=nd: (0,) * _nd)

    layer_keys = ("sa_wq", "sa_wk", "sa_wv", "sa_wo", "sa_bo", "n0_g", "n0_b",
                  "ca_wq", "ca_wk", "ca_wv", "ca_wo", "ca_bo", "n1_g", "n1_b",
                  "ff_w1", "ff_b1", "ff_w2", "ff_b2", "n2_g", "n2_b")
    layer_args = [params[k] for k in layer_keys]

    kernel = functools.partial(decoder_stack_kernel, heads=heads, seq_q=s, seq_kv=s_enc)

    return pl.pallas_call(
        kernel,
        out_shape=jax.ShapeDtypeStruct((n * s, e), jnp.float32),
        grid_spec=pltpu.PrefetchScalarGridSpec(
            num_scalar_prefetch=0,
            grid=(n // nb,),
            in_specs=[
                batch_spec(nb * s, e),                 # x_emb rows for this batch block
                batch_spec(nb * s_enc, e),             # enc_out rows for this batch block
                *[full_spec(a) for a in layer_args],   # stacked layer weights, fetched once
            ],
            out_specs=batch_spec(nb * s, e),
        ),
        compiler_params=pltpu.CompilerParams(
            dimension_semantics=("parallel",),         # batch blocks are independent
            vmem_limit_bytes=VMEM_LIMIT_BYTES,
        ),
    )(x_flat, enc_flat, *layer_args)


def fc_out_kernel(h_ref, w_ref, b_ref, o_ref):
    o_ref[...] = (jnp.dot(h_ref[...].astype(MATMUL_DTYPE), w_ref[...],
                          preferred_element_type=jnp.float32) + b_ref[...]).astype(o_ref.dtype)


def fc_out_proj(hidden, fc_w, fc_b):
    """Decoder.fc_out as its own kernel, tiled over a 128-padded vocab (lane-dense stores)."""
    rows, e = hidden.shape
    v = fc_w.shape[-1]
    v_pad = ((v + 127) // 128) * 128
    if v_pad != v:
        w = jnp.pad(fc_w, ((0, 0), (0, v_pad - v)))
        b = jnp.pad(fc_b, ((0, 0), (0, v_pad - v)))
    else:
        w, b = fc_w, fc_b

    v_tile = v_pad if (v_pad <= 512 or v_pad % 512 != 0) else 512
    row_tile = 256 if rows % 256 == 0 else rows
    # TODO(synk): at production E, add a reduction grid axis (or inner pipeline) over E.

    return pl.pallas_call(
        fc_out_kernel,
        out_shape=jax.ShapeDtypeStruct((rows, v_pad), jnp.float32),
        grid_spec=pltpu.PrefetchScalarGridSpec(
            num_scalar_prefetch=0,
            grid=(rows // row_tile, v_pad // v_tile),
            in_specs=[
                pl.BlockSpec((row_tile, e), lambda i, j: (i, 0)),
                pl.BlockSpec((e, v_tile), lambda i, j: (0, j)),
                pl.BlockSpec((1, v_tile), lambda i, j: (0, j)),
            ],
            out_specs=pl.BlockSpec((row_tile, v_tile), lambda i, j: (i, j)),
        ),
        compiler_params=pltpu.CompilerParams(
            dimension_semantics=("parallel", "parallel"),
            vmem_limit_bytes=VMEM_LIMIT_BYTES,
        ),
    )(hidden, w, b)


def init_decoder_params(key, trg_vocab_size, embedding_size, num_layers, heads,
                        forward_expansion, max_length):
    """Random Decoder parameters in kernel-ready layout:
       - per-head (D, D) nn.Linear weights folded into block-diagonal (E, E) matrices,
       - the reference's 2/head_dim energy scale folded into the Q projection weights,
       - all matmul weights pre-transposed once (kernel never does `.T`),
       - matmul weights cast to MATMUL_DTYPE; biases / LayerNorm params stay f32."""
    e = embedding_size
    d = e // heads
    f = forward_expansion * e
    assert d * heads == e

    keys = jax.random.split(key, 3 + num_layers)
    eye_h = jnp.eye(heads, dtype=jnp.float32)
    q_scale = 2.0 / d   # reference quirk: energy / (head_dim ** 1 / 2) == energy * 2/head_dim

    def blockdiag_t(w):
        # x @ kron(I_H, w.T) == per-head x_h @ w.T for every head at once (shared head weight).
        return jnp.kron(eye_h, w.T).astype(MATMUL_DTYPE)

    per_layer = {k: [] for k in (
        "sa_wq", "sa_wk", "sa_wv", "sa_wo", "sa_bo", "n0_g", "n0_b",
        "ca_wq", "ca_wk", "ca_wv", "ca_wo", "ca_bo", "n1_g", "n1_b",
        "ff_w1", "ff_b1", "ff_w2", "ff_b2", "n2_g", "n2_b")}

    for layer in range(num_layers):
        lk = jax.random.split(keys[3 + layer], 16)
        # DecoderBlock.attention (masked self-attention) + DecoderBlock.norm
        per_layer["sa_wv"].append(blockdiag_t(0.1 * jax.random.normal(lk[0], (d, d), jnp.float32)))
        per_layer["sa_wk"].append(blockdiag_t(0.1 * jax.random.normal(lk[1], (d, d), jnp.float32)))
        per_layer["sa_wq"].append(blockdiag_t(q_scale * 0.1 * jax.random.normal(lk[2], (d, d), jnp.float32)))
        per_layer["sa_wo"].append((0.1 * jax.random.normal(lk[3], (e, e), jnp.float32)).T.astype(MATMUL_DTYPE))
        per_layer["sa_bo"].append(0.01 * jax.random.normal(lk[4], (1, e), jnp.float32))
        per_layer["n0_g"].append(jnp.ones((1, e), jnp.float32))
        per_layer["n0_b"].append(jnp.zeros((1, e), jnp.float32))
        # TransformerBlock.attention (cross-attention) + norm1
        per_layer["ca_wv"].append(blockdiag_t(0.1 * jax.random.normal(lk[5], (d, d), jnp.float32)))
        per_layer["ca_wk"].append(blockdiag_t(0.1 * jax.random.normal(lk[6], (d, d), jnp.float32)))
        per_layer["ca_wq"].append(blockdiag_t(q_scale * 0.1 * jax.random.normal(lk[7], (d, d), jnp.float32)))
        per_layer["ca_wo"].append((0.1 * jax.random.normal(lk[8], (e, e), jnp.float32)).T.astype(MATMUL_DTYPE))
        per_layer["ca_bo"].append(0.01 * jax.random.normal(lk[9], (1, e), jnp.float32))
        per_layer["n1_g"].append(jnp.ones((1, e), jnp.float32))
        per_layer["n1_b"].append(jnp.zeros((1, e), jnp.float32))
        # TransformerBlock.ff + norm2
        per_layer["ff_w1"].append((0.1 * jax.random.normal(lk[10], (f, e), jnp.float32)).T.astype(MATMUL_DTYPE))
        per_layer["ff_b1"].append(0.01 * jax.random.normal(lk[11], (1, f), jnp.float32))
        per_layer["ff_w2"].append((0.1 * jax.random.normal(lk[12], (e, f), jnp.float32)).T.astype(MATMUL_DTYPE))
        per_layer["ff_b2"].append(jnp.zeros((1, e), jnp.float32))
        per_layer["n2_g"].append(jnp.ones((1, e), jnp.float32))
        per_layer["n2_b"].append(jnp.zeros((1, e), jnp.float32))

    params = {k: jnp.stack(v) for k, v in per_layer.items()}
    params["word_emb"] = 0.02 * jax.random.normal(keys[0], (trg_vocab_size, e), jnp.float32)
    params["pos_emb"] = 0.02 * jax.random.normal(keys[1], (max_length, e), jnp.float32)
    params["fc_w"] = (0.1 * jax.random.normal(keys[2], (trg_vocab_size, e),
                                              jnp.float32)).T.astype(MATMUL_DTYPE)   # (E, V)
    params["fc_b"] = jnp.zeros((1, trg_vocab_size), jnp.float32)
    return params


@functools.partial(jax.jit, static_argnames=("heads", "batch_block"))
def decoder_forward(token_ids, enc_out, params, heads, batch_block=None):
    """Decoder.forward(x, enc_out, src_mask=None, trg_mask=None) -> (N, S, trg_vocab)."""
    n, s = token_ids.shape
    v = params["fc_b"].shape[-1]
    positions = jnp.arange(s, dtype=jnp.int32)
    # embedding gathers are XLA glue; the layer stack and fc_out are Pallas kernels.
    x = params["word_emb"][token_ids] + params["pos_emb"][positions][None, :, :]
    # dropout == identity (eval semantics)
    hidden = decoder_stack(x, enc_out, params, heads, batch_block=batch_block)   # (N*S, E) f32
    logits = fc_out_proj(hidden, params["fc_w"], params["fc_b"])                 # (N*S, V_pad)
    return logits[:, :v].reshape(n, s, v)


if __name__ == "__main__":
    TRG_VOCAB = 50
    EMBED = 32
    NUM_LAYERS = 2
    HEADS = 4
    FWD_EXP = 4
    MAX_LEN = 16
    N, SEQ = 4, 8

    key = jax.random.PRNGKey(0)
    pkey, tkey, ekey = jax.random.split(key, 3)

    params = init_decoder_params(pkey, TRG_VOCAB, EMBED, NUM_LAYERS, HEADS, FWD_EXP, MAX_LEN)
    token_ids = jax.random.randint(tkey, (N, SEQ), 0, TRG_VOCAB, dtype=jnp.int32)
    enc_out = 0.1 * jax.random.normal(ekey, (N, SEQ, EMBED), jnp.float32)   # encoder output for cross-attn

    # batch_block=None -> whole batch in one grid step (maximize nb per review).
    out = decoder_forward(token_ids, enc_out, params, heads=HEADS)
    out = jax.block_until_ready(out)

    assert out.shape == (N, SEQ, TRG_VOCAB)
    assert bool(jnp.all(jnp.isfinite(out)))
    print("KERNEL_OK")
</pallas_src>

<mosaic_0001>
module attributes {stable_mosaic.version = 11 : i64} {
  func.func @fc_out_kernel(%arg0: i32, %arg1: i32, %arg2: memref<32x32xf32, #tpu.memory_space<vmem>>, %arg3: memref<32x128xbf16, #tpu.memory_space<vmem>>, %arg4: memref<1x128xf32, #tpu.memory_space<vmem>>, %arg5: memref<32x128xf32, #tpu.memory_space<vmem>>) attributes {dimension_semantics = [#tpu.dimension_semantics<parallel>, #tpu.dimension_semantics<parallel>], iteration_bounds = array<i64: 1, 1>, scalar_prefetch = 0 : i64, scratch_operands = 0 : i64, tpu.core_type = #tpu.core_type<tc>, window_params = [{transform_indices = @transform_0, window_bounds = array<i64: 32, 32>}, {transform_indices = @transform_1, window_bounds = array<i64: 32, 128>}, {transform_indices = @transform_2, window_bounds = array<i64: 1, 128>}, {transform_indices = @transform_3, window_bounds = array<i64: 32, 128>}]} {
    %c0 = arith.constant 0 : index
    %c0_0 = arith.constant 0 : index
    %0 = vector.load %arg2[%c0, %c0_0] : memref<32x32xf32, #tpu.memory_space<vmem>>, vector<32x32xf32>
    %1 = arith.truncf %0 : vector<32x32xf32> to vector<32x32xbf16>
    %c0_1 = arith.constant 0 : index
    %c0_2 = arith.constant 0 : index
    %2 = vector.load %arg3[%c0_1, %c0_2] : memref<32x128xbf16, #tpu.memory_space<vmem>>, vector<32x128xbf16>
    %cst = arith.constant dense<0.000000e+00> : vector<32x128xf32>
    %3 = tpu.matmul %1, %2, %cst {dimension_numbers = #tpu.dot_dimension_numbers<[1], [0], [0], [1], [0, 0, 1, 1], [], []>} : vector<32x32xbf16>, vector<32x128xbf16>, vector<32x128xf32> -> vector<32x128xf32>
    %c0_3 = arith.constant 0 : index
    %c0_4 = arith.constant 0 : index
    %4 = vector.load %arg4[%c0_3, %c0_4] : memref<1x128xf32, #tpu.memory_space<vmem>>, vector<1x128xf32>
    %5 = vector.broadcast %4 : vector<1x128xf32> to vector<32x128xf32>
    %6 = arith.addf %3, %5 : vector<32x128xf32>
    %c0_5 = arith.constant 0 : index
    %c0_6 = arith.constant 0 : index
    %7 = vector.load %arg5[%c0_5, %c0_6] : memref<32x128xf32, #tpu.memory_space<vmem>>, vector<32x128xf32>
    tpu.vector_store %arg5[%c0_5, %c0_6], %6 {strides = array<i32>} : memref<32x128xf32, #tpu.memory_space<vmem>>, vector<32x128xf32>,
    return
  }
  func.func @transform_0(%arg0: i32, %arg1: i32) -> (i32, i32) {
    %c0_i32 = arith.constant 0 : i32
    %c0_i32_0 = arith.constant 0 : i32
    return %arg0, %c0_i32 : i32, i32
  }
  func.func @transform_1(%arg0: i32, %arg1: i32) -> (i32, i32) {
    %c0_i32 = arith.constant 0 : i32
    %c0_i32_0 = arith.constant 0 : i32
    return %c0_i32, %arg1 : i32, i32
  }
  func.func @transform_2(%arg0: i32, %arg1: i32) -> (i32, i32) {
    %c0_i32 = arith.constant 0 : i32
    %c0_i32_0 = arith.constant 0 : i32
    return %c0_i32, %arg1 : i32, i32
  }
  func.func @transform_3(%arg0: i32, %arg1: i32) -> (i32, i32) {
    %c0_i32 = arith.constant 0 : i32
    return %arg0, %arg1 : i32, i32
  }
}

module attributes {stable_mosaic.version = 11 : i64} {
  func.func @decoder_stack_kernel(%arg0: i32, %arg1: memref<32x32xf32, #tpu.memory_space<vmem>>, %arg2: memref<32x32xf32, #tpu.memory_space<vmem>>, %arg3: memref<2x32x32xbf16, #tpu.memory_space<vmem>>, %arg4: memref<2x32x32xbf16, #tpu.memory_space<vmem>>, %arg5: memref<2x32x32xbf16, #tpu.memory_space<vmem>>, %arg6: memref<2x32x32xbf16, #tpu.memory_space<vmem>>, %arg7: memref<2x1x32xf32, #tpu.memory_space<vmem>>, %arg8: memref<2x1x32xf32, #tpu.memory_space<vmem>>, %arg9: memref<2x1x32xf32, #tpu.memory_space<vmem>>, %arg10: memref<2x32x32xbf16, #tpu.memory_space<vmem>>, %arg11: memref<2x32x32xbf16, #tpu.memory_space<vmem>>, %arg12: memref<2x32x32xbf16, #tpu.memory_space<vmem>>, %arg13: memref<2x32x32xbf16, #tpu.memory_space<vmem>>, %arg14: memref<2x1x32xf32, #tpu.memory_space<vmem>>, %arg15: memref<2x1x32xf32, #tpu.memory_space<vmem>>, %arg16: memref<2x1x32xf32, #tpu.memory_space<vmem>>, %arg17: memref<2x32x128xbf16, #tpu.memory_space<vmem>>, %arg18: memref<2x1x128xf32, #tpu.memory_space<vmem>>, %arg19: memref<2x128x32xbf16, #tpu.memory_space<vmem>>, %arg20: memref<2x1x32xf32, #tpu.memory_space<vmem>>, %arg21: memref<2x1x32xf32, #tpu.memory_space<vmem>>, %arg22: memref<2x1x32xf32, #tpu.memory_space<vmem>>, %arg23: memref<32x32xf32, #tpu.memory_space<vmem>>) attributes {dimension_semantics = [#tpu.dimension_semantics<parallel>], iteration_bounds = array<i64: 1>, scalar_prefetch = 0 : i64, scratch_operands = 0 : i64, tpu.core_type = #tpu.core_type<tc>, window_params = [{transform_indices = @transform_0, window_bounds = array<i64: 32, 32>}, {transform_indices = @transform_1, window_bounds = array<i64: 32, 32>}, {pipeline_mode = #tpu.pipeline_mode<synchronous>, transform_indices = @transform_2, window_bounds = array<i64: 2, 32, 32>}, {pipeline_mode = #tpu.pipeline_mode<synchronous>, transform_indices = @transform_3, window_bounds = array<i64: 2, 32, 32>}, {pipeline_mode = #tpu.pipeline_mode<synchronous>, transform_indices = @transform_4, window_bounds = array<i64: 2, 32, 32>}, {pipeline_mode = #tpu.pipeline_mode<synchronous>, transform_indices = @transform_5, window_bounds = array<i64: 2, 32, 32>}, {pipeline_mode = #tpu.pipeline_mode<synchronous>, transform_indices = @transform_6, window_bounds = array<i64: 2, 1, 32>}, {pipeline_mode = #tpu.pipeline_mode<synchronous>, transform_indices = @transform_7, window_bounds = array<i64: 2, 1, 32>}, {pipeline_mode = #tpu.pipeline_mode<synchronous>, transform_indices = @transform_8, window_bounds = array<i64: 2, 1, 32>}, {pipeline_mode = #tpu.pipeline_mode<synchronous>, transform_indices = @transform_9, window_bounds = array<i64: 2, 32, 32>}, {pipeline_mode = #tpu.pipeline_mode<synchronous>, transform_indices = @transform_10, window_bounds = array<i64: 2, 32, 32>}, {pipeline_mode = #tpu.pipeline_mode<synchronous>, transform_indices = @transform_11, window_bounds = array<i64: 2, 32, 32>}, {pipeline_mode = #tpu.pipeline_mode<synchronous>, transform_indices = @transform_12, window_bounds = array<i64: 2, 32, 32>}, {pipeline_mode = #tpu.pipeline_mode<synchronous>, transform_indices = @transform_13, window_bounds = array<i64: 2, 1, 32>}, {pipeline_mode = #tpu.pipeline_mode<synchronous>, transform_indices = @transform_14, window_bounds = array<i64: 2, 1, 32>}, {pipeline_mode = #tpu.pipeline_mode<synchronous>, transform_indices = @transform_15, window_bounds = array<i64: 2, 1, 32>}, {pipeline_mode = #tpu.pipeline_mode<synchronous>, transform_indices = @transform_16, window_bounds = array<i64: 2, 32, 128>}, {pipeline_mode = #tpu.pipeline_mode<synchronous>, transform_indices = @transform_17, window_bounds = array<i64: 2, 1, 128>}, {pipeline_mode = #tpu.pipeline_mode<synchronous>, transform_indices = @transform_18, window_bounds = array<i64: 2, 128, 32>}, {pipeline_mode = #tpu.pipeline_mode<synchronous>, transform_indices = @transform_19, window_bounds = array<i64: 2, 1, 32>}, {pipeline_mode = #tpu.pipeline_mode<synchronous>, transform_indices = @transform_20, window_bounds = array<i64: 2, 1, 32>}, {pipeline_mode = #tpu.pipeline_mode<synchronous>, transform_indices = @transform_21, window_bounds = array<i64: 2, 1, 32>}, {transform_indices = @transform_22, window_bounds = array<i64: 32, 32>}]} {
    %c0 = arith.constant 0 : index
    %c0_0 = arith.constant 0 : index
    %0 = vector.load %arg1[%c0, %c0_0] : memref<32x32xf32, #tpu.memory_space<vmem>>, vector<32x32xf32>
    %c0_1 = arith.constant 0 : index
    %c0_2 = arith.constant 0 : index
    %1 = vector.load %arg2[%c0_1, %c0_2] : memref<32x32xf32, #tpu.memory_space<vmem>>, vector<32x32xf32>
    %2 = arith.truncf %1 : vector<32x32xf32> to vector<32x32xbf16>
    %3 = arith.truncf %0 : vector<32x32xf32> to vector<32x32xbf16>
    %c0_3 = arith.constant 0 : index
    %c0_4 = arith.constant 0 : index
    %c0_5 = arith.constant 0 : index
    %4 = vector.load %arg3[%c0_3, %c0_4, %c0_5] : memref<2x32x32xbf16, #tpu.memory_space<vmem>>, vector<1x32x32xbf16>
    %5 = vector.shape_cast %4 : vector<1x32x32xbf16> to vector<32x32xbf16>
    %c0_6 = arith.constant 0 : index
    %c0_7 = arith.constant 0 : index
    %c0_8 = arith.constant 0 : index
    %6 = vector.load %arg4[%c0_6, %c0_7, %c0_8] : memref<2x32x32xbf16, #tpu.memory_space<vmem>>, vector<1x32x32xbf16>
    %7 = vector.shape_cast %6 : vector<1x32x32xbf16> to vector<32x32xbf16>
    %c0_9 = arith.constant 0 : index
    %c0_10 = arith.constant 0 : index
    %c0_11 = arith.constant 0 : index
    %8 = vector.load %arg5[%c0_9, %c0_10, %c0_11] : memref<2x32x32xbf16, #tpu.memory_space<vmem>>, vector<1x32x32xbf16>
    %9 = vector.shape_cast %8 : vector<1x32x32xbf16> to vector<32x32xbf16>
    %c0_12 = arith.constant 0 : index
    %c0_13 = arith.constant 0 : index
    %c0_14 = arith.constant 0 : index
    %10 = vector.load %arg6[%c0_12, %c0_13, %c0_14] : memref<2x32x32xbf16, #tpu.memory_space<vmem>>, vector<1x32x32xbf16>
    %11 = vector.shape_cast %10 : vector<1x32x32xbf16> to vector<32x32xbf16>
    %c0_15 = arith.constant 0 : index
    %c0_16 = arith.constant 0 : index
    %c0_17 = arith.constant 0 : index
    %12 = vector.load %arg7[%c0_15, %c0_16, %c0_17] : memref<2x1x32xf32, #tpu.memory_space<vmem>>, vector<1x1x32xf32>
    %13 = vector.shape_cast %12 : vector<1x1x32xf32> to vector<1x32xf32>
    %cst = arith.constant dense<0.000000e+00> : vector<32x32xf32>
    %14 = tpu.matmul %3, %5, %cst {dimension_numbers = #tpu.dot_dimension_numbers<[1], [0], [0], [1], [0, 0, 1, 1], [], []>} : vector<32x32xbf16>, vector<32x32xbf16>, vector<32x32xf32> -> vector<32x32xf32>
    %cst_18 = arith.constant dense<0.000000e+00> : vector<32x32xf32>
    %15 = tpu.matmul %3, %7, %cst_18 {dimension_numbers = #tpu.dot_dimension_numbers<[1], [0], [0], [1], [0, 0, 1, 1], [], []>} : vector<32x32xbf16>, vector<32x32xbf16>, vector<32x32xf32> -> vector<32x32xf32>
    %cst_19 = arith.constant dense<0.000000e+00> : vector<32x32xf32>
    %16 = tpu.matmul %3, %9, %cst_19 {dimension_numbers = #tpu.dot_dimension_numbers<[1], [0], [0], [1], [0, 0, 1, 1], [], []>} : vector<32x32xbf16>, vector<32x32xbf16>, vector<32x32xf32> -> vector<32x32xf32>
    %17 = arith.truncf %14 : vector<32x32xf32> to vector<32x32xbf16>
    %18 = arith.truncf %15 : vector<32x32xf32> to vector<32x32xbf16>
    %19 = arith.truncf %16 : vector<32x32xf32> to vector<32x32xbf16>
    %20 = vector.extract_strided_slice %17 {offsets = [0, 0], sizes = [32, 8], strides = [1, 1]} : vector<32x32xbf16> to vector<32x8xbf16>
    %21 = vector.shape_cast %20 : vector<32x8xbf16> to vector<4x8x8xbf16>
    %22 = vector.extract_strided_slice %18 {offsets = [0, 0], sizes = [32, 8], strides = [1, 1]} : vector<32x32xbf16> to vector<32x8xbf16>
    %23 = vector.shape_cast %22 : vector<32x8xbf16> to vector<4x8x8xbf16>
    %24 = vector.extract_strided_slice %19 {offsets = [0, 0], sizes = [32, 8], strides = [1, 1]} : vector<32x32xbf16> to vector<32x8xbf16>
    %25 = vector.shape_cast %24 : vector<32x8xbf16> to vector<4x8x8xbf16>
    "tpu.trace_start"() <{level = 10 : i32, message = "nqd,nkd->nqk"}> : () -> ()
    %cst_20 = arith.constant dense<0.000000e+00> : vector<4x8x8xf32>
    %26 = tpu.matmul %21, %23, %cst_20 {dimension_numbers = #tpu.dot_dimension_numbers<[2], [2], [1], [1], [0, 0, 0, 1, 1, 1], [0], [0]>} : vector<4x8x8xbf16>, vector<4x8x8xbf16>, vector<4x8x8xf32> -> vector<4x8x8xf32>
    "tpu.trace_stop"() : () -> ()
    %cst_21 = arith.constant dense<0xFF800000> : vector<4x8xf32>
    %27 = vector.multi_reduction <maximumf>, %26, %cst_21 [2] : vector<4x8x8xf32> to vector<4x8xf32>
    %28 = vector.shape_cast %27 : vector<4x8xf32> to vector<4x8x1xf32>
    %29 = vector.broadcast %28 : vector<4x8x1xf32> to vector<4x8x8xf32>
    %30 = arith.subf %26, %29 : vector<4x8x8xf32>
    %31 = math.exp %30 : vector<4x8x8xf32>
    %cst_22 = arith.constant dense<0.000000e+00> : vector<4x8xf32>
    %32 = vector.multi_reduction <add>, %31, %cst_22 [2] : vector<4x8x8xf32> to vector<4x8xf32>
    %33 = vector.shape_cast %32 : vector<4x8xf32> to vector<4x8x1xf32>
    %34 = tpu.reciprocal %33 {approx = true} : vector<4x8x1xf32> -> vector<4x8x1xf32>
    %35 = vector.broadcast %34 : vector<4x8x1xf32> to vector<4x8x8xf32>
    %36 = arith.mulf %31, %35 : vector<4x8x8xf32>
    %37 = arith.truncf %36 : vector<4x8x8xf32> to vector<4x8x8xbf16>
    "tpu.trace_start"() <{level = 10 : i32, message = "nqk,nkd->nqd"}> : () -> ()
    %cst_23 = arith.constant dense<0.000000e+00> : vector<4x8x8xf32>
    %38 = tpu.matmul %37, %25, %cst_23 {dimension_numbers = #tpu.dot_dimension_numbers<[2], [1], [1], [2], [0, 0, 0, 1, 1, 2], [0], [0]>} : vector<4x8x8xbf16>, vector<4x8x8xbf16>, vector<4x8x8xf32> -> vector<4x8x8xf32>
    "tpu.trace_stop"() : () -> ()
    %39 = vector.shape_cast %38 : vector<4x8x8xf32> to vector<32x8xf32>
    %40 = vector.extract_strided_slice %17 {offsets = [0, 8], sizes = [32, 8], strides = [1, 1]} : vector<32x32xbf16> to vector<32x8xbf16>
    %41 = vector.shape_cast %40 : vector<32x8xbf16> to vector<4x8x8xbf16>
    %42 = vector.extract_strided_slice %18 {offsets = [0, 8], sizes = [32, 8], strides = [1, 1]} : vector<32x32xbf16> to vector<32x8xbf16>
    %43 = vector.shape_cast %42 : vector<32x8xbf16> to vector<4x8x8xbf16>
    %44 = vector.extract_strided_slice %19 {offsets = [0, 8], sizes = [32, 8], strides = [1, 1]} : vector<32x32xbf16> to vector<32x8xbf16>
    %45 = vector.shape_cast %44 : vector<32x8xbf16> to vector<4x8x8xbf16>
    "tpu.trace_start"() <{level = 10 : i32, message = "nqd,nkd->nqk"}> : () -> ()
    %cst_24 = arith.constant dense<0.000000e+00> : vector<4x8x8xf32>
    %46 = tpu.matmul %41, %43, %cst_24 {dimension_numbers = #tpu.dot_dimension_numbers<[2], [2], [1], [1], [0, 0, 0, 1, 1, 1], [0], [0]>} : vector<4x8x8xbf16>, vector<4x8x8xbf16>, vector<4x8x8xf32> -> vector<4x8x8xf32>
    "tpu.trace_stop"() : () -> ()
    %cst_25 = arith.constant dense<0xFF800000> : vector<4x8xf32>
    %47 = vector.multi_reduction <maximumf>, %46, %cst_25 [2] : vector<4x8x8xf32> to vector<4x8xf32>
    %48 = vector.shape_cast %47 : vector<4x8xf32> to vector<4x8x1xf32>
    %49 = vector.broadcast %48 : vector<4x8x1xf32> to vector<4x8x8xf32>
    %50 = arith.subf %46, %49 : vector<4x8x8xf32>
    %51 = math.exp %50 : vector<4x8x8xf32>
    %cst_26 = arith.constant dense<0.000000e+00> : vector<4x8xf32>
    %52 = vector.multi_reduction <add>, %51, %cst_26 [2] : vector<4x8x8xf32> to vector<4x8xf32>
    %53 = vector.shape_cast %52 : vector<4x8xf32> to vector<4x8x1xf32>
    %54 = tpu.reciprocal %53 {approx = true} : vector<4x8x1xf32> -> vector<4x8x1xf32>
    %55 = vector.broadcast %54 : vector<4x8x1xf32> to vector<4x8x8xf32>
    %56 = arith.mulf %51, %55 : vector<4x8x8xf32>
    %57 = arith.truncf %56 : vector<4x8x8xf32> to vector<4x8x8xbf16>
    "tpu.trace_start"() <{level = 10 : i32, message = "nqk,nkd->nqd"}> : () -> ()
    %cst_27 = arith.constant dense<0.000000e+00> : vector<4x8x8xf32>
    %58 = tpu.matmul %57, %45, %cst_27 {dimension_numbers = #tpu.dot_dimension_numbers<[2], [1], [1], [2], [0, 0, 0, 1, 1, 2], [0], [0]>} : vector<4x8x8xbf16>, vector<4x8x8xbf16>, vector<4x8x8xf32> -> vector<4x8x8xf32>
    "tpu.trace_stop"() : () -> ()
    %59 = vector.shape_cast %58 : vector<4x8x8xf32> to vector<32x8xf32>
    %60 = vector.extract_strided_slice %17 {offsets = [0, 16], sizes = [32, 8], strides = [1, 1]} : vector<32x32xbf16> to vector<32x8xbf16>
    %61 = vector.shape_cast %60 : vector<32x8xbf16> to vector<4x8x8xbf16>
    %62 = vector.extract_strided_slice %18 {offsets = [0, 16], sizes = [32, 8], strides = [1, 1]} : vector<32x32xbf16> to vector<32x8xbf16>
    %63 = vector.shape_cast %62 : vector<32x8xbf16> to vector<4x8x8xbf16>
    %64 = vector.extract_strided_slice %19 {offsets = [0, 16], sizes = [32, 8], strides = [1, 1]} : vector<32x32xbf16> to vector<32x8xbf16>
    %65 = vector.shape_cast %64 : vector<32x8xbf16> to vector<4x8x8xbf16>
    "tpu.trace_start"() <{level = 10 : i32, message = "nqd,nkd->nqk"}> : () -> ()
    %cst_28 = arith.constant dense<0.000000e+00> : vector<4x8x8xf32>
    %66 = tpu.matmul %61, %63, %cst_28 {dimension_numbers = #tpu.dot_dimension_numbers<[2], [2], [1], [1], [0, 0, 0, 1, 1, 1], [0], [0]>} : vector<4x8x8xbf16>, vector<4x8x8xbf16>, vector<4x8x8xf32> -> vector<4x8x8xf32>
    "tpu.trace_stop"() : () -> ()
    %cst_29 = arith.constant dense<0xFF800000> : vector<4x8xf32>
    %67 = vector.multi_reduction <maximumf>, %66, %cst_29 [2] : vector<4x8x8xf32> to vector<4x8xf32>
    %68 = vector.shape_cast %67 : vector<4x8xf32> to vector<4x8x1xf32>
    %69 = vector.broadcast %68 : vector<4x8x1xf32> to vector<4x8x8xf32>
    %70 = arith.subf %66, %69 : vector<4x8x8xf32>
    %71 = math.exp %70 : vector<4x8x8xf32>
    %cst_30 = arith.constant dense<0.000000e+00> : vector<4x8xf32>
    %72 = vector.multi_reduction <add>, %71, %cst_30 [2] : vector<4x8x8xf32> to vector<4x8xf32>
    %73 = vector.shape_cast %72 : vector<4x8xf32> to vector<4x8x1xf32>
    %74 = tpu.reciprocal %73 {approx = true} : vector<4x8x1xf32> -> vector<4x8x1xf32>
    %75 = vector.broadcast %74 : vector<4x8x1xf32> to vector<4x8x8xf32>
    %76 = arith.mulf %71, %75 : vector<4x8x8xf32>
    %77 = arith.truncf %76 : vector<4x8x8xf32> to vector<4x8x8xbf16>
    "tpu.trace_start"() <{level = 10 : i32, message = "nqk,nkd->nqd"}> : () -> ()
    %cst_31 = arith.constant dense<0.000000e+00> : vector<4x8x8xf32>
    %78 = tpu.matmul %77, %65, %cst_31 {dimension_numbers = #tpu.dot_dimension_numbers<[2], [1], [1], [2], [0, 0, 0, 1, 1, 2], [0], [0]>} : vector<4x8x8xbf16>, vector<4x8x8xbf16>, vector<4x8x8xf32> -> vector<4x8x8xf32>
    "tpu.trace_stop"() : () -> ()
    %79 = vector.shape_cast %78 : vector<4x8x8xf32> to vector<32x8xf32>
    %80 = vector.extract_strided_slice %17 {offsets = [0, 24], sizes = [32, 8], strides = [1, 1]} : vector<32x32xbf16> to vector<32x8xbf16>
    %81 = vector.shape_cast %80 : vector<32x8xbf16> to vector<4x8x8xbf16>
    %82 = vector.extract_strided_slice %18 {offsets = [0, 24], sizes = [32, 8], strides = [1, 1]} : vector<32x32xbf16> to vector<32x8xbf16>
    %83 = vector.shape_cast %82 : vector<32x8xbf16> to vector<4x8x8xbf16>
    %84 = vector.extract_strided_slice %19 {offsets = [0, 24], sizes = [32, 8], strides = [1, 1]} : vector<32x32xbf16> to vector<32x8xbf16>
    %85 = vector.shape_cast %84 : vector<32x8xbf16> to vector<4x8x8xbf16>
    "tpu.trace_start"() <{level = 10 : i32, message = "nqd,nkd->nqk"}> : () -> ()
    %cst_32 = arith.constant dense<0.000000e+00> : vector<4x8x8xf32>
    %86 = tpu.matmul %81, %83, %cst_32 {dimension_numbers = #tpu.dot_dimension_numbers<[2], [2], [1], [1], [0, 0, 0, 1, 1, 1], [0], [0]>} : vector<4x8x8xbf16>, vector<4x8x8xbf16>, vector<4x8x8xf32> -> vector<4x8x8xf32>
    "tpu.trace_stop"() : () -> ()
    %cst_33 = arith.constant dense<0xFF800000> : vector<4x8xf32>
    %87 = vector.multi_reduction <maximumf>, %86, %cst_33 [2] : vector<4x8x8xf32> to vector<4x8xf32>
    %88 = vector.shape_cast %87 : vector<4x8xf32> to vector<4x8x1xf32>
    %89 = vector.broadcast %88 : vector<4x8x1xf32> to vector<4x8x8xf32>
    %90 = arith.subf %86, %89 : vector<4x8x8xf32>
    %91 = math.exp %90 : vector<4x8x8xf32>
    %cst_34 = arith.constant dense<0.000000e+00> : vector<4x8xf32>
    %92 = vector.multi_reduction <add>, %91, %cst_34 [2] : vector<4x8x8xf32> to vector<4x8xf32>
    %93 = vector.shape_cast %92 : vector<4x8xf32> to vector<4x8x1xf32>
    %94 = tpu.reciprocal %93 {approx = true} : vector<4x8x1xf32> -> vector<4x8x1xf32>
    %95 = vector.broadcast %94 : vector<4x8x1xf32> to vector<4x8x8xf32>
    %96 = arith.mulf %91, %95 : vector<4x8x8xf32>
    %97 = arith.truncf %96 : vector<4x8x8xf32> to vector<4x8x8xbf16>
    "tpu.trace_start"() <{level = 10 : i32, message = "nqk,nkd->nqd"}> : () -> ()
    %cst_35 = arith.constant dense<0.000000e+00> : vector<4x8x8xf32>
    %98 = tpu.matmul %97, %85, %cst_35 {dimension_numbers = #tpu.dot_dimension_numbers<[2], [1], [1], [2], [0, 0, 0, 1, 1, 2], [0], [0]>} : vector<4x8x8xbf16>, vector<4x8x8xbf16>, vector<4x8x8xf32> -> vector<4x8x8xf32>
    "tpu.trace_stop"() : () -> ()
    %99 = vector.shape_cast %98 : vector<4x8x8xf32> to vector<32x8xf32>
    %100 = tpu.concatenate %39, %59, %79, %99 in 1 : vector<32x8xf32>, vector<32x8xf32>, vector<32x8xf32>, vector<32x8xf32> -> vector<32x32xf32>
    %101 = arith.truncf %100 : vector<32x32xf32> to vector<32x32xbf16>
    %cst_36 = arith.constant dense<0.000000e+00> : vector<32x32xf32>
    %102 = tpu.matmul %101, %11, %cst_36 {dimension_numbers = #tpu.dot_dimension_numbers<[1], [0], [0], [1], [0, 0, 1, 1], [], []>} : vector<32x32xbf16>, vector<32x32xbf16>, vector<32x32xf32> -> vector<32x32xf32>
    %103 = vector.broadcast %13 : vector<1x32xf32> to vector<32x32xf32>
    %104 = arith.addf %102, %103 : vector<32x32xf32>
    %105 = arith.addf %104, %0 : vector<32x32xf32>
    %c0_37 = arith.constant 0 : index
    %c0_38 = arith.constant 0 : index
    %c0_39 = arith.constant 0 : index
    %106 = vector.load %arg8[%c0_37, %c0_38, %c0_39] : memref<2x1x32xf32, #tpu.memory_space<vmem>>, vector<1x1x32xf32>
    %107 = vector.shape_cast %106 : vector<1x1x32xf32> to vector<1x32xf32>
    %c0_40 = arith.constant 0 : index
    %c0_41 = arith.constant 0 : index
    %c0_42 = arith.constant 0 : index
    %108 = vector.load %arg9[%c0_40, %c0_41, %c0_42] : memref<2x1x32xf32, #tpu.memory_space<vmem>>, vector<1x1x32xf32>
    %109 = vector.shape_cast %108 : vector<1x1x32xf32> to vector<1x32xf32>
    %cst_43 = arith.constant dense<0.000000e+00> : vector<32xf32>
    %110 = vector.multi_reduction <add>, %105, %cst_43 [1] : vector<32x32xf32> to vector<32xf32>
    %111 = vector.shape_cast %110 : vector<32xf32> to vector<32x1xf32>
    %cst_44 = arith.constant 3.200000e+01 : f32
    %112 = vector.broadcast %cst_44 : f32 to vector<32x1xf32>
    %113 = arith.divf %111, %112 : vector<32x1xf32>
    %114 = vector.broadcast %113 : vector<32x1xf32> to vector<32x32xf32>
    %115 = arith.subf %105, %114 : vector<32x32xf32>
    %116 = arith.mulf %115, %115 : vector<32x32xf32>
    %cst_45 = arith.constant dense<0.000000e+00> : vector<32xf32>
    %117 = vector.multi_reduction <add>, %116, %cst_45 [1] : vector<32x32xf32> to vector<32xf32>
    %118 = vector.shape_cast %117 : vector<32xf32> to vector<32x1xf32>
    %cst_46 = arith.constant 3.200000e+01 : f32
    %119 = vector.broadcast %cst_46 : f32 to vector<32x1xf32>
    %120 = arith.divf %118, %119 : vector<32x1xf32>
    %121 = vector.broadcast %113 : vector<32x1xf32> to vector<32x32xf32>
    %122 = arith.subf %105, %121 : vector<32x32xf32>
    %cst_47 = arith.constant 9.99999974E-6 : f32
    %123 = vector.broadcast %cst_47 : f32 to vector<32x1xf32>
    %124 = arith.addf %120, %123 : vector<32x1xf32>
    %125 = math.rsqrt %124 : vector<32x1xf32>
    %126 = vector.broadcast %125 : vector<32x1xf32> to vector<32x32xf32>
    %127 = arith.mulf %122, %126 : vector<32x32xf32>
    %128 = vector.broadcast %107 : vector<1x32xf32> to vector<32x32xf32>
    %129 = arith.mulf %127, %128 : vector<32x32xf32>
    %130 = vector.broadcast %109 : vector<1x32xf32> to vector<32x32xf32>
    %131 = arith.addf %129, %130 : vector<32x32xf32>
    %132 = arith.truncf %131 : vector<32x32xf32> to vector<32x32xbf16>
    %c0_48 = arith.constant 0 : index
    %c0_49 = arith.constant 0 : index
    %c0_50 = arith.constant 0 : index
    %133 = vector.load %arg10[%c0_48, %c0_49, %c0_50] : memref<2x32x32xbf16, #tpu.memory_space<vmem>>, vector<1x32x32xbf16>
    %134 = vector.shape_cast %133 : vector<1x32x32xbf16> to vector<32x32xbf16>
    %c0_51 = arith.constant 0 : index
    %c0_52 = arith.constant 0 : index
    %c0_53 = arith.constant 0 : index
    %135 = vector.load %arg11[%c0_51, %c0_52, %c0_53] : memref<2x32x32xbf16, #tpu.memory_space<vmem>>, vector<1x32x32xbf16>
    %136 = vector.shape_cast %135 : vector<1x32x32xbf16> to vector<32x32xbf16>
    %c0_54 = arith.constant 0 : index
    %c0_55 = arith.constant 0 : index
    %c0_56 = arith.constant 0 : index
    %137 = vector.load %arg12[%c0_54, %c0_55, %c0_56] : memref<2x32x32xbf16, #tpu.memory_space<vmem>>, vector<1x32x32xbf16>
    %138 = vector.shape_cast %137 : vector<1x32x32xbf16> to vector<32x32xbf16>
    %c0_57 = arith.constant 0 : index
    %c0_58 = arith.constant 0 : index
    %c0_59 = arith.constant 0 : index
    %139 = vector.load %arg13[%c0_57, %c0_58, %c0_59] : memref<2x32x32xbf16, #tpu.memory_space<vmem>>, vector<1x32x32xbf16>
    %140 = vector.shape_cast %139 : vector<1x32x32xbf16> to vector<32x32xbf16>
    %c0_60 = arith.constant 0 : index
    %c0_61 = arith.constant 0 : index
    %c0_62 = arith.constant 0 : index
    %141 = vector.load %arg14[%c0_60, %c0_61, %c0_62] : memref<2x1x32xf32, #tpu.memory_space<vmem>>, vector<1x1x32xf32>
    %142 = vector.shape_cast %141 : vector<1x1x32xf32> to vector<1x32xf32>
    %cst_63 = arith.constant dense<0.000000e+00> : vector<32x32xf32>
    %143 = tpu.matmul %132, %134, %cst_63 {dimension_numbers = #tpu.dot_dimension_numbers<[1], [0], [0], [1], [0, 0, 1, 1], [], []>} : vector<32x32xbf16>, vector<32x32xbf16>, vector<32x32xf32> -> vector<32x32xf32>
    %cst_64 = arith.constant dense<0.000000e+00> : vector<32x32xf32>
    %144 = tpu.matmul %2, %136, %cst_64 {dimension_numbers = #tpu.dot_dimension_numbers<[1], [0], [0], [1], [0, 0, 1, 1], [], []>} : vector<32x32xbf16>, vector<32x32xbf16>, vector<32x32xf32> -> vector<32x32xf32>
    %cst_65 = arith.constant dense<0.000000e+00> : vector<32x32xf32>
    %145 = tpu.matmul %2, %138, %cst_65 {dimension_numbers = #tpu.dot_dimension_numbers<[1], [0], [0], [1], [0, 0, 1, 1], [], []>} : vector<32x32xbf16>, vector<32x32xbf16>, vector<32x32xf32> -> vector<32x32xf32>
    %146 = arith.truncf %143 : vector<32x32xf32> to vector<32x32xbf16>
    %147 = arith.truncf %144 : vector<32x32xf32> to vector<32x32xbf16>
    %148 = arith.truncf %145 : vector<32x32xf32> to vector<32x32xbf16>
    %149 = vector.extract_strided_slice %146 {offsets = [0, 0], sizes = [32, 8], strides = [1, 1]} : vector<32x32xbf16> to vector<32x8xbf16>
    %150 = vector.shape_cast %149 : vector<32x8xbf16> to vector<4x8x8xbf16>
    %151 = vector.extract_strided_slice %147 {offsets = [0, 0], sizes = [32, 8], strides = [1, 1]} : vector<32x32xbf16> to vector<32x8xbf16>
    %152 = vector.shape_cast %151 : vector<32x8xbf16> to vector<4x8x8xbf16>
    %153 = vector.extract_strided_slice %148 {offsets = [0, 0], sizes = [32, 8], strides = [1, 1]} : vector<32x32xbf16> to vector<32x8xbf16>
    %154 = vector.shape_cast %153 : vector<32x8xbf16> to vector<4x8x8xbf16>
    "tpu.trace_start"() <{level = 10 : i32, message = "nqd,nkd->nqk"}> : () -> ()
    %cst_66 = arith.constant dense<0.000000e+00> : vector<4x8x8xf32>
    %155 = tpu.matmul %150, %152, %cst_66 {dimension_numbers = #tpu.dot_dimension_numbers<[2], [2], [1], [1], [0, 0, 0, 1, 1, 1], [0], [0]>} : vector<4x8x8xbf16>, vector<4x8x8xbf16>, vector<4x8x8xf32> -> vector<4x8x8xf32>
    "tpu.trace_stop"() : () -> ()
    %cst_67 = arith.constant dense<0xFF800000> : vector<4x8xf32>
    %156 = vector.multi_reduction <maximumf>, %155, %cst_67 [2] : vector<4x8x8xf32> to vector<4x8xf32>
    %157 = vector.shape_cast %156 : vector<4x8xf32> to vector<4x8x1xf32>
    %158 = vector.broadcast %157 : vector<4x8x1xf32> to vector<4x8x8xf32>
    %159 = arith.subf %155, %158 : vector<4x8x8xf32>
    %160 = math.exp %159 : vector<4x8x8xf32>
    %cst_68 = arith.constant dense<0.000000e+00> : vector<4x8xf32>
    %161 = vector.multi_reduction <add>, %160, %cst_68 [2] : vector<4x8x8xf32> to vector<4x8xf32>
    %162 = vector.shape_cast %161 : vector<4x8xf32> to vector<4x8x1xf32>
    %163 = tpu.reciprocal %162 {approx = true} : vector<4x8x1xf32> -> vector<4x8x1xf32>
    %164 = vector.broadcast %163 : vector<4x8x1xf32> to vector<4x8x8xf32>
    %165 = arith.mulf %160, %164 : vector<4x8x8xf32>
    %166 = arith.truncf %165 : vector<4x8x8xf32> to vector<4x8x8xbf16>
    "tpu.trace_start"() <{level = 10 : i32, message = "nqk,nkd->nqd"}> : () -> ()
    %cst_69 = arith.constant dense<0.000000e+00> : vector<4x8x8xf32>
    %167 = tpu.matmul %166, %154, %cst_69 {dimension_numbers = #tpu.dot_dimension_numbers<[2], [1], [1], [2], [0, 0, 0, 1, 1, 2], [0], [0]>} : vector<4x8x8xbf16>, vector<4x8x8xbf16>, vector<4x8x8xf32> -> vector<4x8x8xf32>
    "tpu.trace_stop"() : () -> ()
    %168 = vector.shape_cast %167 : vector<4x8x8xf32> to vector<32x8xf32>
    %169 = vector.extract_strided_slice %146 {offsets = [0, 8], sizes = [32, 8], strides = [1, 1]} : vector<32x32xbf16> to vector<32x8xbf16>
    %170 = vector.shape_cast %169 : vector<32x8xbf16> to vector<4x8x8xbf16>
    %171 = vector.extract_strided_slice %147 {offsets = [0, 8], sizes = [32, 8], strides = [1, 1]} : vector<32x32xbf16> to vector<32x8xbf16>
    %172 = vector.shape_cast %171 : vector<32x8xbf16> to vector<4x8x8xbf16>
    %173 = vector.extract_strided_slice %148 {offsets = [0, 8], sizes = [32, 8], strides = [1, 1]} : vector<32x32xbf16> to vector<32x8xbf16>
    %174 = vector.shape_cast %173 : vector<32x8xbf16> to vector<4x8x8xbf16>
    "tpu.trace_start"() <{level = 10 : i32, message = "nqd,nkd->nqk"}> : () -> ()
    %cst_70 = arith.constant dense<0.000000e+00> : vector<4x8x8xf32>
    %175 = tpu.matmul %170, %172, %cst_70 {dimension_numbers = #tpu.dot_dimension_numbers<[2], [2], [1], [1], [0, 0, 0, 1, 1, 1], [0], [0]>} : vector<4x8x8xbf16>, vector<4x8x8xbf16>, vector<4x8x8xf32> -> vector<4x8x8xf32>
    "tpu.trace_stop"() : () -> ()
    %cst_71 = arith.constant dense<0xFF800000> : vector<4x8xf32>
    %176 = vector.multi_reduction <maximumf>, %175, %cst_71 [2] : vector<4x8x8xf32> to vector<4x8xf32>
    %177 = vector.shape_cast %176 : vector<4x8xf32> to vector<4x8x1xf32>
    %178 = vector.broadcast %177 : vector<4x8x1xf32> to vector<4x8x8xf32>
    %179 = arith.subf %175, %178 : vector<4x8x8xf32>
    %180 = math.exp %179 : vector<4x8x8xf32>
    %cst_72 = arith.constant dense<0.000000e+00> : vector<4x8xf32>
    %181 = vector.multi_reduction <add>, %180, %cst_72 [2] : vector<4x8x8xf32> to vector<4x8xf32>
    %182 = vector.shape_cast %181 : vector<4x8xf32> to vector<4x8x1xf32>
    %183 = tpu.reciprocal %182 {approx = true} : vector<4x8x1xf32> -> vector<4x8x1xf32>
    %184 = vector.broadcast %183 : vector<4x8x1xf32> to vector<4x8x8xf32>
    %185 = arith.mulf %180, %184 : vector<4x8x8xf32>
    %186 = arith.truncf %185 : vector<4x8x8xf32> to vector<4x8x8xbf16>
    "tpu.trace_start"() <{level = 10 : i32, message = "nqk,nkd->nqd"}> : () -> ()
    %cst_73 = arith.constant dense<0.000000e+00> : vector<4x8x8xf32>
    %187 = tpu.matmul %186, %174, %cst_73 {dimension_numbers = #tpu.dot_dimension_numbers<[2], [1], [1], [2], [0, 0, 0, 1, 1, 2], [0], [0]>} : vector<4x8x8xbf16>, vector<4x8x8xbf16>, vector<4x8x8xf32> -> vector<4x8x8xf32>
    "tpu.trace_stop"() : () -> ()
    %188 = vector.shape_cast %187 : vector<4x8x8xf32> to vector<32x8xf32>
    %189 = vector.extract_strided_slice %146 {offsets = [0, 16], sizes = [32, 8], strides = [1, 1]} : vector<32x32xbf16> to vector<32x8xbf16>
    %190 = vector.shape_cast %189 : vector<32x8xbf16> to vector<4x8x8xbf16>
    %191 = vector.extract_strided_slice %147 {offsets = [0, 16], sizes = [32, 8], strides = [1, 1]} : vector<32x32xbf16> to vector<32x8xbf16>
    %192 = vector.shape_cast %191 : vector<32x8xbf16> to vector<4x8x8xbf16>
    %193 = vector.extract_strided_slice %148 {offsets = [0, 16], sizes = [32, 8], strides = [1, 1]} : vector<32x32xbf16> to vector<32x8xbf16>
    %194 = vector.shape_cast %193 : vector<32x8xbf16> to vector<4x8x8xbf16>
    "tpu.trace_start"() <{level = 10 : i32, message = "nqd,nkd->nqk"}> : () -> ()
    %cst_74 = arith.constant dense<0.000000e+00> : vector<4x8x8xf32>
    %195 = tpu.matmul %190, %192, %cst_74 {dimension_numbers = #tpu.dot_dimension_numbers<[2], [2], [1], [1], [0, 0, 0, 1, 1, 1], [0], [0]>} : vector<4x8x8xbf16>, vector<4x8x8xbf16>, vector<4x8x8xf32> -> vector<4x8x8xf32>
    "tpu.trace_stop"() : () -> ()
    %cst_75 = arith.constant dense<0xFF800000> : vector<4x8xf32>
    %196 = vector.multi_reduction <maximumf>, %195, %cst_75 [2] : vector<4x8x8xf32> to vector<4x8xf32>
    %197 = vector.shape_cast %196 : vector<4x8xf32> to vector<4x8x1xf32>
    %198 = vector.broadcast %197 : vector<4x8x1xf32> to vector<4x8x8xf32>
    %199 = arith.subf %195, %198 : vector<4x8x8xf32>
    %200 = math.exp %199 : vector<4x8x8xf32>
    %cst_76 = arith.constant dense<0.000000e+00> : vector<4x8xf32>
    %201 = vector.multi_reduction <add>, %200, %cst_76 [2] : vector<4x8x8xf32> to vector<4x8xf32>
    %202 = vector.shape_cast %201 : vector<4x8xf32> to vector<4x8x1xf32>
    %203 = tpu.reciprocal %202 {approx = true} : vector<4x8x1xf32> -> vector<4x8x1xf32>
    %204 = vector.broadcast %203 : vector<4x8x1xf32> to vector<4x8x8xf32>
    %205 = arith.mulf %200, %204 : vector<4x8x8xf32>
    %206 = arith.truncf %205 : vector<4x8x8xf32> to vector<4x8x8xbf16>
    "tpu.trace_start"() <{level = 10 : i32, message = "nqk,nkd->nqd"}> : () -> ()
    %cst_77 = arith.constant dense<0.000000e+00> : vector<4x8x8xf32>
    %207 = tpu.matmul %206, %194, %cst_77 {dimension_numbers = #tpu.dot_dimension_numbers<[2], [1], [1], [2], [0, 0, 0, 1, 1, 2], [0], [0]>} : vector<4x8x8xbf16>, vector<4x8x8xbf16>, vector<4x8x8xf32> -> vector<4x8x8xf32>
    "tpu.trace_stop"() : () -> ()
    %208 = vector.shape_cast %207 : vector<4x8x8xf32> to vector<32x8xf32>
    %209 = vector.extract_strided_slice %146 {offsets = [0, 24], sizes = [32, 8], strides = [1, 1]} : vector<32x32xbf16> to vector<32x8xbf16>
    %210 = vector.shape_cast %209 : vector<32x8xbf16> to vector<4x8x8xbf16>
    %211 = vector.extract_strided_slice %147 {offsets = [0, 24], sizes = [32, 8], strides = [1, 1]} : vector<32x32xbf16> to vector<32x8xbf16>
    %212 = vector.shape_cast %211 : vector<32x8xbf16> to vector<4x8x8xbf16>
    %213 = vector.extract_strided_slice %148 {offsets = [0, 24], sizes = [32, 8], strides = [1, 1]} : vector<32x32xbf16> to vector<32x8xbf16>
    %214 = vector.shape_cast %213 : vector<32x8xbf16> to vector<4x8x8xbf16>
    "tpu.trace_start"() <{level = 10 : i32, message = "nqd,nkd->nqk"}> : () -> ()
    %cst_78 = arith.constant dense<0.000000e+00> : vector<4x8x8xf32>
    %215 = tpu.matmul %210, %212, %cst_78 {dimension_numbers = #tpu.dot_dimension_numbers<[2], [2], [1], [1], [0, 0, 0, 1, 1, 1], [0], [0]>} : vector<4x8x8xbf16>, vector<4x8x8xbf16>, vector<4x8x8xf32> -> vector<4x8x8xf32>
    "tpu.trace_stop"() : () -> ()
    %cst_79 = arith.constant dense<0xFF800000> : vector<4x8xf32>
    %216 = vector.multi_reduction <maximumf>, %215, %cst_79 [2] : vector<4x8x8xf32> to vector<4x8xf32>
    %217 = vector.shape_cast %216 : vector<4x8xf32> to vector<4x8x1xf32>
    %218 = vector.broadcast %217 : vector<4x8x1xf32> to vector<4x8x8xf32>
    %219 = arith.subf %215, %218 : vector<4x8x8xf32>
    %220 = math.exp %219 : vector<4x8x8xf32>
    %cst_80 = arith.constant dense<0.000000e+00> : vector<4x8xf32>
    %221 = vector.multi_reduction <add>, %220, %cst_80 [2] : vector<4x8x8xf32> to vector<4x8xf32>
    %222 = vector.shape_cast %221 : vector<4x8xf32> to vector<4x8x1xf32>
    %223 = tpu.reciprocal %222 {approx = true} : vector<4x8x1xf32> -> vector<4x8x1xf32>
    %224 = vector.broadcast %223 : vector<4x8x1xf32> to vector<4x8x8xf32>
    %225 = arith.mulf %220, %224 : vector<4x8x8xf32>
    %226 = arith.truncf %225 : vector<4x8x8xf32> to vector<4x8x8xbf16>
    "tpu.trace_start"() <{level = 10 : i32, message = "nqk,nkd->nqd"}> : () -> ()
    %cst_81 = arith.constant dense<0.000000e+00> : vector<4x8x8xf32>
    %227 = tpu.matmul %226, %214, %cst_81 {dimension_numbers = #tpu.dot_dimension_numbers<[2], [1], [1], [2], [0, 0, 0, 1, 1, 2], [0], [0]>} : vector<4x8x8xbf16>, vector<4x8x8xbf16>, vector<4x8x8xf32> -> vector<4x8x8xf32>
    "tpu.trace_stop"() : () -> ()
    %228 = vector.shape_cast %227 : vector<4x8x8xf32> to vector<32x8xf32>
    %229 = tpu.concatenate %168, %188, %208, %228 in 1 : vector<32x8xf32>, vector<32x8xf32>, vector<32x8xf32>, vector<32x8xf32> -> vector<32x32xf32>
    %230 = arith.truncf %229 : vector<32x32xf32> to vector<32x32xbf16>
    %cst_82 = arith.constant dense<0.000000e+00> : vector<32x32xf32>
    %231 = tpu.matmul %230, %140, %cst_82 {dimension_numbers = #tpu.dot_dimension_numbers<[1], [0], [0], [1], [0, 0, 1, 1], [], []>} : vector<32x32xbf16>, vector<32x32xbf16>, vector<32x32xf32> -> vector<32x32xf32>
    %232 = vector.broadcast %142 : vector<1x32xf32> to vector<32x32xf32>
    %233 = arith.addf %231, %232 : vector<32x32xf32>
    %234 = arith.addf %233, %131 : vector<32x32xf32>
    %c0_83 = arith.constant 0 : index
    %c0_84 = arith.constant 0 : index
    %c0_85 = arith.constant 0 : index
    %235 = vector.load %arg15[%c0_83, %c0_84, %c0_85] : memref<2x1x32xf32, #tpu.memory_space<vmem>>, vector<1x1x32xf32>
    %236 = vector.shape_cast %235 : vector<1x1x32xf32> to vector<1x32xf32>
    %c0_86 = arith.constant 0 : index
    %c0_87 = arith.constant 0 : index
    %c0_88 = arith.constant 0 : index
    %237 = vector.load %arg16[%c0_86, %c0_87, %c0_88] : memref<2x1x32xf32, #tpu.memory_space<vmem>>, vector<1x1x32xf32>
    %238 = vector.shape_cast %237 : vector<1x1x32xf32> to vector<1x32xf32>
    %cst_89 = arith.constant dense<0.000000e+00> : vector<32xf32>
    %239 = vector.multi_reduction <add>, %234, %cst_89 [1] : vector<32x32xf32> to vector<32xf32>
    %240 = vector.shape_cast %239 : vector<32xf32> to vector<32x1xf32>
    %cst_90 = arith.constant 3.200000e+01 : f32
    %241 = vector.broadcast %cst_90 : f32 to vector<32x1xf32>
    %242 = arith.divf %240, %241 : vector<32x1xf32>
    %243 = vector.broadcast %242 : vector<32x1xf32> to vector<32x32xf32>
    %244 = arith.subf %234, %243 : vector<32x32xf32>
    %245 = arith.mulf %244, %244 : vector<32x32xf32>
    %cst_91 = arith.constant dense<0.000000e+00> : vector<32xf32>
    %246 = vector.multi_reduction <add>, %245, %cst_91 [1] : vector<32x32xf32> to vector<32xf32>
    %247 = vector.shape_cast %246 : vector<32xf32> to vector<32x1xf32>
    %cst_92 = arith.constant 3.200000e+01 : f32
    %248 = vector.broadcast %cst_92 : f32 to vector<32x1xf32>
    %249 = arith.divf %247, %248 : vector<32x1xf32>
    %250 = vector.broadcast %242 : vector<32x1xf32> to vector<32x32xf32>
    %251 = arith.subf %234, %250 : vector<32x32xf32>
    %cst_93 = arith.constant 9.99999974E-6 : f32
    %252 = vector.broadcast %cst_93 : f32 to vector<32x1xf32>
    %253 = arith.addf %249, %252 : vector<32x1xf32>
    %254 = math.rsqrt %253 : vector<32x1xf32>
    %255 = vector.broadcast %254 : vector<32x1xf32> to vector<32x32xf32>
    %256 = arith.mulf %251, %255 : vector<32x32xf32>
    %257 = vector.broadcast %236 : vector<1x32xf32> to vector<32x32xf32>
    %258 = arith.mulf %256, %257 : vector<32x32xf32>
    %259 = vector.broadcast %238 : vector<1x32xf32> to vector<32x32xf32>
    %260 = arith.addf %258, %259 : vector<32x32xf32>
    %261 = arith.truncf %260 : vector<32x32xf32> to vector<32x32xbf16>
    %c0_94 = arith.constant 0 : index
    %c0_95 = arith.constant 0 : index
    %c0_96 = arith.constant 0 : index
    %262 = vector.load %arg17[%c0_94, %c0_95, %c0_96] : memref<2x32x128xbf16, #tpu.memory_space<vmem>>, vector<1x32x128xbf16>
    %263 = vector.shape_cast %262 : vector<1x32x128xbf16> to vector<32x128xbf16>
    %cst_97 = arith.constant dense<0.000000e+00> : vector<32x128xf32>
    %264 = tpu.matmul %261, %263, %cst_97 {dimension_numbers = #tpu.dot_dimension_numbers<[1], [0], [0], [1], [0, 0, 1, 1], [], []>} : vector<32x32xbf16>, vector<32x128xbf16>, vector<32x128xf32> -> vector<32x128xf32>
    %c0_98 = arith.constant 0 : index
    %c0_99 = arith.constant 0 : index
    %c0_100 = arith.constant 0 : index
    %265 = vector.load %arg18[%c0_98, %c0_99, %c0_100] : memref<2x1x128xf32, #tpu.memory_space<vmem>>, vector<1x1x128xf32>
    %266 = vector.shape_cast %265 : vector<1x1x128xf32> to vector<1x128xf32>
    %267 = vector.broadcast %266 : vector<1x128xf32> to vector<32x128xf32>
    %268 = arith.addf %264, %267 : vector<32x128xf32>
    %cst_101 = arith.constant 0.000000e+00 : f32
    %269 = vector.broadcast %cst_101 : f32 to vector<32x128xf32>
    %270 = arith.maximumf %268, %269 : vector<32x128xf32>
    %271 = arith.truncf %270 : vector<32x128xf32> to vector<32x128xbf16>
    %c0_102 = arith.constant 0 : index
    %c0_103 = arith.constant 0 : index
    %c0_104 = arith.constant 0 : index
    %272 = vector.load %arg19[%c0_102, %c0_103, %c0_104] : memref<2x128x32xbf16, #tpu.memory_space<vmem>>, vector<1x128x32xbf16>
    %273 = vector.shape_cast %272 : vector<1x128x32xbf16> to vector<128x32xbf16>
    %cst_105 = arith.constant dense<0.000000e+00> : vector<32x32xf32>
    %274 = tpu.matmul %271, %273, %cst_105 {dimension_numbers = #tpu.dot_dimension_numbers<[1], [0], [0], [1], [0, 0, 1, 1], [], []>} : vector<32x128xbf16>, vector<128x32xbf16>, vector<32x32xf32> -> vector<32x32xf32>
    %c0_106 = arith.constant 0 : index
    %c0_107 = arith.constant 0 : index
    %c0_108 = arith.constant 0 : index
    %275 = vector.load %arg20[%c0_106, %c0_107, %c0_108] : memref<2x1x32xf32, #tpu.memory_space<vmem>>, vector<1x1x32xf32>
    %276 = vector.shape_cast %275 : vector<1x1x32xf32> to vector<1x32xf32>
    %277 = vector.broadcast %276 : vector<1x32xf32> to vector<32x32xf32>
    %278 = arith.addf %274, %277 : vector<32x32xf32>
    %279 = arith.addf %278, %260 : vector<32x32xf32>
    %c0_109 = arith.constant 0 : index
    %c0_110 = arith.constant 0 : index
    %c0_111 = arith.constant 0 : index
    %280 = vector.load %arg21[%c0_109, %c0_110, %c0_111] : memref<2x1x32xf32, #tpu.memory_space<vmem>>, vector<1x1x32xf32>
    %281 = vector.shape_cast %280 : vector<1x1x32xf32> to vector<1x32xf32>
    %c0_112 = arith.constant 0 : index
    %c0_113 = arith.constant 0 : index
    %c0_114 = arith.constant 0 : index
    %282 = vector.load %arg22[%c0_112, %c0_113, %c0_114] : memref<2x1x32xf32, #tpu.memory_space<vmem>>, vector<1x1x32xf32>
    %283 = vector.shape_cast %282 : vector<1x1x32xf32> to vector<1x32xf32>
    %cst_115 = arith.constant dense<0.000000e+00> : vector<32xf32>
    %284 = vector.multi_reduction <add>, %279, %cst_115 [1] : vector<32x32xf32> to vector<32xf32>
    %285 = vector.shape_cast %284 : vector<32xf32> to vector<32x1xf32>
    %cst_116 = arith.constant 3.200000e+01 : f32
    %286 = vector.broadcast %cst_116 : f32 to vector<32x1xf32>
    %287 = arith.divf %285, %286 : vector<32x1xf32>
    %288 = vector.broadcast %287 : vector<32x1xf32> to vector<32x32xf32>
    %289 = arith.subf %279, %288 : vector<32x32xf32>
    %290 = arith.mulf %289, %289 : vector<32x32xf32>
    %cst_117 = arith.constant dense<0.000000e+00> : vector<32xf32>
    %291 = vector.multi_reduction <add>, %290, %cst_117 [1] : vector<32x32xf32> to vector<32xf32>
    %292 = vector.shape_cast %291 : vector<32xf32> to vector<32x1xf32>
    %cst_118 = arith.constant 3.200000e+01 : f32
    %293 = vector.broadcast %cst_118 : f32 to vector<32x1xf32>
    %294 = arith.divf %292, %293 : vector<32x1xf32>
    %295 = vector.broadcast %287 : vector<32x1xf32> to vector<32x32xf32>
    %296 = arith.subf %279, %295 : vector<32x32xf32>
    %cst_119 = arith.constant 9.99999974E-6 : f32
    %297 = vector.broadcast %cst_119 : f32 to vector<32x1xf32>
    %298 = arith.addf %294, %297 : vector<32x1xf32>
    %299 = math.rsqrt %298 : vector<32x1xf32>
    %300 = vector.broadcast %299 : vector<32x1xf32> to vector<32x32xf32>
    %301 = arith.mulf %296, %300 : vector<32x32xf32>
    %302 = vector.broadcast %281 : vector<1x32xf32> to vector<32x32xf32>
    %303 = arith.mulf %301, %302 : vector<32x32xf32>
    %304 = vector.broadcast %283 : vector<1x32xf32> to vector<32x32xf32>
    %305 = arith.addf %303, %304 : vector<32x32xf32>
    %306 = arith.truncf %305 : vector<32x32xf32> to vector<32x32xbf16>
    %c1 = arith.constant 1 : index
    %c0_120 = arith.constant 0 : index
    %c0_121 = arith.constant 0 : index
    %307 = vector.load %arg3[%c1, %c0_120, %c0_121] : memref<2x32x32xbf16, #tpu.memory_space<vmem>>, vector<1x32x32xbf16>
    %308 = vector.shape_cast %307 : vector<1x32x32xbf16> to vector<32x32xbf16>
    %c1_122 = arith.constant 1 : index
    %c0_123 = arith.constant 0 : index
    %c0_124 = arith.constant 0 : index
    %309 = vector.load %arg4[%c1_122, %c0_123, %c0_124] : memref<2x32x32xbf16, #tpu.memory_space<vmem>>, vector<1x32x32xbf16>
    %310 = vector.shape_cast %309 : vector<1x32x32xbf16> to vector<32x32xbf16>
    %c1_125 = arith.constant 1 : index
    %c0_126 = arith.constant 0 : index
    %c0_127 = arith.constant 0 : index
    %311 = vector.load %arg5[%c1_125, %c0_126, %c0_127] : memref<2x32x32xbf16, #tpu.memory_space<vmem>>, vector<1x32x32xbf16>
    %312 = vector.shape_cast %311 : vector<1x32x32xbf16> to vector<32x32xbf16>
    %c1_128 = arith.constant 1 : index
    %c0_129 = arith.constant 0 : index
    %c0_130 = arith.constant 0 : index
    %313 = vector.load %arg6[%c1_128, %c0_129, %c0_130] : memref<2x32x32xbf16, #tpu.memory_space<vmem>>, vector<1x32x32xbf16>
    %314 = vector.shape_cast %313 : vector<1x32x32xbf16> to vector<32x32xbf16>
    %c1_131 = arith.constant 1 : index
    %c0_132 = arith.constant 0 : index
    %c0_133 = arith.constant 0 : index
    %315 = vector.load %arg7[%c1_131, %c0_132, %c0_133] : memref<2x1x32xf32, #tpu.memory_space<vmem>>, vector<1x1x32xf32>
    %316 = vector.shape_cast %315 : vector<1x1x32xf32> to vector<1x32xf32>
    %cst_134 = arith.constant dense<0.000000e+00> : vector<32x32xf32>
    %317 = tpu.matmul %306, %308, %cst_134 {dimension_numbers = #tpu.dot_dimension_numbers<[1], [0], [0], [1], [0, 0, 1, 1], [], []>} : vector<32x32xbf16>, vector<32x32xbf16>, vector<32x32xf32> -> vector<32x32xf32>
    %cst_135 = arith.constant dense<0.000000e+00> : vector<32x32xf32>
    %318 = tpu.matmul %306, %310, %cst_135 {dimension_numbers = #tpu.dot_dimension_numbers<[1], [0], [0], [1], [0, 0, 1, 1], [], []>} : vector<32x32xbf16>, vector<32x32xbf16>, vector<32x32xf32> -> vector<32x32xf32>
    %cst_136 = arith.constant dense<0.000000e+00> : vector<32x32xf32>
    %319 = tpu.matmul %306, %312, %cst_136 {dimension_numbers = #tpu.dot_dimension_numbers<[1], [0], [0], [1], [0, 0, 1, 1], [], []>} : vector<32x32xbf16>, vector<32x32xbf16>, vector<32x32xf32> -> vector<32x32xf32>
    %320 = arith.truncf %317 : vector<32x32xf32> to vector<32x32xbf16>
    %321 = arith.truncf %318 : vector<32x32xf32> to vector<32x32xbf16>
    %322 = arith.truncf %319 : vector<32x32xf32> to vector<32x32xbf16>
    %323 = vector.extract_strided_slice %320 {offsets = [0, 0], sizes = [32, 8], strides = [1, 1]} : vector<32x32xbf16> to vector<32x8xbf16>
    %324 = vector.shape_cast %323 : vector<32x8xbf16> to vector<4x8x8xbf16>
    %325 = vector.extract_strided_slice %321 {offsets = [0, 0], sizes = [32, 8], strides = [1, 1]} : vector<32x32xbf16> to vector<32x8xbf16>
    %326 = vector.shape_cast %325 : vector<32x8xbf16> to vector<4x8x8xbf16>
    %327 = vector.extract_strided_slice %322 {offsets = [0, 0], sizes = [32, 8], strides = [1, 1]} : vector<32x32xbf16> to vector<32x8xbf16>
    %328 = vector.shape_cast %327 : vector<32x8xbf16> to vector<4x8x8xbf16>
    "tpu.trace_start"() <{level = 10 : i32, message = "nqd,nkd->nqk"}> : () -> ()
    %cst_137 = arith.constant dense<0.000000e+00> : vector<4x8x8xf32>
    %329 = tpu.matmul %324, %326, %cst_137 {dimension_numbers = #tpu.dot_dimension_numbers<[2], [2], [1], [1], [0, 0, 0, 1, 1, 1], [0], [0]>} : vector<4x8x8xbf16>, vector<4x8x8xbf16>, vector<4x8x8xf32> -> vector<4x8x8xf32>
    "tpu.trace_stop"() : () -> ()
    %cst_138 = arith.constant dense<0xFF800000> : vector<4x8xf32>
    %330 = vector.multi_reduction <maximumf>, %329, %cst_138 [2] : vector<4x8x8xf32> to vector<4x8xf32>
    %331 = vector.shape_cast %330 : vector<4x8xf32> to vector<4x8x1xf32>
    %332 = vector.broadcast %331 : vector<4x8x1xf32> to vector<4x8x8xf32>
    %333 = arith.subf %329, %332 : vector<4x8x8xf32>
    %334 = math.exp %333 : vector<4x8x8xf32>
    %cst_139 = arith.constant dense<0.000000e+00> : vector<4x8xf32>
    %335 = vector.multi_reduction <add>, %334, %cst_139 [2] : vector<4x8x8xf32> to vector<4x8xf32>
    %336 = vector.shape_cast %335 : vector<4x8xf32> to vector<4x8x1xf32>
    %337 = tpu.reciprocal %336 {approx = true} : vector<4x8x1xf32> -> vector<4x8x1xf32>
    %338 = vector.broadcast %337 : vector<4x8x1xf32> to vector<4x8x8xf32>
    %339 = arith.mulf %334, %338 : vector<4x8x8xf32>
    %340 = arith.truncf %339 : vector<4x8x8xf32> to vector<4x8x8xbf16>
    "tpu.trace_start"() <{level = 10 : i32, message = "nqk,nkd->nqd"}> : () -> ()
    %cst_140 = arith.constant dense<0.000000e+00> : vector<4x8x8xf32>
    %341 = tpu.matmul %340, %328, %cst_140 {dimension_numbers = #tpu.dot_dimension_numbers<[2], [1], [1], [2], [0, 0, 0, 1, 1, 2], [0], [0]>} : vector<4x8x8xbf16>, vector<4x8x8xbf16>, vector<4x8x8xf32> -> vector<4x8x8xf32>
    "tpu.trace_stop"() : () -> ()
    %342 = vector.shape_cast %341 : vector<4x8x8xf32> to vector<32x8xf32>
    %343 = vector.extract_strided_slice %320 {offsets = [0, 8], sizes = [32, 8], strides = [1, 1]} : vector<32x32xbf16> to vector<32x8xbf16>
    %344 = vector.shape_cast %343 : vector<32x8xbf16> to vector<4x8x8xbf16>
    %345 = vector.extract_strided_slice %321 {offsets = [0, 8], sizes = [32, 8], strides = [1, 1]} : vector<32x32xbf16> to vector<32x8xbf16>
    %346 = vector.shape_cast %345 : vector<32x8xbf16> to vector<4x8x8xbf16>
    %347 = vector.extract_strided_slice %322 {offsets = [0, 8], sizes = [32, 8], strides = [1, 1]} : vector<32x32xbf16> to vector<32x8xbf16>
    %348 = vector.shape_cast %347 : vector<32x8xbf16> to vector<4x8x8xbf16>
    "tpu.trace_start"() <{level = 10 : i32, message = "nqd,nkd->nqk"}> : () -> ()
    %cst_141 = arith.constant dense<0.000000e+00> : vector<4x8x8xf32>
    %349 = tpu.matmul %344, %346, %cst_141 {dimension_numbers = #tpu.dot_dimension_numbers<[2], [2], [1], [1], [0, 0, 0, 1, 1, 1], [0], [0]>} : vector<4x8x8xbf16>, vector<4x8x8xbf16>, vector<4x8x8xf32> -> vector<4x8x8xf32>
    "tpu.trace_stop"() : () -> ()
    %cst_142 = arith.constant dense<0xFF800000> : vector<4x8xf32>
    %350 = vector.multi_reduction <maximumf>, %349, %cst_142 [2] : vector<4x8x8xf32> to vector<4x8xf32>
    %351 = vector.shape_cast %350 : vector<4x8xf32> to vector<4x8x1xf32>
    %352 = vector.broadcast %351 : vector<4x8x1xf32> to vector<4x8x8xf32>
    %353 = arith.subf %349, %352 : vector<4x8x8xf32>
    %354 = math.exp %353 : vector<4x8x8xf32>
    %cst_143 = arith.constant dense<0.000000e+00> : vector<4x8xf32>
    %355 = vector.multi_reduction <add>, %354, %cst_143 [2] : vector<4x8x8xf32> to vector<4x8xf32>
    %356 = vector.shape_cast %355 : vector<4x8xf32> to vector<4x8x1xf32>
    %357 = tpu.reciprocal %356 {approx = true} : vector<4x8x1xf32> -> vector<4x8x1xf32>
    %358 = vector.broadcast %357 : vector<4x8x1xf32> to vector<4x8x8xf32>
    %359 = arith.mulf %354, %358 : vector<4x8x8xf32>
    %360 = arith.truncf %359 : vector<4x8x8xf32> to vector<4x8x8xbf16>
    "tpu.trace_start"() <{level = 10 : i32, message = "nqk,nkd->nqd"}> : () -> ()
    %cst_144 = arith.constant dense<0.000000e+00> : vector<4x8x8xf32>
    %361 = tpu.matmul %360, %348, %cst_144 {dimension_numbers = #tpu.dot_dimension_numbers<[2], [1], [1], [2], [0, 0, 0, 1, 1, 2], [0], [0]>} : vector<4x8x8xbf16>, vector<4x8x8xbf16>, vector<4x8x8xf32> -> vector<4x8x8xf32>
    "tpu.trace_stop"() : () -> ()
    %362 = vector.shape_cast %361 : vector<4x8x8xf32> to vector<32x8xf32>
    %363 = vector.extract_strided_slice %320 {offsets = [0, 16], sizes = [32, 8], strides = [1, 1]} : vector<32x32xbf16> to vector<32x8xbf16>
    %364 = vector.shape_cast %363 : vector<32x8xbf16> to vector<4x8x8xbf16>
    %365 = vector.extract_strided_slice %321 {offsets = [0, 16], sizes = [32, 8], strides = [1, 1]} : vector<32x32xbf16> to vector<32x8xbf16>
    %366 = vector.shape_cast %365 : vector<32x8xbf16> to vector<4x8x8xbf16>
    %367 = vector.extract_strided_slice %322 {offsets = [0, 16], sizes = [32, 8], strides = [1, 1]} : vector<32x32xbf16> to vector<32x8xbf16>
    %368 = vector.shape_cast %367 : vector<32x8xbf16> to vector<4x8x8xbf16>
    "tpu.trace_start"() <{level = 10 : i32, message = "nqd,nkd->nqk"}> : () -> ()
    %cst_145 = arith.constant dense<0.000000e+00> : vector<4x8x8xf32>
    %369 = tpu.matmul %364, %366, %cst_145 {dimension_numbers = #tpu.dot_dimension_numbers<[2], [2], [1], [1], [0, 0, 0, 1, 1, 1], [0], [0]>} : vector<4x8x8xbf16>, vector<4x8x8xbf16>, vector<4x8x8xf32> -> vector<4x8x8xf32>
    "tpu.trace_stop"() : () -> ()
    %cst_146 = arith.constant dense<0xFF800000> : vector<4x8xf32>
    %370 = vector.multi_reduction <maximumf>, %369, %cst_146 [2] : vector<4x8x8xf32> to vector<4x8xf32>
    %371 = vector.shape_cast %370 : vector<4x8xf32> to vector<4x8x1xf32>
    %372 = vector.broadcast %371 : vector<4x8x1xf32> to vector<4x8x8xf32>
    %373 = arith.subf %369, %372 : vector<4x8x8xf32>
    %374 = math.exp %373 : vector<4x8x8xf32>
    %cst_147 = arith.constant dense<0.000000e+00> : vector<4x8xf32>
    %375 = vector.multi_reduction <add>, %374, %cst_147 [2] : vector<4x8x8xf32> to vector<4x8xf32>
    %376 = vector.shape_cast %375 : vector<4x8xf32> to vector<4x8x1xf32>
    %377 = tpu.reciprocal %376 {approx = true} : vector<4x8x1xf32> -> vector<4x8x1xf32>
    %378 = vector.broadcast %377 : vector<4x8x1xf32> to vector<4x8x8xf32>
    %379 = arith.mulf %374, %378 : vector<4x8x8xf32>
    %380 = arith.truncf %379 : vector<4x8x8xf32> to vector<4x8x8xbf16>
    "tpu.trace_start"() <{level = 10 : i32, message = "nqk,nkd->nqd"}> : () -> ()
    %cst_148 = arith.constant dense<0.000000e+00> : vector<4x8x8xf32>
    %381 = tpu.matmul %380, %368, %cst_148 {dimension_numbers = #tpu.dot_dimension_numbers<[2], [1], [1], [2], [0, 0, 0, 1, 1, 2], [0], [0]>} : vector<4x8x8xbf16>, vector<4x8x8xbf16>, vector<4x8x8xf32> -> vector<4x8x8xf32>
    "tpu.trace_stop"() : () -> ()
    %382 = vector.shape_cast %381 : vector<4x8x8xf32> to vector<32x8xf32>
    %383 = vector.extract_strided_slice %320 {offsets = [0, 24], sizes = [32, 8], strides = [1, 1]} : vector<32x32xbf16> to vector<32x8xbf16>
    %384 = vector.shape_cast %383 : vector<32x8xbf16> to vector<4x8x8xbf16>
    %385 = vector.extract_strided_slice %321 {offsets = [0, 24], sizes = [32, 8], strides = [1, 1]} : vector<32x32xbf16> to vector<32x8xbf16>
    %386 = vector.shape_cast %385 : vector<32x8xbf16> to vector<4x8x8xbf16>
    %387 = vector.extract_strided_slice %322 {offsets = [0, 24], sizes = [32, 8], strides = [1, 1]} : vector<32x32xbf16> to vector<32x8xbf16>
    %388 = vector.shape_cast %387 : vector<32x8xbf16> to vector<4x8x8xbf16>
    "tpu.trace_start"() <{level = 10 : i32, message = "nqd,nkd->nqk"}> : () -> ()
    %cst_149 = arith.constant dense<0.000000e+00> : vector<4x8x8xf32>
    %389 = tpu.matmul %384, %386, %cst_149 {dimension_numbers = #tpu.dot_dimension_numbers<[2], [2], [1], [1], [0, 0, 0, 1, 1, 1], [0], [0]>} : vector<4x8x8xbf16>, vector<4x8x8xbf16>, vector<4x8x8xf32> -> vector<4x8x8xf32>
    "tpu.trace_stop"() : () -> ()
    %cst_150 = arith.constant dense<0xFF800000> : vector<4x8xf32>
    %390 = vector.multi_reduction <maximumf>, %389, %cst_150 [2] : vector<4x8x8xf32> to vector<4x8xf32>
    %391 = vector.shape_cast %390 : vector<4x8xf32> to vector<4x8x1xf32>
    %392 = vector.broadcast %391 : vector<4x8x1xf32> to vector<4x8x8xf32>
    %393 = arith.subf %389, %392 : vector<4x8x8xf32>
    %394 = math.exp %393 : vector<4x8x8xf32>
    %cst_151 = arith.constant dense<0.000000e+00> : vector<4x8xf32>
    %395 = vector.multi_reduction <add>, %394, %cst_151 [2] : vector<4x8x8xf32> to vector<4x8xf32>
    %396 = vector.shape_cast %395 : vector<4x8xf32> to vector<4x8x1xf32>
    %397 = tpu.reciprocal %396 {approx = true} : vector<4x8x1xf32> -> vector<4x8x1xf32>
    %398 = vector.broadcast %397 : vector<4x8x1xf32> to vector<4x8x8xf32>
    %399 = arith.mulf %394, %398 : vector<4x8x8xf32>
    %400 = arith.truncf %399 : vector<4x8x8xf32> to vector<4x8x8xbf16>
    "tpu.trace_start"() <{level = 10 : i32, message = "nqk,nkd->nqd"}> : () -> ()
    %cst_152 = arith.constant dense<0.000000e+00> : vector<4x8x8xf32>
    %401 = tpu.matmul %400, %388, %cst_152 {dimension_numbers = #tpu.dot_dimension_numbers<[2], [1], [1], [2], [0, 0, 0, 1, 1, 2], [0], [0]>} : vector<4x8x8xbf16>, vector<4x8x8xbf16>, vector<4x8x8xf32> -> vector<4x8x8xf32>
    "tpu.trace_stop"() : () -> ()
    %402 = vector.shape_cast %401 : vector<4x8x8xf32> to vector<32x8xf32>
    %403 = tpu.concatenate %342, %362, %382, %402 in 1 : vector<32x8xf32>, vector<32x8xf32>, vector<32x8xf32>, vector<32x8xf32> -> vector<32x32xf32>
    %404 = arith.truncf %403 : vector<32x32xf32> to vector<32x32xbf16>
    %cst_153 = arith.constant dense<0.000000e+00> : vector<32x32xf32>
    %405 = tpu.matmul %404, %314, %cst_153 {dimension_numbers = #tpu.dot_dimension_numbers<[1], [0], [0], [1], [0, 0, 1, 1], [], []>} : vector<32x32xbf16>, vector<32x32xbf16>, vector<32x32xf32> -> vector<32x32xf32>
    %406 = vector.broadcast %316 : vector<1x32xf32> to vector<32x32xf32>
    %407 = arith.addf %405, %406 : vector<32x32xf32>
    %408 = arith.addf %407, %305 : vector<32x32xf32>
    %c1_154 = arith.constant 1 : index
    %c0_155 = arith.constant 0 : index
    %c0_156 = arith.constant 0 : index
    %409 = vector.load %arg8[%c1_154, %c0_155, %c0_156] : memref<2x1x32xf32, #tpu.memory_space<vmem>>, vector<1x1x32xf32>
    %410 = vector.shape_cast %409 : vector<1x1x32xf32> to vector<1x32xf32>
    %c1_157 = arith.constant 1 : index
    %c0_158 = arith.constant 0 : index
    %c0_159 = arith.constant 0 : index
    %411 = vector.load %arg9[%c1_157, %c0_158, %c0_159] : memref<2x1x32xf32, #tpu.memory_space<vmem>>, vector<1x1x32xf32>
    %412 = vector.shape_cast %411 : vector<1x1x32xf32> to vector<1x32xf32>
    %cst_160 = arith.constant dense<0.000000e+00> : vector<32xf32>
    %413 = vector.multi_reduction <add>, %408, %cst_160 [1] : vector<32x32xf32> to vector<32xf32>
    %414 = vector.shape_cast %413 : vector<32xf32> to vector<32x1xf32>
    %cst_161 = arith.constant 3.200000e+01 : f32
    %415 = vector.broadcast %cst_161 : f32 to vector<32x1xf32>
    %416 = arith.divf %414, %415 : vector<32x1xf32>
    %417 = vector.broadcast %416 : vector<32x1xf32> to vector<32x32xf32>
    %418 = arith.subf %408, %417 : vector<32x32xf32>
    %419 = arith.mulf %418, %418 : vector<32x32xf32>
    %cst_162 = arith.constant dense<0.000000e+00> : vector<32xf32>
    %420 = vector.multi_reduction <add>, %419, %cst_162 [1] : vector<32x32xf32> to vector<32xf32>
    %421 = vector.shape_cast %420 : vector<32xf32> to vector<32x1xf32>
    %cst_163 = arith.constant 3.200000e+01 : f32
    %422 = vector.broadcast %cst_163 : f32 to vector<32x1xf32>
    %423 = arith.divf %421, %422 : vector<32x1xf32>
    %424 = vector.broadcast %416 : vector<32x1xf32> to vector<32x32xf32>
    %425 = arith.subf %408, %424 : vector<32x32xf32>
    %cst_164 = arith.constant 9.99999974E-6 : f32
    %426 = vector.broadcast %cst_164 : f32 to vector<32x1xf32>
    %427 = arith.addf %423, %426 : vector<32x1xf32>
    %428 = math.rsqrt %427 : vector<32x1xf32>
    %429 = vector.broadcast %428 : vector<32x1xf32> to vector<32x32xf32>
    %430 = arith.mulf %425, %429 : vector<32x32xf32>
    %431 = vector.broadcast %410 : vector<1x32xf32> to vector<32x32xf32>
    %432 = arith.mulf %430, %431 : vector<32x32xf32>
    %433 = vector.broadcast %412 : vector<1x32xf32> to vector<32x32xf32>
    %434 = arith.addf %432, %433 : vector<32x32xf32>
    %435 = arith.truncf %434 : vector<32x32xf32> to vector<32x32xbf16>
    %c1_165 = arith.constant 1 : index
    %c0_166 = arith.constant 0 : index
    %c0_167 = arith.constant 0 : index
    %436 = vector.load %arg10[%c1_165, %c0_166, %c0_167] : memref<2x32x32xbf16, #tpu.memory_space<vmem>>, vector<1x32x32xbf16>
    %437 = vector.shape_cast %436 : vector<1x32x32xbf16> to vector<32x32xbf16>
    %c1_168 = arith.constant 1 : index
    %c0_169 = arith.constant 0 : index
    %c0_170 = arith.constant 0 : index
    %438 = vector.load %arg11[%c1_168, %c0_169, %c0_170] : memref<2x32x32xbf16, #tpu.memory_space<vmem>>, vector<1x32x32xbf16>
    %439 = vector.shape_cast %438 : vector<1x32x32xbf16> to vector<32x32xbf16>
    %c1_171 = arith.constant 1 : index
    %c0_172 = arith.constant 0 : index
    %c0_173 = arith.constant 0 : index
    %440 = vector.load %arg12[%c1_171, %c0_172, %c0_173] : memref<2x32x32xbf16, #tpu.memory_space<vmem>>, vector<1x32x32xbf16>
    %441 = vector.shape_cast %440 : vector<1x32x32xbf16> to vector<32x32xbf16>
    %c1_174 = arith.constant 1 : index
    %c0_175 = arith.constant 0 : index
    %c0_176 = arith.constant 0 : index
    %442 = vector.load %arg13[%c1_174, %c0_175, %c0_176] : memref<2x32x32xbf16, #tpu.memory_space<vmem>>, vector<1x32x32xbf16>
    %443 = vector.shape_cast %442 : vector<1x32x32xbf16> to vector<32x32xbf16>
    %c1_177 = arith.constant 1 : index
    %c0_178 = arith.constant 0 : index
    %c0_179 = arith.constant 0 : index
    %444 = vector.load %arg14[%c1_177, %c0_178, %c0_179] : memref<2x1x32xf32, #tpu.memory_space<vmem>>, vector<1x1x32xf32>
    %445 = vector.shape_cast %444 : vector<1x1x32xf32> to vector<1x32xf32>
    %cst_180 = arith.constant dense<0.000000e+00> : vector<32x32xf32>
    %446 = tpu.matmul %435, %437, %cst_180 {dimension_numbers = #tpu.dot_dimension_numbers<[1], [0], [0], [1], [0, 0, 1, 1], [], []>} : vector<32x32xbf16>, vector<32x32xbf16>, vector<32x32xf32> -> vector<32x32xf32>
    %cst_181 = arith.constant dense<0.000000e+00> : vector<32x32xf32>
    %447 = tpu.matmul %2, %439, %cst_181 {dimension_numbers = #tpu.dot_dimension_numbers<[1], [0], [0], [1], [0, 0, 1, 1], [], []>} : vector<32x32xbf16>, vector<32x32xbf16>, vector<32x32xf32> -> vector<32x32xf32>
    %cst_182 = arith.constant dense<0.000000e+00> : vector<32x32xf32>
    %448 = tpu.matmul %2, %441, %cst_182 {dimension_numbers = #tpu.dot_dimension_numbers<[1], [0], [0], [1], [0, 0, 1, 1], [], []>} : vector<32x32xbf16>, vector<32x32xbf16>, vector<32x32xf32> -> vector<32x32xf32>
    %449 = arith.truncf %446 : vector<32x32xf32> to vector<32x32xbf16>
    %450 = arith.truncf %447 : vector<32x32xf32> to vector<32x32xbf16>
    %451 = arith.truncf %448 : vector<32x32xf32> to vector<32x32xbf16>
    %452 = vector.extract_strided_slice %449 {offsets = [0, 0], sizes = [32, 8], strides = [1, 1]} : vector<32x32xbf16> to vector<32x8xbf16>
    %453 = vector.shape_cast %452 : vector<32x8xbf16> to vector<4x8x8xbf16>
    %454 = vector.extract_strided_slice %450 {offsets = [0, 0], sizes = [32, 8], strides = [1, 1]} : vector<32x32xbf16> to vector<32x8xbf16>
    %455 = vector.shape_cast %454 : vector<32x8xbf16> to vector<4x8x8xbf16>
    %456 = vector.extract_strided_slice %451 {offsets = [0, 0], sizes = [32, 8], strides = [1, 1]} : vector<32x32xbf16> to vector<32x8xbf16>
    %457 = vector.shape_cast %456 : vector<32x8xbf16> to vector<4x8x8xbf16>
    "tpu.trace_start"() <{level = 10 : i32, message = "nqd,nkd->nqk"}> : () -> ()
    %cst_183 = arith.constant dense<0.000000e+00> : vector<4x8x8xf32>
    %458 = tpu.matmul %453, %455, %cst_183 {dimension_numbers = #tpu.dot_dimension_numbers<[2], [2], [1], [1], [0, 0, 0, 1, 1, 1], [0], [0]>} : vector<4x8x8xbf16>, vector<4x8x8xbf16>, vector<4x8x8xf32> -> vector<4x8x8xf32>
    "tpu.trace_stop"() : () -> ()
    %cst_184 = arith.constant dense<0xFF800000> : vector<4x8xf32>
    %459 = vector.multi_reduction <maximumf>, %458, %cst_184 [2] : vector<4x8x8xf32> to vector<4x8xf32>
    %460 = vector.shape_cast %459 : vector<4x8xf32> to vector<4x8x1xf32>
    %461 = vector.broadcast %460 : vector<4x8x1xf32> to vector<4x8x8xf32>
    %462 = arith.subf %458, %461 : vector<4x8x8xf32>
    %463 = math.exp %462 : vector<4x8x8xf32>
    %cst_185 = arith.constant dense<0.000000e+00> : vector<4x8xf32>
    %464 = vector.multi_reduction <add>, %463, %cst_185 [2] : vector<4x8x8xf32> to vector<4x8xf32>
    %465 = vector.shape_cast %464 : vector<4x8xf32> to vector<4x8x1xf32>
    %466 = tpu.reciprocal %465 {approx = true} : vector<4x8x1xf32> -> vector<4x8x1xf32>
    %467 = vector.broadcast %466 : vector<4x8x1xf32> to vector<4x8x8xf32>
    %468 = arith.mulf %463, %467 : vector<4x8x8xf32>
    %469 = arith.truncf %468 : vector<4x8x8xf32> to vector<4x8x8xbf16>
    "tpu.trace_start"() <{level = 10 : i32, message = "nqk,nkd->nqd"}> : () -> ()
    %cst_186 = arith.constant dense<0.000000e+00> : vector<4x8x8xf32>
    %470 = tpu.matmul %469, %457, %cst_186 {dimension_numbers = #tpu.dot_dimension_numbers<[2], [1], [1], [2], [0, 0, 0, 1, 1, 2], [0], [0]>} : vector<4x8x8xbf16>, vector<4x8x8xbf16>, vector<4x8x8xf32> -> vector<4x8x8xf32>
    "tpu.trace_stop"() : () -> ()
    %471 = vector.shape_cast %470 : vector<4x8x8xf32> to vector<32x8xf32>
    %472 = vector.extract_strided_slice %449 {offsets = [0, 8], sizes = [32, 8], strides = [1, 1]} : vector<32x32xbf16> to vector<32x8xbf16>
    %473 = vector.shape_cast %472 : vector<32x8xbf16> to vector<4x8x8xbf16>
    %474 = vector.extract_strided_slice %450 {offsets = [0, 8], sizes = [32, 8], strides = [1, 1]} : vector<32x32xbf16> to vector<32x8xbf16>
    %475 = vector.shape_cast %474 : vector<32x8xbf16> to vector<4x8x8xbf16>
    %476 = vector.extract_strided_slice %451 {offsets = [0, 8], sizes = [32, 8], strides = [1, 1]} : vector<32x32xbf16> to vector<32x8xbf16>
    %477 = vector.shape_cast %476 : vector<32x8xbf16> to vector<4x8x8xbf16>
    "tpu.trace_start"() <{level = 10 : i32, message = "nqd,nkd->nqk"}> : () -> ()
    %cst_187 = arith.constant dense<0.000000e+00> : vector<4x8x8xf32>
    %478 = tpu.matmul %473, %475, %cst_187 {dimension_numbers = #tpu.dot_dimension_numbers<[2], [2], [1], [1], [0, 0, 0, 1, 1, 1], [0], [0]>} : vector<4x8x8xbf16>, vector<4x8x8xbf16>, vector<4x8x8xf32> -> vector<4x8x8xf32>
    "tpu.trace_stop"() : () -> ()
    %cst_188 = arith.constant dense<0xFF800000> : vector<4x8xf32>
    %479 = vector.multi_reduction <maximumf>, %478, %cst_188 [2] : vector<4x8x8xf32> to vector<4x8xf32>
    %480 = vector.shape_cast %479 : vector<4x8xf32> to vector<4x8x1xf32>
    %481 = vector.broadcast %480 : vector<4x8x1xf32> to vector<4x8x8xf32>
    %482 = arith.subf %478, %481 : vector<4x8x8xf32>
    %483 = math.exp %482 : vector<4x8x8xf32>
    %cst_189 = arith.constant dense<0.000000e+00> : vector<4x8xf32>
    %484 = vector.multi_reduction <add>, %483, %cst_189 [2] : vector<4x8x8xf32> to vector<4x8xf32>
    %485 = vector.shape_cast %484 : vector<4x8xf32> to vector<4x8x1xf32>
    %486 = tpu.reciprocal %485 {approx = true} : vector<4x8x1xf32> -> vector<4x8x1xf32>
    %487 = vector.broadcast %486 : vector<4x8x1xf32> to vector<4x8x8xf32>
    %488 = arith.mulf %483, %487 : vector<4x8x8xf32>
    %489 = arith.truncf %488 : vector<4x8x8xf32> to vector<4x8x8xbf16>
    "tpu.trace_start"() <{level = 10 : i32, message = "nqk,nkd->nqd"}> : () -> ()
    %cst_190 = arith.constant dense<0.000000e+00> : vector<4x8x8xf32>
    %490 = tpu.matmul %489, %477, %cst_190 {dimension_numbers = #tpu.dot_dimension_numbers<[2], [1], [1], [2], [0, 0, 0, 1, 1, 2], [0], [0]>} : vector<4x8x8xbf16>, vector<4x8x8xbf16>, vector<4x8x8xf32> -> vector<4x8x8xf32>
    "tpu.trace_stop"() : () -> ()
    %491 = vector.shape_cast %490 : vector<4x8x8xf32> to vector<32x8xf32>
    %492 = vector.extract_strided_slice %449 {offsets = [0, 16], sizes = [32, 8], strides = [1, 1]} : vector<32x32xbf16> to vector<32x8xbf16>
    %493 = vector.shape_cast %492 : vector<32x8xbf16> to vector<4x8x8xbf16>
    %494 = vector.extract_strided_slice %450 {offsets = [0, 16], sizes = [32, 8], strides = [1, 1]} : vector<32x32xbf16> to vector<32x8xbf16>
    %495 = vector.shape_cast %494 : vector<32x8xbf16> to vector<4x8x8xbf16>
    %496 = vector.extract_strided_slice %451 {offsets = [0, 16], sizes = [32, 8], strides = [1, 1]} : vector<32x32xbf16> to vector<32x8xbf16>
    %497 = vector.shape_cast %496 : vector<32x8xbf16> to vector<4x8x8xbf16>
    "tpu.trace_start"() <{level = 10 : i32, message = "nqd,nkd->nqk"}> : () -> ()
    %cst_191 = arith.constant dense<0.000000e+00> : vector<4x8x8xf32>
    %498 = tpu.matmul %493, %495, %cst_191 {dimension_numbers = #tpu.dot_dimension_numbers<[2], [2], [1], [1], [0, 0, 0, 1, 1, 1], [0], [0]>} : vector<4x8x8xbf16>, vector<4x8x8xbf16>, vector<4x8x8xf32> -> vector<4x8x8xf32>
    "tpu.trace_stop"() : () -> ()
    %cst_192 = arith.constant dense<0xFF800000> : vector<4x8xf32>
    %499 = vector.multi_reduction <maximumf>, %498, %cst_192 [2] : vector<4x8x8xf32> to vector<4x8xf32>
    %500 = vector.shape_cast %499 : vector<4x8xf32> to vector<4x8x1xf32>
    %501 = vector.broadcast %500 : vector<4x8x1xf32> to vector<4x8x8xf32>
    %502 = arith.subf %498, %501 : vector<4x8x8xf32>
    %503 = math.exp %502 : vector<4x8x8xf32>
    %cst_193 = arith.constant dense<0.000000e+00> : vector<4x8xf32>
    %504 = vector.multi_reduction <add>, %503, %cst_193 [2] : vector<4x8x8xf32> to vector<4x8xf32>
    %505 = vector.shape_cast %504 : vector<4x8xf32> to vector<4x8x1xf32>
    %506 = tpu.reciprocal %505 {approx = true} : vector<4x8x1xf32> -> vector<4x8x1xf32>
    %507 = vector.broadcast %506 : vector<4x8x1xf32> to vector<4x8x8xf32>
    %508 = arith.mulf %503, %507 : vector<4x8x8xf32>
    %509 = arith.truncf %508 : vector<4x8x8xf32> to vector<4x8x8xbf16>
    "tpu.trace_start"() <{level = 10 : i32, message = "nqk,nkd->nqd"}> : () -> ()
    %cst_194 = arith.constant dense<0.000000e+00> : vector<4x8x8xf32>
    %510 = tpu.matmul %509, %497, %cst_194 {dimension_numbers = #tpu.dot_dimension_numbers<[2], [1], [1], [2], [0, 0, 0, 1, 1, 2], [0], [0]>} : vector<4x8x8xbf16>, vector<4x8x8xbf16>, vector<4x8x8xf32> -> vector<4x8x8xf32>
    "tpu.trace_stop"() : () -> ()
    %511 = vector.shape_cast %510 : vector<4x8x8xf32> to vector<32x8xf32>
    %512 = vector.extract_strided_slice %449 {offsets = [0, 24], sizes = [32, 8], strides = [1, 1]} : vector<32x32xbf16> to vector<32x8xbf16>
    %513 = vector.shape_cast %512 : vector<32x8xbf16> to vector<4x8x8xbf16>
    %514 = vector.extract_strided_slice %450 {offsets = [0, 24], sizes = [32, 8], strides = [1, 1]} : vector<32x32xbf16> to vector<32x8xbf16>
    %515 = vector.shape_cast %514 : vector<32x8xbf16> to vector<4x8x8xbf16>
    %516 = vector.extract_strided_slice %451 {offsets = [0, 24], sizes = [32, 8], strides = [1, 1]} : vector<32x32xbf16> to vector<32x8xbf16>
    %517 = vector.shape_cast %516 : vector<32x8xbf16> to vector<4x8x8xbf16>
    "tpu.trace_start"() <{level = 10 : i32, message = "nqd,nkd->nqk"}> : () -> ()
    %cst_195 = arith.constant dense<0.000000e+00> : vector<4x8x8xf32>
    %518 = tpu.matmul %513, %515, %cst_195 {dimension_numbers = #tpu.dot_dimension_numbers<[2], [2], [1], [1], [0, 0, 0, 1, 1, 1], [0], [0]>} : vector<4x8x8xbf16>, vector<4x8x8xbf16>, vector<4x8x8xf32> -> vector<4x8x8xf32>
    "tpu.trace_stop"() : () -> ()
    %cst_196 = arith.constant dense<0xFF800000> : vector<4x8xf32>
    %519 = vector.multi_reduction <maximumf>, %518, %cst_196 [2] : vector<4x8x8xf32> to vector<4x8xf32>
    %520 = vector.shape_cast %519 : vector<4x8xf32> to vector<4x8x1xf32>
    %521 = vector.broadcast %520 : vector<4x8x1xf32> to vector<4x8x8xf32>
    %522 = arith.subf %518, %521 : vector<4x8x8xf32>
    %523 = math.exp %522 : vector<4x8x8xf32>
    %cst_197 = arith.constant dense<0.000000e+00> : vector<4x8xf32>
    %524 = vector.multi_reduction <add>, %523, %cst_197 [2] : vector<4x8x8xf32> to vector<4x8xf32>
    %525 = vector.shape_cast %524 : vector<4x8xf32> to vector<4x8x1xf32>
    %526 = tpu.reciprocal %525 {approx = true} : vector<4x8x1xf32> -> vector<4x8x1xf32>
    %527 = vector.broadcast %526 : vector<4x8x1xf32> to vector<4x8x8xf32>
    %528 = arith.mulf %523, %527 : vector<4x8x8xf32>
    %529 = arith.truncf %528 : vector<4x8x8xf32> to vector<4x8x8xbf16>
    "tpu.trace_start"() <{level = 10 : i32, message = "nqk,nkd->nqd"}> : () -> ()
    %cst_198 = arith.constant dense<0.000000e+00> : vector<4x8x8xf32>
    %530 = tpu.matmul %529, %517, %cst_198 {dimension_numbers = #tpu.dot_dimension_numbers<[2], [1], [1], [2], [0, 0, 0, 1, 1, 2], [0], [0]>} : vector<4x8x8xbf16>, vector<4x8x8xbf16>, vector<4x8x8xf32> -> vector<4x8x8xf32>
    "tpu.trace_stop"() : () -> ()
    %531 = vector.shape_cast %530 : vector<4x8x8xf32> to vector<32x8xf32>
    %532 = tpu.concatenate %471, %491, %511, %531 in 1 : vector<32x8xf32>, vector<32x8xf32>, vector<32x8xf32>, vector<32x8xf32> -> vector<32x32xf32>
    %533 = arith.truncf %532 : vector<32x32xf32> to vector<32x32xbf16>
    %cst_199 = arith.constant dense<0.000000e+00> : vector<32x32xf32>
    %534 = tpu.matmul %533, %443, %cst_199 {dimension_numbers = #tpu.dot_dimension_numbers<[1], [0], [0], [1], [0, 0, 1, 1], [], []>} : vector<32x32xbf16>, vector<32x32xbf16>, vector<32x32xf32> -> vector<32x32xf32>
    %535 = vector.broadcast %445 : vector<1x32xf32> to vector<32x32xf32>
    %536 = arith.addf %534, %535 : vector<32x32xf32>
    %537 = arith.addf %536, %434 : vector<32x32xf32>
    %c1_200 = arith.constant 1 : index
    %c0_201 = arith.constant 0 : index
    %c0_202 = arith.constant 0 : index
    %538 = vector.load %arg15[%c1_200, %c0_201, %c0_202] : memref<2x1x32xf32, #tpu.memory_space<vmem>>, vector<1x1x32xf32>
    %539 = vector.shape_cast %538 : vector<1x1x32xf32> to vector<1x32xf32>
    %c1_203 = arith.constant 1 : index
    %c0_204 = arith.constant 0 : index
    %c0_205 = arith.constant 0 : index
    %540 = vector.load %arg16[%c1_203, %c0_204, %c0_205] : memref<2x1x32xf32, #tpu.memory_space<vmem>>, vector<1x1x32xf32>
    %541 = vector.shape_cast %540 : vector<1x1x32xf32> to vector<1x32xf32>
    %cst_206 = arith.constant dense<0.000000e+00> : vector<32xf32>
    %542 = vector.multi_reduction <add>, %537, %cst_206 [1] : vector<32x32xf32> to vector<32xf32>
    %543 = vector.shape_cast %542 : vector<32xf32> to vector<32x1xf32>
    %cst_207 = arith.constant 3.200000e+01 : f32
    %544 = vector.broadcast %cst_207 : f32 to vector<32x1xf32>
    %545 = arith.divf %543, %544 : vector<32x1xf32>
    %546 = vector.broadcast %545 : vector<32x1xf32> to vector<32x32xf32>
    %547 = arith.subf %537, %546 : vector<32x32xf32>
    %548 = arith.mulf %547, %547 : vector<32x32xf32>
    %cst_208 = arith.constant dense<0.000000e+00> : vector<32xf32>
    %549 = vector.multi_reduction <add>, %548, %cst_208 [1] : vector<32x32xf32> to vector<32xf32>
    %550 = vector.shape_cast %549 : vector<32xf32> to vector<32x1xf32>
    %cst_209 = arith.constant 3.200000e+01 : f32
    %551 = vector.broadcast %cst_209 : f32 to vector<32x1xf32>
    %552 = arith.divf %550, %551 : vector<32x1xf32>
    %553 = vector.broadcast %545 : vector<32x1xf32> to vector<32x32xf32>
    %554 = arith.subf %537, %553 : vector<32x32xf32>
    %cst_210 = arith.constant 9.99999974E-6 : f32
    %555 = vector.broadcast %cst_210 : f32 to vector<32x1xf32>
    %556 = arith.addf %552, %555 : vector<32x1xf32>
    %557 = math.rsqrt %556 : vector<32x1xf32>
    %558 = vector.broadcast %557 : vector<32x1xf32> to vector<32x32xf32>
    %559 = arith.mulf %554, %558 : vector<32x32xf32>
    %560 = vector.broadcast %539 : vector<1x32xf32> to vector<32x32xf32>
    %561 = arith.mulf %559, %560 : vector<32x32xf32>
    %562 = vector.broadcast %541 : vector<1x32xf32> to vector<32x32xf32>
    %563 = arith.addf %561, %562 : vector<32x32xf32>
    %564 = arith.truncf %563 : vector<32x32xf32> to vector<32x32xbf16>
    %c1_211 = arith.constant 1 : index
    %c0_212 = arith.constant 0 : index
    %c0_213 = arith.constant 0 : index
    %565 = vector.load %arg17[%c1_211, %c0_212, %c0_213] : memref<2x32x128xbf16, #tpu.memory_space<vmem>>, vector<1x32x128xbf16>
    %566 = vector.shape_cast %565 : vector<1x32x128xbf16> to vector<32x128xbf16>
    %cst_214 = arith.constant dense<0.000000e+00> : vector<32x128xf32>
    %567 = tpu.matmul %564, %566, %cst_214 {dimension_numbers = #tpu.dot_dimension_numbers<[1], [0], [0], [1], [0, 0, 1, 1], [], []>} : vector<32x32xbf16>, vector<32x128xbf16>, vector<32x128xf32> -> vector<32x128xf32>
    %c1_215 = arith.constant 1 : index
    %c0_216 = arith.constant 0 : index
    %c0_217 = arith.constant 0 : index
    %568 = vector.load %arg18[%c1_215, %c0_216, %c0_217] : memref<2x1x128xf32, #tpu.memory_space<vmem>>, vector<1x1x128xf32>
    %569 = vector.shape_cast %568 : vector<1x1x128xf32> to vector<1x128xf32>
    %570 = vector.broadcast %569 : vector<1x128xf32> to vector<32x128xf32>
    %571 = arith.addf %567, %570 : vector<32x128xf32>
    %cst_218 = arith.constant 0.000000e+00 : f32
    %572 = vector.broadcast %cst_218 : f32 to vector<32x128xf32>
    %573 = arith.maximumf %571, %572 : vector<32x128xf32>
    %574 = arith.truncf %573 : vector<32x128xf32> to vector<32x128xbf16>
    %c1_219 = arith.constant 1 : index
    %c0_220 = arith.constant 0 : index
    %c0_221 = arith.constant 0 : index
    %575 = vector.load %arg19[%c1_219, %c0_220, %c0_221] : memref<2x128x32xbf16, #tpu.memory_space<vmem>>, vector<1x128x32xbf16>
    %576 = vector.shape_cast %575 : vector<1x128x32xbf16> to vector<128x32xbf16>
    %cst_222 = arith.constant dense<0.000000e+00> : vector<32x32xf32>
    %577 = tpu.matmul %574, %576, %cst_222 {dimension_numbers = #tpu.dot_dimension_numbers<[1], [0], [0], [1], [0, 0, 1, 1], [], []>} : vector<32x128xbf16>, vector<128x32xbf16>, vector<32x32xf32> -> vector<32x32xf32>
    %c1_223 = arith.constant 1 : index
    %c0_224 = arith.constant 0 : index
    %c0_225 = arith.constant 0 : index
    %578 = vector.load %arg20[%c1_223, %c0_224, %c0_225] : memref<2x1x32xf32, #tpu.memory_space<vmem>>, vector<1x1x32xf32>
    %579 = vector.shape_cast %578 : vector<1x1x32xf32> to vector<1x32xf32>
    %580 = vector.broadcast %579 : vector<1x32xf32> to vector<32x32xf32>
    %581 = arith.addf %577, %580 : vector<32x32xf32>
    %582 = arith.addf %581, %563 : vector<32x32xf32>
    %c1_226 = arith.constant 1 : index
    %c0_227 = arith.constant 0 : index
    %c0_228 = arith.constant 0 : index
    %583 = vector.load %arg21[%c1_226, %c0_227, %c0_228] : memref<2x1x32xf32, #tpu.memory_space<vmem>>, vector<1x1x32xf32>
    %584 = vector.shape_cast %583 : vector<1x1x32xf32> to vector<1x32xf32>
    %c1_229 = arith.constant 1 : index
    %c0_230 = arith.constant 0 : index
    %c0_231 = arith.constant 0 : index
    %585 = vector.load %arg22[%c1_229, %c0_230, %c0_231] : memref<2x1x32xf32, #tpu.memory_space<vmem>>, vector<1x1x32xf32>
    %586 = vector.shape_cast %585 : vector<1x1x32xf32> to vector<1x32xf32>
    %cst_232 = arith.constant dense<0.000000e+00> : vector<32xf32>
    %587 = vector.multi_reduction <add>, %582, %cst_232 [1] : vector<32x32xf32> to vector<32xf32>
    %588 = vector.shape_cast %587 : vector<32xf32> to vector<32x1xf32>
    %cst_233 = arith.constant 3.200000e+01 : f32
    %589 = vector.broadcast %cst_233 : f32 to vector<32x1xf32>
    %590 = arith.divf %588, %589 : vector<32x1xf32>
    %591 = vector.broadcast %590 : vector<32x1xf32> to vector<32x32xf32>
    %592 = arith.subf %582, %591 : vector<32x32xf32>
    %593 = arith.mulf %592, %592 : vector<32x32xf32>
    %cst_234 = arith.constant dense<0.000000e+00> : vector<32xf32>
    %594 = vector.multi_reduction <add>, %593, %cst_234 [1] : vector<32x32xf32> to vector<32xf32>
    %595 = vector.shape_cast %594 : vector<32xf32> to vector<32x1xf32>
    %cst_235 = arith.constant 3.200000e+01 : f32
    %596 = vector.broadcast %cst_235 : f32 to vector<32x1xf32>
    %597 = arith.divf %595, %596 : vector<32x1xf32>
    %598 = vector.broadcast %590 : vector<32x1xf32> to vector<32x32xf32>
    %599 = arith.subf %582, %598 : vector<32x32xf32>
    %cst_236 = arith.constant 9.99999974E-6 : f32
    %600 = vector.broadcast %cst_236 : f32 to vector<32x1xf32>
    %601 = arith.addf %597, %600 : vector<32x1xf32>
    %602 = math.rsqrt %601 : vector<32x1xf32>
    %603 = vector.broadcast %602 : vector<32x1xf32> to vector<32x32xf32>
    %604 = arith.mulf %599, %603 : vector<32x32xf32>
    %605 = vector.broadcast %584 : vector<1x32xf32> to vector<32x32xf32>
    %606 = arith.mulf %604, %605 : vector<32x32xf32>
    %607 = vector.broadcast %586 : vector<1x32xf32> to vector<32x32xf32>
    %608 = arith.addf %606, %607 : vector<32x32xf32>
    %c0_237 = arith.constant 0 : index
    %c0_238 = arith.constant 0 : index
    %609 = vector.load %arg23[%c0_237, %c0_238] : memref<32x32xf32, #tpu.memory_space<vmem>>, vector<32x32xf32>
    tpu.vector_store %arg23[%c0_237, %c0_238], %608 {strides = array<i32>} : memref<32x32xf32, #tpu.memory_space<vmem>>, vector<32x32xf32>,
    return
  }
  func.func @transform_0(%arg0: i32) -> (i32, i32) {
    %c0_i32 = arith.constant 0 : i32
    %c0_i32_0 = arith.constant 0 : i32
    return %arg0, %c0_i32 : i32, i32
  }
  func.func @transform_1(%arg0: i32) -> (i32, i32) {
    %c0_i32 = arith.constant 0 : i32
    %c0_i32_0 = arith.constant 0 : i32
    return %arg0, %c0_i32 : i32, i32
  }
  func.func @transform_2(%arg0: i32) -> (i32, i32, i32) {
    %c0_i32 = arith.constant 0 : i32
    %c0_i32_0 = arith.constant 0 : i32
    %c0_i32_1 = arith.constant 0 : i32
    %c0_i32_2 = arith.constant 0 : i32
    return %c0_i32, %c0_i32_0, %c0_i32_1 : i32, i32, i32
  }
  func.func @transform_3(%arg0: i32) -> (i32, i32, i32) {
    %c0_i32 = arith.constant 0 : i32
    %c0_i32_0 = arith.constant 0 : i32
    %c0_i32_1 = arith.constant 0 : i32
    %c0_i32_2 = arith.constant 0 : i32
    return %c0_i32, %c0_i32_0, %c0_i32_1 : i32, i32, i32
  }
  func.func @transform_4(%arg0: i32) -> (i32, i32, i32) {
    %c0_i32 = arith.constant 0 : i32
    %c0_i32_0 = arith.constant 0 : i32
    %c0_i32_1 = arith.constant 0 : i32
    %c0_i32_2 = arith.constant 0 : i32
    return %c0_i32, %c0_i32_0, %c0_i32_1 : i32, i32, i32
  }
  func.func @transform_5(%arg0: i32) -> (i32, i32, i32) {
    %c0_i32 = arith.constant 0 : i32
    %c0_i32_0 = arith.constant 0 : i32
    %c0_i32_1 = arith.constant 0 : i32
    %c0_i32_2 = arith.constant 0 : i32
    return %c0_i32, %c0_i32_0, %c0_i32_1 : i32, i32, i32
  }
  func.func @transform_6(%arg0: i32) -> (i32, i32, i32) {
    %c0_i32 = arith.constant 0 : i32
    %c0_i32_0 = arith.constant 0 : i32
    %c0_i32_1 = arith.constant 0 : i32
    %c0_i32_2 = arith.constant 0 : i32
    return %c0_i32, %c0_i32_0, %c0_i32_1 : i32, i32, i32
  }
  func.func @transform_7(%arg0: i32) -> (i32, i32, i32) {
    %c0_i32 = arith.constant 0 : i32
    %c0_i32_0 = arith.constant 0 : i32
    %c0_i32_1 = arith.constant 0 : i32
    %c0_i32_2 = arith.constant 0 : i32
    return %c0_i32, %c0_i32_0, %c0_i32_1 : i32, i32, i32
  }
  func.func @transform_8(%arg0: i32) -> (i32, i32, i32) {
    %c0_i32 = arith.constant 0 : i32
    %c0_i32_0 = arith.constant 0 : i32
    %c0_i32_1 = arith.constant 0 : i32
    %c0_i32_2 = arith.constant 0 : i32
    return %c0_i32, %c0_i32_0, %c0_i32_1 : i32, i32, i32
  }
  func.func @transform_9(%arg0: i32) -> (i32, i32, i32) {
    %c0_i32 = arith.constant 0 : i32
    %c0_i32_0 = arith.constant 0 : i32
    %c0_i32_1 = arith.constant 0 : i32
    %c0_i32_2 = arith.constant 0 : i32
    return %c0_i32, %c0_i32_0, %c0_i32_1 : i32, i32, i32
  }
  func.func @transform_10(%arg0: i32) -> (i32, i32, i32) {
    %c0_i32 = arith.constant 0 : i32
    %c0_i32_0 = arith.constant 0 : i32
    %c0_i32_1 = arith.constant 0 : i32
    %c0_i32_2 = arith.constant 0 : i32
    return %c0_i32, %c0_i32_0, %c0_i32_1 : i32, i32, i32
  }
  func.func @transform_11(%arg0: i32) -> (i32, i32, i32) {
    %c0_i32 = arith.constant 0 : i32
    %c0_i32_0 = arith.constant 0 : i32
    %c0_i32_1 = arith.constant 0 : i32
    %c0_i32_2 = arith.constant 0 : i32
    return %c0_i32, %c0_i32_0, %c0_i32_1 : i32, i32, i32
  }
  func.func @transform_12(%arg0: i32) -> (i32, i32, i32) {
    %c0_i32 = arith.constant 0 : i32
    %c0_i32_0 = arith.constant 0 : i32
    %c0_i32_1 = arith.constant 0 : i32
    %c0_i32_2 = arith.constant 0 : i32
    return %c0_i32, %c0_i32_0, %c0_i32_1 : i32, i32, i32
  }
  func.func @transform_13(%arg0: i32) -> (i32, i32, i32) {
    %c0_i32 = arith.constant 0 : i32
    %c0_i32_0 = arith.constant 0 : i32
    %c0_i32_1 = arith.constant 0 : i32
    %c0_i32_2 = arith.constant 0 : i32
    return %c0_i32, %c0_i32_0, %c0_i32_1 : i32, i32, i32
  }
  func.func @transform_14(%arg0: i32) -> (i32, i32, i32) {
    %c0_i32 = arith.constant 0 : i32
    %c0_i32_0 = arith.constant 0 : i32
    %c0_i32_1 = arith.constant 0 : i32
    %c0_i32_2 = arith.constant 0 : i32
    return %c0_i32, %c0_i32_0, %c0_i32_1 : i32, i32, i32
  }
  func.func @transform_15(%arg0: i32) -> (i32, i32, i32) {
    %c0_i32 = arith.constant 0 : i32
    %c0_i32_0 = arith.constant 0 : i32
    %c0_i32_1 = arith.constant 0 : i32
    %c0_i32_2 = arith.constant 0 : i32
    return %c0_i32, %c0_i32_0, %c0_i32_1 : i32, i32, i32
  }
  func.func @transform_16(%arg0: i32) -> (i32, i32, i32) {
    %c0_i32 = arith.constant 0 : i32
    %c0_i32_0 = arith.constant 0 : i32
    %c0_i32_1 = arith.constant 0 : i32
    %c0_i32_2 = arith.constant 0 : i32
    return %c0_i32, %c0_i32_0, %c0_i32_1 : i32, i32, i32
  }
  func.func @transform_17(%arg0: i32) -> (i32, i32, i32) {
    %c0_i32 = arith.constant 0 : i32
    %c0_i32_0 = arith.constant 0 : i32
    %c0_i32_1 = arith.constant 0 : i32
    %c0_i32_2 = arith.constant 0 : i32
    return %c0_i32, %c0_i32_0, %c0_i32_1 : i32, i32, i32
  }
  func.func @transform_18(%arg0: i32) -> (i32, i32, i32) {
    %c0_i32 = arith.constant 0 : i32
    %c0_i32_0 = arith.constant 0 : i32
    %c0_i32_1 = arith.constant 0 : i32
    %c0_i32_2 = arith.constant 0 : i32
    return %c0_i32, %c0_i32_0, %c0_i32_1 : i32, i32, i32
  }
  func.func @transform_19(%arg0: i32) -> (i32, i32, i32) {
    %c0_i32 = arith.constant 0 : i32
    %c0_i32_0 = arith.constant 0 : i32
    %c0_i32_1 = arith.constant 0 : i32
    %c0_i32_2 = arith.constant 0 : i32
    return %c0_i32, %c0_i32_0, %c0_i32_1 : i32, i32, i32
  }
  func.func @transform_20(%arg0: i32) -> (i32, i32, i32) {
    %c0_i32 = arith.constant 0 : i32
    %c0_i32_0 = arith.constant 0 : i32
    %c0_i32_1 = arith.constant 0 : i32
    %c0_i32_2 = arith.constant 0 : i32
    return %c0_i32, %c0_i32_0, %c0_i32_1 : i32, i32, i32
  }
  func.func @transform_21(%arg0: i32) -> (i32, i32, i32) {
    %c0_i32 = arith.constant 0 : i32
    %c0_i32_0 = arith.constant 0 : i32
    %c0_i32_1 = arith.constant 0 : i32
    %c0_i32_2 = arith.constant 0 : i32
    return %c0_i32, %c0_i32_0, %c0_i32_1 : i32, i32, i32
  }
  func.func @transform_22(%arg0: i32) -> (i32, i32) {
    %c0_i32 = arith.constant 0 : i32
    %c0_i32_0 = arith.constant 0 : i32
    return %arg0, %c0_i32 : i32, i32
  }
}

</mosaic_0001>

<bundles_post_ra>
// kernel: decoder_forward.3
= control target key start
LH: loop header
LB: loop body
LE: loop exit
PB: predicated region body
PF: predicated region fallthrough
CT: control target
= control target key end

     0   :  { %vm41_vm0 = vcmask 261120   ;;  %s143_s1 = inlined_call_operand.vmem [shape: bf16[32,128], index: 1, kind: input, shape index: {}]   ;;  %s144_s0 = inlined_call_operand.vmem [shape: f32[32,32], index: 0, kind: input, shape index: {}]   ;;  %s145_s2 = inlined_call_operand.vmem [shape: f32[1,128], index: 2, kind: input, shape index: {}]   ;;  %s146_s3 = inlined_call_operand.vmem [shape: f32[32,128], index: 3, kind: output, shape index: {}]  }
   0x1   :  { %v86_v0 = vld [vmem:[%s143_s1 + $0x8] sm:$0xff]  ;;  %v85_v1 = vld [vmem:[%s143_s1] sm:$0xff]  ;;  %v17_v4 = vld [vmem:[%s144_s0 + $0x10] sm:$0xff] }
   0x2   :  { %v15_v2 = vld [vmem:[%s144_s0] sm:$0xff]  ;;  %v16_v3 = vld [vmem:[%s144_s0 + $0x8] sm:$0xff]  ;;  %54 = vmatpush.bf16.msra.mxu0 %v86_v0  ;;  %87 = vmatpush.bf16.msra.mxu1 %v86_v0  ;;  %v18_v5 = vld [vmem:[%s144_s0 + $0x18] sm:$0xff] }
   0x3   :  { %v19_v6 = vpack.c.bf16 %v16_v3, %v15_v2  ;;  %v20_v7 = vpack.c.bf16 %v18_v5, %v17_v4  ;;  %v89_v8 = vld [vmem:[%s145_s2] ss:$0 sm:$0xff] }
   0x6   :  { %55 = vmatpush.bf16.msra.mxu0 %v85_v1  ;;  %88 = vmatpush.bf16.msra.mxu1 %v85_v1 }
   0x9   :  { %83 = vmatmul.msk.bf16.vlgmr.msra.gmra.mxu0 %vm41_vm0, %v19_v6  ;;  %84 = vmatmul.msk.bf16.vlgmr.msra.gmra.mxu1 %vm41_vm0, %v20_v7 }
  0x86   :  { %v57_v9 = vpop.f32.mrf.mxu0  ;;  %v62_v10 = vpop.f32.mrf.mxu1 }
  0x87   :  { %v58_v11 = vadd.f32 %v89_v8, %v57_v9  ;;  %v63_v12 = vadd.f32 %v89_v8, %v62_v10 }
  0x89   :  { %67 = vst [vmem:[%s146_s3] sm:$0xff] %v58_v11 }
  0x8a   :  { %69 = vst [vmem:[%s146_s3 + $0x10] sm:$0xff] %v63_v12 }
  0x8e   :  { %v59_v13 = vpop.f32.mrf.mxu0  ;;  %v64_v14 = vpop.f32.mrf.mxu1 }
  0x8f   :  { %v60_v15 = vadd.f32 %v89_v8, %v59_v13  ;;  %v65_v16 = vadd.f32 %v89_v8, %v64_v14 }
  0x91   :  { %68 = vst [vmem:[%s146_s3 + $0x8] sm:$0xff] %v60_v15 }
  0x92   :  { %70 = vst [vmem:[%s146_s3 + $0x18] sm:$0xff] %v65_v16 }

// kernel: decoder_forward.2
= control target key start
LH: loop header
LB: loop body
LE: loop exit
PB: predicated region body
PF: predicated region fallthrough
CT: control target
= control target key end

     0   :  { %vm113_vm0 = vcmask 261120   ;;  %vm213_vm1 = vcmask 64512   ;;  %vm341_vm2 = vcmask 1043456   ;;  %s8396_s25 = smov 112   ;;  %s8394_s26 = smov 104   ;;  %vm1175_vm3 = vcmask 130048   ;;  %s8357_s3 = inlined_call_operand.vmem [shape: bf16[2,32,32], index: 3, kind: input, shape index: {}]   ;;  %s8358_s2 = inlined_call_operand.vmem [shape: bf16[2,32,32], index: 2, kind: input, shape index: {}]   ;;  %s8359_s0 = inlined_call_operand.vmem [shape: f32[32,32], index: 0, kind: input, shape index: {}]   ;;  %s8360_s4 = inlined_call_operand.vmem [shape: bf16[2,32,32], index: 4, kind: input, shape index: {}]   ;;  %s8361_s6 = inlined_call_operand.vmem [shape: f32[2,1,32], index: 6, kind: input, shape index: {}]   ;;  %s8362_s5 = inlined_call_operand.vmem [shape: bf16[2,32,32], index: 5, kind: input, shape index: {}]   ;;  %s8363_s7 = inlined_call_operand.vmem [shape: f32[2,1,32], index: 7, kind: input, shape index: {}]   ;;  %s8364_s8 = inlined_call_operand.vmem [shape: f32[2,1,32], index: 8, kind: input, shape index: {}]   ;;  %s8365_s10 = inlined_call_operand.vmem [shape: bf16[2,32,32], index: 10, kind: input, shape index: {}]   ;;  %s8366_s1 = inlined_call_operand.vmem [shape: f32[32,32], index: 1, kind: input, shape index: {}]   ;;  %s8367_s9 = inlined_call_operand.vmem [shape: bf16[2,32,32], index: 9, kind: input, shape index: {}]   ;;  %s8368_s11 = inlined_call_operand.vmem [shape: bf16[2,32,32], index: 11, kind: input, shape index: {}]   ;;  %s8369_s12 = inlined_call_operand.vmem [shape: bf16[2,32,32], index: 12, kind: input, shape index: {}]   ;;  %s8370_s13 = inlined_call_operand.vmem [shape: f32[2,1,32], index: 13, kind: input, shape index: {}]   ;;  %s8371_s14 = inlined_call_operand.vmem [shape: f32[2,1,32], index: 14, kind: input, shape index: {}]   ;;  %s8372_s15 = inlined_call_operand.vmem [shape: f32[2,1,32], index: 15, kind: input, shape index: {}]   ;;  %s8373_s17 = inlined_call_operand.vmem [shape: f32[2,1,128], index: 17, kind: input, shape index: {}]   ;;  %s8374_s16 = inlined_call_operand.vmem [shape: bf16[2,32,128], index: 16, kind: input, shape index: {}]   ;;  %s8375_s18 = inlined_call_operand.vmem [shape: bf16[2,128,32], index: 18, kind: input, shape index: {}]   ;;  %s8376_s19 = inlined_call_operand.vmem [shape: f32[2,1,32], index: 19, kind: input, shape index: {}]   ;;  %s8377_s20 = inlined_call_operand.vmem [shape: f32[2,1,32], index: 20, kind: input, shape index: {}]   ;;  %s8378_s21 = inlined_call_operand.vmem [shape: f32[2,1,32], index: 21, kind: input, shape index: {}]   ;;  %s8379_s22 = inlined_call_operand.vmem [shape: f32[32,32], index: 22, kind: output, shape index: {}]  }
   0x1   :  { %8401 = sst [smem:[#allocation2_spill]] %s8357_s3  ;;  %s8392_s27 = smov 16   ;;  %vm1180_vm4 = vcmask 195584  }
   0x2   :  { %8402 = sst [smem:[#allocation3_spill]] %s8358_s2 }
   0x3   :  { %8403 = sst [smem:[#allocation4_spill]] %s8359_s0  ;;  %s8390_s0 = smov 8  }
   0x4   :  { %8404 = sst [smem:[#allocation5_spill]] %s8360_s4  ;;  %s8388_s4 = smov 24  }
   0x5   :  { %8405 = sst [smem:[#allocation6_spill]] %s8361_s6 }
   0x6   :  { %8406 = sst [smem:[#allocation7_spill]] %s8362_s5  ;;  %s8421_s5 = smov 120  }
   0x7   :  { %8407 = sst [smem:[#allocation8_spill]] %s8363_s7  ;;  %s8398_s7 = smov 120  }
   0x8   :  { %8408 = sst [smem:[#allocation9_spill]] %s8373_s17 }
   0x9   :  { %8409 = sst [smem:[#allocation10_spill]] %s8379_s22 }
   0xa   :  { %s8410_s29 = sld [smem:[#allocation2_spill]] }
   0xb   :  { %s8411_s17 = sld [smem:[#allocation3_spill]] }
   0xc   :  { %s8412_s24 = sld [smem:[#allocation4_spill]] }
   0xd   :  { %s8413_s23 = sld [smem:[#allocation5_spill]] }
   0xe   :  { %s8414_s6 = sld [smem:[#allocation7_spill]] }
   0xf   :  { %s8415_s30 = sld [smem:[#allocation6_spill]] }
  0x10   :  { %v6053_v0 = vld [vmem:[%s8410_s29 + $0x8] sm:$0xff]  ;;  %v6052_v2 = vld [vmem:[%s8410_s29] sm:$0xff]  ;;  %s8416_s3 = sld [smem:[#allocation8_spill]] }
  0x11   :  { %v6051_v1 = vld [vmem:[%s8411_s17 + $0x8] sm:$0xff]  ;;  %157 = vmatpush.bf16.msra.mxu2 %v6053_v0  ;;  %v6050_v5 = vld [vmem:[%s8411_s17] sm:$0xff] }
  0x12   :  { %126 = vmatpush.bf16.msra.mxu0 %v6051_v1  ;;  %v72_v3 = vld [vmem:[%s8412_s24] sm:$0xff]  ;;  %v73_v4 = vld [vmem:[%s8412_s24 + $0x8] sm:$0xff]  ;;  %v74_v7 = vld [vmem:[%s8412_s24 + $0x10] sm:$0xff] }
  0x13   :  { %v82_v6 = vpack.c.bf16 %v73_v4, %v72_v3  ;;  %v75_v8 = vld [vmem:[%s8412_s24 + $0x18] sm:$0xff]  ;;  %v6055_v30 = vld [vmem:[%s8413_s23 + $0x8] sm:$0xff]  ;;  %v6054_v31 = vld [vmem:[%s8413_s23] sm:$0xff] }
  0x14   :  { %v83_v9 = vpack.c.bf16 %v75_v8, %v74_v7 }
  0x15   :  { %158 = vmatpush.bf16.msra.mxu2 %v6052_v2 }
  0x16   :  { %127 = vmatpush.bf16.msra.mxu0 %v6050_v5 }
  0x18   :  { %5634 = vmatmul.msk.bf16.vlgmr.msra.gmra.mxu2 %vm113_vm0, %v82_v6 }
  0x19   :  { %5624 = vmatmul.msk.bf16.vlgmr.msra.gmra.mxu0 %vm113_vm0, %v82_v6  ;;  %188 = vmatpush.bf16.msrb.mxu2 %v6055_v30 }
  0x1d   :  { %189 = vmatpush.bf16.msrb.mxu2 %v6054_v31 }
  0x28   :  { %5635 = vmatmul.msk.bf16.gmra.mxu2 %vm113_vm0, %v83_v9 }
  0x29   :  { %5625 = vmatmul.msk.bf16.gmra.mxu0 %vm113_vm0, %v83_v9 }
  0x38   :  { %5644 = vmatmul.msk.bf16.vlgmr.msrb.gmra.mxu2 %vm113_vm0, %v82_v6 }
  0x48   :  { %5645 = vmatmul.msk.bf16.gmra.mxu2 %vm113_vm0, %v83_v9 }
  0x96   :  { %v129_v10 = vpop.f32.mrf.mxu0 }
  0x97   :  { %v201_v14 = vpack.c.bf16 %v129_v10, %v129_v10 }
  0x99   :  { %v416_v46 = vunpack.c.l.b16 %v201_v14 }
  0x9b   :  { %v160_v11 = vpop.f32.mrf.mxu2  ;;  %v6739_v48 = vpack.c.b16 %v416_v46, %v416_v46 }
  0x9c   :  { %v205_v12 = vpack.c.bf16 %v160_v11, %v160_v11 }
  0x9e   :  { %v218_v13 = vsel %vm213_vm1, %v205_v12, 0  ;;  %v131_v17 = vpop.f32.mrf.mxu0  ;;  %v421_v44 = vunpack.c.l.b16 %v205_v12 }
  0x9f   :  { %227 = vmatpush.bf16.xpose.msra.mxu3 %v218_v13  ;;  %v202_v25 = vpack.c.bf16 %v131_v17, %v131_v17 }
  0xa0   :  { %v6735_v45 = vpack.c.b16 %v421_v44, %v421_v44 }
  0xa1   :  { %v445_v47 = vunpack.c.l.b16 %v202_v25 }
  0xa3   :  { %v162_v15 = vpop.f32.mrf.mxu2  ;;  %v6743_v49 = vpack.c.b16 %v445_v47, %v445_v47 }
  0xa4   :  { %v6710_v16 = vpack.c.bf16 %v162_v15, %v162_v15 }
  0xa6   :  { %5646 = vmatmul.msk.bf16.vlgmr.msra.gmra.mxu3 %vm213_vm1, %v201_v14  ;;  %v237_v18 = vsel %vm213_vm1, %v6710_v16, 0  ;;  %v134_v21 = vpop.f32.mrf.mxu0 }
  0xa7   :  { %246 = vmatpush.bf16.xpose.msrb.mxu3 %v237_v18  ;;  %v203_v23 = vpack.c.bf16 %v134_v21, %v134_v21 }
  0xa9   :  { %v474_v54 = vunpack.c.l.b16 %v203_v23 }
  0xab   :  { %v165_v19 = vpop.f32.mrf.mxu2  ;;  %v6755_v55 = vpack.c.b16 %v474_v54, %v474_v54 }
  0xac   :  { %v207_v20 = vpack.c.bf16 %v165_v19, %v165_v19 }
  0xae   :  { %v256_v22 = vsel %vm213_vm1, %v207_v20, 0  ;;  %v136_v28 = vpop.f32.mrf.mxu0  ;;  %v479_v50 = vunpack.c.l.b16 %v207_v20 }
  0xaf   :  { %265 = vmatpush.bf16.xpose.msrb.mxu0 %v256_v22  ;;  %v204_v29 = vpack.c.bf16 %v136_v28, %v136_v28 }
  0xb0   :  { %v6747_v51 = vpack.c.b16 %v479_v50, %v479_v50 }
  0xb1   :  { %v503_v56 = vunpack.c.l.b16 %v204_v29 }
  0xb3   :  { %v167_v24 = vpop.f32.mrf.mxu2  ;;  %v6759_v57 = vpack.c.b16 %v503_v56, %v503_v56 }
  0xb4   :  { %v208_v26 = vpack.c.bf16 %v167_v24, %v167_v24 }
  0xb6   :  { %5647 = vmatmul.msk.bf16.vlgmr.msrb.gmra.mxu3 %vm213_vm1, %v202_v25  ;;  %5648 = vmatmul.msk.bf16.vlgmr.msrb.gmra.mxu0 %vm213_vm1, %v203_v23  ;;  %v275_v27 = vsel %vm213_vm1, %v208_v26, 0  ;;  %v508_v52 = vunpack.c.l.b16 %v208_v26  ;;  %v450_v23 = vunpack.c.l.b16 %v6710_v16 }
  0xb7   :  { %284 = vmatpush.bf16.xpose.msra.mxu1 %v275_v27 }
  0xb8   :  { %v6751_v53 = vpack.c.b16 %v508_v52, %v508_v52  ;;  %v6781_v26 = vpack.c.b16 %v450_v23, %v450_v23 }
  0xbb   :  { %v191_v59 = vpop.f32.mrf.mxu2 }
  0xbc   :  { %v6763_v61 = vpack.c.bf16 %v191_v59, %v191_v59 }
  0xbe   :  { %5649 = vmatmul.msk.bf16.vlgmr.msra.gmra.mxu1 %vm213_vm1, %v204_v29  ;;  %v343_v63 = vsel %vm341_vm2, %v6763_v61, 0 }
  0xbf   :  { %352 = vmatpush.bf16.msra.mxu2 %v343_v63 }
  0xc3   :  { %v193_v0 = vpop.f32.mrf.mxu2 }
  0xcb   :  { %v196_v7 = vpop.f32.mrf.mxu2 }
  0xcc   :  { %v6768_v9 = vpack.c.bf16 %v196_v7, %v196_v7 }
  0xce   :  { %v381_v11 = vsel %vm341_vm2, %v6768_v9, 0 }
  0xcf   :  { %390 = vmatpush.bf16.msra.mxu0 %v381_v11 }
  0xd3   :  { %v198_v14 = vpop.f32.mrf.mxu2 }
  0xd4   :  { %v6773_v15 = vpack.c.bf16 %v198_v14, %v198_v14 }
  0xd6   :  { %v400_v18 = vsel %vm341_vm2, %v6773_v15, 0 }
  0xd7   :  { %409 = vmatpush.bf16.msrb.mxu1 %v400_v18 }
 0x129   :  { %v229_v32 = vpop.f32.mrf.mxu3 }
 0x12a   :  { %v290_v33 = vsel %vm213_vm1, %v229_v32, -inf }
 0x12b   :  { %291 = vmax.xlane.f32.xlu0 %v290_v33  ;;  %v210_v33 = vpack.c.bf16 %v193_v0, %v193_v0 }
 0x131   :  { %v231_v34 = vpop.f32.mrf.mxu3 }
 0x132   :  { %v362_v34 = vsel %vm341_vm2, %v210_v33, 0 }
 0x133   :  { %v267_v35 = vpop.f32.mrf.mxu0  ;;  %371 = vmatpush.bf16.msra.mxu3 %v362_v34 }
 0x134   :  { %v296_v36 = vsel %vm213_vm1, %v267_v35, -inf }
 0x135   :  { %297 = vmax.xlane.f32.xlu2 %v296_v36 }
 0x139   :  { %v248_v37 = vpop.f32.mrf.mxu3 }
 0x13a   :  { %v293_v38 = vsel %vm213_vm1, %v248_v37, -inf }
 0x13b   :  { %294 = vmax.xlane.f32.xlu0 %v293_v38  ;;  %v6731_v39 = vpop.f32.mrf.mxu1  ;;  %v269_v40 = vpop.f32.mrf.mxu0 }
 0x13c   :  { %v299_v41 = vsel %vm213_vm1, %v6731_v39, -inf }
 0x13d   :  { %300 = vmax.xlane.f32.xlu2 %v299_v41 }
 0x141   :  { %v250_v42 = vpop.f32.mrf.mxu3 }
 0x143   :  { %v288_v43 = vpop.f32.mrf.mxu1 }
 0x14f   :  { %423 = vrot.lane.b32.xlu0 %v6735_v45, %s8398_s7 }
 0x155   :  { %418 = vrot.lane.b32.xlu2 %v6739_v48, %s8398_s7 }
 0x157   :  { %447 = vrot.lane.b32.xlu0 %v6743_v49, %s8398_s7 }
 0x15f   :  { %481 = vrot.lane.b32.xlu0 %v6747_v51, %s8398_s7 }
 0x167   :  { %510 = vrot.lane.b32.xlu0 %v6751_v53, %s8398_s7 }
 0x16f   :  { %476 = vrot.lane.b32.xlu0 %v6755_v55, %s8398_s7 }
 0x177   :  { %505 = vrot.lane.b32.xlu0 %v6759_v57, %s8398_s7 }
 0x19e   :  { %v292_v58 = vpop.xlane.xlu0 %291 }
 0x19f   :  { %v302_v60 = vsub.f32 %v229_v32, %v292_v58 }
 0x1a1   :  { %v306_v62 = vmul.f32 1.442695, %v302_v60 }
 0x1a3   :  { %6249 = vpow2.f32 %v306_v62 }
 0x1a8   :  { %v298_v1 = vpop.xlane.xlu2 %297 }
 0x1a9   :  { %v6250_v2 = vpop.eup %6249  ;;  %v304_v3 = vsub.f32 %v267_v35, %v298_v1 }
 0x1aa   :  { %v314_v4 = vsel %vm213_vm1, %v6250_v2, 0.0 }
 0x1ab   :  { %v310_v5 = vmul.f32 1.442695, %v304_v3  ;;  %315 = vadd.xlane.f32.xlu1 %v314_v4 }
 0x1ad   :  { %6251 = vpow2.f32 %v310_v5 }
 0x1ae   :  { %v295_v6 = vpop.xlane.xlu0 %294 }
 0x1af   :  { %v303_v8 = vsub.f32 %v248_v37, %v295_v6 }
 0x1b0   :  { %v301_v29 = vpop.xlane.xlu2 %300 }
 0x1b1   :  { %v308_v10 = vmul.f32 1.442695, %v303_v8  ;;  %v305_v30 = vsub.f32 %v6731_v39, %v301_v29 }
 0x1b3   :  { %v6252_v12 = vpop.eup %6251  ;;  %6253 = vpow2.f32 %v308_v10  ;;  %v312_v31 = vmul.f32 1.442695, %v305_v30 }
 0x1b4   :  { %v320_v13 = vsel %vm213_vm1, %v6252_v12, 0.0 }
 0x1b5   :  { %321 = vadd.xlane.f32.xlu2 %v320_v13  ;;  %6255 = vpow2.f32 %v312_v31 }
 0x1b8   :  { %v419_v36 = vpop.permute.xlu2 %418 }
 0x1b9   :  { %v6254_v17 = vpop.eup %6253 }
 0x1ba   :  { %v317_v19 = vsel %vm213_vm1, %v6254_v17, 0.0 }
 0x1bb   :  { %318 = vadd.xlane.f32.xlu1 %v317_v19  ;;  %v6256_v32 = vpop.eup %6255 }
 0x1bc   :  { %v323_v16 = vsel %vm213_vm1, %v6256_v32, 0.0 }
 0x1c1   :  { %v424_v20 = vpop.permute.xlu0 %423 }
 0x1c2   :  { %v429_v21 = vsel %vm213_vm1, %v424_v20, 0 }
 0x1c3   :  { %438 = vmatpush.bf16.xpose.msrb.mxu2 %v429_v21 }
 0x1c9   :  { %v448_v22 = vpop.permute.xlu0 %447 }
 0x1d1   :  { %v482_v24 = vpop.permute.xlu0 %481 }
 0x1d2   :  { %v487_v25 = vsel %vm213_vm1, %v482_v24, 0 }
 0x1d3   :  { %496 = vmatpush.bf16.xpose.msrb.mxu0 %v487_v25 }
 0x1d4   :  { %452 = vrot.lane.b32.xlu1 %v6781_v26, %s8398_s7 }
 0x1d9   :  { %v511_v27 = vpop.permute.xlu0 %510 }
 0x1da   :  { %v516_v28 = vsel %vm213_vm1, %v511_v27, 0 }
 0x1db   :  { %525 = vmatpush.bf16.xpose.msra.mxu1 %v516_v28 }
 0x1e1   :  { %v477_v52 = vpop.permute.xlu0 %476 }
 0x1e9   :  { %v506_v63 = vpop.permute.xlu0 %505 }
 0x1fe   :  { %324 = vadd.xlane.f32.xlu1 %v323_v16 }
 0x21e   :  { %v316_v35 = vpop.xlane.xlu1 %315 }
 0x21f   :  { %6257 = vrcp.f32 %v316_v35  ;;  %v580_v35 = vunpack.c.l.b16 %v6763_v61 }
 0x225   :  { %v6258_v37 = vpop.eup %6257 }
 0x226   :  { %v330_v38 = vmul.f32 %v6258_v37, %v6250_v2  ;;  %v6825_v37 = vpack.c.b16 %v580_v35, %v580_v35 }
 0x228   :  { %v334_v40 = vpack.c.bf16 %v330_v38, %v330_v38  ;;  %v322_v41 = vpop.xlane.xlu2 %321 }
 0x229   :  { %6259 = vrcp.f32 %v322_v41 }
 0x22a   :  { %5650 = vmatmul.msk.bf16.vlgmr.msra.gmra.mxu2 %vm213_vm1, %v334_v40 }
 0x22e   :  { %v319_v39 = vpop.xlane.xlu1 %318 }
 0x22f   :  { %v6260_v42 = vpop.eup %6259  ;;  %6261 = vrcp.f32 %v319_v39 }
 0x230   :  { %v332_v43 = vmul.f32 %v6260_v42, %v6252_v12 }
 0x232   :  { %v336_v44 = vpack.c.bf16 %v332_v43, %v332_v43 }
 0x234   :  { %5652 = vmatmul.msk.bf16.vlgmr.msra.gmra.mxu0 %vm213_vm1, %v336_v44 }
 0x235   :  { %v6262_v46 = vpop.eup %6261 }
 0x236   :  { %v331_v47 = vmul.f32 %v6262_v46, %v6254_v17  ;;  %v604_v17 = vunpack.c.l.b16 %v210_v33  ;;  %v628_v46 = vunpack.c.l.b16 %v6768_v9 }
 0x238   :  { %v335_v50 = vpack.c.bf16 %v331_v47, %v331_v47  ;;  %v6808_v18 = vpack.c.b16 %v604_v17, %v604_v17  ;;  %v6836_v47 = vpack.c.b16 %v628_v46, %v628_v46 }
 0x23a   :  { %5651 = vmatmul.msk.bf16.vlgmr.msra.gmra.mxu3 %vm213_vm1, %v335_v50  ;;  %5654 = vmatmul.msk.bf16.vlgmr.msrb.gmra.mxu2 %vm213_vm1, %v419_v36  ;;  %v652_v50 = vunpack.c.l.b16 %v6773_v15 }
 0x244   :  { %5656 = vmatmul.msk.bf16.vlgmr.msrb.gmra.mxu0 %vm213_vm1, %v477_v52  ;;  %v6843_v52 = vpack.c.b16 %v652_v50, %v652_v50 }
 0x246   :  { %v453_v54 = vpop.permute.xlu1 %452 }
 0x247   :  { %v458_v56 = vsel %vm213_vm1, %v453_v54, 0 }
 0x248   :  { %467 = vmatpush.bf16.xpose.msrb.mxu3 %v458_v56 }
 0x24f   :  { %5655 = vmatmul.msk.bf16.vlgmr.msrb.gmra.mxu3 %vm213_vm1, %v448_v22 }
 0x271   :  { %v325_v58 = vpop.xlane.xlu1 %324 }
 0x272   :  { %6263 = vrcp.f32 %v325_v58 }
 0x278   :  { %v6264_v59 = vpop.eup %6263 }
 0x279   :  { %v333_v60 = vmul.f32 %v6264_v59, %v6256_v32 }
 0x27b   :  { %v337_v62 = vpack.c.bf16 %v333_v60, %v333_v60 }
 0x27d   :  { %5653 = vmatmul.msk.bf16.vlgmr.msrb.gmra.mxu1 %vm213_vm1, %v337_v62 }
 0x28d   :  { %5657 = vmatmul.msk.bf16.vlgmr.msra.gmra.mxu1 %vm213_vm1, %v506_v63 }
 0x2ad   :  { %v6798_v0 = vpop.f32.mrf.mxu2 }
 0x2b1   :  { %v6800_v1 = vpop.f32.mrf.mxu0 }
 0x2b5   :  { %v356_v2 = vpop.f32.mrf.mxu2 }
 0x2b9   :  { %v394_v3 = vpop.f32.mrf.mxu0 }
 0x2bd   :  { %v6802_v4 = vpop.f32.mrf.mxu3  ;;  %v440_v5 = vpop.f32.mrf.mxu2 }
 0x2be   :  { %v531_v6 = vsel %vm213_vm1, %v440_v5, -inf }
 0x2bf   :  { %532 = vmax.xlane.f32.xlu0 %v531_v6 }
 0x2c1   :  { %v6805_v7 = vpop.f32.mrf.mxu0 }
 0x2c2   :  { %v537_v41 = vsel %vm213_vm1, %v6805_v7, -inf }
 0x2c5   :  { %v375_v8 = vpop.f32.mrf.mxu3  ;;  %v442_v10 = vpop.f32.mrf.mxu2 }
 0x2c9   :  { %v500_v11 = vpop.f32.mrf.mxu0 }
 0x2d2   :  { %v469_v12 = vpop.f32.mrf.mxu3 }
 0x2d3   :  { %v534_v13 = vsel %vm213_vm1, %v469_v12, -inf }
 0x2d4   :  { %535 = vmax.xlane.f32.xlu2 %v534_v13 }
 0x2da   :  { %v471_v14 = vpop.f32.mrf.mxu3 }
 0x2ec   :  { %606 = vrot.lane.b32.xlu2 %v6808_v18, %s8398_s7 }
 0x2f4   :  { %677 = vrot.lane.b32.xlu2 %v6735_v45, %s8396_s25 }
 0x2fa   :  { %v6814_v19 = vpop.f32.mrf.mxu1 }
 0x2fc   :  { %675 = vrot.lane.b32.xlu2 %v6739_v48, %s8396_s25 }
 0x302   :  { %v413_v20 = vpop.f32.mrf.mxu1 }
 0x30a   :  { %v527_v21 = vpop.f32.mrf.mxu1 }
 0x30b   :  { %v540_v22 = vsel %vm213_vm1, %v527_v21, -inf }
 0x30c   :  { %541 = vmax.xlane.f32.xlu0 %v540_v22 }
 0x312   :  { %v529_v23 = vpop.f32.mrf.mxu1 }
 0x320   :  { %700 = vrot.lane.b32.xlu0 %v6781_v26, %s8396_s25 }
 0x332   :  { %v533_v24 = vpop.xlane.xlu0 %532 }
 0x333   :  { %v543_v25 = vsub.f32 %v440_v5, %v533_v24 }
 0x335   :  { %v547_v27 = vmul.f32 1.442695, %v543_v25 }
 0x337   :  { %6265 = vpow2.f32 %v547_v27 }
 0x33d   :  { %v6266_v28 = vpop.eup %6265 }
 0x33e   :  { %v555_v29 = vsel %vm213_vm1, %v6266_v28, 0.0 }
 0x33f   :  { %556 = vadd.xlane.f32.xlu1 %v555_v29 }
 0x347   :  { %v536_v30 = vpop.xlane.xlu2 %535 }
 0x348   :  { %v544_v31 = vsub.f32 %v469_v12, %v536_v30 }
 0x34a   :  { %v549_v32 = vmul.f32 1.442695, %v544_v31 }
 0x34c   :  { %6267 = vpow2.f32 %v549_v32 }
 0x34f   :  { %v607_v16 = vpop.permute.xlu2 %606 }
 0x350   :  { %v612_v33 = vsel %vm341_vm2, %v607_v16, 0 }
 0x351   :  { %621 = vmatpush.bf16.msra.mxu3 %v612_v33 }
 0x352   :  { %v6268_v34 = vpop.eup %6267 }
 0x353   :  { %v558_v36 = vsel %vm213_vm1, %v6268_v34, 0.0 }
 0x354   :  { %559 = vadd.xlane.f32.xlu2 %v558_v36 }
 0x357   :  { %v678_v9 = vpop.permute.xlu2 %677 }
 0x358   :  { %582 = vrot.lane.b32.xlu1 %v6825_v37, %s8398_s7  ;;  %v683_v63 = vsel %vm213_vm1, %v678_v9, 0 }
 0x35f   :  { %v676_v56 = vpop.permute.xlu2 %675 }
 0x36c   :  { %698 = vrot.lane.b32.xlu2 %v6743_v49, %s8396_s25 }
 0x37f   :  { %v542_v38 = vpop.xlane.xlu0 %541 }
 0x380   :  { %v546_v40 = vsub.f32 %v527_v21, %v542_v38 }
 0x382   :  { %v553_v39 = vmul.f32 1.442695, %v546_v40  ;;  %538 = vmax.xlane.f32.xlu1 %v537_v41 }
 0x384   :  { %6269 = vpow2.f32 %v553_v39 }
 0x38a   :  { %v6270_v61 = vpop.eup %6269 }
 0x38b   :  { %v564_v42 = vsel %vm213_vm1, %v6270_v61, 0.0 }
 0x38c   :  { %565 = vadd.xlane.f32.xlu0 %v564_v42 }
 0x392   :  { %v701_v43 = vpop.permute.xlu0 %700 }
 0x393   :  { %v706_v44 = vsel %vm213_vm1, %v701_v43, 0 }
 0x394   :  { %715 = vmatpush.bf16.xpose.msrb.mxu3 %v706_v44 }
 0x39b   :  { %630 = vrot.lane.b32.xlu1 %v6836_v47, %s8398_s7 }
 0x3a0   :  { %746 = vrot.lane.b32.xlu0 %v6751_v53, %s8396_s25 }
 0x3a3   :  { %654 = vrot.lane.b32.xlu1 %v6843_v52, %s8398_s7 }
 0x3ab   :  { %721 = vrot.lane.b32.xlu1 %v6755_v55, %s8396_s25 }
 0x3b2   :  { %v557_v54 = vpop.xlane.xlu1 %556 }
 0x3b3   :  { %744 = vrot.lane.b32.xlu1 %v6759_v57, %s8396_s25  ;;  %6271 = vrcp.f32 %v557_v54 }
 0x3b9   :  { %v6272_v58 = vpop.eup %6271 }
 0x3ba   :  { %v571_v59 = vmul.f32 %v6272_v58, %v6266_v28 }
 0x3bc   :  { %v575_v2 = vpack.c.bf16 %v571_v59, %v571_v59 }
 0x3c7   :  { %v560_v15 = vpop.xlane.xlu2 %559 }
 0x3c8   :  { %6273 = vrcp.f32 %v560_v15 }
 0x3ca   :  { %v583_v60 = vpop.permute.xlu1 %582 }
 0x3cb   :  { %v588_v62 = vsel %vm341_vm2, %v583_v60, 0 }
 0x3cc   :  { %597 = vmatpush.bf16.msra.mxu2 %v588_v62 }
 0x3ce   :  { %v6274_v3 = vpop.eup %6273 }
 0x3cf   :  { %v572_v5 = vmul.f32 %v6274_v3, %v6268_v34  ;;  %5658 = vmatmul.msk.bf16.vlgmr.msra.gmra.mxu2 %vm213_vm1, %v575_v2  ;;  %v699_v8 = vpop.permute.xlu2 %698 }
 0x3d0   :  { %692 = vmatpush.bf16.xpose.msrb.mxu2 %v683_v63 }
 0x3d1   :  { %v576_v6 = vpack.c.bf16 %v572_v5, %v572_v5 }
 0x3d3   :  { %5659 = vmatmul.msk.bf16.vlgmr.msra.gmra.mxu3 %vm213_vm1, %v576_v6 }
 0x3df   :  { %5662 = vmatmul.msk.bf16.vlgmr.msrb.gmra.mxu2 %vm213_vm1, %v676_v56 }
 0x3e3   :  { %5663 = vmatmul.msk.bf16.vlgmr.msrb.gmra.mxu3 %vm213_vm1, %v699_v8 }
 0x3f5   :  { %v539_v10 = vpop.xlane.xlu1 %538 }
 0x3f6   :  { %v545_v11 = vsub.f32 %v6805_v7, %v539_v10 }
 0x3f8   :  { %v551_v12 = vmul.f32 1.442695, %v545_v11 }
 0x3fa   :  { %6275 = vpow2.f32 %v551_v12 }
 0x3ff   :  { %v566_v17 = vpop.xlane.xlu0 %565 }
 0x400   :  { %v6276_v13 = vpop.eup %6275  ;;  %6277 = vrcp.f32 %v566_v17 }
 0x401   :  { %v561_v14 = vsel %vm213_vm1, %v6276_v13, 0.0 }
 0x402   :  { %562 = vadd.xlane.f32.xlu2 %v561_v14 }
 0x406   :  { %v6278_v22 = vpop.eup %6277 }
 0x407   :  { %v574_v23 = vmul.f32 %v6278_v22, %v6270_v61 }
 0x409   :  { %v578_v28 = vpack.c.bf16 %v574_v23, %v574_v23 }
 0x40d   :  { %v631_v20 = vpop.permute.xlu1 %630 }
 0x40e   :  { %v636_v21 = vsel %vm341_vm2, %v631_v20, 0 }
 0x40f   :  { %645 = vmatpush.bf16.msra.mxu0 %v636_v21 }
 0x412   :  { %v747_v24 = vpop.permute.xlu0 %746 }
 0x413   :  { %v752_v7 = vsel %vm213_vm1, %v747_v24, 0 }
 0x415   :  { %v655_v25 = vpop.permute.xlu1 %654 }
 0x416   :  { %v660_v27 = vsel %vm341_vm2, %v655_v25, 0 }
 0x417   :  { %669 = vmatpush.bf16.msrb.mxu1 %v660_v27 }
 0x41a   :  { %723 = vrot.lane.b32.xlu2 %v6747_v51, %s8396_s25  ;;  %5661 = vmatmul.msk.bf16.vlgmr.msrb.gmra.mxu1 %vm213_vm1, %v578_v28 }
 0x41b   :  { %761 = vmatpush.bf16.xpose.msra.mxu1 %v752_v7 }
 0x41d   :  { %v722_v29 = vpop.permute.xlu1 %721 }
 0x425   :  { %v745_v30 = vpop.permute.xlu1 %744 }
 0x42a   :  { %5665 = vmatmul.msk.bf16.vlgmr.msra.gmra.mxu1 %vm213_vm1, %v745_v30 }
 0x452   :  { %v6866_v31 = vpop.f32.mrf.mxu2 }
 0x456   :  { %v6868_v32 = vpop.f32.mrf.mxu3 }
 0x457   :  { %v6109_v16 = vpack.i.bf16 %v6868_v32, %v6866_v31 }
 0x45a   :  { %v601_v33 = vpop.f32.mrf.mxu2 }
 0x45e   :  { %v625_v34 = vpop.f32.mrf.mxu3 }
 0x462   :  { %v694_v35 = vpop.f32.mrf.mxu2 }
 0x463   :  { %v767_v36 = vsel %vm213_vm1, %v694_v35, -inf }
 0x464   :  { %768 = vmax.xlane.f32.xlu1 %v767_v36 }
 0x466   :  { %v717_v38 = vpop.f32.mrf.mxu3 }
 0x467   :  { %v770_v40 = vsel %vm213_vm1, %v717_v38, -inf }
 0x468   :  { %771 = vmax.xlane.f32.xlu0 %v770_v40 }
 0x46a   :  { %v696_v41 = vpop.f32.mrf.mxu2 }
 0x46e   :  { %v719_v39 = vpop.f32.mrf.mxu3 }
 0x475   :  { %v563_v61 = vpop.xlane.xlu2 %562 }
 0x476   :  { %6279 = vrcp.f32 %v563_v61 }
 0x47c   :  { %v6280_v42 = vpop.eup %6279 }
 0x47d   :  { %v573_v43 = vmul.f32 %v6280_v42, %v6276_v13  ;;  %815 = vrot.lane.b32.xlu1 %v6825_v37, %s8396_s25  ;;  %v724_v44 = vpop.permute.xlu2 %723 }
 0x47e   :  { %v729_v46 = vsel %vm213_vm1, %v724_v44, 0 }
 0x47f   :  { %v577_v50 = vpack.c.bf16 %v573_v43, %v573_v43  ;;  %738 = vmatpush.bf16.xpose.msrb.mxu0 %v729_v46 }
 0x481   :  { %5660 = vmatmul.msk.bf16.vlgmr.msra.gmra.mxu0 %vm213_vm1, %v577_v50 }
 0x491   :  { %5664 = vmatmul.msk.bf16.vlgmr.msrb.gmra.mxu0 %vm213_vm1, %v722_v29 }
 0x497   :  { %v6879_v9 = vpop.f32.mrf.mxu1 }
 0x49f   :  { %v673_v54 = vpop.f32.mrf.mxu1 }
 0x4a7   :  { %v763_v56 = vpop.f32.mrf.mxu1 }
 0x4a8   :  { %v776_v58 = vsel %vm213_vm1, %v763_v56, -inf }
 0x4a9   :  { %777 = vmax.xlane.f32.xlu2 %v776_v58 }
 0x4af   :  { %v765_v15 = vpop.f32.mrf.mxu1 }
 0x4c1   :  { %901 = vrot.lane.b32.xlu2 %v6735_v45, %s8394_s26 }
 0x4d7   :  { %v769_v59 = vpop.xlane.xlu1 %768 }
 0x4d8   :  { %v779_v60 = vsub.f32 %v694_v35, %v769_v59 }
 0x4da   :  { %v783_v62 = vmul.f32 1.442695, %v779_v60 }
 0x4db   :  { %v772_v63 = vpop.xlane.xlu0 %771 }
 0x4dc   :  { %v780_v2 = vsub.f32 %v717_v38, %v772_v63  ;;  %6281 = vpow2.f32 %v783_v62 }
 0x4de   :  { %v785_v3 = vmul.f32 1.442695, %v780_v2 }
 0x4e0   :  { %6283 = vpow2.f32 %v785_v3 }
 0x4e2   :  { %v6282_v5 = vpop.eup %6281 }
 0x4e3   :  { %v791_v10 = vsel %vm213_vm1, %v6282_v5, 0.0 }
 0x4e6   :  { %v6884_v6 = vpop.eup %6283 }
 0x4e7   :  { %v794_v8 = vsel %vm213_vm1, %v6884_v6, 0.0 }
 0x4e8   :  { %795 = vadd.xlane.f32.xlu1 %v794_v8 }
 0x4ea   :  { %792 = vadd.xlane.f32.xlu2 %v791_v10 }
 0x4ef   :  { %v816_v11 = vpop.permute.xlu1 %815 }
 0x4f0   :  { %v821_v45 = vsel %vm341_vm2, %v816_v11, 0 }
 0x4f1   :  { %830 = vmatpush.bf16.msra.mxu2 %v821_v45 }
 0x4fe   :  { %v6890_v12 = vpop.f32.mrf.mxu0 }
 0x501   :  { %899 = vrot.lane.b32.xlu1 %v6739_v48, %s8394_s26 }
 0x502   :  { %922 = vrot.lane.b32.xlu2 %v6743_v49, %s8394_s26 }
 0x506   :  { %v649_v13 = vpop.f32.mrf.mxu0 }
 0x50a   :  { %857 = vrot.lane.b32.xlu2 %v6836_v47, %s8396_s25 }
 0x50e   :  { %v740_v14 = vpop.f32.mrf.mxu0 }
 0x50f   :  { %v773_v17 = vsel %vm213_vm1, %v740_v14, -inf }
 0x510   :  { %774 = vmax.xlane.f32.xlu0 %v773_v17 }
 0x512   :  { %878 = vrot.lane.b32.xlu2 %v6843_v52, %s8396_s25 }
 0x516   :  { %v742_v20 = vpop.f32.mrf.mxu0 }
 0x51a   :  { %947 = vrot.lane.b32.xlu2 %v6747_v51, %s8394_s26 }
 0x51c   :  { %v778_v21 = vpop.xlane.xlu2 %777 }
 0x51d   :  { %v782_v48 = vsub.f32 %v763_v56, %v778_v21 }
 0x51f   :  { %v789_v22 = vmul.f32 1.442695, %v782_v48 }
 0x521   :  { %6285 = vpow2.f32 %v789_v22 }
 0x522   :  { %970 = vrot.lane.b32.xlu2 %v6751_v53, %s8394_s26 }
 0x524   :  { %836 = vrot.lane.b32.xlu0 %v6808_v18, %s8396_s25  ;;  %v902_v49 = vpop.permute.xlu2 %901 }
 0x525   :  { %v907_v23 = vsel %vm213_vm1, %v902_v49, 0 }
 0x526   :  { %916 = vmatpush.bf16.xpose.msrb.mxu2 %v907_v23 }
 0x527   :  { %v6286_v24 = vpop.eup %6285 }
 0x528   :  { %v800_v51 = vsel %vm213_vm1, %v6286_v24, 0.0 }
 0x52a   :  { %945 = vrot.lane.b32.xlu2 %v6755_v55, %s8394_s26 }
 0x52b   :  { %801 = vadd.xlane.f32.xlu1 %v800_v51 }
 0x52c   :  { %924 = vrot.lane.b32.xlu0 %v6781_v26, %s8394_s26 }
 0x55b   :  { %v796_v33 = vpop.xlane.xlu1 %795 }
 0x55d   :  { %v793_v25 = vpop.xlane.xlu2 %792 }
 0x55e   :  { %6287 = vrcp.f32 %v793_v25 }
 0x564   :  { %v6288_v53 = vpop.eup %6287 }
 0x565   :  { %v807_v27 = vmul.f32 %v6288_v53, %v6282_v5  ;;  %v923_v7 = vpop.permute.xlu2 %922 }
 0x567   :  { %v811_v28 = vpack.c.bf16 %v807_v27, %v807_v27 }
 0x569   :  { %5666 = vmatmul.msk.bf16.vlgmr.msra.gmra.mxu2 %vm213_vm1, %v811_v28 }
 0x56d   :  { %v858_v29 = vpop.permute.xlu2 %857 }
 0x56e   :  { %v863_v30 = vsel %vm341_vm2, %v858_v29, 0 }
 0x56f   :  { %872 = vmatpush.bf16.msra.mxu0 %v863_v30 }
 0x573   :  { %v900_v35 = vpop.permute.xlu1 %899 }
 0x575   :  { %v879_v55 = vpop.permute.xlu2 %878 }
 0x576   :  { %v884_v34 = vsel %vm341_vm2, %v879_v55, 0 }
 0x577   :  { %893 = vmatpush.bf16.msrb.mxu1 %v884_v34 }
 0x579   :  { %5670 = vmatmul.msk.bf16.vlgmr.msrb.gmra.mxu2 %vm213_vm1, %v900_v35 }
 0x57d   :  { %v948_v26 = vpop.permute.xlu2 %947 }
 0x57e   :  { %v953_v36 = vsel %vm213_vm1, %v948_v26, 0 }
 0x57f   :  { %962 = vmatpush.bf16.xpose.msrb.mxu0 %v953_v36 }
 0x583   :  { %v775_v38 = vpop.xlane.xlu0 %774 }
 0x584   :  { %v781_v40 = vsub.f32 %v740_v14, %v775_v38 }
 0x585   :  { %v971_v41 = vpop.permute.xlu2 %970 }
 0x586   :  { %v787_v39 = vmul.f32 1.442695, %v781_v40  ;;  %v976_v61 = vsel %vm213_vm1, %v971_v41, 0 }
 0x587   :  { %985 = vmatpush.bf16.xpose.msra.mxu1 %v976_v61 }
 0x588   :  { %6289 = vpow2.f32 %v787_v39 }
 0x589   :  { %6291 = vrcp.f32 %v796_v33 }
 0x58d   :  { %v946_v14 = vpop.permute.xlu2 %945 }
 0x58e   :  { %v6290_v42 = vpop.eup %6289 }
 0x58f   :  { %v797_v43 = vsel %vm213_vm1, %v6290_v42, 0.0  ;;  %v6292_v44 = vpop.eup %6291 }
 0x590   :  { %798 = vadd.xlane.f32.xlu0 %v797_v43  ;;  %v808_v46 = vmul.f32 %v6292_v44, %v6884_v6 }
 0x592   :  { %v812_v56 = vpack.c.bf16 %v808_v46, %v808_v46 }
 0x596   :  { %v837_v50 = vpop.permute.xlu0 %836 }
 0x597   :  { %v842_v54 = vsel %vm341_vm2, %v837_v50, 0 }
 0x598   :  { %851 = vmatpush.bf16.msra.mxu3 %v842_v54 }
 0x59b   :  { %5667 = vmatmul.msk.bf16.vlgmr.msra.gmra.mxu3 %vm213_vm1, %v812_v56 }
 0x59e   :  { %v925_v58 = vpop.permute.xlu0 %924  ;;  %v802_v15 = vpop.xlane.xlu1 %801 }
 0x59f   :  { %v930_v59 = vsel %vm213_vm1, %v925_v58, 0  ;;  %6293 = vrcp.f32 %v802_v15 }
 0x5a0   :  { %939 = vmatpush.bf16.xpose.msrb.mxu3 %v930_v59 }
 0x5a4   :  { %968 = vrot.lane.b32.xlu0 %v6759_v57, %s8394_s26 }
 0x5a5   :  { %v6294_v60 = vpop.eup %6293 }
 0x5a6   :  { %v810_v62 = vmul.f32 %v6294_v60, %v6286_v24 }
 0x5a8   :  { %v814_v63 = vpack.c.bf16 %v810_v62, %v810_v62 }
 0x5aa   :  { %5669 = vmatmul.msk.bf16.vlgmr.msrb.gmra.mxu1 %vm213_vm1, %v814_v63 }
 0x5ab   :  { %5671 = vmatmul.msk.bf16.vlgmr.msrb.gmra.mxu3 %vm213_vm1, %v923_v7 }
 0x5ec   :  { %v832_v2 = vpop.f32.mrf.mxu2 }
 0x5f4   :  { %v834_v3 = vpop.f32.mrf.mxu2 }
 0x5fc   :  { %v918_v5 = vpop.f32.mrf.mxu2 }
 0x5fd   :  { %v991_v6 = vsel %vm213_vm1, %v918_v5, -inf }
 0x5fe   :  { %992 = vmax.xlane.f32.xlu2 %v991_v6 }
 0x603   :  { %v799_v8 = vpop.xlane.xlu0 %798 }
 0x604   :  { %6295 = vrcp.f32 %v799_v8  ;;  %v920_v10 = vpop.f32.mrf.mxu2 }
 0x60a   :  { %v6296_v11 = vpop.eup %6295 }
 0x60b   :  { %v809_v45 = vmul.f32 %v6296_v11, %v6290_v42 }
 0x60d   :  { %v813_v13 = vpack.c.bf16 %v809_v45, %v809_v45 }
 0x60f   :  { %5668 = vmatmul.msk.bf16.vlgmr.msra.gmra.mxu0 %vm213_vm1, %v813_v13 }
 0x616   :  { %v969_v57 = vpop.permute.xlu0 %968  ;;  %1060 = vrot.lane.b32.xlu2 %v6808_v18, %s8394_s26 }
 0x617   :  { %5673 = vmatmul.msk.bf16.vlgmr.msra.gmra.mxu1 %vm213_vm1, %v969_v57 }
 0x61e   :  { %v853_v17 = vpop.f32.mrf.mxu3  ;;  %1081 = vrot.lane.b32.xlu2 %v6836_v47, %s8394_s26  ;;  %v6124_v47 = vpack.i.bf16 %v6879_v9, %v6890_v12 }
 0x61f   :  { %5672 = vmatmul.msk.bf16.vlgmr.msrb.gmra.mxu0 %vm213_vm1, %v946_v14  ;;  %v6114_v48 = vpack.i.bf16 %v853_v17, %v832_v2 }
 0x626   :  { %v855_v20 = vpop.f32.mrf.mxu3  ;;  %6110 = vrot.lane.b32.xlu2 %v6109_v16, %s8390_s0 }
 0x627   :  { %v6940_v21 = vpop.f32.mrf.mxu1 }
 0x62e   :  { %6115 = vrot.lane.b32.xlu2 %v6114_v48, %s8392_s27  ;;  %v941_v18 = vpop.f32.mrf.mxu3 }
 0x62f   :  { %v897_v22 = vpop.f32.mrf.mxu1  ;;  %v994_v49 = vsel %vm213_vm1, %v941_v18, -inf }
 0x630   :  { %995 = vmax.xlane.f32.xlu1 %v994_v49 }
 0x636   :  { %6125 = vrot.lane.b32.xlu2 %v6124_v47, %s8390_s0  ;;  %v943_v23 = vpop.f32.mrf.mxu3  ;;  %s8417_s0 = smov 16  }
 0x637   :  { %v6057_v23 = vld [vmem:[%s8414_s6 + $0x8] sm:$0xff] }
 0x671   :  { %v993_v24 = vpop.xlane.xlu2 %992 }
 0x672   :  { %v1003_v53 = vsub.f32 %v918_v5, %v993_v24  ;;  %v6056_v24 = vld [vmem:[%s8414_s6] sm:$0xff] }
 0x674   :  { %v1007_v9 = vmul.f32 1.442695, %v1003_v53 }
 0x676   :  { %6297 = vpow2.f32 %v1007_v9 }
 0x679   :  { %v1061_v31 = vpop.permute.xlu2 %1060 }
 0x67a   :  { %v1066_v32 = vsel %vm341_vm2, %v1061_v31, 0 }
 0x67b   :  { %1075 = vmatpush.bf16.msra.mxu3 %v1066_v32 }
 0x67c   :  { %v6298_v33 = vpop.eup %6297 }
 0x67d   :  { %v1015_v26 = vsel %vm213_vm1, %v6298_v33, 0.0 }
 0x681   :  { %v1082_v16 = vpop.permute.xlu2 %1081 }
 0x682   :  { %v1087_v51 = vsel %vm341_vm2, %v1082_v16, 0 }
 0x683   :  { %1096 = vmatpush.bf16.msra.mxu0 %v1087_v51 }
 0x68c   :  { %v6949_v25 = vpop.f32.mrf.mxu0 }
 0x68d   :  { %v6129_v47 = vpack.i.bf16 %v6940_v21, %v6949_v25  ;;  %v6111_v21 = vpop.permute.xlu2 %6110 }
 0x694   :  { %v876_v27 = vpop.f32.mrf.mxu0  ;;  %v987_v7 = vpop.f32.mrf.mxu1 }
 0x695   :  { %v1000_v28 = vsel %vm213_vm1, %v987_v7, -inf  ;;  %v6116_v25 = vpop.permute.xlu2 %6115  ;;  %v6113_v27 = vunpack.i.h.bf16 %v6111_v21 }
 0x696   :  { %1001 = vmax.xlane.f32.xlu0 %v1000_v28  ;;  %v6118_v28 = vunpack.i.h.bf16 %v6116_v25  ;;  %v6117_v9 = vunpack.i.l.bf16 %v6116_v25 }
 0x69c   :  { %v964_v12 = vpop.f32.mrf.mxu0  ;;  %v989_v29 = vpop.f32.mrf.mxu1 }
 0x69d   :  { %v997_v30 = vsel %vm213_vm1, %v964_v12, -inf  ;;  %v1172_v29 = vsel %vm213_vm1, %v6802_v4, %v6113_v27 }
 0x69e   :  { %998 = vmax.xlane.f32.xlu1 %v997_v30 }
 0x6a3   :  { %v996_v55 = vpop.xlane.xlu1 %995 }
 0x6a4   :  { %v1004_v34 = vsub.f32 %v941_v18, %v996_v55  ;;  %v966_v35 = vpop.f32.mrf.mxu0 }
 0x6a5   :  { %v1177_v35 = vsel %vm1175_vm3, %v1172_v29, %v6118_v28 }
 0x6a6   :  { %v1009_v36 = vmul.f32 1.442695, %v1004_v34  ;;  %1016 = vadd.xlane.f32.xlu1 %v1015_v26 }
 0x6a8   :  { %6299 = vpow2.f32 %v1009_v36 }
 0x6ae   :  { %v6300_v38 = vpop.eup %6299 }
 0x6af   :  { %v1018_v40 = vsel %vm213_vm1, %v6300_v38, 0.0 }
 0x6b0   :  { %1019 = vadd.xlane.f32.xlu1 %v1018_v40  ;;  %v6126_v40 = vpop.permute.xlu2 %6125 }
 0x6b1   :  { %v6127_v4 = vunpack.i.l.bf16 %v6126_v40 }
 0x6c9   :  { %1039 = vrot.lane.b32.xlu1 %v6825_v37, %s8394_s26 }
 0x709   :  { %v1002_v41 = vpop.xlane.xlu0 %1001 }
 0x70a   :  { %v1006_v39 = vsub.f32 %v987_v7, %v1002_v41  ;;  %v6112_v7 = vunpack.i.l.bf16 %v6111_v21 }
 0x70c   :  { %v1013_v61 = vmul.f32 1.442695, %v1006_v39  ;;  %v1171_v30 = vsel %vm213_vm1, %v6798_v0, %v6112_v7  ;;  %v6128_v39 = vunpack.i.h.bf16 %v6126_v40  ;;  %v6061_v40 = vld [vmem:[%s8365_s10 + $0x8] sm:$0xff] }
 0x70d   :  { %v1176_v34 = vsel %vm1175_vm3, %v1171_v30, %v6117_v9  ;;  %1422 = vmatpush.bf16.msrb.mxu0 %v6061_v40 }
 0x70e   :  { %6301 = vpow2.f32 %v1013_v61 }
 0x711   :  { %v999_v42 = vpop.xlane.xlu1 %998 }
 0x712   :  { %v1005_v43 = vsub.f32 %v964_v12, %v999_v42 }
 0x714   :  { %v6302_v44 = vpop.eup %6301  ;;  %v1011_v46 = vmul.f32 1.442695, %v1005_v43  ;;  %v1174_v43 = vsel %vm213_vm1, %v6814_v19, %v6128_v39  ;;  %v6229_v19 = vld [vmem:[%s8415_s30] ss:$0 sm:$0xff] }
 0x715   :  { %v1024_v50 = vsel %vm213_vm1, %v6302_v44, 0.0  ;;  %v76_v39 = vld [vmem:[%s8366_s1] sm:$0xff] }
 0x716   :  { %6303 = vpow2.f32 %v1011_v46  ;;  %1025 = vadd.xlane.f32.xlu0 %v1024_v50 }
 0x719   :  { %v1017_v54 = vpop.xlane.xlu1 %1016 }
 0x71c   :  { %v6304_v56 = vpop.eup %6303 }
 0x71d   :  { %v1021_v58 = vsel %vm213_vm1, %v6304_v56, 0.0 }
 0x71e   :  { %1022 = vadd.xlane.f32.xlu1 %v1021_v58 }
 0x723   :  { %v1020_v15 = vpop.xlane.xlu1 %1019 }
 0x724   :  { %6305 = vrcp.f32 %v1020_v15 }
 0x725   :  { %6307 = vrcp.f32 %v1017_v54 }
 0x72a   :  { %v6306_v37 = vpop.eup %6305  ;;  %1102 = vrot.lane.b32.xlu0 %v6843_v52, %s8394_s26 }
 0x72b   :  { %v1032_v59 = vmul.f32 %v6306_v37, %v6300_v38  ;;  %v6308_v62 = vpop.eup %6307 }
 0x72c   :  { %v1031_v63 = vmul.f32 %v6308_v62, %v6298_v33 }
 0x72d   :  { %v1036_v60 = vpack.c.bf16 %v1032_v59, %v1032_v59 }
 0x72e   :  { %v1035_v5 = vpack.c.bf16 %v1031_v63, %v1031_v63 }
 0x72f   :  { %5675 = vmatmul.msk.bf16.vlgmr.msra.gmra.mxu3 %vm213_vm1, %v1036_v60 }
 0x73b   :  { %v1040_v2 = vpop.permute.xlu1 %1039 }
 0x73c   :  { %v1045_v3 = vsel %vm341_vm2, %v1040_v2, 0 }
 0x73d   :  { %1054 = vmatpush.bf16.msra.mxu2 %v1045_v3 }
 0x740   :  { %5674 = vmatmul.msk.bf16.vlgmr.msra.gmra.mxu2 %vm213_vm1, %v1035_v5  ;;  %v6556_v5 = vld [vmem:[%s8412_s24 + $0x8] sm:$0xff] }
 0x741   :  { %1214 = vmatpush.bf16.msrb.mxu2 %v6057_v23 }
 0x745   :  { %1215 = vmatpush.bf16.msrb.mxu2 %v6056_v24 }
 0x789   :  { %v1026_v6 = vpop.xlane.xlu0 %1025 }
 0x78a   :  { %6309 = vrcp.f32 %v1026_v6 }
 0x790   :  { %v6310_v10 = vpop.eup %6309 }
 0x791   :  { %v1023_v8 = vpop.xlane.xlu1 %1022  ;;  %v1034_v45 = vmul.f32 %v6310_v10, %v6302_v44  ;;  %v1173_v44 = vsel %vm213_vm1, %v6800_v1, %v6127_v4  ;;  %v6555_v1 = vld [vmem:[%s8412_s24] sm:$0xff]  ;;  %v77_v4 = vld [vmem:[%s8366_s1 + $0x8] sm:$0xff] }
 0x792   :  { %6311 = vrcp.f32 %v1023_v8 }
 0x793   :  { %v1038_v17 = vpack.c.bf16 %v1034_v45, %v1034_v45 }
 0x798   :  { %v6312_v52 = vpop.eup %6311 }
 0x799   :  { %v1033_v11 = vmul.f32 %v6312_v52, %v6304_v56 }
 0x79b   :  { %v1037_v13 = vpack.c.bf16 %v1033_v11, %v1033_v11  ;;  %v6557_v11 = vld [vmem:[%s8412_s24 + $0x10] sm:$0xff] }
 0x79c   :  { %v1103_v57 = vpop.permute.xlu0 %1102 }
 0x79d   :  { %v1108_v14 = vsel %vm341_vm2, %v1103_v57, 0  ;;  %5676 = vmatmul.msk.bf16.vlgmr.msra.gmra.mxu0 %vm213_vm1, %v1037_v13 }
 0x79e   :  { %1117 = vmatpush.bf16.msrb.mxu1 %v1108_v14 }
 0x7a1   :  { %5677 = vmatmul.msk.bf16.vlgmr.msrb.gmra.mxu1 %vm213_vm1, %v1038_v17  ;;  %v6558_v17 = vld [vmem:[%s8412_s24 + $0x18] sm:$0xff] }
 0x7b2   :  { %v1077_v20 = vpop.f32.mrf.mxu3 }
 0x7ba   :  { %v1079_v48 = vpop.f32.mrf.mxu3 }
 0x7c3   :  { %v1056_v18 = vpop.f32.mrf.mxu2 }
 0x7c4   :  { %v6119_v22 = vpack.i.bf16 %v1077_v20, %v1056_v18  ;;  %v6565_v18 = vmov 32.0  }
 0x7c5   :  { %6313 = vrcp.f32 %v6565_v18  ;;  %v79_v18 = vld [vmem:[%s8366_s1 + $0x18] sm:$0xff] }
 0x7c6   :  { %6120 = vrot.lane.b32.xlu0 %v6119_v22, %s8388_s4 }
 0x7cb   :  { %v1058_v49 = vpop.f32.mrf.mxu2  ;;  %v6314_v22 = vpop.eup %6313 }
 0x7cc   :  { %v1246_v49 = vmul.f32 32.0, %v6314_v22  ;;  %vm1250_vm5 = vweird.f32 %v6314_v22 }
 0x7ce   :  { %6130 = vrot.lane.b32.xlu0 %v6129_v47, %s8392_s27  ;;  %v1247_v47 = vsub.f32 1.0, %v1246_v49  ;;  %s8420_s27 = sld [smem:[#allocation9_spill]] }
 0x7d0   :  { %v1248_v23 = vmul.f32 %v6314_v22, %v1247_v47 }
 0x7d2   :  { %v1249_v24 = vadd.f32 %v6314_v22, %v1248_v23 }
 0x81a   :  { %v1098_v31 = vpop.f32.mrf.mxu0 }
 0x81e   :  { %v1119_v32 = vpop.f32.mrf.mxu1 }
 0x81f   :  { %v6134_v16 = vpack.i.bf16 %v1119_v32, %v1098_v31  ;;  %v7015_v31 = vsel %vm1250_vm5, %v6314_v22, %v1249_v24 }
 0x821   :  { %6135 = vrot.lane.b32.xlu2 %v6134_v16, %s8388_s4  ;;  %s8418_s4 = smov 8  }
 0x822   :  { %v1100_v51 = vpop.f32.mrf.mxu0 }
 0x826   :  { %v1121_v53 = vpop.f32.mrf.mxu1 }
 0x838   :  { %v6121_v12 = vpop.permute.xlu0 %6120 }
 0x839   :  { %v6123_v33 = vunpack.i.h.bf16 %v6121_v12  ;;  %v6122_v55 = vunpack.i.l.bf16 %v6121_v12 }
 0x83b   :  { %v1182_v26 = vsel %vm1180_vm4, %v1177_v35, %v6123_v33  ;;  %v1181_v36 = vsel %vm1180_vm4, %v1176_v34, %v6122_v55 }
 0x83c   :  { %v1185_v38 = vpack.c.bf16 %v1182_v26, %v1181_v36 }
 0x83e   :  { %5686 = vmatmul.msk.bf16.vlgmr.msrb.gmra.mxu2 %vm113_vm0, %v1185_v38 }
 0x840   :  { %v6131_v41 = vpop.permute.xlu0 %6130 }
 0x841   :  { %v6133_v61 = vunpack.i.h.bf16 %v6131_v41  ;;  %v6132_v42 = vunpack.i.l.bf16 %v6131_v41  ;;  %v6060_v41 = vld [vmem:[%s8365_s10] sm:$0xff] }
 0x842   :  { %1423 = vmatpush.bf16.msrb.mxu0 %v6060_v41 }
 0x843   :  { %v1179_v54 = vsel %vm1175_vm3, %v1174_v43, %v6133_v61  ;;  %v1178_v56 = vsel %vm1175_vm3, %v1173_v44, %v6132_v42  ;;  %v7053_v61 = vpack.c.bf16 %v77_v4, %v76_v39  ;;  %v6059_v42 = vld [vmem:[%s8367_s9 + $0x8] sm:$0xff]  ;;  %v6058_v44 = vld [vmem:[%s8367_s9] sm:$0xff] }
 0x844   :  { %1385 = vmatpush.bf16.msrb.mxu3 %v6059_v42 }
 0x845   :  { %5706 = vmatmul.msk.bf16.vlgmr.msrb.gmra.mxu0 %vm113_vm0, %v7053_v61 }
 0x848   :  { %1386 = vmatpush.bf16.msrb.mxu3 %v6058_v44 }
 0x87b   :  { %v6136_v0 = vpop.permute.xlu2 %6135 }
 0x87c   :  { %v6138_v46 = vunpack.i.h.bf16 %v6136_v0  ;;  %v6137_v50 = vunpack.i.l.bf16 %v6136_v0 }
 0x87e   :  { %v1184_v58 = vsel %vm1180_vm4, %v1179_v54, %v6138_v46  ;;  %v1183_v15 = vsel %vm1180_vm4, %v1178_v56, %v6137_v50 }
 0x87f   :  { %v1186_v37 = vpack.c.bf16 %v1184_v58, %v1183_v15 }
 0x881   :  { %5687 = vmatmul.msk.bf16.gmra.mxu2 %vm113_vm0, %v1186_v37 }
 0x8c1   :  { %v1217_v59 = vpop.f32.mrf.mxu2 }
 0x8c2   :  { %v1218_v60 = vadd.f32 %v6229_v19, %v1217_v59 }
 0x8c4   :  { %v1227_v62 = vadd.f32 %v6555_v1, %v1218_v60 }
 0x8c6   :  { %v1233_v63 = vsel %vm113_vm0, %v1227_v62, 0.0 }
 0x8c7   :  { %1234 = vadd.xlane.f32.xlu1 %v1233_v63 }
 0x8c9   :  { %v1219_v2 = vpop.f32.mrf.mxu2 }
 0x8ca   :  { %v1220_v3 = vadd.f32 %v6229_v19, %v1219_v2 }
 0x8cc   :  { %v1228_v6 = vadd.f32 %v6556_v5, %v1220_v3 }
 0x8ce   :  { %v1236_v8 = vsel %vm113_vm0, %v1228_v6, 0.0 }
 0x8cf   :  { %1237 = vadd.xlane.f32.xlu0 %v1236_v8 }
 0x904   :  { %v1222_v10 = vpop.f32.mrf.mxu2 }
 0x905   :  { %v1223_v52 = vadd.f32 %v6229_v19, %v1222_v10 }
 0x907   :  { %v1229_v45 = vadd.f32 %v6557_v11, %v1223_v52 }
 0x909   :  { %v1239_v13 = vsel %vm113_vm0, %v1229_v45, 0.0 }
 0x90a   :  { %1240 = vadd.xlane.f32.xlu2 %v1239_v13  ;;  %v6231_v13 = vld [vmem:[%s8364_s8] ss:$0 sm:$0xff] }
 0x90c   :  { %v1224_v57 = vpop.f32.mrf.mxu2 }
 0x90d   :  { %v1225_v14 = vadd.f32 %v6229_v19, %v1224_v57 }
 0x90f   :  { %v1230_v20 = vadd.f32 %v6558_v17, %v1225_v14 }
 0x911   :  { %v1242_v48 = vsel %vm113_vm0, %v1230_v20, 0.0 }
 0x912   :  { %1243 = vadd.xlane.f32.xlu1 %v1242_v48  ;;  %v78_v48 = vld [vmem:[%s8366_s1 + $0x10] sm:$0xff]  ;;  %s8419_s1 = smov 24  }
 0x913   :  { %v7086_v22 = vpack.c.bf16 %v79_v18, %v78_v48 }
 0x915   :  { %5707 = vmatmul.msk.bf16.gmra.mxu0 %vm113_vm0, %v7086_v22 }
 0x93a   :  { %v1235_v32 = vpop.xlane.xlu1 %1234 }
 0x93b   :  { %v1252_v16 = vmul.f32 %v7015_v31, %v1235_v32 }
 0x93d   :  { %v7018_v51 = vsub.f32 %v1227_v62, %v1252_v16 }
 0x93f   :  { %v1260_v53 = vmul.f32 %v7018_v51, %v7018_v51 }
 0x941   :  { %v1264_v21 = vsel %vm113_vm0, %v1260_v53, 0.0 }
 0x942   :  { %v1238_v25 = vpop.xlane.xlu0 %1237  ;;  %1265 = vadd.xlane.f32.xlu1 %v1264_v21 }
 0x943   :  { %v1253_v27 = vmul.f32 %v7015_v31, %v1238_v25 }
 0x945   :  { %v7024_v7 = vsub.f32 %v1228_v6, %v1253_v27  ;;  %v6230_v6 = vld [vmem:[%s8416_s3] ss:$0 sm:$0xff] }
 0x947   :  { %v1261_v28 = vmul.f32 %v7024_v7, %v7024_v7 }
 0x949   :  { %v1267_v9 = vsel %vm113_vm0, %v1261_v28, 0.0 }
 0x94a   :  { %1268 = vadd.xlane.f32.xlu1 %v1267_v9 }
 0x97d   :  { %v1241_v12 = vpop.xlane.xlu2 %1240 }
 0x97e   :  { %v1254_v29 = vmul.f32 %v7015_v31, %v1241_v12 }
 0x980   :  { %v7030_v30 = vsub.f32 %v1229_v45, %v1254_v29 }
 0x982   :  { %v1262_v33 = vmul.f32 %v7030_v30, %v7030_v30 }
 0x984   :  { %v1270_v55 = vsel %vm113_vm0, %v1262_v33, 0.0 }
 0x985   :  { %v1244_v34 = vpop.xlane.xlu1 %1243  ;;  %1271 = vadd.xlane.f32.xlu1 %v1270_v55 }
 0x986   :  { %v1255_v35 = vmul.f32 %v7015_v31, %v1244_v34 }
 0x988   :  { %v7036_v26 = vsub.f32 %v1230_v20, %v1255_v35 }
 0x98a   :  { %v1263_v36 = vmul.f32 %v7036_v26, %v7036_v26 }
 0x98c   :  { %v1273_v38 = vsel %vm113_vm0, %v1263_v36, 0.0 }
 0x98d   :  { %1274 = vadd.xlane.f32.xlu1 %v1273_v38 }
 0x9b5   :  { %v1266_v0 = vpop.xlane.xlu1 %1265 }
 0x9b6   :  { %v1276_v43 = vmul.f32 %v1266_v0, %v7015_v31  ;;  %v1425_v0 = vpop.f32.mrf.mxu0 }
 0x9b8   :  { %v1280_v46 = vadd.f32 1e-05, %v1276_v43  ;;  %v1470_v43 = vpack.c.bf16 %v1425_v0, %v1425_v0 }
 0x9ba   :  { %6315 = vrsqrt.f32 %v1280_v46  ;;  %vm1290_vm7 = vweird.f32 %v1280_v46 }
 0x9bd   :  { %v1269_v50 = vpop.xlane.xlu1 %1268 }
 0x9be   :  { %v1277_v54 = vmul.f32 %v1269_v50, %v7015_v31  ;;  %v1427_v44 = vpop.f32.mrf.mxu0  ;;  %v6063_v50 = vld [vmem:[%s8368_s11 + $0x8] sm:$0xff] }
 0x9bf   :  { %1453 = vmatpush.bf16.msra.mxu1 %v6063_v50 }
 0x9c0   :  { %v6316_v56 = vpop.eup %6315  ;;  %v1281_v58 = vadd.f32 1e-05, %v1277_v54  ;;  %v6062_v54 = vld [vmem:[%s8368_s11] sm:$0xff] }
 0x9c1   :  { %v1285_v15 = vmul.f32 %v6316_v56, %v1280_v46  ;;  %vm1291_vm6 = vweird.f32 %v6316_v56  ;;  %v7102_v46 = vpack.c.bf16 %v1427_v44, %v1427_v44 }
 0x9c2   :  { %6317 = vrsqrt.f32 %v1281_v58  ;;  %vm1292_vm8 = vmor %vm1290_vm7, %vm1291_vm6  ;;  %vm1300_vm10 = vweird.f32 %v1281_v58 }
 0x9c3   :  { %v1286_v37 = vmul.f32 %v6316_v56, %v1285_v15  ;;  %1454 = vmatpush.bf16.msra.mxu1 %v6062_v54  ;;  %v1713_v50 = vunpack.c.l.b16 %v7102_v46 }
 0x9c5   :  { %v1287_v19 = vmul.f32 0.5, %v1286_v37  ;;  %v7169_v54 = vpack.c.b16 %v1713_v50, %v1713_v50 }
 0x9c6   :  { %5716 = vmatmul.msk.bf16.vlgmr.msra.gmra.mxu1 %vm113_vm0, %v7053_v61 }
 0x9c7   :  { %v1288_v59 = vsub.f32 1.5, %v1287_v19  ;;  %v1430_v19 = vpop.f32.mrf.mxu0 }
 0x9c8   :  { %v6318_v60 = vpop.eup %6317 }
 0x9c9   :  { %v1289_v1 = vmul.f32 %v6316_v56, %v1288_v59  ;;  %v1295_v62 = vmul.f32 %v6318_v60, %v1281_v58  ;;  %vm1301_vm9 = vweird.f32 %v6318_v60  ;;  %v7121_v59 = vpack.c.bf16 %v1430_v19, %v1430_v19 }
 0x9ca   :  { %vm1302_vm11 = vmor %vm1300_vm10, %vm1301_vm9 }
 0x9cb   :  { %v1296_v63 = vmul.f32 %v6318_v60, %v1295_v62  ;;  %v1293_v2 = vsel %vm1292_vm8, %v6316_v56, %v1289_v1 }
 0x9cc   :  { %v1324_v8 = vmul.f32 %v1293_v2, %v7018_v51 }
 0x9cd   :  { %v1297_v3 = vmul.f32 0.5, %v1296_v63 }
 0x9ce   :  { %v1331_v11 = vmul.f32 %v6230_v6, %v1324_v8 }
 0x9cf   :  { %v1298_v5 = vsub.f32 1.5, %v1297_v3  ;;  %v1432_v1 = vpop.f32.mrf.mxu0 }
 0x9d0   :  { %v7073_v14 = vadd.f32 %v6231_v13, %v1331_v11  ;;  %v7125_v62 = vpack.c.bf16 %v1432_v1, %v1432_v1 }
 0x9d1   :  { %v1299_v10 = vmul.f32 %v6318_v60, %v1298_v5 }
 0x9d2   :  { %v1539_v63 = vsel %vm213_vm1, %v7125_v62, 0 }
 0x9d3   :  { %v1303_v52 = vsel %vm1302_vm11, %v6318_v60, %v1299_v10  ;;  %v1520_v60 = vsel %vm213_vm1, %v7121_v59, 0  ;;  %1548 = vmatpush.bf16.xpose.msrb.mxu1 %v1539_v63 }
 0x9d4   :  { %v1325_v45 = vmul.f32 %v1303_v52, %v7024_v7  ;;  %1529 = vmatpush.bf16.xpose.msra.mxu0 %v1520_v60 }
 0x9d6   :  { %v1332_v57 = vmul.f32 %v6230_v6, %v1325_v45  ;;  %5717 = vmatmul.msk.bf16.gmra.mxu1 %vm113_vm0, %v7086_v22 }
 0x9d8   :  { %v7075_v17 = vadd.f32 %v6231_v13, %v1332_v57 }
 0x9da   :  { %v1342_v20 = vpack.c.bf16 %v7075_v17, %v7073_v14 }
 0x9dc   :  { %5696 = vmatmul.msk.bf16.vlgmr.msrb.gmra.mxu3 %vm113_vm0, %v1342_v20 }
 0x9f8   :  { %v1272_v49 = vpop.xlane.xlu1 %1271 }
 0x9f9   :  { %v1278_v47 = vmul.f32 %v1272_v49, %v7015_v31 }
 0x9fb   :  { %v1282_v23 = vadd.f32 1e-05, %v1278_v47 }
 0x9fd   :  { %6319 = vrsqrt.f32 %v1282_v23  ;;  %vm1310_vm13 = vweird.f32 %v1282_v23 }
 0xa00   :  { %v1275_v24 = vpop.xlane.xlu1 %1274 }
 0xa01   :  { %v1279_v32 = vmul.f32 %v1275_v24, %v7015_v31 }
 0xa03   :  { %v6320_v16 = vpop.eup %6319  ;;  %v1283_v51 = vadd.f32 1e-05, %v1279_v32  ;;  %v1684_v32 = vunpack.c.l.b16 %v1470_v43 }
 0xa04   :  { %v1305_v53 = vmul.f32 %v6320_v16, %v1282_v23  ;;  %vm1311_vm12 = vweird.f32 %v6320_v16 }
 0xa05   :  { %6321 = vrsqrt.f32 %v1283_v51  ;;  %vm1312_vm14 = vmor %vm1310_vm13, %vm1311_vm12  ;;  %vm1320_vm5 = vweird.f32 %v1283_v51 }
 0xa06   :  { %v1306_v21 = vmul.f32 %v6320_v16, %v1305_v53 }
 0xa08   :  { %v1307_v25 = vmul.f32 0.5, %v1306_v21 }
 0xa0a   :  { %v1308_v27 = vsub.f32 1.5, %v1307_v25 }
 0xa0b   :  { %v6322_v7 = vpop.eup %6321 }
 0xa0c   :  { %v1309_v28 = vmul.f32 %v6320_v16, %v1308_v27  ;;  %v1315_v9 = vmul.f32 %v6322_v7, %v1283_v51  ;;  %vm1321_vm15 = vweird.f32 %v6322_v7  ;;  %v7151_v51 = vpack.c.b16 %v1684_v32, %v1684_v32 }
 0xa0d   :  { %vm1322_vm6 = vmor %vm1320_vm5, %vm1321_vm15 }
 0xa0e   :  { %v1316_v12 = vmul.f32 %v6322_v7, %v1315_v9  ;;  %v1313_v29 = vsel %vm1312_vm14, %v6320_v16, %v1309_v28 }
 0xa0f   :  { %v1326_v34 = vmul.f32 %v1313_v29, %v7030_v30  ;;  %v1482_v30 = vsel %vm213_vm1, %v1470_v43, 0 }
 0xa10   :  { %v1317_v33 = vmul.f32 0.5, %v1316_v12  ;;  %1491 = vmatpush.bf16.xpose.msra.mxu2 %v1482_v30 }
 0xa11   :  { %v1333_v40 = vmul.f32 %v6230_v6, %v1326_v34 }
 0xa12   :  { %v1318_v55 = vsub.f32 1.5, %v1317_v33 }
 0xa13   :  { %v7094_v39 = vadd.f32 %v6231_v13, %v1333_v40 }
 0xa14   :  { %v1319_v35 = vmul.f32 %v6322_v7, %v1318_v55 }
 0xa16   :  { %v1323_v36 = vsel %vm1322_vm6, %v6322_v7, %v1319_v35 }
 0xa17   :  { %v1327_v38 = vmul.f32 %v1323_v36, %v7036_v26  ;;  %v1501_v26 = vsel %vm213_vm1, %v7102_v46, 0  ;;  %v1771_v46 = vunpack.c.l.b16 %v7125_v62 }
 0xa18   :  { %1510 = vmatpush.bf16.xpose.msra.mxu3 %v1501_v26 }
 0xa19   :  { %v1334_v41 = vmul.f32 %v6230_v6, %v1327_v38  ;;  %v7184_v60 = vpack.c.b16 %v1771_v46, %v1771_v46 }
 0xa1b   :  { %v7096_v4 = vadd.f32 %v6231_v13, %v1334_v41 }
 0xa1d   :  { %v1343_v42 = vpack.c.bf16 %v7096_v4, %v7094_v39 }
 0xa1f   :  { %5697 = vmatmul.msk.bf16.gmra.mxu3 %vm113_vm0, %v1343_v42 }
 0xa43   :  { %v1456_v8 = vpop.f32.mrf.mxu1 }
 0xa44   :  { %v7137_v10 = vpack.c.bf16 %v1456_v8, %v1456_v8 }
 0xa46   :  { %v1606_v52 = vsel %vm341_vm2, %v7137_v10, 0 }
 0xa47   :  { %1615 = vmatpush.bf16.msrb.mxu2 %v1606_v52 }
 0xa4b   :  { %v1458_v11 = vpop.f32.mrf.mxu1 }
 0xa4c   :  { %v7141_v45 = vpack.c.bf16 %v1458_v11, %v1458_v11 }
 0xa4e   :  { %v1625_v20 = vsel %vm341_vm2, %v7141_v45, 0 }
 0xa4f   :  { %1634 = vmatpush.bf16.msrb.mxu3 %v1625_v20 }
 0xa53   :  { %v1461_v48 = vpop.f32.mrf.mxu1 }
 0xa54   :  { %v7146_v18 = vpack.c.bf16 %v1461_v48, %v1461_v48  ;;  %v1843_v48 = vunpack.c.l.b16 %v7137_v10 }
 0xa56   :  { %v1644_v24 = vsel %vm341_vm2, %v7146_v18, 0 }
 0xa57   :  { %1653 = vmatpush.bf16.msrb.mxu0 %v1644_v24 }
 0xa5b   :  { %v1463_v53 = vpop.f32.mrf.mxu1 }
 0xa5c   :  { %v7155_v21 = vpack.c.bf16 %v1463_v53, %v1463_v53 }
 0xa5e   :  { %v1663_v25 = vsel %vm341_vm2, %v7155_v21, 0 }
 0xa5f   :  { %v1388_v56 = vpop.f32.mrf.mxu3  ;;  %1672 = vmatpush.bf16.msra.mxu1 %v1663_v25 }
 0xa60   :  { %v7114_v58 = vpack.c.bf16 %v1388_v56, %v1388_v56 }
 0xa62   :  { %5718 = vmatmul.msk.bf16.vlgmr.msra.gmra.mxu2 %vm213_vm1, %v7114_v58  ;;  %v1679_v56 = vunpack.c.l.b16 %v7114_v58 }
 0xa67   :  { %v1390_v15 = vpop.f32.mrf.mxu3 }
 0xa68   :  { %v1467_v37 = vpack.c.bf16 %v1390_v15, %v1390_v15  ;;  %v7174_v15 = vpack.c.b16 %v1679_v56, %v1679_v56 }
 0xa6a   :  { %5719 = vmatmul.msk.bf16.vlgmr.msra.gmra.mxu3 %vm213_vm1, %v1467_v37  ;;  %v1708_v33 = vunpack.c.l.b16 %v1467_v37  ;;  %v1742_v37 = vunpack.c.l.b16 %v7121_v59 }
 0xa6c   :  { %v7161_v55 = vpack.c.b16 %v1708_v33, %v1708_v33  ;;  %v7179_v19 = vpack.c.b16 %v1742_v37, %v1742_v37 }
 0xaa2   :  { %v1393_v2 = vpop.f32.mrf.mxu3 }
 0xaa3   :  { %v7129_v3 = vpack.c.bf16 %v1393_v2, %v1393_v2 }
 0xaa5   :  { %5720 = vmatmul.msk.bf16.vlgmr.msra.gmra.mxu0 %vm213_vm1, %v7129_v3  ;;  %v1737_v58 = vunpack.c.l.b16 %v7129_v3 }
 0xaaa   :  { %v1395_v5 = vpop.f32.mrf.mxu3 }
 0xaab   :  { %v7133_v6 = vpack.c.bf16 %v1395_v5, %v1395_v5  ;;  %v7189_v5 = vpack.c.b16 %v1737_v58, %v1737_v58 }
 0xaad   :  { %5721 = vmatmul.msk.bf16.vlgmr.msrb.gmra.mxu1 %vm213_vm1, %v7133_v6  ;;  %v1766_v62 = vunpack.c.l.b16 %v7133_v6  ;;  %v7202_v6 = vpack.c.b16 %v1843_v48, %v1843_v48 }
 0xae5   :  { %v1493_v13 = vpop.f32.mrf.mxu2 }
 0xae6   :  { %v1554_v57 = vsel %vm213_vm1, %v1493_v13, -inf }
 0xae7   :  { %1555 = vmax.xlane.f32.xlu0 %v1554_v57 }
 0xaed   :  { %v1495_v49 = vpop.f32.mrf.mxu2  ;;  %v1512_v47 = vpop.f32.mrf.mxu3 }
 0xaee   :  { %v1557_v23 = vsel %vm213_vm1, %v1512_v47, -inf  ;;  %v1867_v49 = vunpack.c.l.b16 %v7141_v45 }
 0xaef   :  { %1558 = vmax.xlane.f32.xlu2 %v1557_v23 }
 0xaf5   :  { %v1514_v16 = vpop.f32.mrf.mxu3 }
 0xafb   :  { %1686 = vrot.lane.b32.xlu0 %v7151_v51, %s8398_s7 }
 0xb22   :  { %v1531_v27 = vpop.f32.mrf.mxu0 }
 0xb23   :  { %v1560_v7 = vsel %vm213_vm1, %v1531_v27, -inf }
 0xb24   :  { %1561 = vmax.xlane.f32.xlu1 %v1560_v7 }
 0xb2a   :  { %v1533_v28 = vpop.f32.mrf.mxu0  ;;  %v1550_v9 = vpop.f32.mrf.mxu1 }
 0xb2b   :  { %v1563_v12 = vsel %vm213_vm1, %v1550_v9, -inf }
 0xb2c   :  { %1564 = vmax.xlane.f32.xlu0 %v1563_v12 }
 0xb32   :  { %v1552_v29 = vpop.f32.mrf.mxu1 }
 0xb40   :  { %1710 = vrot.lane.b32.xlu0 %v7161_v55, %s8398_s7 }
 0xb5a   :  { %v1556_v34 = vpop.xlane.xlu0 %1555 }
 0xb5b   :  { %v1566_v35 = vsub.f32 %v1493_v13, %v1556_v34  ;;  %v7194_v13 = vpack.c.b16 %v1766_v62, %v1766_v62 }
 0xb5d   :  { %v1570_v36 = vmul.f32 1.442695, %v1566_v35 }
 0xb5f   :  { %6323 = vpow2.f32 %v1570_v36 }
 0xb62   :  { %v1559_v38 = vpop.xlane.xlu2 %1558 }
 0xb63   :  { %v1567_v40 = vsub.f32 %v1512_v47, %v1559_v38  ;;  %v7204_v47 = vpack.c.b16 %v1867_v49, %v1867_v49  ;;  %v1915_v49 = vunpack.c.l.b16 %v7155_v21 }
 0xb65   :  { %v6324_v41 = vpop.eup %6323  ;;  %v1572_v42 = vmul.f32 1.442695, %v1567_v40 }
 0xb66   :  { %v1578_v0 = vsel %vm213_vm1, %v6324_v41, 0.0 }
 0xb67   :  { %6325 = vpow2.f32 %v1572_v42  ;;  %1579 = vadd.xlane.f32.xlu2 %v1578_v0 }
 0xb6d   :  { %v6326_v43 = vpop.eup %6325  ;;  %v1687_v30 = vpop.permute.xlu0 %1686 }
 0xb6e   :  { %v1692_v44 = vsel %vm213_vm1, %v1687_v30, 0  ;;  %v1581_v26 = vsel %vm213_vm1, %v6326_v43, 0.0 }
 0xb6f   :  { %1582 = vadd.xlane.f32.xlu1 %v1581_v26  ;;  %1701 = vmatpush.bf16.xpose.msra.mxu2 %v1692_v44 }
 0xb7f   :  { %1715 = vrot.lane.b32.xlu2 %v7169_v54, %s8398_s7 }
 0xb88   :  { %1681 = vrot.lane.b32.xlu1 %v7174_v15, %s8398_s7 }
 0xb90   :  { %1744 = vrot.lane.b32.xlu1 %v7179_v19, %s8398_s7 }
 0xb97   :  { %v1562_v1 = vpop.xlane.xlu1 %1561 }
 0xb98   :  { %v1568_v63 = vsub.f32 %v1531_v27, %v1562_v1  ;;  %1773 = vrot.lane.b32.xlu1 %v7184_v60, %s8398_s7 }
 0xb9a   :  { %v1574_v2 = vmul.f32 1.442695, %v1568_v63 }
 0xb9c   :  { %6327 = vpow2.f32 %v1574_v2 }
 0xb9f   :  { %v1565_v59 = vpop.xlane.xlu0 %1564 }
 0xba0   :  { %v1569_v8 = vsub.f32 %v1550_v9, %v1565_v59  ;;  %1739 = vrot.lane.b32.xlu1 %v7189_v5, %s8398_s7 }
 0xba2   :  { %v1576_v52 = vmul.f32 1.442695, %v1569_v8  ;;  %v6328_v11 = vpop.eup %6327 }
 0xba3   :  { %v1584_v57 = vsel %vm213_vm1, %v6328_v11, 0.0 }
 0xba4   :  { %6329 = vpow2.f32 %v1576_v52 }
 0xba8   :  { %1585 = vadd.xlane.f32.xlu2 %v1584_v57  ;;  %1768 = vrot.lane.b32.xlu1 %v7194_v13, %s8398_s7 }
 0xbaa   :  { %v6330_v3 = vpop.eup %6329 }
 0xbab   :  { %v1587_v20 = vsel %vm213_vm1, %v6330_v3, 0.0 }
 0xbac   :  { %1588 = vadd.xlane.f32.xlu0 %v1587_v20  ;;  %v1891_v20 = vunpack.c.l.b16 %v7146_v18 }
 0xbae   :  { %v7235_v48 = vpack.c.b16 %v1891_v20, %v1891_v20 }
 0xbb2   :  { %v1711_v9 = vpop.permute.xlu0 %1710 }
 0xbc0   :  { %1869 = vrot.lane.b32.xlu2 %v7204_v47, %s8398_s7  ;;  %1845 = vrot.lane.b32.xlu0 %v7202_v6, %s8398_s7 }
 0xbc8   :  { %1963 = vrot.lane.b32.xlu0 %v7169_v54, %s8396_s25 }
 0xbda   :  { %v1580_v23 = vpop.xlane.xlu2 %1579 }
 0xbdb   :  { %6331 = vrcp.f32 %v1580_v23 }
 0xbe1   :  { %v6332_v24 = vpop.eup %6331 }
 0xbe2   :  { %v1594_v32 = vmul.f32 %v6332_v24, %v6324_v41  ;;  %v1583_v10 = vpop.xlane.xlu1 %1582  ;;  %v1716_v16 = vpop.permute.xlu2 %1715  ;;  %v7242_v24 = vpack.c.b16 %v1915_v49, %v1915_v49 }
 0xbe3   :  { %6333 = vrcp.f32 %v1583_v10  ;;  %v1721_v45 = vsel %vm213_vm1, %v1716_v16, 0 }
 0xbe4   :  { %v1598_v53 = vpack.c.bf16 %v1594_v32, %v1594_v32  ;;  %1730 = vmatpush.bf16.xpose.msra.mxu3 %v1721_v45 }
 0xbe6   :  { %5722 = vmatmul.msk.bf16.vlgmr.msrb.gmra.mxu2 %vm213_vm1, %v1598_v53 }
 0xbe9   :  { %v6334_v25 = vpop.eup %6333 }
 0xbea   :  { %v1595_v27 = vmul.f32 %v6334_v25, %v6326_v43 }
 0xbec   :  { %v1599_v7 = vpack.c.bf16 %v1595_v27, %v1595_v27 }
 0xbee   :  { %5723 = vmatmul.msk.bf16.vlgmr.msrb.gmra.mxu3 %vm213_vm1, %v1599_v7 }
 0xbfa   :  { %v1682_v28 = vpop.permute.xlu1 %1681 }
 0xbfb   :  { %5726 = vmatmul.msk.bf16.vlgmr.msra.gmra.mxu2 %vm213_vm1, %v1682_v28 }
 0xbfe   :  { %5727 = vmatmul.msk.bf16.vlgmr.msra.gmra.mxu3 %vm213_vm1, %v1711_v9 }
 0xc02   :  { %v1745_v12 = vpop.permute.xlu1 %1744 }
 0xc03   :  { %v1750_v29 = vsel %vm213_vm1, %v1745_v12, 0 }
 0xc04   :  { %1759 = vmatpush.bf16.xpose.msra.mxu0 %v1750_v29 }
 0xc0a   :  { %v1774_v33 = vpop.permute.xlu1 %1773 }
 0xc0b   :  { %v1779_v34 = vsel %vm213_vm1, %v1774_v33, 0 }
 0xc0c   :  { %1788 = vmatpush.bf16.xpose.msrb.mxu1 %v1779_v34 }
 0xc12   :  { %v1740_v26 = vpop.permute.xlu1 %1739 }
 0xc1a   :  { %v1769_v37 = vpop.permute.xlu1 %1768 }
 0xc1b   :  { %v1586_v35 = vpop.xlane.xlu2 %1585 }
 0xc1c   :  { %6335 = vrcp.f32 %v1586_v35 }
 0xc1f   :  { %v1589_v36 = vpop.xlane.xlu0 %1588 }
 0xc20   :  { %6337 = vrcp.f32 %v1589_v36 }
 0xc22   :  { %v6336_v38 = vpop.eup %6335 }
 0xc23   :  { %v1596_v40 = vmul.f32 %v6336_v38, %v6328_v11  ;;  %v1870_v41 = vpop.permute.xlu2 %1869 }
 0xc24   :  { %v1875_v42 = vsel %vm341_vm2, %v1870_v41, 0 }
 0xc25   :  { %v1600_v0 = vpack.c.bf16 %v1596_v40, %v1596_v40  ;;  %1884 = vmatpush.bf16.msrb.mxu3 %v1875_v42 }
 0xc26   :  { %v6338_v43 = vpop.eup %6337 }
 0xc27   :  { %v1597_v30 = vmul.f32 %v6338_v43, %v6330_v3  ;;  %5724 = vmatmul.msk.bf16.vlgmr.msrb.gmra.mxu0 %vm213_vm1, %v1600_v0 }
 0xc29   :  { %v1601_v44 = vpack.c.bf16 %v1597_v30, %v1597_v30 }
 0xc2b   :  { %5725 = vmatmul.msk.bf16.vlgmr.msra.gmra.mxu1 %vm213_vm1, %v1601_v44 }
 0xc32   :  { %v1846_v50 = vpop.permute.xlu0 %1845 }
 0xc33   :  { %v1851_v56 = vsel %vm341_vm2, %v1846_v50, 0 }
 0xc34   :  { %1860 = vmatpush.bf16.msrb.mxu2 %v1851_v56 }
 0xc37   :  { %5728 = vmatmul.msk.bf16.vlgmr.msra.gmra.mxu0 %vm213_vm1, %v1740_v26 }
 0xc3a   :  { %v1964_v46 = vpop.permute.xlu0 %1963 }
 0xc3b   :  { %v1969_v1 = vsel %vm213_vm1, %v1964_v46, 0  ;;  %5729 = vmatmul.msk.bf16.vlgmr.msrb.gmra.mxu1 %vm213_vm1, %v1769_v37 }
 0xc3c   :  { %1978 = vmatpush.bf16.xpose.msra.mxu3 %v1969_v1 }
 0xc69   :  { %v7226_v63 = vpop.f32.mrf.mxu2 }
 0xc71   :  { %v1619_v58 = vpop.f32.mrf.mxu2  ;;  %v7228_v2 = vpop.f32.mrf.mxu3 }
 0xc79   :  { %v1638_v59 = vpop.f32.mrf.mxu3 }
 0xc7e   :  { %v1703_v8 = vpop.f32.mrf.mxu2 }
 0xc7f   :  { %v1794_v62 = vsel %vm213_vm1, %v1703_v8, -inf }
 0xc80   :  { %1795 = vmax.xlane.f32.xlu1 %v1794_v62 }
 0xc81   :  { %v1732_v52 = vpop.f32.mrf.mxu3 }
 0xc82   :  { %v1797_v11 = vsel %vm213_vm1, %v1732_v52, -inf }
 0xc83   :  { %1798 = vmax.xlane.f32.xlu2 %v1797_v11 }
 0xc86   :  { %v1705_v57 = vpop.f32.mrf.mxu2 }
 0xc89   :  { %v1734_v3 = vpop.f32.mrf.mxu3 }
 0xc99   :  { %1940 = vrot.lane.b32.xlu1 %v7151_v51, %s8396_s25 }
 0xca1   :  { %1893 = vrot.lane.b32.xlu1 %v7235_v48, %s8398_s7 }
 0xca4   :  { %v7240_v23 = vpop.f32.mrf.mxu0 }
 0xca8   :  { %v7244_v32 = vpop.f32.mrf.mxu1 }
 0xca9   :  { %1917 = vrot.lane.b32.xlu1 %v7242_v24, %s8398_s7  ;;  %s8422_s7 = smov 112  }
 0xcac   :  { %v1657_v10 = vpop.f32.mrf.mxu0 }
 0xcb0   :  { %v1676_v16 = vpop.f32.mrf.mxu1 }
 0xcb1   :  { %1986 = vrot.lane.b32.xlu1 %v7179_v19, %s8396_s25 }
 0xcb4   :  { %v1761_v18 = vpop.f32.mrf.mxu0 }
 0xcb5   :  { %v1800_v45 = vsel %vm213_vm1, %v1761_v18, -inf }
 0xcb6   :  { %1801 = vmax.xlane.f32.xlu0 %v1800_v45 }
 0xcb8   :  { %v1790_v53 = vpop.f32.mrf.mxu1 }
 0xcb9   :  { %2009 = vrot.lane.b32.xlu1 %v7184_v60, %s8396_s25  ;;  %v1803_v21 = vsel %vm213_vm1, %v1790_v53, -inf }
 0xcba   :  { %1804 = vmax.xlane.f32.xlu2 %v1803_v21 }
 0xcbc   :  { %v1763_v25 = vpop.f32.mrf.mxu0 }
 0xcc0   :  { %v1792_v27 = vpop.f32.mrf.mxu1 }
 0xcc1   :  { %1984 = vrot.lane.b32.xlu1 %v7189_v5, %s8396_s25 }
 0xcf3   :  { %v1796_v7 = vpop.xlane.xlu1 %1795 }
 0xcf4   :  { %v1806_v28 = vsub.f32 %v1703_v8, %v1796_v7 }
 0xcf6   :  { %v1810_v9 = vmul.f32 1.442695, %v1806_v28  ;;  %v1799_v12 = vpop.xlane.xlu2 %1798 }
 0xcf7   :  { %v1807_v29 = vsub.f32 %v1732_v52, %v1799_v12 }
 0xcf8   :  { %6339 = vpow2.f32 %v1810_v9 }
 0xcf9   :  { %v1812_v33 = vmul.f32 1.442695, %v1807_v29 }
 0xcfb   :  { %6341 = vpow2.f32 %v1812_v33 }
 0xcfe   :  { %v6340_v34 = vpop.eup %6339 }
 0xcff   :  { %v1818_v35 = vsel %vm213_vm1, %v6340_v34, 0.0 }
 0xd00   :  { %1819 = vadd.xlane.f32.xlu0 %v1818_v35 }
 0xd01   :  { %v6342_v36 = vpop.eup %6341 }
 0xd02   :  { %v1821_v38 = vsel %vm213_vm1, %v6342_v36, 0.0 }
 0xd03   :  { %1822 = vadd.xlane.f32.xlu2 %v1821_v38 }
 0xd0b   :  { %v1941_v40 = vpop.permute.xlu1 %1940 }
 0xd0c   :  { %v1946_v41 = vsel %vm213_vm1, %v1941_v40, 0 }
 0xd0d   :  { %1955 = vmatpush.bf16.xpose.msra.mxu2 %v1946_v41 }
 0xd13   :  { %v1894_v42 = vpop.permute.xlu1 %1893 }
 0xd14   :  { %v1899_v0 = vsel %vm341_vm2, %v1894_v42, 0  ;;  %1938 = vrot.lane.b32.xlu0 %v7174_v15, %s8396_s25 }
 0xd15   :  { %1908 = vmatpush.bf16.msrb.mxu0 %v1899_v0 }
 0xd1b   :  { %v1918_v43 = vpop.permute.xlu1 %1917  ;;  %1961 = vrot.lane.b32.xlu2 %v7161_v55, %s8396_s25 }
 0xd1c   :  { %v1923_v30 = vsel %vm341_vm2, %v1918_v43, 0 }
 0xd1d   :  { %1932 = vmatpush.bf16.msra.mxu1 %v1923_v30 }
 0xd23   :  { %v1987_v44 = vpop.permute.xlu1 %1986 }
 0xd24   :  { %v1992_v26 = vsel %vm213_vm1, %v1987_v44, 0 }
 0xd25   :  { %2001 = vmatpush.bf16.xpose.msra.mxu0 %v1992_v26 }
 0xd29   :  { %v1802_v50 = vpop.xlane.xlu0 %1801 }
 0xd2a   :  { %v1808_v37 = vsub.f32 %v1761_v18, %v1802_v50 }
 0xd2b   :  { %v2010_v56 = vpop.permute.xlu1 %2009 }
 0xd2c   :  { %v2015_v46 = vsel %vm213_vm1, %v2010_v56, 0  ;;  %v1814_v58 = vmul.f32 1.442695, %v1808_v37 }
 0xd2d   :  { %2024 = vmatpush.bf16.xpose.msrb.mxu1 %v2015_v46  ;;  %v1805_v1 = vpop.xlane.xlu2 %1804 }
 0xd2e   :  { %v1809_v59 = vsub.f32 %v1790_v53, %v1805_v1  ;;  %6343 = vpow2.f32 %v1814_v58 }
 0xd30   :  { %v1816_v8 = vmul.f32 1.442695, %v1809_v59 }
 0xd32   :  { %6345 = vpow2.f32 %v1816_v8 }
 0xd33   :  { %v1985_v35 = vpop.permute.xlu1 %1984 }
 0xd34   :  { %v6344_v62 = vpop.eup %6343 }
 0xd35   :  { %v1824_v52 = vsel %vm213_vm1, %v6344_v62, 0.0 }
 0xd38   :  { %v6346_v11 = vpop.eup %6345 }
 0xd39   :  { %v1827_v57 = vsel %vm213_vm1, %v6346_v11, 0.0 }
 0xd3e   :  { %1825 = vadd.xlane.f32.xlu0 %v1824_v52 }
 0xd44   :  { %1828 = vadd.xlane.f32.xlu2 %v1827_v57 }
 0xd5c   :  { %2007 = vrot.lane.b32.xlu2 %v7194_v13, %s8396_s25 }
 0xd73   :  { %v1820_v3 = vpop.xlane.xlu0 %1819 }
 0xd74   :  { %6347 = vrcp.f32 %v1820_v3 }
 0xd76   :  { %v1823_v20 = vpop.xlane.xlu2 %1822 }
 0xd77   :  { %6349 = vrcp.f32 %v1823_v20 }
 0xd7a   :  { %v6348_v49 = vpop.eup %6347 }
 0xd7b   :  { %v1834_v10 = vmul.f32 %v6348_v49, %v6340_v34 }
 0xd7d   :  { %v6350_v16 = vpop.eup %6349  ;;  %v1838_v18 = vpack.c.bf16 %v1834_v10, %v1834_v10 }
 0xd7e   :  { %v1835_v45 = vmul.f32 %v6350_v16, %v6342_v36  ;;  %v1962_v25 = vpop.permute.xlu2 %1961 }
 0xd7f   :  { %5730 = vmatmul.msk.bf16.vlgmr.msrb.gmra.mxu2 %vm213_vm1, %v1838_v18 }
 0xd80   :  { %v1839_v53 = vpack.c.bf16 %v1835_v45, %v1835_v45 }
 0xd82   :  { %5731 = vmatmul.msk.bf16.vlgmr.msrb.gmra.mxu3 %vm213_vm1, %v1839_v53 }
 0xd86   :  { %v1939_v21 = vpop.permute.xlu0 %1938 }
 0xd8f   :  { %5734 = vmatmul.msk.bf16.vlgmr.msra.gmra.mxu2 %vm213_vm1, %v1939_v21 }
 0xd92   :  { %5735 = vmatmul.msk.bf16.vlgmr.msra.gmra.mxu3 %vm213_vm1, %v1962_v25 }
 0xdb1   :  { %v1826_v27 = vpop.xlane.xlu0 %1825 }
 0xdb2   :  { %6351 = vrcp.f32 %v1826_v27 }
 0xdb7   :  { %v1829_v7 = vpop.xlane.xlu2 %1828 }
 0xdb8   :  { %v6352_v28 = vpop.eup %6351  ;;  %6353 = vrcp.f32 %v1829_v7 }
 0xdb9   :  { %v1836_v9 = vmul.f32 %v6352_v28, %v6344_v62 }
 0xdbb   :  { %v1840_v12 = vpack.c.bf16 %v1836_v9, %v1836_v9 }
 0xdbd   :  { %5732 = vmatmul.msk.bf16.vlgmr.msrb.gmra.mxu0 %vm213_vm1, %v1840_v12 }
 0xdbe   :  { %v6354_v29 = vpop.eup %6353 }
 0xdbf   :  { %v1837_v33 = vmul.f32 %v6354_v29, %v6346_v11  ;;  %v2008_v36 = vpop.permute.xlu2 %2007 }
 0xdc1   :  { %v1841_v34 = vpack.c.bf16 %v1837_v33, %v1837_v33 }
 0xdc3   :  { %5733 = vmatmul.msk.bf16.vlgmr.msra.gmra.mxu1 %vm213_vm1, %v1841_v34 }
 0xdcd   :  { %5736 = vmatmul.msk.bf16.vlgmr.msra.gmra.mxu0 %vm213_vm1, %v1985_v35 }
 0xdd3   :  { %5737 = vmatmul.msk.bf16.vlgmr.msrb.gmra.mxu1 %vm213_vm1, %v2008_v36 }
 0xe02   :  { %v7279_v38 = vpop.f32.mrf.mxu2 }
 0xe05   :  { %v7281_v40 = vpop.f32.mrf.mxu3 }
 0xe06   :  { %v6139_v41 = vpack.i.bf16 %v7281_v40, %v7279_v38 }
 0xe0a   :  { %v1864_v42 = vpop.f32.mrf.mxu2 }
 0xe0d   :  { %v1888_v0 = vpop.f32.mrf.mxu3 }
 0xe12   :  { %v1957_v43 = vpop.f32.mrf.mxu2 }
 0xe13   :  { %v2030_v30 = vsel %vm213_vm1, %v1957_v43, -inf }
 0xe14   :  { %2031 = vmax.xlane.f32.xlu0 %v2030_v30 }
 0xe15   :  { %v1980_v44 = vpop.f32.mrf.mxu3 }
 0xe16   :  { %v2033_v26 = vsel %vm213_vm1, %v1980_v44, -inf }
 0xe17   :  { %2034 = vmax.xlane.f32.xlu1 %v2033_v26 }
 0xe1a   :  { %v1959_v50 = vpop.f32.mrf.mxu2 }
 0xe1d   :  { %v1982_v56 = vpop.f32.mrf.mxu3 }
 0xe30   :  { %2099 = vrot.lane.b32.xlu1 %v7204_v47, %s8396_s25 }
 0xe38   :  { %2162 = vrot.lane.b32.xlu1 %v7174_v15, %s8394_s26 }
 0xe3a   :  { %v7291_v37 = vpop.f32.mrf.mxu0 }
 0xe40   :  { %2120 = vrot.lane.b32.xlu1 %v7235_v48, %s8396_s25  ;;  %v7295_v46 = vpop.f32.mrf.mxu1 }
 0xe41   :  { %v6154_v1 = vpack.i.bf16 %v7295_v46, %v7291_v37 }
 0xe42   :  { %v1912_v58 = vpop.f32.mrf.mxu0 }
 0xe48   :  { %2141 = vrot.lane.b32.xlu1 %v7242_v24, %s8396_s25  ;;  %v1936_v59 = vpop.f32.mrf.mxu1 }
 0xe4a   :  { %v2003_v8 = vpop.f32.mrf.mxu0 }
 0xe4b   :  { %v2036_v62 = vsel %vm213_vm1, %v2003_v8, -inf }
 0xe4c   :  { %2037 = vmax.xlane.f32.xlu0 %v2036_v62 }
 0xe50   :  { %2210 = vrot.lane.b32.xlu1 %v7179_v19, %s8394_s26  ;;  %v2026_v15 = vpop.f32.mrf.mxu1 }
 0xe51   :  { %v2039_v11 = vsel %vm213_vm1, %v2026_v15, -inf }
 0xe52   :  { %v2005_v52 = vpop.f32.mrf.mxu0 }
 0xe54   :  { %2040 = vmax.xlane.f32.xlu0 %v2039_v11 }
 0xe58   :  { %2208 = vrot.lane.b32.xlu1 %v7189_v5, %s8394_s26  ;;  %v2028_v57 = vpop.f32.mrf.mxu1 }
 0xe68   :  { %2078 = vrot.lane.b32.xlu0 %v7202_v6, %s8396_s25  ;;  %s8423_s25 = smov 104  }
 0xe70   :  { %2164 = vrot.lane.b32.xlu0 %v7151_v51, %s8394_s26 }
 0xe87   :  { %v2032_v3 = vpop.xlane.xlu0 %2031 }
 0xe88   :  { %v2042_v20 = vsub.f32 %v1957_v43, %v2032_v3 }
 0xe8a   :  { %v2046_v49 = vmul.f32 1.442695, %v2042_v20  ;;  %v2035_v10 = vpop.xlane.xlu1 %2034 }
 0xe8b   :  { %v2043_v19 = vsub.f32 %v1980_v44, %v2035_v10 }
 0xe8c   :  { %6355 = vpow2.f32 %v2046_v49 }
 0xe8d   :  { %v2048_v16 = vmul.f32 1.442695, %v2043_v19 }
 0xe8f   :  { %6357 = vpow2.f32 %v2048_v16 }
 0xe92   :  { %v6356_v18 = vpop.eup %6355 }
 0xe93   :  { %v2054_v45 = vsel %vm213_vm1, %v6356_v18, 0.0 }
 0xe94   :  { %2055 = vadd.xlane.f32.xlu2 %v2054_v45 }
 0xe95   :  { %v6358_v5 = vpop.eup %6357 }
 0xe96   :  { %v2057_v53 = vsel %vm213_vm1, %v6358_v5, 0.0 }
 0xe9a   :  { %2058 = vadd.xlane.f32.xlu0 %v2057_v53 }
 0xea2   :  { %v2100_v21 = vpop.permute.xlu1 %2099 }
 0xea3   :  { %v2105_v25 = vsel %vm341_vm2, %v2100_v21, 0 }
 0xea4   :  { %2114 = vmatpush.bf16.msrb.mxu3 %v2105_v25 }
 0xeaa   :  { %v2163_v51 = vpop.permute.xlu1 %2162 }
 0xeae   :  { %2187 = vrot.lane.b32.xlu0 %v7169_v54, %s8394_s26 }
 0xeb2   :  { %v2121_v27 = vpop.permute.xlu1 %2120 }
 0xeb3   :  { %v2126_v7 = vsel %vm341_vm2, %v2121_v27, 0 }
 0xeb4   :  { %2135 = vmatpush.bf16.msrb.mxu0 %v2126_v7 }
 0xeba   :  { %v2142_v28 = vpop.permute.xlu1 %2141 }
 0xebb   :  { %v2147_v9 = vsel %vm341_vm2, %v2142_v28, 0 }
 0xebc   :  { %2156 = vmatpush.bf16.msra.mxu1 %v2147_v9 }
 0xebf   :  { %v2038_v12 = vpop.xlane.xlu0 %2037 }
 0xec0   :  { %v2044_v29 = vsub.f32 %v2003_v8, %v2038_v12 }
 0xec2   :  { %v2050_v33 = vmul.f32 1.442695, %v2044_v29  ;;  %v2211_v34 = vpop.permute.xlu1 %2210 }
 0xec3   :  { %v2216_v35 = vsel %vm213_vm1, %v2211_v34, 0 }
 0xec4   :  { %6359 = vpow2.f32 %v2050_v33  ;;  %2225 = vmatpush.bf16.xpose.msra.mxu0 %v2216_v35 }
 0xec7   :  { %v2041_v36 = vpop.xlane.xlu0 %2040 }
 0xec8   :  { %v2045_v42 = vsub.f32 %v2026_v15, %v2041_v36 }
 0xeca   :  { %v6360_v0 = vpop.eup %6359  ;;  %v2052_v54 = vmul.f32 1.442695, %v2045_v42  ;;  %v2209_v25 = vpop.permute.xlu1 %2208 }
 0xecb   :  { %v2060_v43 = vsel %vm213_vm1, %v6360_v0, 0.0 }
 0xecc   :  { %2061 = vadd.xlane.f32.xlu2 %v2060_v43  ;;  %6361 = vpow2.f32 %v2052_v54 }
 0xed2   :  { %v6362_v30 = vpop.eup %6361 }
 0xed3   :  { %v2063_v44 = vsel %vm213_vm1, %v6362_v30, 0.0 }
 0xed8   :  { %2064 = vadd.xlane.f32.xlu0 %v2063_v44 }
 0xeda   :  { %v2079_v26 = vpop.permute.xlu0 %2078 }
 0xedb   :  { %v2084_v50 = vsel %vm341_vm2, %v2079_v26, 0 }
 0xedc   :  { %2093 = vmatpush.bf16.msrb.mxu2 %v2084_v50 }
 0xee2   :  { %v2165_v56 = vpop.permute.xlu0 %2164 }
 0xee3   :  { %v2170_v58 = vsel %vm213_vm1, %v2165_v56, 0 }
 0xee4   :  { %2185 = vrot.lane.b32.xlu2 %v7161_v55, %s8394_s26  ;;  %2179 = vmatpush.bf16.xpose.msra.mxu2 %v2170_v58 }
 0xeec   :  { %2233 = vrot.lane.b32.xlu2 %v7184_v60, %s8394_s26 }
 0xef4   :  { %2231 = vrot.lane.b32.xlu2 %v7194_v13, %s8394_s26 }
 0xf07   :  { %v2056_v59 = vpop.xlane.xlu2 %2055 }
 0xf08   :  { %6363 = vrcp.f32 %v2056_v59 }
 0xf0d   :  { %v2059_v8 = vpop.xlane.xlu0 %2058 }
 0xf0e   :  { %v6364_v62 = vpop.eup %6363  ;;  %6365 = vrcp.f32 %v2059_v8 }
 0xf0f   :  { %v2070_v15 = vmul.f32 %v6364_v62, %v6356_v18 }
 0xf11   :  { %v2074_v52 = vpack.c.bf16 %v2070_v15, %v2070_v15 }
 0xf13   :  { %5738 = vmatmul.msk.bf16.vlgmr.msrb.gmra.mxu2 %vm213_vm1, %v2074_v52 }
 0xf14   :  { %v6366_v11 = vpop.eup %6365 }
 0xf15   :  { %v2071_v57 = vmul.f32 %v6366_v11, %v6358_v5 }
 0xf17   :  { %v2075_v3 = vpack.c.bf16 %v2071_v57, %v2071_v57 }
 0xf19   :  { %5739 = vmatmul.msk.bf16.vlgmr.msrb.gmra.mxu3 %vm213_vm1, %v2075_v3 }
 0xf20   :  { %v2188_v55 = vpop.permute.xlu0 %2187 }
 0xf21   :  { %v2193_v60 = vsel %vm213_vm1, %v2188_v55, 0 }
 0xf22   :  { %2202 = vmatpush.bf16.xpose.msra.mxu3 %v2193_v60 }
 0xf23   :  { %5742 = vmatmul.msk.bf16.vlgmr.msra.gmra.mxu2 %vm213_vm1, %v2163_v51 }
 0xf3f   :  { %v2062_v13 = vpop.xlane.xlu2 %2061 }
 0xf40   :  { %6367 = vrcp.f32 %v2062_v13 }
 0xf46   :  { %v6368_v20 = vpop.eup %6367 }
 0xf47   :  { %v2072_v49 = vmul.f32 %v6368_v20, %v6360_v0  ;;  %v2186_v10 = vpop.permute.xlu2 %2185 }
 0xf48   :  { %5743 = vmatmul.msk.bf16.vlgmr.msra.gmra.mxu3 %vm213_vm1, %v2186_v10 }
 0xf49   :  { %v2076_v19 = vpack.c.bf16 %v2072_v49, %v2072_v49 }
 0xf4b   :  { %5740 = vmatmul.msk.bf16.vlgmr.msrb.gmra.mxu0 %vm213_vm1, %v2076_v19  ;;  %v2065_v16 = vpop.xlane.xlu0 %2064 }
 0xf4c   :  { %6369 = vrcp.f32 %v2065_v16 }
 0xf4f   :  { %v2234_v18 = vpop.permute.xlu2 %2233 }
 0xf50   :  { %v2239_v45 = vsel %vm213_vm1, %v2234_v18, 0 }
 0xf51   :  { %2248 = vmatpush.bf16.xpose.msrb.mxu1 %v2239_v45 }
 0xf52   :  { %v6370_v5 = vpop.eup %6369 }
 0xf53   :  { %v2073_v53 = vmul.f32 %v6370_v5, %v6362_v30 }
 0xf55   :  { %v2077_v21 = vpack.c.bf16 %v2073_v53, %v2073_v53 }
 0xf57   :  { %5741 = vmatmul.msk.bf16.vlgmr.msra.gmra.mxu1 %vm213_vm1, %v2077_v21  ;;  %v2232_v51 = vpop.permute.xlu2 %2231 }
 0xf5b   :  { %5744 = vmatmul.msk.bf16.vlgmr.msra.gmra.mxu0 %vm213_vm1, %v2209_v25 }
 0xf67   :  { %5745 = vmatmul.msk.bf16.vlgmr.msrb.gmra.mxu1 %vm213_vm1, %v2232_v51 }
 0xf96   :  { %v2095_v27 = vpop.f32.mrf.mxu2 }
 0xf9c   :  { %v2116_v7 = vpop.f32.mrf.mxu3 }
 0xf9d   :  { %v6144_v28 = vpack.i.bf16 %v2116_v7, %v2095_v27 }
 0xf9e   :  { %v2097_v9 = vpop.f32.mrf.mxu2 }
 0xfa4   :  { %v2118_v12 = vpop.f32.mrf.mxu3 }
 0xfa6   :  { %v2181_v29 = vpop.f32.mrf.mxu2 }
 0xfa7   :  { %v2254_v33 = vsel %vm213_vm1, %v2181_v29, -inf }
 0xfa8   :  { %2255 = vmax.xlane.f32.xlu0 %v2254_v33 }
 0xfae   :  { %v2183_v34 = vpop.f32.mrf.mxu2 }
 0xfc8   :  { %v7340_v35 = vpop.f32.mrf.mxu0 }
 0xfcb   :  { %v2204_v36 = vpop.f32.mrf.mxu3 }
 0xfcc   :  { %v2257_v42 = vsel %vm213_vm1, %v2204_v36, -inf }
 0xfcd   :  { %2258 = vmax.xlane.f32.xlu1 %v2257_v42 }
 0xfd0   :  { %v2139_v0 = vpop.f32.mrf.mxu0 }
 0xfd3   :  { %v2206_v54 = vpop.f32.mrf.mxu3 }
 0xfd4   :  { %v7343_v43 = vpop.f32.mrf.mxu1 }
 0xfd5   :  { %v6159_v30 = vpack.i.bf16 %v7343_v43, %v7340_v35 }
 0xfd8   :  { %v2227_v44 = vpop.f32.mrf.mxu0 }
 0xfd9   :  { %v2260_v26 = vsel %vm213_vm1, %v2227_v44, -inf }
 0xfda   :  { %2261 = vmax.xlane.f32.xlu2 %v2260_v26 }
 0xfdc   :  { %v2160_v50 = vpop.f32.mrf.mxu1 }
 0xfe0   :  { %v2229_v56 = vpop.f32.mrf.mxu0 }
 0xfe1   :  { %v6065_v56 = vld [vmem:[%s8369_s12 + $0x8] sm:$0xff] }
 0xfe4   :  { %v2250_v58 = vpop.f32.mrf.mxu1 }
 0xfe5   :  { %v2263_v59 = vsel %vm213_vm1, %v2250_v58, -inf }
 0xfe6   :  { %2323 = vrot.lane.b32.xlu1 %v7204_v47, %s8394_s26  ;;  %2264 = vmax.xlane.f32.xlu0 %v2263_v59 }
 0xfec   :  { %v2252_v8 = vpop.f32.mrf.mxu1 }
 0xfee   :  { %6145 = vrot.lane.b32.xlu1 %v6144_v28, %s8417_s0 }
 0xff6   :  { %6155 = vrot.lane.b32.xlu1 %v6154_v1, %s8418_s4 }
 0xffa   :  { %2302 = vrot.lane.b32.xlu0 %v7202_v6, %s8394_s26 }
0x101b   :  { %v2256_v62 = vpop.xlane.xlu0 %2255 }
0x101c   :  { %v2266_v15 = vsub.f32 %v2181_v29, %v2256_v62 }
0x101e   :  { %v2270_v52 = vmul.f32 1.442695, %v2266_v15 }
0x1020   :  { %6371 = vpow2.f32 %v2270_v52 }
0x1026   :  { %v6372_v11 = vpop.eup %6371 }
0x1027   :  { %v2278_v57 = vsel %vm213_vm1, %v6372_v11, 0.0 }
0x1028   :  { %2279 = vadd.xlane.f32.xlu0 %v2278_v57 }
0x1040   :  { %v2259_v47 = vpop.xlane.xlu1 %2258 }
0x1041   :  { %v2267_v3 = vsub.f32 %v2204_v36, %v2259_v47  ;;  %v6064_v47 = vld [vmem:[%s8369_s12] sm:$0xff] }
0x1043   :  { %v2272_v55 = vmul.f32 1.442695, %v2267_v3 }
0x1045   :  { %6373 = vpow2.f32 %v2272_v55 }
0x104b   :  { %v6374_v60 = vpop.eup %6373 }
0x104c   :  { %v2281_v13 = vsel %vm213_vm1, %v6374_v60, 0.0 }
0x104d   :  { %v2262_v37 = vpop.xlane.xlu2 %2261  ;;  %2282 = vadd.xlane.f32.xlu0 %v2281_v13 }
0x104e   :  { %v2268_v46 = vsub.f32 %v2227_v44, %v2262_v37 }
0x1050   :  { %v2274_v1 = vmul.f32 1.442695, %v2268_v46 }
0x1052   :  { %6375 = vpow2.f32 %v2274_v1 }
0x1058   :  { %v6376_v6 = vpop.eup %6375  ;;  %v2324_v20 = vpop.permute.xlu1 %2323 }
0x1059   :  { %v2329_v49 = vsel %vm341_vm2, %v2324_v20, 0  ;;  %v2265_v10 = vpop.xlane.xlu0 %2264  ;;  %v2284_v19 = vsel %vm213_vm1, %v6376_v6, 0.0 }
0x105a   :  { %v2269_v16 = vsub.f32 %v2250_v58, %v2265_v10  ;;  %2285 = vadd.xlane.f32.xlu2 %v2284_v19  ;;  %2338 = vmatpush.bf16.msrb.mxu3 %v2329_v49 }
0x105c   :  { %v2276_v18 = vmul.f32 1.442695, %v2269_v16 }
0x105e   :  { %6377 = vpow2.f32 %v2276_v18 }
0x1060   :  { %v6146_v13 = vpop.permute.xlu1 %6145 }
0x1061   :  { %2344 = vrot.lane.b32.xlu0 %v7235_v48, %s8394_s26  ;;  %v6148_v43 = vunpack.i.h.bf16 %v6146_v13 }
0x1064   :  { %v6378_v45 = vpop.eup %6377 }
0x1065   :  { %v2287_v5 = vsel %vm213_vm1, %v6378_v45, 0.0 }
0x1066   :  { %2288 = vadd.xlane.f32.xlu2 %v2287_v5 }
0x1069   :  { %6140 = vrot.lane.b32.xlu0 %v6139_v41, %s8418_s4 }
0x106c   :  { %v2303_v53 = vpop.permute.xlu0 %2302 }
0x106d   :  { %v2308_v21 = vsel %vm341_vm2, %v2303_v53, 0 }
0x106e   :  { %2317 = vmatpush.bf16.msrb.mxu2 %v2308_v21 }
0x1072   :  { %2475 = vmatpush.bf16.msra.mxu2 %v6065_v56 }
0x1076   :  { %2476 = vmatpush.bf16.msra.mxu2 %v6064_v47 }
0x107e   :  { %2365 = vrot.lane.b32.xlu2 %v7242_v24, %s8394_s26 }
0x109b   :  { %v2280_v25 = vpop.xlane.xlu0 %2279 }
0x109c   :  { %6379 = vrcp.f32 %v2280_v25 }
0x10a2   :  { %v6380_v51 = vpop.eup %6379 }
0x10a3   :  { %v2294_v48 = vmul.f32 %v6380_v51, %v6372_v11 }
0x10a5   :  { %v2298_v27 = vpack.c.bf16 %v2294_v48, %v2294_v48 }
0x10a7   :  { %5746 = vmatmul.msk.bf16.vlgmr.msrb.gmra.mxu2 %vm213_vm1, %v2298_v27 }
0x10c0   :  { %v2283_v7 = vpop.xlane.xlu0 %2282 }
0x10c1   :  { %6381 = vrcp.f32 %v2283_v7 }
0x10c7   :  { %v6382_v28 = vpop.eup %6381 }
0x10c8   :  { %v2295_v9 = vmul.f32 %v6382_v28, %v6374_v60 }
0x10ca   :  { %v2299_v38 = vpack.c.bf16 %v2295_v9, %v2295_v9 }
0x10cc   :  { %5747 = vmatmul.msk.bf16.vlgmr.msrb.gmra.mxu3 %vm213_vm1, %v2299_v38 }
0x10cd   :  { %v2286_v40 = vpop.xlane.xlu2 %2285 }
0x10ce   :  { %6383 = vrcp.f32 %v2286_v40 }
0x10d3   :  { %v2345_v41 = vpop.permute.xlu0 %2344 }
0x10d4   :  { %v6384_v12 = vpop.eup %6383  ;;  %v2350_v24 = vsel %vm341_vm2, %v2345_v41, 0 }
0x10d5   :  { %v2296_v29 = vmul.f32 %v6384_v12, %v6376_v6  ;;  %2359 = vmatpush.bf16.msrb.mxu0 %v2350_v24 }
0x10d7   :  { %v2300_v33 = vpack.c.bf16 %v2296_v29, %v2296_v29 }
0x10d9   :  { %v2289_v34 = vpop.xlane.xlu2 %2288  ;;  %5748 = vmatmul.msk.bf16.vlgmr.msrb.gmra.mxu0 %vm213_vm1, %v2300_v33 }
0x10da   :  { %6385 = vrcp.f32 %v2289_v34 }
0x10db   :  { %v6141_v3 = vpop.permute.xlu0 %6140 }
0x10dc   :  { %v6143_v55 = vunpack.i.h.bf16 %v6141_v3  ;;  %v6142_v60 = vunpack.i.l.bf16 %v6141_v3 }
0x10de   :  { %v2435_v37 = vsel %vm213_vm1, %v7228_v2, %v6143_v55  ;;  %v2434_v35 = vsel %vm213_vm1, %v7226_v63, %v6142_v60  ;;  %v6156_v2 = vpop.permute.xlu1 %6155 }
0x10df   :  { %v2439_v49 = vsel %vm1175_vm3, %v2435_v37, %v6148_v43  ;;  %v6157_v63 = vunpack.i.l.bf16 %v6156_v2 }
0x10e0   :  { %v6386_v36 = vpop.eup %6385 }
0x10e1   :  { %v2297_v42 = vmul.f32 %v6386_v36, %v6378_v45  ;;  %v2366_v0 = vpop.permute.xlu2 %2365  ;;  %v6158_v45 = vunpack.i.h.bf16 %v6156_v2  ;;  %v2436_v51 = vsel %vm213_vm1, %v7240_v23, %v6157_v63 }
0x10e2   :  { %v2371_v54 = vsel %vm341_vm2, %v2366_v0, 0 }
0x10e3   :  { %v2301_v44 = vpack.c.bf16 %v2297_v42, %v2297_v42  ;;  %2380 = vmatpush.bf16.msra.mxu1 %v2371_v54  ;;  %v2437_v25 = vsel %vm213_vm1, %v7244_v32, %v6158_v45  ;;  %v6232_v32 = vld [vmem:[%s8370_s13] ss:$0 sm:$0xff] }
0x10e6   :  { %5749 = vmatmul.msk.bf16.vlgmr.msra.gmra.mxu1 %vm213_vm1, %v2301_v44 }
0x112a   :  { %v2319_v26 = vpop.f32.mrf.mxu2 }
0x1132   :  { %v2321_v50 = vpop.f32.mrf.mxu2 }
0x114f   :  { %v2340_v58 = vpop.f32.mrf.mxu3 }
0x1150   :  { %v6149_v59 = vpack.i.bf16 %v2340_v58, %v2319_v26 }
0x1152   :  { %6150 = vrot.lane.b32.xlu0 %v6149_v59, %s8419_s1 }
0x1156   :  { %v2361_v8 = vpop.f32.mrf.mxu0 }
0x1157   :  { %v2342_v62 = vpop.f32.mrf.mxu3 }
0x115a   :  { %6160 = vrot.lane.b32.xlu0 %v6159_v30, %s8417_s0  ;;  %v6147_v30 = vunpack.i.l.bf16 %v6146_v13 }
0x115c   :  { %v2438_v20 = vsel %vm1175_vm3, %v2434_v35, %v6147_v30 }
0x115e   :  { %v2363_v15 = vpop.f32.mrf.mxu0 }
0x1163   :  { %v2382_v52 = vpop.f32.mrf.mxu1 }
0x1164   :  { %v6164_v11 = vpack.i.bf16 %v2382_v52, %v2361_v8 }
0x1166   :  { %6165 = vrot.lane.b32.xlu1 %v6164_v11, %s8419_s1 }
0x116b   :  { %v2384_v57 = vpop.f32.mrf.mxu1 }
0x11c4   :  { %v6151_v46 = vpop.permute.xlu0 %6150 }
0x11c5   :  { %v6153_v1 = vunpack.i.h.bf16 %v6151_v46  ;;  %v6152_v6 = vunpack.i.l.bf16 %v6151_v46  ;;  %v6067_v46 = vld [vmem:[%s8374_s16 + $0x8] sm:$0xff] }
0x11c6   :  { %2630 = vmatpush.bf16.msra.mxu3 %v6067_v46 }
0x11c7   :  { %v2442_v10 = vsel %vm1180_vm4, %v2438_v20, %v6152_v6  ;;  %v2443_v19 = vsel %vm1180_vm4, %v2439_v49, %v6153_v1  ;;  %v6066_v20 = vld [vmem:[%s8374_s16] sm:$0xff] }
0x11c8   :  { %v2446_v16 = vpack.c.bf16 %v2443_v19, %v2442_v10 }
0x11ca   :  { %5758 = vmatmul.msk.bf16.vlgmr.msra.gmra.mxu2 %vm113_vm0, %v2446_v16  ;;  %2631 = vmatpush.bf16.msra.mxu3 %v6066_v20  ;;  %v6071_v20 = vld [vmem:[%s8375_s18 + $0x18] sm:$0xff] }
0x11cc   :  { %v6161_v18 = vpop.permute.xlu0 %6160 }
0x11cd   :  { %v6163_v5 = vunpack.i.h.bf16 %v6161_v18  ;;  %v6162_v53 = vunpack.i.l.bf16 %v6161_v18 }
0x11cf   :  { %v2441_v7 = vsel %vm1175_vm3, %v2437_v25, %v6163_v5  ;;  %v2440_v28 = vsel %vm1175_vm3, %v2436_v51, %v6162_v53 }
0x11d8   :  { %v6166_v21 = vpop.permute.xlu1 %6165 }
0x11d9   :  { %v6168_v48 = vunpack.i.h.bf16 %v6166_v21  ;;  %v6167_v27 = vunpack.i.l.bf16 %v6166_v21 }
0x11db   :  { %v2445_v9 = vsel %vm1180_vm4, %v2441_v7, %v6168_v48  ;;  %v2444_v38 = vsel %vm1180_vm4, %v2440_v28, %v6167_v27 }
0x11dc   :  { %v2447_v40 = vpack.c.bf16 %v2445_v9, %v2444_v38 }
0x11de   :  { %5759 = vmatmul.msk.bf16.gmra.mxu2 %vm113_vm0, %v2447_v40  ;;  %v6233_v40 = vld [vmem:[%s8371_s14] ss:$0 sm:$0xff] }
0x124d   :  { %v2478_v41 = vpop.f32.mrf.mxu2 }
0x124e   :  { %v2479_v12 = vadd.f32 %v6232_v32, %v2478_v41  ;;  %v6075_v41 = vld [vmem:[%s8375_s18 + $0x38] sm:$0xff] }
0x124f   :  { %2717 = vmatpush.bf16.msra.mxu0 %v6075_v41 }
0x1250   :  { %v2488_v23 = vadd.f32 %v2479_v12, %v7073_v14 }
0x1252   :  { %v2494_v24 = vsel %vm113_vm0, %v2488_v23, 0.0 }
0x1253   :  { %2495 = vadd.xlane.f32.xlu2 %v2494_v24 }
0x1255   :  { %v2480_v29 = vpop.f32.mrf.mxu2 }
0x1256   :  { %v2481_v33 = vadd.f32 %v6232_v32, %v2480_v29  ;;  %v6074_v29 = vld [vmem:[%s8375_s18 + $0x30] sm:$0xff] }
0x1257   :  { %2718 = vmatpush.bf16.msra.mxu0 %v6074_v29 }
0x1258   :  { %v2489_v34 = vadd.f32 %v2481_v33, %v7075_v17 }
0x125a   :  { %v2497_v36 = vsel %vm113_vm0, %v2489_v34, 0.0 }
0x125b   :  { %2498 = vadd.xlane.f32.xlu0 %v2497_v36  ;;  %v6234_v36 = vld [vmem:[%s8372_s15] ss:$0 sm:$0xff] }
0x1261   :  { %v2483_v42 = vpop.f32.mrf.mxu2 }
0x1262   :  { %v2484_v0 = vadd.f32 %v6232_v32, %v2483_v42 }
0x1264   :  { %v2490_v54 = vadd.f32 %v2484_v0, %v7094_v39 }
0x1266   :  { %v2500_v44 = vsel %vm113_vm0, %v2490_v54, 0.0 }
0x1267   :  { %2501 = vadd.xlane.f32.xlu1 %v2500_v44 }
0x1269   :  { %v2485_v26 = vpop.f32.mrf.mxu2 }
0x126a   :  { %v2486_v50 = vadd.f32 %v6232_v32, %v2485_v26 }
0x126c   :  { %v2491_v14 = vadd.f32 %v2486_v50, %v7096_v4  ;;  %v6073_v50 = vld [vmem:[%s8375_s18 + $0x28] sm:$0xff] }
0x126d   :  { %2719 = vmatpush.bf16.msra.mxu0 %v6073_v50 }
0x126e   :  { %v2503_v56 = vsel %vm113_vm0, %v2491_v14, 0.0 }
0x126f   :  { %2504 = vadd.xlane.f32.xlu2 %v2503_v56 }
0x12c6   :  { %v2496_v58 = vpop.xlane.xlu2 %2495 }
0x12c7   :  { %v2506_v17 = vmul.f32 %v2496_v58, %v7015_v31 }
0x12c9   :  { %v2510_v59 = vsub.f32 %v2488_v23, %v2506_v17 }
0x12cb   :  { %v2514_v8 = vmul.f32 %v2510_v59, %v2510_v59 }
0x12cd   :  { %v2518_v62 = vsel %vm113_vm0, %v2514_v8, 0.0  ;;  %v6072_v8 = vld [vmem:[%s8375_s18 + $0x20] sm:$0xff] }
0x12ce   :  { %v2499_v15 = vpop.xlane.xlu0 %2498  ;;  %2519 = vadd.xlane.f32.xlu0 %v2518_v62  ;;  %2720 = vmatpush.bf16.msra.mxu0 %v6072_v8 }
0x12cf   :  { %v2507_v39 = vmul.f32 %v2499_v15, %v7015_v31 }
0x12d1   :  { %v7422_v52 = vsub.f32 %v2489_v34, %v2507_v39 }
0x12d2   :  { %2721 = vmatpush.bf16.msra.mxu0 %v6071_v20  ;;  %v6076_v20 = vld [vmem:[%s8411_s17 + $0x10] sm:$0xff] }
0x12d3   :  { %v2515_v11 = vmul.f32 %v7422_v52, %v7422_v52 }
0x12d5   :  { %v2521_v4 = vsel %vm113_vm0, %v2515_v11, 0.0 }
0x12d6   :  { %2522 = vadd.xlane.f32.xlu2 %v2521_v4 }
0x12da   :  { %v2502_v57 = vpop.xlane.xlu1 %2501 }
0x12db   :  { %v2508_v47 = vmul.f32 %v2502_v57, %v7015_v31 }
0x12dd   :  { %v7428_v3 = vsub.f32 %v2490_v54, %v2508_v47 }
0x12df   :  { %v2516_v55 = vmul.f32 %v7428_v3, %v7428_v3 }
0x12e1   :  { %v2524_v60 = vsel %vm113_vm0, %v2516_v55, 0.0 }
0x12e2   :  { %v2505_v13 = vpop.xlane.xlu2 %2504  ;;  %2525 = vadd.xlane.f32.xlu1 %v2524_v60 }
0x12e3   :  { %v2509_v37 = vmul.f32 %v2505_v13, %v7015_v31 }
0x12e5   :  { %v7434_v35 = vsub.f32 %v2491_v14, %v2509_v37 }
0x12e7   :  { %v2517_v43 = vmul.f32 %v7434_v35, %v7434_v35 }
0x12e9   :  { %v2527_v30 = vsel %vm113_vm0, %v2517_v43, 0.0 }
0x12ea   :  { %2528 = vadd.xlane.f32.xlu0 %v2527_v30 }
0x1341   :  { %v2520_v1 = vpop.xlane.xlu0 %2519 }
0x1342   :  { %v2530_v6 = vmul.f32 %v2520_v1, %v7015_v31 }
0x1344   :  { %v2534_v49 = vadd.f32 1e-05, %v2530_v6 }
0x1346   :  { %6387 = vrsqrt.f32 %v2534_v49  ;;  %vm2544_vm8 = vweird.f32 %v2534_v49 }
0x1349   :  { %v2523_v10 = vpop.xlane.xlu2 %2522 }
0x134a   :  { %v2531_v19 = vmul.f32 %v2523_v10, %v7015_v31 }
0x134c   :  { %v6388_v16 = vpop.eup %6387  ;;  %v2535_v2 = vadd.f32 1e-05, %v2531_v19  ;;  %v6235_v19 = vld [vmem:[%s8420_s27] ss:$0 sm:$0xff] }
0x134d   :  { %v2539_v18 = vmul.f32 %v6388_v16, %v2534_v49  ;;  %vm2545_vm7 = vweird.f32 %v6388_v16  ;;  %v6068_v49 = vld [vmem:[%s8375_s18] sm:$0xff] }
0x134e   :  { %6389 = vrsqrt.f32 %v2535_v2  ;;  %vm2546_vm9 = vmor %vm2544_vm8, %vm2545_vm7  ;;  %vm2554_vm11 = vweird.f32 %v2535_v2 }
0x134f   :  { %v2540_v45 = vmul.f32 %v6388_v16, %v2539_v18 }
0x1351   :  { %v2541_v63 = vmul.f32 0.5, %v2540_v45 }
0x1353   :  { %v2542_v5 = vsub.f32 1.5, %v2541_v63 }
0x1354   :  { %v6390_v53 = vpop.eup %6389 }
0x1355   :  { %v2543_v21 = vmul.f32 %v6388_v16, %v2542_v5  ;;  %v2549_v25 = vmul.f32 %v6390_v53, %v2535_v2  ;;  %v2526_v51 = vpop.xlane.xlu1 %2525  ;;  %vm2555_vm10 = vweird.f32 %v6390_v53 }
0x1356   :  { %v2532_v48 = vmul.f32 %v2526_v51, %v7015_v31  ;;  %vm2556_vm12 = vmor %vm2554_vm11, %vm2555_vm10 }
0x1357   :  { %v2550_v27 = vmul.f32 %v6390_v53, %v2549_v25  ;;  %v2547_v28 = vsel %vm2546_vm9, %v6388_v16, %v2543_v21 }
0x1358   :  { %v2536_v7 = vadd.f32 1e-05, %v2532_v48  ;;  %v2578_v32 = vmul.f32 %v2547_v28, %v2510_v59  ;;  %v6236_v28 = vld [vmem:[%s8376_s19] ss:$0 sm:$0xff] }
0x1359   :  { %v2551_v9 = vmul.f32 0.5, %v2550_v27 }
0x135a   :  { %6391 = vrsqrt.f32 %v2536_v7  ;;  %v2585_v42 = vmul.f32 %v6233_v40, %v2578_v32  ;;  %vm2564_vm14 = vweird.f32 %v2536_v7 }
0x135b   :  { %v2552_v38 = vsub.f32 1.5, %v2551_v9 }
0x135c   :  { %v2592_v56 = vadd.f32 %v6234_v36, %v2585_v42 }
0x135d   :  { %v2553_v12 = vmul.f32 %v6390_v53, %v2552_v38  ;;  %v2529_v23 = vpop.xlane.xlu0 %2528 }
0x135e   :  { %v2533_v24 = vmul.f32 %v2529_v23, %v7015_v31 }
0x135f   :  { %v2557_v33 = vsel %vm2556_vm12, %v6390_v53, %v2553_v12 }
0x1360   :  { %v6392_v34 = vpop.eup %6391  ;;  %v2579_v0 = vmul.f32 %v2557_v33, %v7422_v52  ;;  %v2537_v54 = vadd.f32 1e-05, %v2533_v24 }
0x1361   :  { %v2559_v44 = vmul.f32 %v6392_v34, %v2536_v7  ;;  %vm2565_vm13 = vweird.f32 %v6392_v34 }
0x1362   :  { %v2586_v26 = vmul.f32 %v6233_v40, %v2579_v0  ;;  %6393 = vrsqrt.f32 %v2537_v54  ;;  %vm2566_vm15 = vmor %vm2564_vm14, %vm2565_vm13  ;;  %vm2574_vm6 = vweird.f32 %v2537_v54 }
0x1363   :  { %v2560_v14 = vmul.f32 %v6392_v34, %v2559_v44 }
0x1364   :  { %v7465_v58 = vadd.f32 %v6234_v36, %v2586_v26 }
0x1365   :  { %v2561_v17 = vmul.f32 0.5, %v2560_v14 }
0x1366   :  { %v2596_v59 = vpack.c.bf16 %v7465_v58, %v2592_v56 }
0x1367   :  { %v2562_v62 = vsub.f32 1.5, %v2561_v17 }
0x1368   :  { %v6394_v15 = vpop.eup %6393  ;;  %5768 = vmatmul.msk.bf16.vlgmr.msra.gmra.mxu3 %vm113_vm0, %v2596_v59 }
0x1369   :  { %v2563_v39 = vmul.f32 %v6392_v34, %v2562_v62  ;;  %v2569_v52 = vmul.f32 %v6394_v15, %v2537_v54  ;;  %vm2575_vm5 = vweird.f32 %v6394_v15 }
0x136a   :  { %vm2576_vm7 = vmor %vm2574_vm6, %vm2575_vm5 }
0x136b   :  { %v2570_v11 = vmul.f32 %v6394_v15, %v2569_v52  ;;  %v2567_v4 = vsel %vm2566_vm15, %v6392_v34, %v2563_v39 }
0x136c   :  { %v2580_v55 = vmul.f32 %v2567_v4, %v7428_v3  ;;  %v6070_v3 = vld [vmem:[%s8375_s18 + $0x10] sm:$0xff] }
0x136d   :  { %v2571_v57 = vmul.f32 0.5, %v2570_v11  ;;  %2722 = vmatpush.bf16.msra.mxu0 %v6070_v3  ;;  %v6078_v3 = vld [vmem:[%s8410_s29 + $0x10] sm:$0xff] }
0x136e   :  { %v2587_v43 = vmul.f32 %v6233_v40, %v2580_v55 }
0x136f   :  { %v2572_v47 = vsub.f32 1.5, %v2571_v57 }
0x1370   :  { %v2594_v46 = vadd.f32 %v6234_v36, %v2587_v43  ;;  %v6077_v43 = vld [vmem:[%s8411_s17 + $0x18] sm:$0xff] }
0x1371   :  { %v2573_v60 = vmul.f32 %v6394_v15, %v2572_v47  ;;  %2892 = vmatpush.bf16.msrb.mxu1 %v6077_v43 }
0x1373   :  { %v2577_v13 = vsel %vm2576_vm7, %v6394_v15, %v2573_v60 }
0x1374   :  { %v2581_v37 = vmul.f32 %v2577_v13, %v7434_v35  ;;  %v6069_v35 = vld [vmem:[%s8375_s18 + $0x8] sm:$0xff] }
0x1375   :  { %2723 = vmatpush.bf16.msra.mxu0 %v6069_v35  ;;  %v6080_v35 = vld [vmem:[%s8413_s23 + $0x10] sm:$0xff]  ;;  %2893 = vmatpush.bf16.msrb.mxu1 %v6076_v20 }
0x1376   :  { %v2588_v30 = vmul.f32 %v6233_v40, %v2581_v37 }
0x1378   :  { %v2595_v1 = vadd.f32 %v6234_v36, %v2588_v30  ;;  %v6079_v30 = vld [vmem:[%s8410_s29 + $0x18] sm:$0xff] }
0x1379   :  { %2724 = vmatpush.bf16.msra.mxu0 %v6068_v49  ;;  %2923 = vmatpush.bf16.msrb.mxu2 %v6079_v30 }
0x137a   :  { %v2597_v6 = vpack.c.bf16 %v2595_v1, %v2594_v46 }
0x137c   :  { %5769 = vmatmul.msk.bf16.gmra.mxu3 %vm113_vm0, %v2597_v6 }
0x137d   :  { %2924 = vmatpush.bf16.msrb.mxu2 %v6078_v3 }
0x13eb   :  { %v2633_v10 = vpop.f32.mrf.mxu3 }
0x13ec   :  { %v2634_v16 = vadd.f32 %v6235_v19, %v2633_v10 }
0x13ee   :  { %v2643_v45 = vmax.f32 %v2634_v16, 0.0 }
0x13f3   :  { %v2635_v2 = vpop.f32.mrf.mxu3 }
0x13f4   :  { %v2636_v18 = vadd.f32 %v6235_v19, %v2635_v2 }
0x13f6   :  { %v2644_v63 = vmax.f32 %v2636_v18, 0.0 }
0x13f8   :  { %v2647_v5 = vpack.c.bf16 %v2644_v63, %v2643_v45 }
0x13fa   :  { %2725 = vmatmul.bf16.vlgmr.msra.gmra.mxu0 %v2647_v5 }
0x13ff   :  { %v2638_v53 = vpop.f32.mrf.mxu3 }
0x1400   :  { %v2639_v21 = vadd.f32 %v6235_v19, %v2638_v53 }
0x1402   :  { %v2645_v48 = vmax.f32 %v2639_v21, 0.0 }
0x1407   :  { %v2640_v25 = vpop.f32.mrf.mxu3 }
0x1408   :  { %v2641_v51 = vadd.f32 %v6235_v19, %v2640_v25 }
0x140a   :  { %v2646_v27 = vmax.f32 %v2641_v51, 0.0 }
0x140c   :  { %v2648_v7 = vpack.c.bf16 %v2646_v27, %v2645_v48 }
0x140e   :  { %2730 = vmatmul.bf16.gmra.mxu0 %v2648_v7 }
0x1477   :  { %v2726_v9 = vpop.f32.mrf.mxu0 }
0x1478   :  { %v2727_v38 = vadd.f32 %v6236_v28, %v2726_v9 }
0x147a   :  { %v2736_v40 = vadd.f32 %v2727_v38, %v2592_v56 }
0x147c   :  { %v2742_v32 = vsel %vm113_vm0, %v2736_v40, 0.0 }
0x147d   :  { %2743 = vadd.xlane.f32.xlu2 %v2742_v32 }
0x147f   :  { %v2728_v41 = vpop.f32.mrf.mxu0 }
0x1480   :  { %v2729_v12 = vadd.f32 %v6236_v28, %v2728_v41 }
0x1482   :  { %v2737_v23 = vadd.f32 %v2729_v12, %v7465_v58 }
0x1484   :  { %v2745_v24 = vsel %vm113_vm0, %v2737_v23, 0.0 }
0x1485   :  { %2746 = vadd.xlane.f32.xlu1 %v2745_v24 }
0x148b   :  { %v2731_v29 = vpop.f32.mrf.mxu0 }
0x148c   :  { %v2732_v33 = vadd.f32 %v6236_v28, %v2731_v29 }
0x148e   :  { %v2738_v34 = vadd.f32 %v2732_v33, %v2594_v46  ;;  %v6081_v46 = vld [vmem:[%s8413_s23 + $0x18] sm:$0xff]  ;;  %v6238_v33 = vld [vmem:[%s8378_s21] ss:$0 sm:$0xff] }
0x148f   :  { %2954 = vmatpush.bf16.msrb.mxu3 %v6081_v46 }
0x1490   :  { %v2748_v36 = vsel %vm113_vm0, %v2738_v34, 0.0 }
0x1491   :  { %2749 = vadd.xlane.f32.xlu0 %v2748_v36 }
0x1493   :  { %v2733_v42 = vpop.f32.mrf.mxu0  ;;  %2955 = vmatpush.bf16.msrb.mxu3 %v6080_v35 }
0x1494   :  { %v2734_v0 = vadd.f32 %v6236_v28, %v2733_v42 }
0x1496   :  { %v2739_v54 = vadd.f32 %v2734_v0, %v2595_v1 }
0x1498   :  { %v2751_v44 = vsel %vm113_vm0, %v2739_v54, 0.0 }
0x1499   :  { %2752 = vadd.xlane.f32.xlu2 %v2751_v44 }
0x14f0   :  { %v2744_v26 = vpop.xlane.xlu2 %2743 }
0x14f1   :  { %v2754_v50 = vmul.f32 %v2744_v26, %v7015_v31 }
0x14f3   :  { %v7499_v14 = vsub.f32 %v2736_v40, %v2754_v50  ;;  %v6237_v40 = vld [vmem:[%s8377_s20] ss:$0 sm:$0xff] }
0x14f5   :  { %v2762_v56 = vmul.f32 %v7499_v14, %v7499_v14 }
0x14f7   :  { %v2766_v58 = vsel %vm113_vm0, %v2762_v56, 0.0 }
0x14f8   :  { %2767 = vadd.xlane.f32.xlu1 %v2766_v58  ;;  %v2747_v17 = vpop.xlane.xlu1 %2746 }
0x14f9   :  { %v2755_v59 = vmul.f32 %v2747_v17, %v7015_v31 }
0x14fb   :  { %v7505_v8 = vsub.f32 %v2737_v23, %v2755_v59 }
0x14fd   :  { %v2763_v62 = vmul.f32 %v7505_v8, %v7505_v8 }
0x14ff   :  { %v2769_v15 = vsel %vm113_vm0, %v2763_v62, 0.0 }
0x1500   :  { %2770 = vadd.xlane.f32.xlu0 %v2769_v15 }
0x1504   :  { %v2750_v39 = vpop.xlane.xlu0 %2749 }
0x1505   :  { %v2756_v52 = vmul.f32 %v2750_v39, %v7015_v31 }
0x1507   :  { %v7511_v11 = vsub.f32 %v2738_v34, %v2756_v52 }
0x1509   :  { %v2764_v4 = vmul.f32 %v7511_v11, %v7511_v11 }
0x150b   :  { %v2772_v57 = vsel %vm113_vm0, %v2764_v4, 0.0 }
0x150c   :  { %v2753_v47 = vpop.xlane.xlu2 %2752  ;;  %2773 = vadd.xlane.f32.xlu2 %v2772_v57 }
0x150d   :  { %v2757_v55 = vmul.f32 %v2753_v47, %v7015_v31 }
0x150f   :  { %v7517_v60 = vsub.f32 %v2739_v54, %v2757_v55 }
0x1511   :  { %v2765_v13 = vmul.f32 %v7517_v60, %v7517_v60 }
0x1513   :  { %v2775_v37 = vsel %vm113_vm0, %v2765_v13, 0.0 }
0x1514   :  { %2776 = vadd.xlane.f32.xlu1 %v2775_v37 }
0x156b   :  { %v2768_v1 = vpop.xlane.xlu1 %2767 }
0x156c   :  { %v2778_v6 = vmul.f32 %v2768_v1, %v7015_v31 }
0x156e   :  { %v2782_v49 = vadd.f32 1e-05, %v2778_v6 }
0x1570   :  { %6395 = vrsqrt.f32 %v2782_v49  ;;  %vm2792_vm9 = vweird.f32 %v2782_v49 }
0x1573   :  { %v2771_v10 = vpop.xlane.xlu0 %2770 }
0x1574   :  { %v2779_v19 = vmul.f32 %v2771_v10, %v7015_v31 }
0x1576   :  { %v6396_v16 = vpop.eup %6395  ;;  %v2783_v2 = vadd.f32 1e-05, %v2779_v19 }
0x1577   :  { %v2787_v18 = vmul.f32 %v6396_v16, %v2782_v49  ;;  %vm2793_vm8 = vweird.f32 %v6396_v16 }
0x1578   :  { %6397 = vrsqrt.f32 %v2783_v2  ;;  %vm2794_vm10 = vmor %vm2792_vm9, %vm2793_vm8  ;;  %vm2802_vm12 = vweird.f32 %v2783_v2 }
0x1579   :  { %v2788_v45 = vmul.f32 %v6396_v16, %v2787_v18 }
0x157b   :  { %v2789_v63 = vmul.f32 0.5, %v2788_v45 }
0x157d   :  { %v2790_v5 = vsub.f32 1.5, %v2789_v63 }
0x157e   :  { %v6398_v53 = vpop.eup %6397 }
0x157f   :  { %v2791_v21 = vmul.f32 %v6396_v16, %v2790_v5  ;;  %v2797_v25 = vmul.f32 %v6398_v53, %v2783_v2  ;;  %v2774_v51 = vpop.xlane.xlu2 %2773  ;;  %vm2803_vm11 = vweird.f32 %v6398_v53 }
0x1580   :  { %v2780_v48 = vmul.f32 %v2774_v51, %v7015_v31  ;;  %vm2804_vm13 = vmor %vm2802_vm12, %vm2803_vm11 }
0x1581   :  { %v2798_v27 = vmul.f32 %v6398_v53, %v2797_v25  ;;  %v2795_v28 = vsel %vm2794_vm10, %v6396_v16, %v2791_v21 }
0x1582   :  { %v2784_v7 = vadd.f32 1e-05, %v2780_v48  ;;  %v2826_v32 = vmul.f32 %v2795_v28, %v7499_v14 }
0x1583   :  { %v2799_v9 = vmul.f32 0.5, %v2798_v27 }
0x1584   :  { %6399 = vrsqrt.f32 %v2784_v7  ;;  %v2833_v34 = vmul.f32 %v6237_v40, %v2826_v32  ;;  %vm2812_vm15 = vweird.f32 %v2784_v7 }
0x1585   :  { %v2800_v38 = vsub.f32 1.5, %v2799_v9 }
0x1586   :  { %v7552_v26 = vadd.f32 %v6238_v33, %v2833_v34 }
0x1587   :  { %v2801_v41 = vmul.f32 %v6398_v53, %v2800_v38  ;;  %v2777_v12 = vpop.xlane.xlu1 %2776 }
0x1588   :  { %v2781_v23 = vmul.f32 %v2777_v12, %v7015_v31 }
0x1589   :  { %v2805_v24 = vsel %vm2804_vm13, %v6398_v53, %v2801_v41 }
0x158a   :  { %v6400_v29 = vpop.eup %6399  ;;  %v2827_v36 = vmul.f32 %v2805_v24, %v7505_v8  ;;  %v2785_v42 = vadd.f32 1e-05, %v2781_v23 }
0x158b   :  { %v2807_v0 = vmul.f32 %v6400_v29, %v2784_v7  ;;  %vm2813_vm14 = vweird.f32 %v6400_v29 }
0x158c   :  { %v2834_v54 = vmul.f32 %v6237_v40, %v2827_v36  ;;  %6401 = vrsqrt.f32 %v2785_v42  ;;  %vm2814_vm5 = vmor %vm2812_vm15, %vm2813_vm14  ;;  %vm2822_vm7 = vweird.f32 %v2785_v42 }
0x158d   :  { %v2808_v44 = vmul.f32 %v6400_v29, %v2807_v0 }
0x158e   :  { %v7554_v50 = vadd.f32 %v6238_v33, %v2834_v54 }
0x158f   :  { %v2809_v14 = vmul.f32 0.5, %v2808_v44 }
0x1590   :  { %v2844_v56 = vpack.c.bf16 %v7554_v50, %v7552_v26 }
0x1591   :  { %v2810_v58 = vsub.f32 1.5, %v2809_v14 }
0x1592   :  { %v6402_v17 = vpop.eup %6401  ;;  %5827 = vmatmul.msk.bf16.vlgmr.msrb.gmra.mxu1 %vm113_vm0, %v2844_v56  ;;  %5837 = vmatmul.msk.bf16.vlgmr.msrb.gmra.mxu2 %vm113_vm0, %v2844_v56 }
0x1593   :  { %v2811_v59 = vmul.f32 %v6400_v29, %v2810_v58  ;;  %v2817_v8 = vmul.f32 %v6402_v17, %v2785_v42  ;;  %5847 = vmatmul.msk.bf16.vlgmr.msrb.gmra.mxu3 %vm113_vm0, %v2844_v56  ;;  %vm2823_vm6 = vweird.f32 %v6402_v17 }
0x1594   :  { %vm2824_vm8 = vmor %vm2822_vm7, %vm2823_vm6 }
0x1595   :  { %v2818_v62 = vmul.f32 %v6402_v17, %v2817_v8  ;;  %v2815_v15 = vsel %vm2814_vm5, %v6400_v29, %v2811_v59 }
0x1596   :  { %v2828_v4 = vmul.f32 %v2815_v15, %v7511_v11 }
0x1597   :  { %v2819_v39 = vmul.f32 0.5, %v2818_v62 }
0x1598   :  { %v2835_v13 = vmul.f32 %v6237_v40, %v2828_v4 }
0x1599   :  { %v2820_v52 = vsub.f32 1.5, %v2819_v39 }
0x159a   :  { %v7563_v43 = vadd.f32 %v6238_v33, %v2835_v13 }
0x159b   :  { %v2821_v57 = vmul.f32 %v6402_v17, %v2820_v52 }
0x159d   :  { %v2825_v47 = vsel %vm2824_vm8, %v6402_v17, %v2821_v57 }
0x159e   :  { %v2829_v55 = vmul.f32 %v2825_v47, %v7517_v60 }
0x15a0   :  { %v2836_v37 = vmul.f32 %v6237_v40, %v2829_v55 }
0x15a2   :  { %v7565_v30 = vadd.f32 %v6238_v33, %v2836_v37 }
0x15a4   :  { %v2845_v46 = vpack.c.bf16 %v7565_v30, %v7563_v43 }
0x15a6   :  { %5828 = vmatmul.msk.bf16.gmra.mxu1 %vm113_vm0, %v2845_v46  ;;  %5838 = vmatmul.msk.bf16.gmra.mxu2 %vm113_vm0, %v2845_v46 }
0x15a7   :  { %5848 = vmatmul.msk.bf16.gmra.mxu3 %vm113_vm0, %v2845_v46 }
0x160f   :  { %v2895_v3 = vpop.f32.mrf.mxu1 }
0x1610   :  { %v2967_v10 = vpack.c.bf16 %v2895_v3, %v2895_v3 }
0x1612   :  { %v3180_v56 = vunpack.c.l.b16 %v2967_v10 }
0x1614   :  { %v7614_v58 = vpack.c.b16 %v3180_v56, %v3180_v56 }
0x1615   :  { %v2926_v11 = vpop.f32.mrf.mxu2 }
0x1616   :  { %v7572_v1 = vpack.c.bf16 %v2926_v11, %v2926_v11  ;;  %v2957_v6 = vpop.f32.mrf.mxu3 }
0x1617   :  { %v7574_v60 = vpack.c.bf16 %v2957_v6, %v2957_v6  ;;  %v2897_v63 = vpop.f32.mrf.mxu1 }
0x1618   :  { %v2983_v20 = vsel %vm213_vm1, %v7572_v1, 0  ;;  %v7586_v5 = vpack.c.bf16 %v2897_v63, %v2897_v63  ;;  %v3185_v8 = vunpack.c.l.b16 %v7572_v1 }
0x1619   :  { %v3107_v35 = vsel %vm341_vm2, %v7574_v60, 0  ;;  %2992 = vmatpush.bf16.xpose.msra.mxu1 %v2983_v20 }
0x161a   :  { %3116 = vmatpush.bf16.msra.mxu3 %v3107_v35  ;;  %v7620_v15 = vpack.c.b16 %v3185_v8, %v3185_v8 }
0x161d   :  { %v2928_v49 = vpop.f32.mrf.mxu2 }
0x161e   :  { %v2972_v19 = vpack.c.bf16 %v2928_v49, %v2928_v49  ;;  %v2959_v16 = vpop.f32.mrf.mxu3 }
0x161f   :  { %v7580_v2 = vpack.c.bf16 %v2959_v16, %v2959_v16 }
0x1620   :  { %5849 = vmatmul.msk.bf16.vlgmr.msra.gmra.mxu1 %vm213_vm1, %v2967_v10  ;;  %v3002_v18 = vsel %vm213_vm1, %v2972_v19, 0  ;;  %v3214_v62 = vunpack.c.l.b16 %v2972_v19 }
0x1621   :  { %3011 = vmatpush.bf16.xpose.msrb.mxu0 %v3002_v18  ;;  %v3126_v45 = vsel %vm341_vm2, %v7580_v2, 0 }
0x1622   :  { %v7622_v39 = vpack.c.b16 %v3214_v62, %v3214_v62 }
0x1623   :  { %v2900_v27 = vpop.f32.mrf.mxu1 }
0x1624   :  { %v7598_v9 = vpack.c.bf16 %v2900_v27, %v2900_v27 }
0x1628   :  { %5850 = vmatmul.msk.bf16.vlgmr.msrb.gmra.mxu0 %vm213_vm1, %v7586_v5 }
0x1629   :  { %3135 = vmatpush.bf16.msra.mxu0 %v3126_v45  ;;  %v2931_v53 = vpop.f32.mrf.mxu2 }
0x162a   :  { %v7590_v21 = vpack.c.bf16 %v2931_v53, %v2931_v53  ;;  %v2962_v25 = vpop.f32.mrf.mxu3 }
0x162b   :  { %v7592_v51 = vpack.c.bf16 %v2962_v25, %v2962_v25  ;;  %v2902_v23 = vpop.f32.mrf.mxu1 }
0x162c   :  { %v3021_v48 = vsel %vm213_vm1, %v7590_v21, 0  ;;  %v7607_v24 = vpack.c.bf16 %v2902_v23, %v2902_v23 }
0x162d   :  { %v3145_v7 = vsel %vm341_vm2, %v7592_v51, 0  ;;  %3030 = vmatpush.bf16.xpose.msrb.mxu1 %v3021_v48 }
0x162e   :  { %v3267_v25 = vunpack.c.l.b16 %v7607_v24 }
0x1631   :  { %v2933_v28 = vpop.f32.mrf.mxu2 }
0x1632   :  { %v2974_v38 = vpack.c.bf16 %v2933_v28, %v2933_v28  ;;  %v2964_v40 = vpop.f32.mrf.mxu3 }
0x1633   :  { %v7600_v32 = vpack.c.bf16 %v2964_v40, %v2964_v40  ;;  %v7638_v40 = vpack.c.b16 %v3267_v25, %v3267_v25 }
0x1634   :  { %5851 = vmatmul.msk.bf16.vlgmr.msrb.gmra.mxu1 %vm213_vm1, %v7598_v9  ;;  %v3040_v41 = vsel %vm213_vm1, %v2974_v38, 0  ;;  %v3272_v4 = vunpack.c.l.b16 %v2974_v38 }
0x1635   :  { %3154 = vmatpush.bf16.msra.mxu1 %v3145_v7  ;;  %3049 = vmatpush.bf16.xpose.msra.mxu2 %v3040_v41  ;;  %v3164_v12 = vsel %vm341_vm2, %v7600_v32, 0 }
0x1636   :  { %v7628_v57 = vpack.c.b16 %v3272_v4, %v3272_v4 }
0x163c   :  { %5852 = vmatmul.msk.bf16.vlgmr.msra.gmra.mxu2 %vm213_vm1, %v7607_v24  ;;  %v3344_v24 = vunpack.c.l.b16 %v7574_v60  ;;  %v3209_v60 = vunpack.c.l.b16 %v7586_v5 }
0x163d   :  { %3173 = vmatpush.bf16.msrb.mxu2 %v3164_v12 }
0x169d   :  { %v2994_v29 = vpop.f32.mrf.mxu1 }
0x169e   :  { %v3055_v33 = vsel %vm213_vm1, %v2994_v29, -inf }
0x169f   :  { %3056 = vmax.xlane.f32.xlu0 %v3055_v33  ;;  %v7646_v33 = vpack.c.b16 %v3344_v24, %v3344_v24  ;;  %v3392_v24 = vunpack.c.l.b16 %v7592_v51 }
0x16a5   :  { %v2996_v34 = vpop.f32.mrf.mxu1  ;;  %v3013_v36 = vpop.f32.mrf.mxu0 }
0x16a6   :  { %v3058_v42 = vsel %vm213_vm1, %v3013_v36, -inf }
0x16a7   :  { %3059 = vmax.xlane.f32.xlu1 %v3058_v42 }
0x16ad   :  { %v3015_v0 = vpop.f32.mrf.mxu0 }
0x16ae   :  { %v3238_v0 = vunpack.c.l.b16 %v7598_v9 }
0x16b1   :  { %v3032_v54 = vpop.f32.mrf.mxu1 }
0x16b2   :  { %v3061_v44 = vsel %vm213_vm1, %v3032_v54, -inf }
0x16b3   :  { %3062 = vmax.xlane.f32.xlu0 %v3061_v44 }
0x16b9   :  { %v3034_v14 = vpop.f32.mrf.mxu1 }
0x16bf   :  { %v3051_v17 = vpop.f32.mrf.mxu2 }
0x16c0   :  { %3182 = vrot.lane.b32.xlu1 %v7614_v58, %s8421_s5  ;;  %v3064_v59 = vsel %vm213_vm1, %v3051_v17, -inf }
0x16c1   :  { %3065 = vmax.xlane.f32.xlu2 %v3064_v59 }
0x16c7   :  { %3187 = vrot.lane.b32.xlu0 %v7620_v15, %s8421_s5  ;;  %v3053_v52 = vpop.f32.mrf.mxu2 }
0x16c8   :  { %3216 = vrot.lane.b32.xlu1 %v7622_v39, %s8421_s5 }
0x16d9   :  { %3274 = vrot.lane.b32.xlu2 %v7628_v57, %s8421_s5 }
0x1712   :  { %v3057_v47 = vpop.xlane.xlu0 %3056 }
0x1713   :  { %v3067_v55 = vsub.f32 %v2994_v29, %v3057_v47  ;;  %v3243_v29 = vunpack.c.l.b16 %v7590_v21  ;;  %v7662_v21 = vpack.c.b16 %v3209_v60, %v3209_v60 }
0x1715   :  { %v3071_v13 = vmul.f32 1.442695, %v3067_v55  ;;  %v7648_v34 = vpack.c.b16 %v3243_v29, %v3243_v29  ;;  %v7696_v29 = vpack.c.b16 %v3392_v24, %v3392_v24 }
0x1717   :  { %6403 = vpow2.f32 %v3071_v13 }
0x171a   :  { %v3060_v37 = vpop.xlane.xlu1 %3059 }
0x171b   :  { %v3068_v46 = vsub.f32 %v3013_v36, %v3060_v37  ;;  %v3416_v36 = vunpack.c.l.b16 %v7600_v32 }
0x171d   :  { %v6404_v11 = vpop.eup %6403  ;;  %v3073_v1 = vmul.f32 1.442695, %v3068_v46  ;;  %v7655_v42 = vpack.c.b16 %v3416_v36, %v3416_v36 }
0x171e   :  { %v3079_v6 = vsel %vm213_vm1, %v6404_v11, 0.0 }
0x171f   :  { %6405 = vpow2.f32 %v3073_v1  ;;  %3080 = vadd.xlane.f32.xlu2 %v3079_v6 }
0x1725   :  { %v6406_v20 = vpop.eup %6405 }
0x1726   :  { %v3063_v3 = vpop.xlane.xlu0 %3062  ;;  %v3082_v35 = vsel %vm213_vm1, %v6406_v20, 0.0 }
0x1727   :  { %v3069_v49 = vsub.f32 %v3032_v54, %v3063_v3  ;;  %3083 = vadd.xlane.f32.xlu2 %v3082_v35  ;;  %v7667_v54 = vpack.c.b16 %v3238_v0, %v3238_v0 }
0x1729   :  { %v3075_v10 = vmul.f32 1.442695, %v3069_v49 }
0x172b   :  { %6407 = vpow2.f32 %v3075_v10 }
0x1731   :  { %v6408_v19 = vpop.eup %6407 }
0x1732   :  { %v3183_v16 = vpop.permute.xlu1 %3182  ;;  %v3085_v18 = vsel %vm213_vm1, %v6408_v19, 0.0 }
0x1733   :  { %3086 = vadd.xlane.f32.xlu0 %v3085_v18 }
0x1734   :  { %v3066_v45 = vpop.xlane.xlu2 %3065 }
0x1735   :  { %v3070_v63 = vsub.f32 %v3051_v17, %v3066_v45 }
0x1737   :  { %v3077_v53 = vmul.f32 1.442695, %v3070_v63 }
0x1739   :  { %6409 = vpow2.f32 %v3077_v53  ;;  %v3188_v48 = vpop.permute.xlu0 %3187 }
0x173a   :  { %v3193_v27 = vsel %vm213_vm1, %v3188_v48, 0  ;;  %v3217_v7 = vpop.permute.xlu1 %3216 }
0x173b   :  { %v3222_v28 = vsel %vm213_vm1, %v3217_v7, 0  ;;  %3202 = vmatpush.bf16.xpose.msrb.mxu3 %v3193_v27 }
0x173c   :  { %3231 = vmatpush.bf16.xpose.msrb.mxu0 %v3222_v28  ;;  %v3275_v38 = vpop.permute.xlu2 %3274 }
0x173d   :  { %v3280_v41 = vsel %vm213_vm1, %v3275_v38, 0 }
0x173e   :  { %3289 = vmatpush.bf16.xpose.msra.mxu2 %v3280_v41 }
0x173f   :  { %v6410_v12 = vpop.eup %6409  ;;  %3269 = vrot.lane.b32.xlu2 %v7638_v40, %s8421_s5 }
0x1740   :  { %v3088_v23 = vsel %vm213_vm1, %v6410_v12, 0.0 }
0x1741   :  { %3089 = vadd.xlane.f32.xlu1 %v3088_v23 }
0x1747   :  { %3346 = vrot.lane.b32.xlu0 %v7646_v33, %s8421_s5  ;;  %3245 = vrot.lane.b32.xlu2 %v7648_v34, %s8421_s5 }
0x174f   :  { %3418 = vrot.lane.b32.xlu0 %v7655_v42, %s8421_s5  ;;  %3441 = vrot.lane.b32.xlu2 %v7620_v15, %s8422_s7 }
0x175a   :  { %3211 = vrot.lane.b32.xlu1 %v7662_v21, %s8421_s5 }
0x1762   :  { %3240 = vrot.lane.b32.xlu1 %v7667_v54, %s8421_s5 }
0x1792   :  { %v3081_v32 = vpop.xlane.xlu2 %3080 }
0x1793   :  { %6411 = vrcp.f32 %v3081_v32 }
0x1799   :  { %v6412_v44 = vpop.eup %6411 }
0x179a   :  { %v3095_v14 = vmul.f32 %v6412_v44, %v6404_v11  ;;  %v3084_v56 = vpop.xlane.xlu2 %3083 }
0x179b   :  { %6413 = vrcp.f32 %v3084_v56 }
0x179c   :  { %v3099_v17 = vpack.c.bf16 %v3095_v14, %v3095_v14 }
0x179e   :  { %5853 = vmatmul.msk.bf16.vlgmr.msra.gmra.mxu3 %vm213_vm1, %v3099_v17  ;;  %v3368_v17 = vunpack.c.l.b16 %v7580_v2 }
0x17a1   :  { %v6414_v5 = vpop.eup %6413 }
0x17a2   :  { %v3096_v59 = vmul.f32 %v6414_v5, %v6406_v20  ;;  %v3270_v8 = vpop.permute.xlu2 %3269  ;;  %v7703_v5 = vpack.c.b16 %v3368_v17, %v3368_v17 }
0x17a4   :  { %v3100_v62 = vpack.c.bf16 %v3096_v59, %v3096_v59 }
0x17a6   :  { %v3087_v52 = vpop.xlane.xlu0 %3086  ;;  %5854 = vmatmul.msk.bf16.vlgmr.msra.gmra.mxu0 %vm213_vm1, %v3100_v62 }
0x17a7   :  { %6415 = vrcp.f32 %v3087_v52 }
0x17aa   :  { %v3246_v9 = vpop.permute.xlu2 %3245 }
0x17ab   :  { %v3251_v4 = vsel %vm213_vm1, %v3246_v9, 0 }
0x17ac   :  { %3260 = vmatpush.bf16.xpose.msrb.mxu1 %v3251_v4 }
0x17ad   :  { %v6416_v47 = vpop.eup %6415 }
0x17ae   :  { %v3097_v55 = vmul.f32 %v6416_v47, %v6408_v19  ;;  %5857 = vmatmul.msk.bf16.vlgmr.msrb.gmra.mxu3 %vm213_vm1, %v3183_v16 }
0x17b0   :  { %v3101_v13 = vpack.c.bf16 %v3097_v55, %v3097_v55 }
0x17b2   :  { %5855 = vmatmul.msk.bf16.vlgmr.msra.gmra.mxu1 %vm213_vm1, %v3101_v13  ;;  %v3442_v46 = vpop.permute.xlu2 %3441 }
0x17b3   :  { %v3447_v20 = vsel %vm213_vm1, %v3442_v46, 0 }
0x17b4   :  { %v3090_v37 = vpop.xlane.xlu1 %3089 }
0x17b5   :  { %6417 = vrcp.f32 %v3090_v37 }
0x17b9   :  { %v3347_v11 = vpop.permute.xlu0 %3346 }
0x17ba   :  { %v3352_v1 = vsel %vm341_vm2, %v3347_v11, 0 }
0x17bb   :  { %v6418_v6 = vpop.eup %6417  ;;  %3361 = vmatpush.bf16.msra.mxu3 %v3352_v1 }
0x17bc   :  { %v3098_v3 = vmul.f32 %v6418_v6, %v6410_v12 }
0x17be   :  { %v3102_v35 = vpack.c.bf16 %v3098_v3, %v3098_v3 }
0x17bf   :  { %3456 = vmatpush.bf16.xpose.msrb.mxu3 %v3447_v20 }
0x17c0   :  { %5856 = vmatmul.msk.bf16.vlgmr.msrb.gmra.mxu2 %vm213_vm1, %v3102_v35 }
0x17c1   :  { %v3419_v49 = vpop.permute.xlu0 %3418 }
0x17c2   :  { %v3424_v10 = vsel %vm341_vm2, %v3419_v49, 0 }
0x17c3   :  { %3433 = vmatpush.bf16.msrb.mxu2 %v3424_v10 }
0x17cc   :  { %v3212_v19 = vpop.permute.xlu1 %3211 }
0x17cd   :  { %5858 = vmatmul.msk.bf16.vlgmr.msrb.gmra.mxu0 %vm213_vm1, %v3212_v19 }
0x17d0   :  { %5860 = vmatmul.msk.bf16.vlgmr.msra.gmra.mxu2 %vm213_vm1, %v3270_v8 }
0x17d4   :  { %v3241_v16 = vpop.permute.xlu1 %3240 }
0x17d5   :  { %5859 = vmatmul.msk.bf16.vlgmr.msrb.gmra.mxu1 %vm213_vm1, %v3241_v16 }
0x1821   :  { %v7683_v18 = vpop.f32.mrf.mxu3 }
0x1823   :  { %v7685_v45 = vpop.f32.mrf.mxu0 }
0x1829   :  { %v3120_v63 = vpop.f32.mrf.mxu3 }
0x182b   :  { %v3139_v53 = vpop.f32.mrf.mxu0 }
0x182f   :  { %v7687_v25 = vpop.f32.mrf.mxu1 }
0x1831   :  { %v3204_v48 = vpop.f32.mrf.mxu3 }
0x1832   :  { %v3295_v27 = vsel %vm213_vm1, %v3204_v48, -inf }
0x1833   :  { %3296 = vmax.xlane.f32.xlu2 %v3295_v27 }
0x1837   :  { %v3158_v7 = vpop.f32.mrf.mxu1 }
0x1839   :  { %v3206_v28 = vpop.f32.mrf.mxu3 }
0x1843   :  { %v7690_v38 = vpop.f32.mrf.mxu2 }
0x184a   :  { %v3233_v41 = vpop.f32.mrf.mxu0 }
0x184b   :  { %3510 = vrot.lane.b32.xlu2 %v7628_v57, %s8422_s7  ;;  %v3177_v12 = vpop.f32.mrf.mxu2  ;;  %v3298_v23 = vsel %vm213_vm1, %v3233_v41, -inf }
0x184c   :  { %3299 = vmax.xlane.f32.xlu0 %v3298_v23 }
0x1852   :  { %v3235_v36 = vpop.f32.mrf.mxu0  ;;  %v3262_v60 = vpop.f32.mrf.mxu1 }
0x1853   :  { %3394 = vrot.lane.b32.xlu2 %v7696_v29, %s8421_s5  ;;  %v3291_v0 = vpop.f32.mrf.mxu2  ;;  %v3301_v32 = vsel %vm213_vm1, %v3262_v60, -inf }
0x1854   :  { %3302 = vmax.xlane.f32.xlu0 %v3301_v32  ;;  %v3304_v44 = vsel %vm213_vm1, %v3291_v0, -inf }
0x1855   :  { %3305 = vmax.xlane.f32.xlu1 %v3304_v44 }
0x185a   :  { %v3264_v14 = vpop.f32.mrf.mxu1 }
0x185b   :  { %v3293_v56 = vpop.f32.mrf.mxu2 }
0x186e   :  { %3370 = vrot.lane.b32.xlu1 %v7703_v5, %s8421_s5 }
0x18a6   :  { %v3297_v51 = vpop.xlane.xlu2 %3296 }
0x18a7   :  { %v3307_v59 = vsub.f32 %v3204_v48, %v3297_v51 }
0x18a9   :  { %v3311_v8 = vmul.f32 1.442695, %v3307_v59 }
0x18ab   :  { %6419 = vpow2.f32 %v3311_v8 }
0x18ae   :  { %v3511_v62 = vpop.permute.xlu2 %3510 }
0x18af   :  { %v3516_v52 = vsel %vm213_vm1, %v3511_v62, 0 }
0x18b0   :  { %3525 = vmatpush.bf16.xpose.msra.mxu2 %v3516_v52 }
0x18b1   :  { %v6420_v9 = vpop.eup %6419 }
0x18b2   :  { %v3319_v4 = vsel %vm213_vm1, %v6420_v9, 0.0 }
0x18b3   :  { %3320 = vadd.xlane.f32.xlu0 %v3319_v4 }
0x18b6   :  { %v3395_v47 = vpop.permute.xlu2 %3394 }
0x18b7   :  { %v3400_v2 = vsel %vm341_vm2, %v3395_v47, 0 }
0x18b8   :  { %3409 = vmatpush.bf16.msra.mxu1 %v3400_v2 }
0x18bf   :  { %v3300_v55 = vpop.xlane.xlu0 %3299 }
0x18c0   :  { %v3308_v13 = vsub.f32 %v3233_v41, %v3300_v55 }
0x18c2   :  { %v3313_v37 = vmul.f32 1.442695, %v3308_v13 }
0x18c4   :  { %6421 = vpow2.f32 %v3313_v37 }
0x18c7   :  { %3439 = vrot.lane.b32.xlu0 %v7614_v58, %s8422_s7  ;;  %v3303_v49 = vpop.xlane.xlu0 %3302 }
0x18c8   :  { %v3306_v46 = vpop.xlane.xlu1 %3305  ;;  %v3309_v10 = vsub.f32 %v3262_v60, %v3303_v49 }
0x18c9   :  { %v3310_v11 = vsub.f32 %v3291_v0, %v3306_v46 }
0x18ca   :  { %v6422_v1 = vpop.eup %6421  ;;  %v3315_v63 = vmul.f32 1.442695, %v3309_v10 }
0x18cb   :  { %v3317_v6 = vmul.f32 1.442695, %v3310_v11  ;;  %v3322_v20 = vsel %vm213_vm1, %v6422_v1, 0.0 }
0x18cc   :  { %3323 = vadd.xlane.f32.xlu1 %v3322_v20 }
0x18cd   :  { %6423 = vpow2.f32 %v3317_v6 }
0x18ce   :  { %6425 = vpow2.f32 %v3315_v63 }
0x18d3   :  { %v6424_v3 = vpop.eup %6423 }
0x18d4   :  { %v3328_v35 = vsel %vm213_vm1, %v6424_v3, 0.0  ;;  %v6426_v53 = vpop.eup %6425 }
0x18d5   :  { %3329 = vadd.xlane.f32.xlu2 %v3328_v35  ;;  %v3325_v48 = vsel %vm213_vm1, %v6426_v53, 0.0 }
0x18e0   :  { %v3371_v19 = vpop.permute.xlu1 %3370 }
0x18e1   :  { %v3376_v16 = vsel %vm341_vm2, %v3371_v19, 0 }
0x18e2   :  { %3385 = vmatpush.bf16.msra.mxu0 %v3376_v16 }
0x18e5   :  { %3464 = vrot.lane.b32.xlu1 %v7622_v39, %s8422_s7 }
0x18ed   :  { %3508 = vrot.lane.b32.xlu1 %v7638_v40, %s8422_s7  ;;  %3462 = vrot.lane.b32.xlu2 %v7662_v21, %s8422_s7 }
0x18f1   :  { %3326 = vadd.xlane.f32.xlu0 %v3325_v48 }
0x18f5   :  { %3487 = vrot.lane.b32.xlu1 %v7648_v34, %s8422_s7  ;;  %3485 = vrot.lane.b32.xlu2 %v7667_v54, %s8422_s7 }
0x1905   :  { %3579 = vrot.lane.b32.xlu0 %v7646_v33, %s8422_s7 }
0x1926   :  { %v3321_v27 = vpop.xlane.xlu0 %3320 }
0x1927   :  { %6427 = vrcp.f32 %v3321_v27 }
0x192d   :  { %v6428_v7 = vpop.eup %6427 }
0x192e   :  { %v3335_v28 = vmul.f32 %v6428_v7, %v6420_v9 }
0x1930   :  { %v3339_v41 = vpack.c.bf16 %v3335_v28, %v3335_v28 }
0x1932   :  { %5861 = vmatmul.msk.bf16.vlgmr.msra.gmra.mxu3 %vm213_vm1, %v3339_v41 }
0x1939   :  { %v3440_v23 = vpop.permute.xlu0 %3439 }
0x193f   :  { %v3324_v12 = vpop.xlane.xlu1 %3323 }
0x1940   :  { %6429 = vrcp.f32 %v3324_v12 }
0x1942   :  { %5865 = vmatmul.msk.bf16.vlgmr.msrb.gmra.mxu3 %vm213_vm1, %v3440_v23 }
0x1946   :  { %v6430_v24 = vpop.eup %6429 }
0x1947   :  { %v3336_v36 = vmul.f32 %v6430_v24, %v6422_v1 }
0x1948   :  { %v3330_v60 = vpop.xlane.xlu2 %3329 }
0x1949   :  { %v3340_v0 = vpack.c.bf16 %v3336_v36, %v3336_v36  ;;  %6431 = vrcp.f32 %v3330_v60 }
0x194b   :  { %5862 = vmatmul.msk.bf16.vlgmr.msra.gmra.mxu0 %vm213_vm1, %v3340_v0 }
0x194f   :  { %v6432_v32 = vpop.eup %6431 }
0x1950   :  { %v3338_v44 = vmul.f32 %v6432_v32, %v6424_v3  ;;  %v3463_v51 = vpop.permute.xlu2 %3462 }
0x1952   :  { %v3342_v14 = vpack.c.bf16 %v3338_v44, %v3338_v44 }
0x1954   :  { %5864 = vmatmul.msk.bf16.vlgmr.msrb.gmra.mxu2 %vm213_vm1, %v3342_v14 }
0x1957   :  { %v3465_v56 = vpop.permute.xlu1 %3464 }
0x1958   :  { %v3470_v17 = vsel %vm213_vm1, %v3465_v56, 0  ;;  %v3486_v13 = vpop.permute.xlu2 %3485 }
0x1959   :  { %3479 = vmatpush.bf16.xpose.msrb.mxu0 %v3470_v17 }
0x195f   :  { %v3509_v59 = vpop.permute.xlu1 %3508 }
0x1960   :  { %5866 = vmatmul.msk.bf16.vlgmr.msrb.gmra.mxu0 %vm213_vm1, %v3463_v51 }
0x1964   :  { %v3327_v8 = vpop.xlane.xlu0 %3326  ;;  %5868 = vmatmul.msk.bf16.vlgmr.msra.gmra.mxu2 %vm213_vm1, %v3509_v59 }
0x1965   :  { %6433 = vrcp.f32 %v3327_v8 }
0x1967   :  { %v3488_v62 = vpop.permute.xlu1 %3487 }
0x1968   :  { %v3493_v52 = vsel %vm213_vm1, %v3488_v62, 0 }
0x1969   :  { %3502 = vmatpush.bf16.xpose.msrb.mxu1 %v3493_v52 }
0x196b   :  { %v6434_v9 = vpop.eup %6433 }
0x196c   :  { %v3337_v4 = vmul.f32 %v6434_v9, %v6426_v53 }
0x196e   :  { %v3341_v47 = vpack.c.bf16 %v3337_v4, %v3337_v4 }
0x1970   :  { %5863 = vmatmul.msk.bf16.vlgmr.msra.gmra.mxu1 %vm213_vm1, %v3341_v47 }
0x1977   :  { %v3580_v2 = vpop.permute.xlu0 %3579 }
0x1978   :  { %v3585_v55 = vsel %vm341_vm2, %v3580_v2, 0 }
0x1979   :  { %3594 = vmatpush.bf16.msra.mxu3 %v3585_v55 }
0x1980   :  { %5867 = vmatmul.msk.bf16.vlgmr.msrb.gmra.mxu1 %vm213_vm1, %v3486_v13 }
0x19b5   :  { %v7739_v37 = vpop.f32.mrf.mxu3 }
0x19bd   :  { %v3365_v46 = vpop.f32.mrf.mxu3 }
0x19c5   :  { %v3458_v11 = vpop.f32.mrf.mxu3 }
0x19c6   :  { %v3531_v1 = vsel %vm213_vm1, %v3458_v11, -inf }
0x19c7   :  { %3532 = vmax.xlane.f32.xlu1 %v3531_v1 }
0x19c8   :  { %v7742_v6 = vpop.f32.mrf.mxu0 }
0x19c9   :  { %v6169_v20 = vpack.i.bf16 %v7742_v6, %v7739_v37 }
0x19cd   :  { %v3460_v3 = vpop.f32.mrf.mxu3 }
0x19d0   :  { %v3389_v35 = vpop.f32.mrf.mxu0 }
0x19d7   :  { %v7746_v49 = vpop.f32.mrf.mxu2 }
0x19dd   :  { %v3481_v10 = vpop.f32.mrf.mxu0 }
0x19de   :  { %v3534_v19 = vsel %vm213_vm1, %v3481_v10, -inf }
0x19df   :  { %3535 = vmax.xlane.f32.xlu2 %v3534_v19  ;;  %v3437_v16 = vpop.f32.mrf.mxu2 }
0x19e0   :  { %3600 = vrot.lane.b32.xlu1 %v7703_v5, %s8422_s7 }
0x19e5   :  { %v3483_v63 = vpop.f32.mrf.mxu0 }
0x19e7   :  { %v3527_v53 = vpop.f32.mrf.mxu2 }
0x19e8   :  { %v3540_v24 = vsel %vm213_vm1, %v3527_v53, -inf }
0x19ed   :  { %v7751_v48 = vpop.f32.mrf.mxu1 }
0x19ee   :  { %v6184_v27 = vpack.i.bf16 %v7746_v49, %v7751_v48 }
0x19ef   :  { %v3529_v7 = vpop.f32.mrf.mxu2 }
0x19f5   :  { %v3413_v28 = vpop.f32.mrf.mxu1 }
0x19f7   :  { %3642 = vrot.lane.b32.xlu2 %v7655_v42, %s8422_s7 }
0x19fd   :  { %v3504_v41 = vpop.f32.mrf.mxu1 }
0x19fe   :  { %v3537_v12 = vsel %vm213_vm1, %v3504_v41, -inf }
0x19ff   :  { %3688 = vrot.lane.b32.xlu2 %v7622_v39, %s8423_s25  ;;  %3538 = vmax.xlane.f32.xlu0 %v3537_v12 }
0x1a05   :  { %v3506_v23 = vpop.f32.mrf.mxu1 }
0x1a07   :  { %3734 = vrot.lane.b32.xlu2 %v7628_v57, %s8423_s25  ;;  %3541 = vmax.xlane.f32.xlu0 %v3540_v24 }
0x1a0f   :  { %3732 = vrot.lane.b32.xlu2 %v7638_v40, %s8423_s25 }
0x1a3a   :  { %v3533_v36 = vpop.xlane.xlu1 %3532 }
0x1a3b   :  { %v3543_v60 = vsub.f32 %v3458_v11, %v3533_v36 }
0x1a3d   :  { %v3547_v0 = vmul.f32 1.442695, %v3543_v60 }
0x1a3f   :  { %6435 = vpow2.f32 %v3547_v0 }
0x1a45   :  { %v6436_v32 = vpop.eup %6435 }
0x1a46   :  { %v3555_v44 = vsel %vm213_vm1, %v6436_v32, 0.0 }
0x1a47   :  { %3556 = vadd.xlane.f32.xlu0 %v3555_v44 }
0x1a52   :  { %v3536_v39 = vpop.xlane.xlu2 %3535  ;;  %v3601_v14 = vpop.permute.xlu1 %3600 }
0x1a53   :  { %v3544_v56 = vsub.f32 %v3481_v10, %v3536_v39  ;;  %v3606_v17 = vsel %vm341_vm2, %v3601_v14, 0 }
0x1a54   :  { %3615 = vmatpush.bf16.msra.mxu0 %v3606_v17 }
0x1a55   :  { %v3549_v51 = vmul.f32 1.442695, %v3544_v56 }
0x1a57   :  { %6437 = vpow2.f32 %v3549_v51 }
0x1a5a   :  { %v3643_v57 = vpop.permute.xlu2 %3642 }
0x1a5b   :  { %v3648_v59 = vsel %vm341_vm2, %v3643_v57, 0  ;;  %3665 = vrot.lane.b32.xlu0 %v7620_v15, %s8423_s25 }
0x1a5c   :  { %3657 = vmatpush.bf16.msrb.mxu2 %v3648_v59 }
0x1a5d   :  { %v6438_v40 = vpop.eup %6437 }
0x1a5e   :  { %v3558_v8 = vsel %vm213_vm1, %v6438_v40, 0.0 }
0x1a5f   :  { %3559 = vadd.xlane.f32.xlu1 %v3558_v8 }
0x1a62   :  { %v3689_v62 = vpop.permute.xlu2 %3688 }
0x1a63   :  { %v3694_v52 = vsel %vm213_vm1, %v3689_v62, 0 }
0x1a64   :  { %3703 = vmatpush.bf16.xpose.msrb.mxu0 %v3694_v52 }
0x1a6a   :  { %v3735_v9 = vpop.permute.xlu2 %3734 }
0x1a6b   :  { %v3740_v4 = vsel %vm213_vm1, %v3735_v9, 0 }
0x1a6c   :  { %3749 = vmatpush.bf16.xpose.msra.mxu2 %v3740_v4 }
0x1a72   :  { %v3539_v47 = vpop.xlane.xlu0 %3538 }
0x1a73   :  { %v3545_v2 = vsub.f32 %v3504_v41, %v3539_v47 }
0x1a75   :  { %v3551_v55 = vmul.f32 1.442695, %v3545_v2 }
0x1a77   :  { %6439 = vpow2.f32 %v3551_v55 }
0x1a78   :  { %3663 = vrot.lane.b32.xlu1 %v7614_v58, %s8423_s25 }
0x1a7a   :  { %v3542_v15 = vpop.xlane.xlu0 %3541 }
0x1a7b   :  { %v3546_v13 = vsub.f32 %v3527_v53, %v3542_v15 }
0x1a7d   :  { %v3553_v46 = vmul.f32 1.442695, %v3546_v13  ;;  %v6440_v11 = vpop.eup %6439 }
0x1a7e   :  { %v3561_v1 = vsel %vm213_vm1, %v6440_v11, 0.0 }
0x1a7f   :  { %6441 = vpow2.f32 %v3553_v46 }
0x1a80   :  { %3621 = vrot.lane.b32.xlu1 %v7696_v29, %s8422_s7 }
0x1a85   :  { %v6442_v3 = vpop.eup %6441  ;;  %3562 = vadd.xlane.f32.xlu0 %v3561_v1 }
0x1a86   :  { %v3564_v35 = vsel %vm213_vm1, %v6442_v3, 0.0 }
0x1a87   :  { %3565 = vadd.xlane.f32.xlu2 %v3564_v35 }
0x1a88   :  { %3686 = vrot.lane.b32.xlu1 %v7662_v21, %s8423_s25 }
0x1a90   :  { %3711 = vrot.lane.b32.xlu1 %v7648_v34, %s8423_s25 }
0x1a9f   :  { %3709 = vrot.lane.b32.xlu2 %v7667_v54, %s8423_s25  ;;  %v3733_v54 = vpop.permute.xlu2 %3732 }
0x1aba   :  { %v3557_v58 = vpop.xlane.xlu0 %3556 }
0x1abb   :  { %6443 = vrcp.f32 %v3557_v58 }
0x1ac1   :  { %v6444_v10 = vpop.eup %6443 }
0x1ac2   :  { %v3571_v19 = vmul.f32 %v6444_v10, %v6436_v32 }
0x1ac4   :  { %v3575_v16 = vpack.c.bf16 %v3571_v19, %v3571_v19 }
0x1ac6   :  { %5869 = vmatmul.msk.bf16.vlgmr.msra.gmra.mxu3 %vm213_vm1, %v3575_v16 }
0x1acd   :  { %v3666_v63 = vpop.permute.xlu0 %3665 }
0x1ace   :  { %v3671_v53 = vsel %vm213_vm1, %v3666_v63, 0 }
0x1acf   :  { %3680 = vmatpush.bf16.xpose.msrb.mxu3 %v3671_v53 }
0x1ad2   :  { %v3560_v7 = vpop.xlane.xlu1 %3559 }
0x1ad3   :  { %6445 = vrcp.f32 %v3560_v7 }
0x1ad9   :  { %v6446_v21 = vpop.eup %6445 }
0x1ada   :  { %v3572_v28 = vmul.f32 %v6446_v21, %v6438_v40 }
0x1adc   :  { %v3576_v41 = vpack.c.bf16 %v3572_v28, %v3572_v28 }
0x1ade   :  { %5870 = vmatmul.msk.bf16.vlgmr.msra.gmra.mxu0 %vm213_vm1, %v3576_v41 }
0x1aea   :  { %v3664_v34 = vpop.permute.xlu1 %3663 }
0x1aeb   :  { %5873 = vmatmul.msk.bf16.vlgmr.msrb.gmra.mxu3 %vm213_vm1, %v3664_v34 }
0x1af2   :  { %v3622_v12 = vpop.permute.xlu1 %3621 }
0x1af3   :  { %v3627_v23 = vsel %vm341_vm2, %v3622_v12, 0 }
0x1af4   :  { %3636 = vmatpush.bf16.msra.mxu1 %v3627_v23 }
0x1af8   :  { %v3563_v24 = vpop.xlane.xlu0 %3562 }
0x1af9   :  { %6447 = vrcp.f32 %v3563_v24 }
0x1afa   :  { %v3687_v36 = vpop.permute.xlu1 %3686  ;;  %v3566_v60 = vpop.xlane.xlu2 %3565 }
0x1afb   :  { %6449 = vrcp.f32 %v3566_v60  ;;  %5874 = vmatmul.msk.bf16.vlgmr.msrb.gmra.mxu0 %vm213_vm1, %v3687_v36 }
0x1aff   :  { %v6448_v0 = vpop.eup %6447 }
0x1b00   :  { %v3573_v32 = vmul.f32 %v6448_v0, %v6440_v11 }
0x1b01   :  { %v6450_v44 = vpop.eup %6449 }
0x1b02   :  { %v3577_v39 = vpack.c.bf16 %v3573_v32, %v3573_v32  ;;  %v3574_v14 = vmul.f32 %v6450_v44, %v6442_v3  ;;  %v3712_v56 = vpop.permute.xlu1 %3711  ;;  %v3710_v57 = vpop.permute.xlu2 %3709 }
0x1b03   :  { %v3717_v17 = vsel %vm213_vm1, %v3712_v56, 0 }
0x1b04   :  { %v3578_v51 = vpack.c.bf16 %v3574_v14, %v3574_v14  ;;  %5871 = vmatmul.msk.bf16.vlgmr.msra.gmra.mxu1 %vm213_vm1, %v3577_v39 }
0x1b05   :  { %3726 = vmatpush.bf16.xpose.msrb.mxu1 %v3717_v17 }
0x1b06   :  { %5872 = vmatmul.msk.bf16.vlgmr.msrb.gmra.mxu2 %vm213_vm1, %v3578_v51 }
0x1b14   :  { %5875 = vmatmul.msk.bf16.vlgmr.msrb.gmra.mxu1 %vm213_vm1, %v3710_v57 }
0x1b16   :  { %5876 = vmatmul.msk.bf16.vlgmr.msra.gmra.mxu2 %vm213_vm1, %v3733_v54 }
0x1b49   :  { %v3596_v59 = vpop.f32.mrf.mxu3 }
0x1b51   :  { %v3598_v40 = vpop.f32.mrf.mxu3 }
0x1b5b   :  { %v3617_v8 = vpop.f32.mrf.mxu0 }
0x1b5c   :  { %v6174_v62 = vpack.i.bf16 %v3617_v8, %v3596_v59 }
0x1b63   :  { %v3619_v52 = vpop.f32.mrf.mxu0 }
0x1b6e   :  { %v3682_v9 = vpop.f32.mrf.mxu3 }
0x1b6f   :  { %v3755_v4 = vsel %vm213_vm1, %v3682_v9, -inf }
0x1b70   :  { %3756 = vmax.xlane.f32.xlu0 %v3755_v4 }
0x1b76   :  { %v3684_v47 = vpop.f32.mrf.mxu3 }
0x1b78   :  { %v3705_v2 = vpop.f32.mrf.mxu0 }
0x1b79   :  { %v3758_v55 = vsel %vm213_vm1, %v3705_v2, -inf }
0x1b7a   :  { %3759 = vmax.xlane.f32.xlu1 %v3758_v55 }
0x1b80   :  { %v3707_v15 = vpop.f32.mrf.mxu0 }
0x1b81   :  { %v3638_v13 = vpop.f32.mrf.mxu1 }
0x1b89   :  { %v3640_v46 = vpop.f32.mrf.mxu1  ;;  %v3659_v11 = vpop.f32.mrf.mxu2 }
0x1b8a   :  { %v6189_v1 = vpack.i.bf16 %v3659_v11, %v3638_v13 }
0x1b91   :  { %v3661_v3 = vpop.f32.mrf.mxu2  ;;  %v3728_v35 = vpop.f32.mrf.mxu1 }
0x1b92   :  { %v3761_v58 = vsel %vm213_vm1, %v3728_v35, -inf }
0x1b93   :  { %3824 = vrot.lane.b32.xlu1 %v7703_v5, %s8423_s25  ;;  %3762 = vmax.xlane.f32.xlu0 %v3761_v58 }
0x1b99   :  { %v3730_v10 = vpop.f32.mrf.mxu1  ;;  %v3751_v19 = vpop.f32.mrf.mxu2 }
0x1b9a   :  { %v3764_v16 = vsel %vm213_vm1, %v3751_v19, -inf }
0x1b9b   :  { %3845 = vrot.lane.b32.xlu1 %v7696_v29, %s8423_s25  ;;  %3765 = vmax.xlane.f32.xlu2 %v3764_v16 }
0x1ba1   :  { %v3753_v63 = vpop.f32.mrf.mxu2 }
0x1ba3   :  { %6170 = vrot.lane.b32.xlu1 %v6169_v20, %s8418_s4 }
0x1be3   :  { %v3757_v53 = vpop.xlane.xlu0 %3756 }
0x1be4   :  { %v3767_v28 = vsub.f32 %v3682_v9, %v3757_v53 }
0x1be6   :  { %v3771_v41 = vmul.f32 1.442695, %v3767_v28 }
0x1bed   :  { %v3760_v7 = vpop.xlane.xlu1 %3759 }
0x1bee   :  { %v3768_v21 = vsub.f32 %v3705_v2, %v3760_v7 }
0x1bf0   :  { %v3773_v5 = vmul.f32 1.442695, %v3768_v21  ;;  %v6082_v21 = vld [vmem:[%s8414_s6 + $0x10] sm:$0xff] }
0x1bf2   :  { %6451 = vpow2.f32 %v3773_v5 }
0x1bf3   :  { %6453 = vpow2.f32 %v3771_v41 }
0x1bf8   :  { %v6452_v34 = vpop.eup %6451 }
0x1bf9   :  { %v3782_v54 = vsel %vm213_vm1, %v6452_v34, 0.0  ;;  %v6454_v29 = vpop.eup %6453 }
0x1bfa   :  { %3783 = vadd.xlane.f32.xlu0 %v3782_v54  ;;  %v3779_v12 = vsel %vm213_vm1, %v6454_v29, 0.0 }
0x1c02   :  { %3780 = vadd.xlane.f32.xlu0 %v3779_v12 }
0x1c05   :  { %v3825_v23 = vpop.permute.xlu1 %3824 }
0x1c06   :  { %v3830_v37 = vsel %vm341_vm2, %v3825_v23, 0  ;;  %v3763_v44 = vpop.xlane.xlu0 %3762 }
0x1c07   :  { %3839 = vmatpush.bf16.msra.mxu0 %v3830_v37  ;;  %v3769_v39 = vsub.f32 %v3728_v35, %v3763_v44 }
0x1c09   :  { %v3775_v14 = vmul.f32 1.442695, %v3769_v39 }
0x1c0d   :  { %v3846_v6 = vpop.permute.xlu1 %3845 }
0x1c0e   :  { %v3851_v20 = vsel %vm341_vm2, %v3846_v6, 0  ;;  %v3766_v24 = vpop.xlane.xlu2 %3765 }
0x1c0f   :  { %v3770_v36 = vsub.f32 %v3751_v19, %v3766_v24  ;;  %3860 = vmatpush.bf16.msra.mxu1 %v3851_v20  ;;  %v6083_v19 = vld [vmem:[%s8414_s6 + $0x18] sm:$0xff] }
0x1c11   :  { %v3777_v60 = vmul.f32 1.442695, %v3770_v36 }
0x1c13   :  { %6455 = vpow2.f32 %v3777_v60 }
0x1c14   :  { %6457 = vpow2.f32 %v3775_v14 }
0x1c15   :  { %v6171_v28 = vpop.permute.xlu1 %6170 }
0x1c16   :  { %3803 = vrot.lane.b32.xlu0 %v7646_v33, %s8423_s25  ;;  %v6173_v41 = vunpack.i.h.bf16 %v6171_v28 }
0x1c18   :  { %v3936_v23 = vsel %vm213_vm1, %v7685_v45, %v6173_v41 }
0x1c19   :  { %v6456_v0 = vpop.eup %6455 }
0x1c1a   :  { %v3788_v32 = vsel %vm213_vm1, %v6456_v0, 0.0  ;;  %v6458_v56 = vpop.eup %6457 }
0x1c1b   :  { %3789 = vadd.xlane.f32.xlu2 %v3788_v32  ;;  %v3785_v17 = vsel %vm213_vm1, %v6458_v56, 0.0 }
0x1c33   :  { %3866 = vrot.lane.b32.xlu2 %v7655_v42, %s8423_s25 }
0x1c3b   :  { %6175 = vrot.lane.b32.xlu2 %v6174_v62, %s8417_s0 }
0x1c40   :  { %3786 = vadd.xlane.f32.xlu0 %v3785_v17 }
0x1c43   :  { %6185 = vrot.lane.b32.xlu2 %v6184_v27, %s8418_s4 }
0x1c54   :  { %6190 = vrot.lane.b32.xlu0 %v6189_v1, %s8417_s0 }
0x1c6d   :  { %v3784_v33 = vpop.xlane.xlu0 %3783 }
0x1c6e   :  { %6459 = vrcp.f32 %v3784_v33 }
0x1c74   :  { %v6460_v51 = vpop.eup %6459 }
0x1c75   :  { %v3796_v57 = vmul.f32 %v6460_v51, %v6452_v34  ;;  %v3781_v42 = vpop.xlane.xlu0 %3780  ;;  %v6172_v34 = vunpack.i.l.bf16 %v6171_v28 }
0x1c76   :  { %6461 = vrcp.f32 %v3781_v42 }
0x1c77   :  { %v3800_v59 = vpack.c.bf16 %v3796_v57, %v3796_v57  ;;  %v3935_v37 = vsel %vm213_vm1, %v7683_v18, %v6172_v34 }
0x1c79   :  { %5878 = vmatmul.msk.bf16.vlgmr.msra.gmra.mxu0 %vm213_vm1, %v3800_v59 }
0x1c7c   :  { %v6462_v40 = vpop.eup %6461 }
0x1c7d   :  { %v3795_v8 = vmul.f32 %v6462_v40, %v6454_v29 }
0x1c7f   :  { %v3799_v9 = vpack.c.bf16 %v3795_v8, %v3795_v8 }
0x1c88   :  { %v3804_v62 = vpop.permute.xlu0 %3803 }
0x1c89   :  { %v3809_v52 = vsel %vm341_vm2, %v3804_v62, 0 }
0x1c8a   :  { %3818 = vmatpush.bf16.msra.mxu3 %v3809_v52 }
0x1c8d   :  { %5877 = vmatmul.msk.bf16.vlgmr.msra.gmra.mxu3 %vm213_vm1, %v3799_v9 }
0x1c8e   :  { %v3790_v49 = vpop.xlane.xlu2 %3789  ;;  %3976 = vmatpush.bf16.msrb.mxu3 %v6083_v19 }
0x1c8f   :  { %6463 = vrcp.f32 %v3790_v49 }
0x1c92   :  { %3977 = vmatpush.bf16.msrb.mxu3 %v6082_v21 }
0x1c95   :  { %v6464_v48 = vpop.eup %6463 }
0x1c96   :  { %v3798_v27 = vmul.f32 %v6464_v48, %v6456_v0  ;;  %v3867_v4 = vpop.permute.xlu2 %3866 }
0x1c97   :  { %v3872_v47 = vsel %vm341_vm2, %v3867_v4, 0 }
0x1c98   :  { %v3802_v2 = vpack.c.bf16 %v3798_v27, %v3798_v27  ;;  %3881 = vmatpush.bf16.msrb.mxu2 %v3872_v47 }
0x1c9b   :  { %5880 = vmatmul.msk.bf16.vlgmr.msrb.gmra.mxu2 %vm213_vm1, %v3802_v2 }
0x1c9e   :  { %v6176_v5 = vpop.permute.xlu2 %6175 }
0x1c9f   :  { %v6178_v54 = vunpack.i.h.bf16 %v6176_v5  ;;  %v6177_v29 = vunpack.i.l.bf16 %v6176_v5 }
0x1ca1   :  { %v3940_v24 = vsel %vm1175_vm3, %v3936_v23, %v6178_v54  ;;  %v3939_v36 = vsel %vm1175_vm3, %v3935_v37, %v6177_v29  ;;  %v6087_v37 = vld [vmem:[%s8365_s10 + $0x18] sm:$0xff] }
0x1ca2   :  { %4178 = vmatpush.bf16.msrb.mxu1 %v6087_v37 }
0x1ca6   :  { %v6186_v44 = vpop.permute.xlu2 %6185 }
0x1ca7   :  { %v6188_v14 = vunpack.i.h.bf16 %v6186_v44  ;;  %v6187_v45 = vunpack.i.l.bf16 %v6186_v44 }
0x1ca9   :  { %v3938_v33 = vsel %vm213_vm1, %v7690_v38, %v6188_v14  ;;  %v3937_v51 = vsel %vm213_vm1, %v7687_v25, %v6187_v45  ;;  %v6239_v38 = vld [vmem:[%s8415_s30 + $0x1] ss:$0 sm:$0xff] }
0x1cb3   :  { %v3787_v55 = vpop.xlane.xlu0 %3786 }
0x1cb4   :  { %6465 = vrcp.f32 %v3787_v55 }
0x1cba   :  { %v6466_v15 = vpop.eup %6465 }
0x1cbb   :  { %v3797_v13 = vmul.f32 %v6466_v15, %v6458_v56 }
0x1cbd   :  { %v3801_v46 = vpack.c.bf16 %v3797_v13, %v3797_v13 }
0x1cbf   :  { %5879 = vmatmul.msk.bf16.vlgmr.msra.gmra.mxu1 %vm213_vm1, %v3801_v46 }
0x1cc6   :  { %v6191_v39 = vpop.permute.xlu0 %6190 }
0x1cc7   :  { %v6193_v56 = vunpack.i.h.bf16 %v6191_v39  ;;  %v6192_v17 = vunpack.i.l.bf16 %v6191_v39 }
0x1cc9   :  { %v3941_v42 = vsel %vm1175_vm3, %v3937_v51, %v6192_v17  ;;  %v3942_v40 = vsel %vm1175_vm3, %v3938_v33, %v6193_v56 }
0x1cf6   :  { %v3841_v11 = vpop.f32.mrf.mxu0 }
0x1cfe   :  { %v3843_v1 = vpop.f32.mrf.mxu0 }
0x1d10   :  { %v3820_v3 = vpop.f32.mrf.mxu3 }
0x1d11   :  { %v6179_v35 = vpack.i.bf16 %v3841_v11, %v3820_v3 }
0x1d13   :  { %6180 = vrot.lane.b32.xlu1 %v6179_v35, %s8419_s1 }
0x1d18   :  { %v3822_v58 = vpop.f32.mrf.mxu3 }
0x1d1e   :  { %v3883_v10 = vpop.f32.mrf.mxu2 }
0x1d26   :  { %v3885_v16 = vpop.f32.mrf.mxu2 }
0x1d3c   :  { %v3862_v63 = vpop.f32.mrf.mxu1 }
0x1d3d   :  { %v6194_v53 = vpack.i.bf16 %v3883_v10, %v3862_v63 }
0x1d3f   :  { %6195 = vrot.lane.b32.xlu1 %v6194_v53, %s8419_s1 }
0x1d44   :  { %v3864_v7 = vpop.f32.mrf.mxu1 }
0x1d85   :  { %v6181_v12 = vpop.permute.xlu1 %6180 }
0x1d86   :  { %v6183_v6 = vunpack.i.h.bf16 %v6181_v12  ;;  %v6182_v20 = vunpack.i.l.bf16 %v6181_v12 }
0x1d88   :  { %v3943_v60 = vsel %vm1180_vm4, %v3939_v36, %v6182_v20  ;;  %v3944_v0 = vsel %vm1180_vm4, %v3940_v24, %v6183_v6  ;;  %v6086_v6 = vld [vmem:[%s8365_s10 + $0x10] sm:$0xff]  ;;  %v6085_v20 = vld [vmem:[%s8367_s9 + $0x18] sm:$0xff] }
0x1d89   :  { %v3947_v32 = vpack.c.bf16 %v3944_v0, %v3943_v60  ;;  %4179 = vmatpush.bf16.msrb.mxu1 %v6086_v6  ;;  %4147 = vmatpush.bf16.msrb.mxu0 %v6085_v20  ;;  %v6084_v0 = vld [vmem:[%s8367_s9 + $0x10] sm:$0xff] }
0x1d8b   :  { %5889 = vmatmul.msk.bf16.vlgmr.msrb.gmra.mxu3 %vm113_vm0, %v3947_v32 }
0x1d8c   :  { %5928 = vmatmul.msk.bf16.vlgmr.msrb.gmra.mxu1 %vm113_vm0, %v7053_v61 }
0x1d8d   :  { %4148 = vmatpush.bf16.msrb.mxu0 %v6084_v0  ;;  %v6088_v0 = vld [vmem:[%s8368_s11 + $0x10] sm:$0xff] }
0x1d9c   :  { %5929 = vmatmul.msk.bf16.gmra.mxu1 %vm113_vm0, %v7086_v22 }
0x1db1   :  { %v6196_v18 = vpop.permute.xlu1 %6195 }
0x1db2   :  { %v6198_v57 = vunpack.i.h.bf16 %v6196_v18  ;;  %v6197_v59 = vunpack.i.l.bf16 %v6196_v18 }
0x1db4   :  { %v3946_v8 = vsel %vm1180_vm4, %v3942_v40, %v6198_v57  ;;  %v3945_v62 = vsel %vm1180_vm4, %v3941_v42, %v6197_v59 }
0x1db5   :  { %v3948_v52 = vpack.c.bf16 %v3946_v8, %v3945_v62  ;;  %v6240_v62 = vld [vmem:[%s8416_s3 + $0x1] ss:$0 sm:$0xff] }
0x1db7   :  { %5890 = vmatmul.msk.bf16.gmra.mxu3 %vm113_vm0, %v3948_v52 }
0x1e09   :  { %v4181_v6 = vpop.f32.mrf.mxu1 }
0x1e0a   :  { %v7925_v20 = vpack.c.bf16 %v4181_v6, %v4181_v6 }
0x1e0e   :  { %v3979_v9 = vpop.f32.mrf.mxu3 }
0x1e0f   :  { %v3980_v49 = vadd.f32 %v6239_v38, %v3979_v9 }
0x1e11   :  { %v3989_v25 = vadd.f32 %v3980_v49, %v7552_v26  ;;  %v6241_v49 = vld [vmem:[%s8364_s8 + $0x1] ss:$0 sm:$0xff] }
0x1e13   :  { %v3997_v48 = vsel %vm113_vm0, %v3989_v25, 0.0 }
0x1e14   :  { %3998 = vadd.xlane.f32.xlu2 %v3997_v48 }
0x1e16   :  { %v3981_v27 = vpop.f32.mrf.mxu3 }
0x1e17   :  { %v3982_v4 = vadd.f32 %v6239_v38, %v3981_v27 }
0x1e19   :  { %v3990_v47 = vadd.f32 %v3982_v4, %v7554_v50 }
0x1e1b   :  { %v4000_v2 = vsel %vm113_vm0, %v3990_v47, 0.0 }
0x1e1c   :  { %4001 = vadd.xlane.f32.xlu1 %v4000_v2 }
0x1e3a   :  { %v3984_v55 = vpop.f32.mrf.mxu3 }
0x1e3b   :  { %v3985_v15 = vadd.f32 %v6239_v38, %v3984_v55 }
0x1e3d   :  { %v3991_v13 = vadd.f32 %v3985_v15, %v7563_v43 }
0x1e3f   :  { %v4003_v46 = vsel %vm113_vm0, %v3991_v13, 0.0 }
0x1e40   :  { %4004 = vadd.xlane.f32.xlu0 %v4003_v46 }
0x1e42   :  { %v3986_v11 = vpop.f32.mrf.mxu3 }
0x1e43   :  { %v3987_v1 = vadd.f32 %v6239_v38, %v3986_v11 }
0x1e45   :  { %v3992_v26 = vadd.f32 %v3987_v1, %v7565_v30 }
0x1e47   :  { %v4006_v3 = vsel %vm113_vm0, %v3992_v26, 0.0 }
0x1e48   :  { %4007 = vadd.xlane.f32.xlu2 %v4006_v3 }
0x1e87   :  { %v3999_v35 = vpop.xlane.xlu2 %3998 }
0x1e88   :  { %v4009_v50 = vmul.f32 %v3999_v35, %v7015_v31 }
0x1e8a   :  { %v4013_v58 = vsub.f32 %v3989_v25, %v4009_v50 }
0x1e8c   :  { %v4017_v10 = vmul.f32 %v4013_v58, %v4013_v58 }
0x1e8e   :  { %v4021_v19 = vsel %vm113_vm0, %v4017_v10, 0.0 }
0x1e8f   :  { %v4002_v16 = vpop.xlane.xlu1 %4001  ;;  %4022 = vadd.xlane.f32.xlu2 %v4021_v19 }
0x1e90   :  { %v4010_v43 = vmul.f32 %v4002_v16, %v7015_v31 }
0x1e92   :  { %v4014_v63 = vsub.f32 %v3990_v47, %v4010_v43 }
0x1e94   :  { %v4018_v53 = vmul.f32 %v4014_v63, %v4014_v63 }
0x1e96   :  { %v4024_v7 = vsel %vm113_vm0, %v4018_v53, 0.0 }
0x1e97   :  { %4025 = vadd.xlane.f32.xlu1 %v4024_v7 }
0x1eb3   :  { %v4005_v30 = vpop.xlane.xlu0 %4004 }
0x1eb4   :  { %v4011_v21 = vmul.f32 %v4005_v30, %v7015_v31 }
0x1eb6   :  { %v7872_v28 = vsub.f32 %v3991_v13, %v4011_v21 }
0x1eb8   :  { %v4019_v5 = vmul.f32 %v7872_v28, %v7872_v28 }
0x1eba   :  { %v4027_v41 = vsel %vm113_vm0, %v4019_v5, 0.0 }
0x1ebb   :  { %v4008_v34 = vpop.xlane.xlu2 %4007  ;;  %4028 = vadd.xlane.f32.xlu2 %v4027_v41 }
0x1ebc   :  { %v4012_v54 = vmul.f32 %v4008_v34, %v7015_v31 }
0x1ebe   :  { %v7878_v29 = vsub.f32 %v3992_v26, %v4012_v54 }
0x1ec0   :  { %v4020_v12 = vmul.f32 %v7878_v29, %v7878_v29 }
0x1ec2   :  { %v4030_v23 = vsel %vm113_vm0, %v4020_v12, 0.0 }
0x1ec3   :  { %4031 = vadd.xlane.f32.xlu1 %v4030_v23 }
0x1f02   :  { %v4023_v24 = vpop.xlane.xlu2 %4022 }
0x1f03   :  { %v4033_v36 = vmul.f32 %v4023_v24, %v7015_v31  ;;  %v4183_v24 = vpop.f32.mrf.mxu1 }
0x1f05   :  { %v4037_v60 = vadd.f32 1e-05, %v4033_v36 }
0x1f07   :  { %6467 = vrsqrt.f32 %v4037_v60  ;;  %vm4047_vm10 = vweird.f32 %v4037_v60 }
0x1f0a   :  { %v4026_v32 = vpop.xlane.xlu1 %4025 }
0x1f0b   :  { %v4034_v44 = vmul.f32 %v4026_v32, %v7015_v31  ;;  %v4186_v32 = vpop.f32.mrf.mxu1 }
0x1f0d   :  { %v6468_v39 = vpop.eup %6467  ;;  %v4038_v14 = vadd.f32 1e-05, %v4034_v44  ;;  %v7936_v44 = vpack.c.bf16 %v4186_v32, %v4186_v32 }
0x1f0e   :  { %v4042_v45 = vmul.f32 %v6468_v39, %v4037_v60  ;;  %vm4048_vm9 = vweird.f32 %v6468_v39  ;;  %v6089_v60 = vld [vmem:[%s8368_s11 + $0x18] sm:$0xff] }
0x1f0f   :  { %6469 = vrsqrt.f32 %v4038_v14  ;;  %vm4049_vm11 = vmor %vm4047_vm10, %vm4048_vm9  ;;  %vm4057_vm13 = vweird.f32 %v4038_v14  ;;  %4209 = vmatpush.bf16.msra.mxu2 %v6089_v60 }
0x1f10   :  { %v4043_v56 = vmul.f32 %v6468_v39, %v4042_v45 }
0x1f12   :  { %v4044_v17 = vmul.f32 0.5, %v4043_v56 }
0x1f13   :  { %4210 = vmatpush.bf16.msra.mxu2 %v6088_v0 }
0x1f14   :  { %v4045_v18 = vsub.f32 1.5, %v4044_v17 }
0x1f15   :  { %v6470_v33 = vpop.eup %6469 }
0x1f16   :  { %v4046_v51 = vmul.f32 %v6468_v39, %v4045_v18  ;;  %v4052_v57 = vmul.f32 %v6470_v33, %v4038_v14  ;;  %vm4058_vm12 = vweird.f32 %v6470_v33  ;;  %5938 = vmatmul.msk.bf16.vlgmr.msra.gmra.mxu2 %vm113_vm0, %v7053_v61  ;;  %v4188_v14 = vpop.f32.mrf.mxu1 }
0x1f17   :  { %vm4059_vm14 = vmor %vm4057_vm13, %vm4058_vm12  ;;  %v4229_v45 = vpack.c.bf16 %v4188_v14, %v4188_v14 }
0x1f18   :  { %v4053_v59 = vmul.f32 %v6470_v33, %v4052_v57  ;;  %v4050_v42 = vsel %vm4049_vm11, %v6468_v39, %v4046_v51  ;;  %v4276_v39 = vsel %vm213_vm1, %v7936_v44, 0 }
0x1f19   :  { %v4081_v52 = vmul.f32 %v4050_v42, %v4013_v58  ;;  %4285 = vmatpush.bf16.xpose.msra.mxu1 %v4276_v39  ;;  %v4295_v56 = vsel %vm213_vm1, %v4229_v45, 0 }
0x1f1a   :  { %v4054_v40 = vmul.f32 0.5, %v4053_v59  ;;  %4304 = vmatpush.bf16.xpose.msrb.mxu2 %v4295_v56 }
0x1f1b   :  { %v4088_v25 = vmul.f32 %v6240_v62, %v4081_v52 }
0x1f1c   :  { %v4055_v8 = vsub.f32 1.5, %v4054_v40 }
0x1f1d   :  { %v7907_v4 = vadd.f32 %v6241_v49, %v4088_v25 }
0x1f1e   :  { %v4056_v38 = vmul.f32 %v6470_v33, %v4055_v8 }
0x1f20   :  { %v4060_v9 = vsel %vm4059_vm14, %v6470_v33, %v4056_v38 }
0x1f21   :  { %v4082_v48 = vmul.f32 %v4060_v9, %v4014_v63 }
0x1f23   :  { %v4089_v27 = vmul.f32 %v6240_v62, %v4082_v48 }
0x1f25   :  { %v7909_v47 = vadd.f32 %v6241_v49, %v4089_v27 }
0x1f26   :  { %5939 = vmatmul.msk.bf16.gmra.mxu2 %vm113_vm0, %v7086_v22 }
0x1f27   :  { %v4099_v2 = vpack.c.bf16 %v7909_v47, %v7907_v4 }
0x1f29   :  { %5918 = vmatmul.msk.bf16.vlgmr.msrb.gmra.mxu0 %vm113_vm0, %v4099_v2 }
0x1f2e   :  { %v4029_v55 = vpop.xlane.xlu2 %4028 }
0x1f2f   :  { %v4035_v15 = vmul.f32 %v4029_v55, %v7015_v31 }
0x1f31   :  { %v4039_v13 = vadd.f32 1e-05, %v4035_v15 }
0x1f33   :  { %6471 = vrsqrt.f32 %v4039_v13  ;;  %vm4067_vm5 = vweird.f32 %v4039_v13 }
0x1f36   :  { %v4032_v46 = vpop.xlane.xlu1 %4031 }
0x1f37   :  { %v4036_v11 = vmul.f32 %v4032_v46, %v7015_v31 }
0x1f39   :  { %v6472_v1 = vpop.eup %6471  ;;  %v4040_v26 = vadd.f32 1e-05, %v4036_v11 }
0x1f3a   :  { %v4062_v3 = vmul.f32 %v6472_v1, %v4039_v13  ;;  %vm4068_vm15 = vweird.f32 %v6472_v1 }
0x1f3b   :  { %6473 = vrsqrt.f32 %v4040_v26  ;;  %vm4069_vm6 = vmor %vm4067_vm5, %vm4068_vm15  ;;  %vm4077_vm8 = vweird.f32 %v4040_v26 }
0x1f3c   :  { %v4063_v35 = vmul.f32 %v6472_v1, %v4062_v3 }
0x1f3e   :  { %v4064_v50 = vmul.f32 0.5, %v4063_v35 }
0x1f40   :  { %v4065_v58 = vsub.f32 1.5, %v4064_v50 }
0x1f41   :  { %v6474_v10 = vpop.eup %6473 }
0x1f42   :  { %v4066_v19 = vmul.f32 %v6472_v1, %v4065_v58  ;;  %v4072_v16 = vmul.f32 %v6474_v10, %v4040_v26  ;;  %vm4078_vm7 = vweird.f32 %v6474_v10 }
0x1f43   :  { %vm4079_vm9 = vmor %vm4077_vm8, %vm4078_vm7 }
0x1f44   :  { %v4073_v43 = vmul.f32 %v6474_v10, %v4072_v16  ;;  %v4070_v63 = vsel %vm4069_vm6, %v6472_v1, %v4066_v19 }
0x1f45   :  { %v4083_v30 = vmul.f32 %v4070_v63, %v7872_v28  ;;  %v4238_v28 = vsel %vm213_vm1, %v7925_v20, 0  ;;  %v4440_v63 = vunpack.c.l.b16 %v7925_v20 }
0x1f46   :  { %v4074_v53 = vmul.f32 0.5, %v4073_v43  ;;  %4247 = vmatpush.bf16.xpose.msra.mxu3 %v4238_v28 }
0x1f47   :  { %v4090_v34 = vmul.f32 %v6240_v62, %v4083_v30  ;;  %v4527_v30 = vunpack.c.l.b16 %v4229_v45 }
0x1f48   :  { %v4075_v7 = vsub.f32 1.5, %v4074_v53  ;;  %v7987_v53 = vpack.c.b16 %v4440_v63, %v4440_v63 }
0x1f49   :  { %v7918_v12 = vadd.f32 %v6241_v49, %v4090_v34 }
0x1f4a   :  { %v4076_v21 = vmul.f32 %v6474_v10, %v4075_v7 }
0x1f4c   :  { %v4080_v5 = vsel %vm4079_vm9, %v6474_v10, %v4076_v21  ;;  %v7991_v21 = vpack.c.b16 %v4527_v30, %v4527_v30 }
0x1f4d   :  { %v4084_v41 = vmul.f32 %v4080_v5, %v7878_v29  ;;  %v4227_v29 = vpack.c.bf16 %v4183_v24, %v4183_v24 }
0x1f4f   :  { %v4091_v54 = vmul.f32 %v6240_v62, %v4084_v41  ;;  %v4257_v36 = vsel %vm213_vm1, %v4227_v29, 0  ;;  %v4469_v35 = vunpack.c.l.b16 %v4227_v29 }
0x1f50   :  { %4266 = vmatpush.bf16.xpose.msra.mxu0 %v4257_v36 }
0x1f51   :  { %v7920_v23 = vadd.f32 %v6241_v49, %v4091_v54  ;;  %v7980_v50 = vpack.c.b16 %v4469_v35, %v4469_v35 }
0x1f53   :  { %v4100_v37 = vpack.c.bf16 %v7920_v23, %v7918_v12 }
0x1f55   :  { %5919 = vmatmul.msk.bf16.gmra.mxu0 %vm113_vm0, %v4100_v37 }
0x1f99   :  { %v4212_v22 = vpop.f32.mrf.mxu2 }
0x1f9a   :  { %v7958_v40 = vpack.c.bf16 %v4212_v22, %v4212_v22 }
0x1f9c   :  { %v4362_v8 = vsel %vm341_vm2, %v7958_v40, 0 }
0x1f9d   :  { %4371 = vmatpush.bf16.msrb.mxu3 %v4362_v8 }
0x1fa1   :  { %v4214_v62 = vpop.f32.mrf.mxu2 }
0x1fa2   :  { %v7962_v52 = vpack.c.bf16 %v4214_v62, %v4214_v62 }
0x1fa4   :  { %v4381_v38 = vsel %vm341_vm2, %v7962_v52, 0 }
0x1fa5   :  { %4390 = vmatpush.bf16.msrb.mxu0 %v4381_v38 }
0x1fa6   :  { %v4150_v17 = vpop.f32.mrf.mxu0 }
0x1fa7   :  { %v4222_v18 = vpack.c.bf16 %v4150_v17, %v4150_v17  ;;  %v4498_v17 = vunpack.c.l.b16 %v7936_v44 }
0x1fa9   :  { %5940 = vmatmul.msk.bf16.vlgmr.msra.gmra.mxu3 %vm213_vm1, %v4222_v18  ;;  %v4217_v9 = vpop.f32.mrf.mxu2  ;;  %v4435_v26 = vunpack.c.l.b16 %v4222_v18 }
0x1faa   :  { %v7966_v49 = vpack.c.bf16 %v4217_v9, %v4217_v9 }
0x1fab   :  { %v7976_v3 = vpack.c.b16 %v4435_v26, %v4435_v26 }
0x1fac   :  { %v4400_v48 = vsel %vm341_vm2, %v7966_v49, 0 }
0x1fad   :  { %4409 = vmatpush.bf16.msrb.mxu1 %v4400_v48  ;;  %v4599_v48 = vunpack.c.l.b16 %v7958_v40 }
0x1fae   :  { %v4152_v33 = vpop.f32.mrf.mxu0 }
0x1faf   :  { %v7946_v51 = vpack.c.bf16 %v4152_v33, %v4152_v33 }
0x1fb1   :  { %5941 = vmatmul.msk.bf16.vlgmr.msra.gmra.mxu0 %vm213_vm1, %v7946_v51  ;;  %v4219_v15 = vpop.f32.mrf.mxu2 }
0x1fb2   :  { %v7972_v13 = vpack.c.bf16 %v4219_v15, %v4219_v15 }
0x1fb4   :  { %v4419_v11 = vsel %vm341_vm2, %v7972_v13, 0 }
0x1fb5   :  { %4428 = vmatpush.bf16.msra.mxu2 %v4419_v11 }
0x1fd2   :  { %v4155_v61 = vpop.f32.mrf.mxu0 }
0x1fd3   :  { %v7950_v57 = vpack.c.bf16 %v4155_v61, %v4155_v61  ;;  %v8005_v61 = vpack.c.b16 %v4498_v17, %v4498_v17 }
0x1fd5   :  { %5942 = vmatmul.msk.bf16.vlgmr.msra.gmra.mxu1 %vm213_vm1, %v7950_v57  ;;  %v4493_v15 = vunpack.c.l.b16 %v7950_v57 }
0x1fda   :  { %v4157_v59 = vpop.f32.mrf.mxu0 }
0x1fdb   :  { %v7954_v42 = vpack.c.bf16 %v4157_v59, %v4157_v59 }
0x1fdd   :  { %5943 = vmatmul.msk.bf16.vlgmr.msrb.gmra.mxu2 %vm213_vm1, %v7954_v42  ;;  %v4522_v39 = vunpack.c.l.b16 %v7954_v42 }
0x1fdf   :  { %v7999_v56 = vpack.c.b16 %v4522_v39, %v4522_v39 }
0x202c   :  { %v4249_v25 = vpop.f32.mrf.mxu3 }
0x202d   :  { %v4310_v27 = vsel %vm213_vm1, %v4249_v25, -inf }
0x202e   :  { %4311 = vmax.xlane.f32.xlu0 %v4310_v27  ;;  %v4268_v2 = vpop.f32.mrf.mxu0  ;;  %v8015_v27 = vpack.c.b16 %v4599_v48, %v4599_v48 }
0x202f   :  { %v4313_v55 = vsel %vm213_vm1, %v4268_v2, -inf }
0x2030   :  { %4314 = vmax.xlane.f32.xlu1 %v4313_v55 }
0x2034   :  { %v4251_v46 = vpop.f32.mrf.mxu3 }
0x2035   :  { %v8025_v46 = vpack.c.b16 %v4493_v15, %v4493_v15  ;;  %v4623_v15 = vunpack.c.l.b16 %v7962_v52 }
0x2036   :  { %v4270_v1 = vpop.f32.mrf.mxu0 }
0x2049   :  { %4437 = vrot.lane.b32.xlu1 %v7976_v3, %s8421_s5 }
0x2051   :  { %4471 = vrot.lane.b32.xlu1 %v7980_v50, %s8421_s5 }
0x2052   :  { %v4287_v58 = vpop.f32.mrf.mxu1 }
0x2053   :  { %v4316_v10 = vsel %vm213_vm1, %v4287_v58, -inf }
0x2054   :  { %4317 = vmax.xlane.f32.xlu0 %v4316_v10 }
0x205a   :  { %v4289_v19 = vpop.f32.mrf.mxu1 }
0x2060   :  { %v4306_v16 = vpop.f32.mrf.mxu2 }
0x2061   :  { %v4319_v43 = vsel %vm213_vm1, %v4306_v16, -inf }
0x2062   :  { %4320 = vmax.xlane.f32.xlu2 %v4319_v43 }
0x2068   :  { %4442 = vrot.lane.b32.xlu0 %v7987_v53, %s8421_s5  ;;  %v4308_v7 = vpop.f32.mrf.mxu2 }
0x207a   :  { %4529 = vrot.lane.b32.xlu2 %v7991_v21, %s8421_s5 }
0x20a1   :  { %v4312_v5 = vpop.xlane.xlu0 %4311 }
0x20a2   :  { %v4322_v41 = vsub.f32 %v4249_v25, %v4312_v5 }
0x20a3   :  { %v4315_v34 = vpop.xlane.xlu1 %4314 }
0x20a4   :  { %v4326_v54 = vmul.f32 1.442695, %v4322_v41  ;;  %v4323_v37 = vsub.f32 %v4268_v2, %v4315_v34  ;;  %v4464_v2 = vunpack.c.l.b16 %v7946_v51 }
0x20a6   :  { %6475 = vpow2.f32 %v4326_v54  ;;  %v4328_v6 = vmul.f32 1.442695, %v4323_v37  ;;  %v8020_v55 = vpack.c.b16 %v4464_v2, %v4464_v2 }
0x20a8   :  { %6477 = vpow2.f32 %v4328_v6 }
0x20ac   :  { %v6476_v20 = vpop.eup %6475 }
0x20ad   :  { %v4334_v28 = vsel %vm213_vm1, %v6476_v20, 0.0 }
0x20ae   :  { %4335 = vadd.xlane.f32.xlu2 %v4334_v28  ;;  %v6478_v24 = vpop.eup %6477 }
0x20af   :  { %v4337_v29 = vsel %vm213_vm1, %v6478_v24, 0.0 }
0x20b6   :  { %4338 = vadd.xlane.f32.xlu2 %v4337_v29 }
0x20bb   :  { %v4438_v36 = vpop.permute.xlu1 %4437 }
0x20c3   :  { %v4472_v60 = vpop.permute.xlu1 %4471 }
0x20c4   :  { %v4477_v0 = vsel %vm213_vm1, %v4472_v60, 0 }
0x20c5   :  { %4486 = vmatpush.bf16.xpose.msra.mxu0 %v4477_v0 }
0x20c7   :  { %v4318_v32 = vpop.xlane.xlu0 %4317 }
0x20c8   :  { %v4324_v14 = vsub.f32 %v4287_v58, %v4318_v32 }
0x20ca   :  { %v4330_v45 = vmul.f32 1.442695, %v4324_v14 }
0x20cc   :  { %6479 = vpow2.f32 %v4330_v45 }
0x20ce   :  { %4524 = vrot.lane.b32.xlu2 %v7999_v56, %s8421_s5 }
0x20d2   :  { %v6480_v18 = vpop.eup %6479 }
0x20d3   :  { %v4340_v33 = vsel %vm213_vm1, %v6480_v18, 0.0 }
0x20d4   :  { %4341 = vadd.xlane.f32.xlu0 %v4340_v33  ;;  %v4647_v33 = vunpack.c.l.b16 %v7966_v49 }
0x20d5   :  { %v4321_v59 = vpop.xlane.xlu2 %4320 }
0x20d6   :  { %v4325_v22 = vsub.f32 %v4306_v16, %v4321_v59  ;;  %4500 = vrot.lane.b32.xlu2 %v8005_v61, %s8421_s5  ;;  %v8050_v59 = vpack.c.b16 %v4647_v33, %v4647_v33 }
0x20d8   :  { %v4332_v42 = vmul.f32 1.442695, %v4325_v22 }
0x20da   :  { %6481 = vpow2.f32 %v4332_v42  ;;  %v4443_v8 = vpop.permute.xlu0 %4442 }
0x20db   :  { %v4448_v62 = vsel %vm213_vm1, %v4443_v8, 0 }
0x20dc   :  { %4457 = vmatpush.bf16.xpose.msra.mxu3 %v4448_v62 }
0x20dd   :  { %v4530_v38 = vpop.permute.xlu2 %4529 }
0x20de   :  { %v4535_v44 = vsel %vm213_vm1, %v4530_v38, 0  ;;  %4696 = vrot.lane.b32.xlu2 %v7987_v53, %s8422_s7 }
0x20df   :  { %4544 = vmatpush.bf16.xpose.msrb.mxu2 %v4535_v44 }
0x20e0   :  { %v6482_v9 = vpop.eup %6481 }
0x20e1   :  { %v4343_v25 = vsel %vm213_vm1, %v6482_v9, 0.0 }
0x20e2   :  { %4344 = vadd.xlane.f32.xlu1 %v4343_v25 }
0x20e8   :  { %4601 = vrot.lane.b32.xlu0 %v8015_v27, %s8421_s5 }
0x20fb   :  { %4466 = vrot.lane.b32.xlu1 %v8020_v55, %s8421_s5 }
0x2103   :  { %4495 = vrot.lane.b32.xlu1 %v8025_v46, %s8421_s5 }
0x2121   :  { %v4336_v40 = vpop.xlane.xlu2 %4335 }
0x2122   :  { %6483 = vrcp.f32 %v4336_v40  ;;  %v8060_v40 = vpack.c.b16 %v4623_v15, %v4623_v15 }
0x2128   :  { %v6484_v11 = vpop.eup %6483 }
0x2129   :  { %v4350_v1 = vmul.f32 %v6484_v11, %v6476_v20  ;;  %v4339_v26 = vpop.xlane.xlu2 %4338  ;;  %v4671_v11 = vunpack.c.l.b16 %v7972_v13 }
0x212a   :  { %6485 = vrcp.f32 %v4339_v26 }
0x212b   :  { %v4354_v35 = vpack.c.bf16 %v4350_v1, %v4350_v1  ;;  %v8065_v1 = vpack.c.b16 %v4671_v11, %v4671_v11 }
0x212d   :  { %5944 = vmatmul.msk.bf16.vlgmr.msrb.gmra.mxu3 %vm213_vm1, %v4354_v35 }
0x2130   :  { %v6486_v51 = vpop.eup %6485 }
0x2131   :  { %v4351_v58 = vmul.f32 %v6486_v51, %v6478_v24  ;;  %v4525_v10 = vpop.permute.xlu2 %4524 }
0x2133   :  { %v4355_v19 = vpack.c.bf16 %v4351_v58, %v4351_v58 }
0x2135   :  { %5945 = vmatmul.msk.bf16.vlgmr.msrb.gmra.mxu0 %vm213_vm1, %v4355_v19 }
0x2139   :  { %v4501_v57 = vpop.permute.xlu2 %4500 }
0x213a   :  { %v4506_v16 = vsel %vm213_vm1, %v4501_v57, 0 }
0x213b   :  { %4515 = vmatpush.bf16.xpose.msra.mxu1 %v4506_v16 }
0x213d   :  { %5948 = vmatmul.msk.bf16.vlgmr.msra.gmra.mxu3 %vm213_vm1, %v4438_v36 }
0x2141   :  { %v4697_v41 = vpop.permute.xlu2 %4696 }
0x2142   :  { %v4702_v6 = vsel %vm213_vm1, %v4697_v41, 0 }
0x2147   :  { %v4342_v43 = vpop.xlane.xlu0 %4341 }
0x2148   :  { %6487 = vrcp.f32 %v4342_v43 }
0x214e   :  { %v6488_v63 = vpop.eup %6487 }
0x214f   :  { %v4352_v7 = vmul.f32 %v6488_v63, %v6480_v18 }
0x2151   :  { %v4356_v30 = vpack.c.bf16 %v4352_v7, %v4352_v7 }
0x2153   :  { %5946 = vmatmul.msk.bf16.vlgmr.msrb.gmra.mxu1 %vm213_vm1, %v4356_v30 }
0x2155   :  { %v4345_v5 = vpop.xlane.xlu1 %4344 }
0x2156   :  { %6489 = vrcp.f32 %v4345_v5 }
0x215a   :  { %v4602_v34 = vpop.permute.xlu0 %4601 }
0x215b   :  { %v4607_v54 = vsel %vm341_vm2, %v4602_v34, 0 }
0x215c   :  { %v6490_v37 = vpop.eup %6489  ;;  %4616 = vmatpush.bf16.msrb.mxu3 %v4607_v54 }
0x215d   :  { %v4353_v20 = vmul.f32 %v6490_v37, %v6482_v9 }
0x215f   :  { %v4357_v28 = vpack.c.bf16 %v4353_v20, %v4353_v20 }
0x2160   :  { %4711 = vmatpush.bf16.xpose.msra.mxu3 %v4702_v6 }
0x2161   :  { %5947 = vmatmul.msk.bf16.vlgmr.msra.gmra.mxu2 %vm213_vm1, %v4357_v28 }
0x216d   :  { %v4467_v24 = vpop.permute.xlu1 %4466 }
0x216e   :  { %5949 = vmatmul.msk.bf16.vlgmr.msra.gmra.mxu0 %vm213_vm1, %v4467_v24 }
0x2171   :  { %5951 = vmatmul.msk.bf16.vlgmr.msrb.gmra.mxu2 %vm213_vm1, %v4525_v10 }
0x2175   :  { %v4496_v29 = vpop.permute.xlu1 %4495 }
0x2176   :  { %5950 = vmatmul.msk.bf16.vlgmr.msra.gmra.mxu1 %vm213_vm1, %v4496_v29 }
0x21b0   :  { %v8040_v36 = vpop.f32.mrf.mxu3 }
0x21b2   :  { %v8042_v60 = vpop.f32.mrf.mxu0 }
0x21b8   :  { %v4375_v0 = vpop.f32.mrf.mxu3 }
0x21ba   :  { %v4394_v32 = vpop.f32.mrf.mxu0 }
0x21c0   :  { %v4459_v39 = vpop.f32.mrf.mxu3 }
0x21c1   :  { %v4550_v14 = vsel %vm213_vm1, %v4459_v39, -inf }
0x21c2   :  { %4551 = vmax.xlane.f32.xlu2 %v4550_v14 }
0x21c8   :  { %v4461_v45 = vpop.f32.mrf.mxu3 }
0x21d0   :  { %v8045_v17 = vpop.f32.mrf.mxu1 }
0x21d8   :  { %v4413_v18 = vpop.f32.mrf.mxu1 }
0x21da   :  { %4765 = vrot.lane.b32.xlu2 %v7991_v21, %s8422_s7 }
0x21e2   :  { %4649 = vrot.lane.b32.xlu2 %v8050_v59, %s8421_s5 }
0x21e4   :  { %v8054_v22 = vpop.f32.mrf.mxu2 }
0x21eb   :  { %v4488_v42 = vpop.f32.mrf.mxu0 }
0x21ec   :  { %v4432_v8 = vpop.f32.mrf.mxu2  ;;  %v4553_v62 = vsel %vm213_vm1, %v4488_v42, -inf }
0x21ed   :  { %4554 = vmax.xlane.f32.xlu0 %v4553_v62 }
0x21f3   :  { %v4490_v38 = vpop.f32.mrf.mxu0  ;;  %v4517_v44 = vpop.f32.mrf.mxu1 }
0x21f4   :  { %v4546_v9 = vpop.f32.mrf.mxu2  ;;  %v4556_v25 = vsel %vm213_vm1, %v4517_v44, -inf }
0x21f5   :  { %4557 = vmax.xlane.f32.xlu0 %v4556_v25  ;;  %v4559_v49 = vsel %vm213_vm1, %v4546_v9, -inf }
0x21f6   :  { %4560 = vmax.xlane.f32.xlu1 %v4559_v49 }
0x21fb   :  { %v4519_v48 = vpop.f32.mrf.mxu1 }
0x21fc   :  { %v4548_v2 = vpop.f32.mrf.mxu2 }
0x2209   :  { %4625 = vrot.lane.b32.xlu0 %v8060_v40, %s8421_s5 }
0x220f   :  { %4673 = vrot.lane.b32.xlu1 %v8065_v1, %s8421_s5 }
0x2235   :  { %v4552_v26 = vpop.xlane.xlu2 %4551 }
0x2236   :  { %v4562_v35 = vsub.f32 %v4459_v39, %v4552_v26 }
0x2238   :  { %v4566_v51 = vmul.f32 1.442695, %v4562_v35 }
0x223a   :  { %6491 = vpow2.f32 %v4566_v51 }
0x223d   :  { %v4766_v58 = vpop.permute.xlu2 %4765 }
0x223e   :  { %v4771_v14 = vsel %vm213_vm1, %v4766_v58, 0 }
0x2240   :  { %v6492_v10 = vpop.eup %6491 }
0x2241   :  { %v4574_v52 = vsel %vm213_vm1, %v6492_v10, 0.0 }
0x2242   :  { %4575 = vadd.xlane.f32.xlu0 %v4574_v52 }
0x2245   :  { %v4650_v19 = vpop.permute.xlu2 %4649 }
0x2246   :  { %v4655_v13 = vsel %vm341_vm2, %v4650_v19, 0 }
0x2247   :  { %4664 = vmatpush.bf16.msrb.mxu1 %v4655_v13 }
0x2256   :  { %4694 = vrot.lane.b32.xlu0 %v7976_v3, %s8422_s7 }
0x2260   :  { %v4555_v57 = vpop.xlane.xlu0 %4554 }
0x2261   :  { %v4563_v16 = vsub.f32 %v4488_v42, %v4555_v57 }
0x2263   :  { %v4568_v43 = vmul.f32 1.442695, %v4563_v16 }
0x2265   :  { %6493 = vpow2.f32 %v4568_v43 }
0x2268   :  { %v4558_v5 = vpop.xlane.xlu0 %4557 }
0x2269   :  { %v4561_v63 = vpop.xlane.xlu1 %4560  ;;  %v4564_v54 = vsub.f32 %v4517_v44, %v4558_v5 }
0x226a   :  { %v4565_v7 = vsub.f32 %v4546_v9, %v4561_v63 }
0x226b   :  { %v6494_v30 = vpop.eup %6493  ;;  %v4570_v37 = vmul.f32 1.442695, %v4564_v54 }
0x226c   :  { %v4572_v41 = vmul.f32 1.442695, %v4565_v7  ;;  %v4577_v34 = vsel %vm213_vm1, %v6494_v30, 0.0 }
0x226d   :  { %4578 = vadd.xlane.f32.xlu1 %v4577_v34 }
0x226e   :  { %6495 = vpow2.f32 %v4572_v41 }
0x226f   :  { %6497 = vpow2.f32 %v4570_v37 }
0x2274   :  { %v6496_v6 = vpop.eup %6495 }
0x2275   :  { %v4583_v20 = vsel %vm213_vm1, %v6496_v6, 0.0  ;;  %v6498_v24 = vpop.eup %6497 }
0x2276   :  { %4584 = vadd.xlane.f32.xlu2 %v4583_v20  ;;  %v4580_v0 = vsel %vm213_vm1, %v6498_v24, 0.0 }
0x227b   :  { %v4626_v28 = vpop.permute.xlu0 %4625 }
0x227c   :  { %v4631_v29 = vsel %vm341_vm2, %v4626_v28, 0 }
0x227d   :  { %4640 = vmatpush.bf16.msrb.mxu0 %v4631_v29 }
0x2280   :  { %4581 = vadd.xlane.f32.xlu0 %v4580_v0 }
0x2281   :  { %v4674_v32 = vpop.permute.xlu1 %4673 }
0x2282   :  { %v4679_v39 = vsel %vm341_vm2, %v4674_v32, 0 }
0x2283   :  { %4688 = vmatpush.bf16.msra.mxu2 %v4679_v39 }
0x2286   :  { %4719 = vrot.lane.b32.xlu1 %v7980_v50, %s8422_s7 }
0x2287   :  { %4780 = vmatpush.bf16.xpose.msrb.mxu2 %v4771_v14 }
0x228e   :  { %4763 = vrot.lane.b32.xlu1 %v7999_v56, %s8422_s7  ;;  %4717 = vrot.lane.b32.xlu2 %v8020_v55, %s8422_s7 }
0x2294   :  { %4834 = vrot.lane.b32.xlu0 %v8015_v27, %s8422_s7 }
0x2296   :  { %4742 = vrot.lane.b32.xlu1 %v8005_v61, %s8422_s7  ;;  %4740 = vrot.lane.b32.xlu2 %v8025_v46, %s8422_s7 }
0x22b5   :  { %v4576_v45 = vpop.xlane.xlu0 %4575 }
0x22b6   :  { %6499 = vrcp.f32 %v4576_v45 }
0x22bc   :  { %v6500_v18 = vpop.eup %6499 }
0x22bd   :  { %v4590_v33 = vmul.f32 %v6500_v18, %v6492_v10 }
0x22bf   :  { %v4594_v42 = vpack.c.bf16 %v4590_v33, %v4590_v33 }
0x22c1   :  { %5952 = vmatmul.msk.bf16.vlgmr.msrb.gmra.mxu3 %vm213_vm1, %v4594_v42 }
0x22c8   :  { %v4695_v8 = vpop.permute.xlu0 %4694 }
0x22d1   :  { %5956 = vmatmul.msk.bf16.vlgmr.msra.gmra.mxu3 %vm213_vm1, %v4695_v8 }
0x22e0   :  { %v4579_v62 = vpop.xlane.xlu1 %4578 }
0x22e1   :  { %6501 = vrcp.f32 %v4579_v62 }
0x22e7   :  { %v6502_v38 = vpop.eup %6501 }
0x22e8   :  { %v4591_v44 = vmul.f32 %v6502_v38, %v6494_v30 }
0x22e9   :  { %v4585_v9 = vpop.xlane.xlu2 %4584 }
0x22ea   :  { %v4595_v25 = vpack.c.bf16 %v4591_v44, %v4591_v44  ;;  %6503 = vrcp.f32 %v4585_v9 }
0x22ec   :  { %5953 = vmatmul.msk.bf16.vlgmr.msrb.gmra.mxu0 %vm213_vm1, %v4595_v25 }
0x22f0   :  { %v6504_v49 = vpop.eup %6503 }
0x22f1   :  { %v4593_v48 = vmul.f32 %v6504_v49, %v6496_v6  ;;  %v4718_v10 = vpop.permute.xlu2 %4717 }
0x22f3   :  { %v4597_v2 = vpack.c.bf16 %v4593_v48, %v4593_v48  ;;  %v4582_v15 = vpop.xlane.xlu0 %4581 }
0x22f4   :  { %6505 = vrcp.f32 %v4582_v15 }
0x22f5   :  { %5955 = vmatmul.msk.bf16.vlgmr.msra.gmra.mxu2 %vm213_vm1, %v4597_v2 }
0x22f8   :  { %v4720_v11 = vpop.permute.xlu1 %4719 }
0x22f9   :  { %v4725_v26 = vsel %vm213_vm1, %v4720_v11, 0  ;;  %v4741_v43 = vpop.permute.xlu2 %4740 }
0x22fa   :  { %v6506_v35 = vpop.eup %6505  ;;  %4734 = vmatpush.bf16.xpose.msra.mxu0 %v4725_v26 }
0x22fb   :  { %v4592_v51 = vmul.f32 %v6506_v35, %v6498_v24 }
0x22fd   :  { %v4596_v58 = vpack.c.bf16 %v4592_v51, %v4592_v51 }
0x22ff   :  { %5954 = vmatmul.msk.bf16.vlgmr.msrb.gmra.mxu1 %vm213_vm1, %v4596_v58 }
0x2300   :  { %v4764_v52 = vpop.permute.xlu1 %4763 }
0x2301   :  { %5957 = vmatmul.msk.bf16.vlgmr.msra.gmra.mxu0 %vm213_vm1, %v4718_v10 }
0x2305   :  { %5959 = vmatmul.msk.bf16.vlgmr.msrb.gmra.mxu2 %vm213_vm1, %v4764_v52 }
0x2306   :  { %v4835_v19 = vpop.permute.xlu0 %4834 }
0x2307   :  { %v4840_v13 = vsel %vm341_vm2, %v4835_v19, 0 }
0x2308   :  { %4849 = vmatpush.bf16.msrb.mxu3 %v4840_v13  ;;  %v4743_v57 = vpop.permute.xlu1 %4742 }
0x2309   :  { %v4748_v16 = vsel %vm213_vm1, %v4743_v57, 0 }
0x230a   :  { %4757 = vmatpush.bf16.xpose.msra.mxu1 %v4748_v16 }
0x2311   :  { %5958 = vmatmul.msk.bf16.vlgmr.msra.gmra.mxu1 %vm213_vm1, %v4741_v43 }
0x2344   :  { %v8102_v63 = vpop.f32.mrf.mxu3 }
0x234c   :  { %v4620_v7 = vpop.f32.mrf.mxu3 }
0x2354   :  { %v4713_v30 = vpop.f32.mrf.mxu3 }
0x2355   :  { %v4786_v5 = vsel %vm213_vm1, %v4713_v30, -inf }
0x2356   :  { %4787 = vmax.xlane.f32.xlu1 %v4786_v5 }
0x235c   :  { %v4715_v41 = vpop.f32.mrf.mxu3 }
0x2369   :  { %v8105_v34 = vpop.f32.mrf.mxu0 }
0x236a   :  { %v6199_v54 = vpack.i.bf16 %v8105_v34, %v8102_v63 }
0x236f   :  { %4855 = vrot.lane.b32.xlu1 %v8060_v40, %s8422_s7 }
0x2371   :  { %v4644_v37 = vpop.f32.mrf.mxu0 }
0x2378   :  { %v8111_v6 = vpop.f32.mrf.mxu2 }
0x237c   :  { %v8113_v20 = vpop.f32.mrf.mxu1 }
0x237d   :  { %v6214_v28 = vpack.i.bf16 %v8111_v6, %v8113_v20 }
0x237e   :  { %v4736_v24 = vpop.f32.mrf.mxu0 }
0x237f   :  { %v4789_v29 = vsel %vm213_vm1, %v4736_v24, -inf }
0x2380   :  { %4790 = vmax.xlane.f32.xlu2 %v4789_v29  ;;  %v4692_v0 = vpop.f32.mrf.mxu2 }
0x2384   :  { %v4668_v32 = vpop.f32.mrf.mxu1 }
0x2386   :  { %v4738_v39 = vpop.f32.mrf.mxu0 }
0x2388   :  { %v4782_v14 = vpop.f32.mrf.mxu2 }
0x2389   :  { %v4795_v8 = vsel %vm213_vm1, %v4782_v14, -inf }
0x238e   :  { %v4759_v45 = vpop.f32.mrf.mxu1 }
0x238f   :  { %v4792_v18 = vsel %vm213_vm1, %v4759_v45, -inf }
0x2390   :  { %4793 = vmax.xlane.f32.xlu0 %v4792_v18  ;;  %v4784_v33 = vpop.f32.mrf.mxu2 }
0x2396   :  { %v4761_v42 = vpop.f32.mrf.mxu1 }
0x2398   :  { %4920 = vrot.lane.b32.xlu2 %v7987_v53, %s8423_s25  ;;  %4796 = vmax.xlane.f32.xlu0 %v4795_v8 }
0x23a0   :  { %4943 = vrot.lane.b32.xlu2 %v7980_v50, %s8423_s25 }
0x23a8   :  { %4989 = vrot.lane.b32.xlu2 %v7991_v21, %s8423_s25 }
0x23b0   :  { %4987 = vrot.lane.b32.xlu2 %v7999_v56, %s8423_s25 }
0x23c9   :  { %v4788_v62 = vpop.xlane.xlu1 %4787 }
0x23ca   :  { %v4798_v38 = vsub.f32 %v4713_v30, %v4788_v62 }
0x23cc   :  { %v4802_v44 = vmul.f32 1.442695, %v4798_v38 }
0x23ce   :  { %6507 = vpow2.f32 %v4802_v44 }
0x23d4   :  { %v6508_v9 = vpop.eup %6507 }
0x23d5   :  { %v4810_v25 = vsel %vm213_vm1, %v6508_v9, 0.0 }
0x23d6   :  { %4811 = vadd.xlane.f32.xlu0 %v4810_v25 }
0x23e1   :  { %v4856_v49 = vpop.permute.xlu1 %4855 }
0x23e2   :  { %v4861_v53 = vsel %vm341_vm2, %v4856_v49, 0 }
0x23e3   :  { %4870 = vmatpush.bf16.msrb.mxu0 %v4861_v53 }
0x23ea   :  { %4897 = vrot.lane.b32.xlu0 %v8065_v1, %s8422_s7 }
0x23f3   :  { %v4791_v50 = vpop.xlane.xlu2 %4790 }
0x23f4   :  { %v4799_v21 = vsub.f32 %v4736_v24, %v4791_v50 }
0x23f6   :  { %v4804_v48 = vmul.f32 1.442695, %v4799_v21 }
0x23f8   :  { %6509 = vpow2.f32 %v4804_v48 }
0x23fb   :  { %v4921_v56 = vpop.permute.xlu2 %4920 }
0x23fc   :  { %v4926_v2 = vsel %vm213_vm1, %v4921_v56, 0 }
0x23fd   :  { %4935 = vmatpush.bf16.xpose.msra.mxu3 %v4926_v2 }
0x23fe   :  { %v6510_v15 = vpop.eup %6509 }
0x23ff   :  { %v4813_v11 = vsel %vm213_vm1, %v6510_v15, 0.0 }
0x2400   :  { %4814 = vadd.xlane.f32.xlu1 %v4813_v11 }
0x2403   :  { %v4944_v26 = vpop.permute.xlu2 %4943  ;;  %v4794_v35 = vpop.xlane.xlu0 %4793 }
0x2404   :  { %v4949_v51 = vsel %vm213_vm1, %v4944_v26, 0  ;;  %v4800_v58 = vsub.f32 %v4759_v45, %v4794_v35 }
0x2405   :  { %4958 = vmatpush.bf16.xpose.msra.mxu0 %v4949_v51 }
0x2406   :  { %v4806_v10 = vmul.f32 1.442695, %v4800_v58 }
0x2408   :  { %6511 = vpow2.f32 %v4806_v10 }
0x240b   :  { %v4797_v52 = vpop.xlane.xlu0 %4796 }
0x240c   :  { %v4801_v19 = vsub.f32 %v4782_v14, %v4797_v52 }
0x240e   :  { %v4808_v13 = vmul.f32 1.442695, %v4801_v19  ;;  %v6512_v57 = vpop.eup %6511 }
0x240f   :  { %v4816_v16 = vsel %vm213_vm1, %v6512_v57, 0.0 }
0x2410   :  { %6513 = vpow2.f32 %v4808_v13 }
0x2414   :  { %4817 = vadd.xlane.f32.xlu0 %v4816_v16 }
0x2416   :  { %v6514_v43 = vpop.eup %6513 }
0x2417   :  { %v4819_v7 = vsel %vm213_vm1, %v6514_v43, 0.0 }
0x2418   :  { %4820 = vadd.xlane.f32.xlu2 %v4819_v7 }
0x2419   :  { %4918 = vrot.lane.b32.xlu1 %v7976_v3, %s8423_s25  ;;  %v4990_v3 = vpop.permute.xlu2 %4989 }
0x241a   :  { %v4995_v0 = vsel %vm213_vm1, %v4990_v3, 0 }
0x2421   :  { %4876 = vrot.lane.b32.xlu1 %v8050_v59, %s8422_s7  ;;  %v4988_v39 = vpop.permute.xlu2 %4987 }
0x2429   :  { %4941 = vrot.lane.b32.xlu1 %v8020_v55, %s8423_s25 }
0x2430   :  { %4964 = vrot.lane.b32.xlu2 %v8025_v46, %s8423_s25 }
0x2431   :  { %4966 = vrot.lane.b32.xlu1 %v8005_v61, %s8423_s25 }
0x2449   :  { %v4812_v30 = vpop.xlane.xlu0 %4811 }
0x244a   :  { %6515 = vrcp.f32 %v4812_v30 }
0x2450   :  { %v6516_v5 = vpop.eup %6515 }
0x2451   :  { %v4826_v41 = vmul.f32 %v6516_v5, %v6508_v9 }
0x2453   :  { %v4830_v37 = vpack.c.bf16 %v4826_v41, %v4826_v41 }
0x2455   :  { %5960 = vmatmul.msk.bf16.vlgmr.msrb.gmra.mxu3 %vm213_vm1, %v4830_v37 }
0x245c   :  { %v4898_v24 = vpop.permute.xlu0 %4897 }
0x245d   :  { %v4903_v29 = vsel %vm341_vm2, %v4898_v24, 0 }
0x245e   :  { %4912 = vmatpush.bf16.msra.mxu2 %v4903_v29 }
0x2462   :  { %5004 = vmatpush.bf16.xpose.msrb.mxu2 %v4995_v0 }
0x2473   :  { %v4815_v55 = vpop.xlane.xlu1 %4814 }
0x2474   :  { %6517 = vrcp.f32 %v4815_v55 }
0x247a   :  { %v6518_v46 = vpop.eup %6517 }
0x247b   :  { %v4827_v32 = vmul.f32 %v6518_v46, %v6510_v15 }
0x247d   :  { %v4831_v61 = vpack.c.bf16 %v4827_v32, %v4827_v32 }
0x247f   :  { %5961 = vmatmul.msk.bf16.vlgmr.msrb.gmra.mxu0 %vm213_vm1, %v4831_v61 }
0x2487   :  { %v4818_v14 = vpop.xlane.xlu0 %4817 }
0x2488   :  { %6519 = vrcp.f32 %v4818_v14 }
0x248b   :  { %v4919_v45 = vpop.permute.xlu1 %4918  ;;  %v4821_v18 = vpop.xlane.xlu2 %4820 }
0x248c   :  { %6521 = vrcp.f32 %v4821_v18  ;;  %5964 = vmatmul.msk.bf16.vlgmr.msra.gmra.mxu3 %vm213_vm1, %v4919_v45 }
0x248e   :  { %v6520_v33 = vpop.eup %6519 }
0x248f   :  { %v4828_v8 = vmul.f32 %v6520_v33, %v6512_v57 }
0x2491   :  { %v4832_v25 = vpack.c.bf16 %v4828_v8, %v4828_v8 }
0x2492   :  { %v6522_v42 = vpop.eup %6521 }
0x2493   :  { %v4829_v62 = vmul.f32 %v6522_v42, %v6514_v43  ;;  %v4877_v38 = vpop.permute.xlu1 %4876  ;;  %v4965_v21 = vpop.permute.xlu2 %4964 }
0x2494   :  { %v4882_v44 = vsel %vm341_vm2, %v4877_v38, 0 }
0x2495   :  { %v4833_v9 = vpack.c.bf16 %v4829_v62, %v4829_v62  ;;  %4891 = vmatpush.bf16.msrb.mxu1 %v4882_v44 }
0x2497   :  { %5963 = vmatmul.msk.bf16.vlgmr.msra.gmra.mxu2 %vm213_vm1, %v4833_v9 }
0x2498   :  { %5962 = vmatmul.msk.bf16.vlgmr.msrb.gmra.mxu1 %vm213_vm1, %v4832_v25 }
0x249b   :  { %v4942_v49 = vpop.permute.xlu1 %4941 }
0x249c   :  { %5965 = vmatmul.msk.bf16.vlgmr.msra.gmra.mxu0 %vm213_vm1, %v4942_v49 }
0x24a3   :  { %v4967_v53 = vpop.permute.xlu1 %4966 }
0x24a4   :  { %v4972_v50 = vsel %vm213_vm1, %v4967_v53, 0 }
0x24a5   :  { %4981 = vmatpush.bf16.xpose.msra.mxu1 %v4972_v50 }
0x24a7   :  { %5967 = vmatmul.msk.bf16.vlgmr.msrb.gmra.mxu2 %vm213_vm1, %v4988_v39 }
0x24ac   :  { %5966 = vmatmul.msk.bf16.vlgmr.msra.gmra.mxu1 %vm213_vm1, %v4965_v21 }
0x24d8   :  { %v4851_v48 = vpop.f32.mrf.mxu3 }
0x24e0   :  { %v4853_v56 = vpop.f32.mrf.mxu3 }
0x24fc   :  { %v4872_v2 = vpop.f32.mrf.mxu0 }
0x24fd   :  { %v6204_v15 = vpack.i.bf16 %v4872_v2, %v4851_v48 }
0x2504   :  { %v4874_v11 = vpop.f32.mrf.mxu0 }
0x250f   :  { %v4937_v26 = vpop.f32.mrf.mxu3 }
0x2510   :  { %v5010_v35 = vsel %vm213_vm1, %v4937_v26, -inf }
0x2511   :  { %5011 = vmax.xlane.f32.xlu0 %v5010_v35 }
0x2515   :  { %v8160_v51 = vpop.f32.mrf.mxu1 }
0x2517   :  { %v4939_v58 = vpop.f32.mrf.mxu3 }
0x2519   :  { %v4960_v10 = vpop.f32.mrf.mxu0 }
0x251a   :  { %v8162_v52 = vpop.f32.mrf.mxu2  ;;  %v5013_v19 = vsel %vm213_vm1, %v4960_v10, -inf }
0x251b   :  { %v6219_v13 = vpack.i.bf16 %v8162_v52, %v8160_v51  ;;  %5014 = vmax.xlane.f32.xlu1 %v5013_v19 }
0x251d   :  { %v4895_v57 = vpop.f32.mrf.mxu1 }
0x2521   :  { %v4962_v16 = vpop.f32.mrf.mxu0 }
0x2522   :  { %v4916_v43 = vpop.f32.mrf.mxu2 }
0x2529   :  { %v4983_v7 = vpop.f32.mrf.mxu1 }
0x252a   :  { %v5006_v30 = vpop.f32.mrf.mxu2  ;;  %v5016_v5 = vsel %vm213_vm1, %v4983_v7, -inf }
0x252b   :  { %5017 = vmax.xlane.f32.xlu0 %v5016_v5  ;;  %v5019_v41 = vsel %vm213_vm1, %v5006_v30, -inf }
0x252c   :  { %5020 = vmax.xlane.f32.xlu2 %v5019_v41 }
0x2531   :  { %v4985_v37 = vpop.f32.mrf.mxu1 }
0x2532   :  { %v5008_v3 = vpop.f32.mrf.mxu2 }
0x2533   :  { %v6091_v3 = vld [vmem:[%s8369_s12 + $0x18] sm:$0xff] }
0x2534   :  { %5079 = vrot.lane.b32.xlu1 %v8060_v40, %s8423_s25 }
0x253c   :  { %5100 = vrot.lane.b32.xlu1 %v8050_v59, %s8423_s25 }
0x2544   :  { %6200 = vrot.lane.b32.xlu1 %v6199_v54, %s8418_s4 }
0x2584   :  { %v5012_v24 = vpop.xlane.xlu0 %5011 }
0x2585   :  { %v5022_v55 = vsub.f32 %v4937_v26, %v5012_v24 }
0x2587   :  { %v5026_v32 = vmul.f32 1.442695, %v5022_v55  ;;  %v6090_v55 = vld [vmem:[%s8369_s12 + $0x10] sm:$0xff] }
0x258e   :  { %v5015_v29 = vpop.xlane.xlu1 %5014 }
0x258f   :  { %v5023_v0 = vsub.f32 %v4960_v10, %v5015_v29 }
0x2591   :  { %v5028_v46 = vmul.f32 1.442695, %v5023_v0 }
0x2593   :  { %6523 = vpow2.f32 %v5028_v46 }
0x2594   :  { %6525 = vpow2.f32 %v5026_v32 }
0x2599   :  { %v6524_v61 = vpop.eup %6523 }
0x259a   :  { %v5037_v39 = vsel %vm213_vm1, %v6524_v61, 0.0  ;;  %v6526_v40 = vpop.eup %6525 }
0x259b   :  { %5038 = vadd.xlane.f32.xlu0 %v5037_v39  ;;  %v5034_v18 = vsel %vm213_vm1, %v6526_v40, 0.0 }
0x259e   :  { %v5018_v62 = vpop.xlane.xlu0 %5017 }
0x259f   :  { %v5021_v14 = vpop.xlane.xlu2 %5020  ;;  %v5024_v38 = vsub.f32 %v4983_v7, %v5018_v62 }
0x25a0   :  { %v5025_v59 = vsub.f32 %v5006_v30, %v5021_v14 }
0x25a1   :  { %v5030_v44 = vmul.f32 1.442695, %v5024_v38 }
0x25a2   :  { %v5032_v45 = vmul.f32 1.442695, %v5025_v59 }
0x25a3   :  { %5035 = vadd.xlane.f32.xlu0 %v5034_v18 }
0x25a4   :  { %6527 = vpow2.f32 %v5032_v45 }
0x25a5   :  { %6529 = vpow2.f32 %v5030_v44 }
0x25a6   :  { %v5080_v63 = vpop.permute.xlu1 %5079 }
0x25a7   :  { %v5085_v34 = vsel %vm341_vm2, %v5080_v63, 0 }
0x25a8   :  { %5094 = vmatpush.bf16.msrb.mxu0 %v5085_v34 }
0x25aa   :  { %v6528_v54 = vpop.eup %6527 }
0x25ab   :  { %v5043_v33 = vsel %vm213_vm1, %v6528_v54, 0.0  ;;  %v6530_v9 = vpop.eup %6529 }
0x25ac   :  { %5044 = vadd.xlane.f32.xlu2 %v5043_v33  ;;  %v5040_v25 = vsel %vm213_vm1, %v6530_v9, 0.0 }
0x25ae   :  { %v5101_v42 = vpop.permute.xlu1 %5100 }
0x25af   :  { %v5106_v8 = vsel %vm341_vm2, %v5101_v42, 0 }
0x25b0   :  { %5115 = vmatpush.bf16.msrb.mxu1 %v5106_v8 }
0x25b6   :  { %v6201_v46 = vpop.permute.xlu1 %6200 }
0x25b7   :  { %5058 = vrot.lane.b32.xlu0 %v8015_v27, %s8423_s25  ;;  %v6202_v51 = vunpack.i.l.bf16 %v6201_v46 }
0x25b9   :  { %v5190_v14 = vsel %vm213_vm1, %v8040_v36, %v6202_v51 }
0x25c4   :  { %5121 = vrot.lane.b32.xlu2 %v8065_v1, %s8423_s25 }
0x25cc   :  { %6205 = vrot.lane.b32.xlu2 %v6204_v15, %s8417_s0 }
0x25d4   :  { %6215 = vrot.lane.b32.xlu2 %v6214_v28, %s8418_s4 }
0x25e1   :  { %5041 = vadd.xlane.f32.xlu0 %v5040_v25 }
0x260e   :  { %v5039_v49 = vpop.xlane.xlu0 %5038 }
0x260f   :  { %6531 = vrcp.f32 %v5039_v49 }
0x2615   :  { %v6532_v27 = vpop.eup %6531 }
0x2616   :  { %v5051_v53 = vmul.f32 %v6532_v27, %v6524_v61  ;;  %v5036_v50 = vpop.xlane.xlu0 %5035  ;;  %v6203_v61 = vunpack.i.h.bf16 %v6201_v46 }
0x2617   :  { %6533 = vrcp.f32 %v5036_v50 }
0x2618   :  { %v5055_v1 = vpack.c.bf16 %v5051_v53, %v5051_v53 }
0x261a   :  { %5969 = vmatmul.msk.bf16.vlgmr.msrb.gmra.mxu0 %vm213_vm1, %v5055_v1 }
0x261d   :  { %v6534_v48 = vpop.eup %6533 }
0x261e   :  { %v5050_v28 = vmul.f32 %v6534_v48, %v6526_v40  ;;  %v5191_v40 = vsel %vm213_vm1, %v8042_v60, %v6203_v61 }
0x261f   :  { %v5045_v21 = vpop.xlane.xlu2 %5044 }
0x2620   :  { %6535 = vrcp.f32 %v5045_v21  ;;  %v5054_v35 = vpack.c.bf16 %v5050_v28, %v5050_v28 }
0x2626   :  { %v6536_v56 = vpop.eup %6535 }
0x2627   :  { %v5053_v6 = vmul.f32 %v6536_v56, %v6528_v54  ;;  %v5122_v20 = vpop.permute.xlu2 %5121 }
0x2628   :  { %v5127_v2 = vsel %vm341_vm2, %v5122_v20, 0 }
0x2629   :  { %v5057_v15 = vpack.c.bf16 %v5053_v6, %v5053_v6  ;;  %v5059_v11 = vpop.permute.xlu0 %5058  ;;  %5136 = vmatpush.bf16.msra.mxu2 %v5127_v2 }
0x262a   :  { %v5064_v26 = vsel %vm341_vm2, %v5059_v11, 0 }
0x262b   :  { %5073 = vmatpush.bf16.msrb.mxu3 %v5064_v26 }
0x262c   :  { %5971 = vmatmul.msk.bf16.vlgmr.msra.gmra.mxu2 %vm213_vm1, %v5057_v15 }
0x262e   :  { %5968 = vmatmul.msk.bf16.vlgmr.msrb.gmra.mxu3 %vm213_vm1, %v5054_v35 }
0x262f   :  { %5231 = vmatpush.bf16.msra.mxu3 %v6091_v3  ;;  %v6206_v32 = vpop.permute.xlu2 %6205 }
0x2630   :  { %v6208_v52 = vunpack.i.h.bf16 %v6206_v32 }
0x2632   :  { %v5195_v18 = vsel %vm1175_vm3, %v5191_v40, %v6208_v52 }
0x2633   :  { %5232 = vmatpush.bf16.msra.mxu3 %v6090_v55 }
0x2637   :  { %v6216_v42 = vpop.permute.xlu2 %6215 }
0x2638   :  { %v6218_v62 = vunpack.i.h.bf16 %v6216_v42  ;;  %v6217_v60 = vunpack.i.l.bf16 %v6216_v42 }
0x263a   :  { %v5192_v25 = vsel %vm213_vm1, %v8045_v17, %v6217_v60 }
0x2654   :  { %v5042_v58 = vpop.xlane.xlu0 %5041 }
0x2655   :  { %6537 = vrcp.f32 %v5042_v58 }
0x265b   :  { %v6538_v10 = vpop.eup %6537 }
0x265c   :  { %v5052_v19 = vmul.f32 %v6538_v10, %v6530_v9  ;;  %v5193_v9 = vsel %vm213_vm1, %v8054_v22, %v6218_v62  ;;  %v6242_v22 = vld [vmem:[%s8370_s13 + $0x1] ss:$0 sm:$0xff] }
0x265e   :  { %v5056_v57 = vpack.c.bf16 %v5052_v19, %v5052_v19 }
0x2660   :  { %5970 = vmatmul.msk.bf16.vlgmr.msrb.gmra.mxu1 %vm213_vm1, %v5056_v57 }
0x2697   :  { %v5096_v16 = vpop.f32.mrf.mxu0 }
0x269f   :  { %v5098_v43 = vpop.f32.mrf.mxu0 }
0x26af   :  { %v5138_v7 = vpop.f32.mrf.mxu2 }
0x26b1   :  { %v5075_v30 = vpop.f32.mrf.mxu3 }
0x26b2   :  { %v6209_v5 = vpack.i.bf16 %v5096_v16, %v5075_v30 }
0x26b4   :  { %6210 = vrot.lane.b32.xlu1 %v6209_v5, %s8419_s1 }
0x26b7   :  { %v5140_v41 = vpop.f32.mrf.mxu2 }
0x26b9   :  { %v5077_v37 = vpop.f32.mrf.mxu3 }
0x26bc   :  { %6220 = vrot.lane.b32.xlu1 %v6219_v13, %s8417_s0  ;;  %v6207_v13 = vunpack.i.l.bf16 %v6206_v32 }
0x26be   :  { %v5194_v63 = vsel %vm1175_vm3, %v5190_v14, %v6207_v13 }
0x26dd   :  { %v5117_v24 = vpop.f32.mrf.mxu1 }
0x26de   :  { %v6224_v29 = vpack.i.bf16 %v5138_v7, %v5117_v24 }
0x26e0   :  { %6225 = vrot.lane.b32.xlu2 %v6224_v29, %s8419_s1 }
0x26e5   :  { %v5119_v0 = vpop.f32.mrf.mxu1 }
0x2726   :  { %v6211_v39 = vpop.permute.xlu1 %6210 }
0x2727   :  { %v6213_v59 = vunpack.i.h.bf16 %v6211_v39  ;;  %v6212_v45 = vunpack.i.l.bf16 %v6211_v39  ;;  %v6093_v39 = vld [vmem:[%s8374_s16 + $0x18] sm:$0xff] }
0x2728   :  { %5390 = vmatpush.bf16.msra.mxu0 %v6093_v39 }
0x2729   :  { %v5198_v34 = vsel %vm1180_vm4, %v5194_v63, %v6212_v45  ;;  %v5199_v54 = vsel %vm1180_vm4, %v5195_v18, %v6213_v59  ;;  %v6092_v45 = vld [vmem:[%s8374_s16 + $0x10] sm:$0xff]  ;;  %s8424_s16 = sld [smem:[#allocation10_spill]] }
0x272a   :  { %v5202_v33 = vpack.c.bf16 %v5199_v54, %v5198_v34 }
0x272c   :  { %5980 = vmatmul.msk.bf16.vlgmr.msra.gmra.mxu3 %vm113_vm0, %v5202_v33  ;;  %5391 = vmatpush.bf16.msra.mxu0 %v6092_v45  ;;  %v6245_v45 = vld [vmem:[%s8420_s27 + $0x1] ss:$0 sm:$0xff] }
0x272e   :  { %v6221_v8 = vpop.permute.xlu1 %6220 }
0x272f   :  { %v6223_v38 = vunpack.i.h.bf16 %v6221_v8  ;;  %v6222_v44 = vunpack.i.l.bf16 %v6221_v8 }
0x2731   :  { %v5196_v53 = vsel %vm1175_vm3, %v5192_v25, %v6222_v44  ;;  %v5197_v1 = vsel %vm1175_vm3, %v5193_v9, %v6223_v38 }
0x273a   :  { %v6226_v36 = vpop.permute.xlu2 %6225 }
0x273b   :  { %v6228_v49 = vunpack.i.h.bf16 %v6226_v36  ;;  %v6227_v27 = vunpack.i.l.bf16 %v6226_v36 }
0x273d   :  { %v5201_v50 = vsel %vm1180_vm4, %v5197_v1, %v6228_v49  ;;  %v5200_v21 = vsel %vm1180_vm4, %v5196_v53, %v6227_v27 }
0x273e   :  { %v5203_v48 = vpack.c.bf16 %v5201_v50, %v5200_v21  ;;  %v6243_v50 = vld [vmem:[%s8371_s14 + $0x1] ss:$0 sm:$0xff] }
0x2740   :  { %5981 = vmatmul.msk.bf16.gmra.mxu3 %vm113_vm0, %v5203_v48  ;;  %v6101_v48 = vld [vmem:[%s8375_s18 + $0x78] sm:$0xff] }
0x2741   :  { %5479 = vmatpush.bf16.msra.mxu1 %v6101_v48 }
0x27af   :  { %v5234_v56 = vpop.f32.mrf.mxu3 }
0x27b0   :  { %v5235_v6 = vadd.f32 %v6242_v22, %v5234_v56 }
0x27b2   :  { %v5244_v17 = vadd.f32 %v5235_v6, %v7907_v4 }
0x27b4   :  { %v5252_v20 = vsel %vm113_vm0, %v5244_v17, 0.0 }
0x27b5   :  { %5253 = vadd.xlane.f32.xlu0 %v5252_v20 }
0x27b7   :  { %v5236_v28 = vpop.f32.mrf.mxu3 }
0x27b8   :  { %v5237_v2 = vadd.f32 %v6242_v22, %v5236_v28 }
0x27ba   :  { %v5245_v15 = vadd.f32 %v5237_v2, %v7909_v47  ;;  %v6244_v2 = vld [vmem:[%s8372_s15 + $0x1] ss:$0 sm:$0xff] }
0x27bc   :  { %v5255_v11 = vsel %vm113_vm0, %v5245_v15, 0.0 }
0x27bd   :  { %5256 = vadd.xlane.f32.xlu1 %v5255_v11 }
0x27c3   :  { %v5239_v26 = vpop.f32.mrf.mxu3 }
0x27c4   :  { %v5240_v35 = vadd.f32 %v6242_v22, %v5239_v26 }
0x27c6   :  { %v5246_v58 = vadd.f32 %v5240_v35, %v7918_v12 }
0x27c8   :  { %v5258_v10 = vsel %vm113_vm0, %v5246_v58, 0.0 }
0x27c9   :  { %5259 = vadd.xlane.f32.xlu2 %v5258_v10  ;;  %v6099_v10 = vld [vmem:[%s8375_s18 + $0x68] sm:$0xff] }
0x27cb   :  { %v5241_v19 = vpop.f32.mrf.mxu3 }
0x27cc   :  { %v5242_v57 = vadd.f32 %v6242_v22, %v5241_v19 }
0x27ce   :  { %v5247_v4 = vadd.f32 %v5242_v57, %v7920_v23 }
0x27d0   :  { %v5261_v16 = vsel %vm113_vm0, %v5247_v4, 0.0 }
0x27d1   :  { %5262 = vadd.xlane.f32.xlu0 %v5261_v16 }
0x2828   :  { %v5254_v43 = vpop.xlane.xlu0 %5253 }
0x2829   :  { %v5264_v47 = vmul.f32 %v5254_v43, %v7015_v31 }
0x282b   :  { %v5268_v7 = vsub.f32 %v5244_v17, %v5264_v47  ;;  %v6100_v17 = vld [vmem:[%s8375_s18 + $0x70] sm:$0xff]  ;;  %v6098_v47 = vld [vmem:[%s8375_s18 + $0x60] sm:$0xff] }
0x282c   :  { %5480 = vmatpush.bf16.msra.mxu1 %v6100_v17 }
0x282d   :  { %v5272_v30 = vmul.f32 %v5268_v7, %v5268_v7 }
0x282f   :  { %v5276_v5 = vsel %vm113_vm0, %v5272_v30, 0.0 }
0x2830   :  { %v5257_v41 = vpop.xlane.xlu1 %5256  ;;  %5277 = vadd.xlane.f32.xlu0 %v5276_v5  ;;  %5481 = vmatpush.bf16.msra.mxu1 %v6099_v10 }
0x2831   :  { %v5265_v12 = vmul.f32 %v5257_v41, %v7015_v31 }
0x2833   :  { %v5269_v37 = vsub.f32 %v5245_v15, %v5265_v12 }
0x2834   :  { %5482 = vmatpush.bf16.msra.mxu1 %v6098_v47 }
0x2835   :  { %v5273_v3 = vmul.f32 %v5269_v37, %v5269_v37 }
0x2837   :  { %v5279_v24 = vsel %vm113_vm0, %v5273_v3, 0.0 }
0x2838   :  { %5280 = vadd.xlane.f32.xlu0 %v5279_v24 }
0x283c   :  { %v5260_v23 = vpop.xlane.xlu2 %5259 }
0x283d   :  { %v5266_v29 = vmul.f32 %v5260_v23, %v7015_v31 }
0x283f   :  { %v8244_v0 = vsub.f32 %v5246_v58, %v5266_v29 }
0x2841   :  { %v5274_v55 = vmul.f32 %v8244_v0, %v8244_v0 }
0x2843   :  { %v5282_v46 = vsel %vm113_vm0, %v5274_v55, 0.0 }
0x2844   :  { %v5263_v32 = vpop.xlane.xlu0 %5262  ;;  %5283 = vadd.xlane.f32.xlu0 %v5282_v46 }
0x2845   :  { %v5267_v61 = vmul.f32 %v5263_v32, %v7015_v31 }
0x2847   :  { %v8250_v51 = vsub.f32 %v5247_v4, %v5267_v61 }
0x2849   :  { %v5275_v52 = vmul.f32 %v8250_v51, %v8250_v51 }
0x284b   :  { %v5285_v13 = vsel %vm113_vm0, %v5275_v52, 0.0 }
0x284c   :  { %5286 = vadd.xlane.f32.xlu0 %v5285_v13 }
0x28a3   :  { %v5278_v40 = vpop.xlane.xlu0 %5277 }
0x28a4   :  { %v5288_v14 = vmul.f32 %v5278_v40, %v7015_v31  ;;  %v6097_v40 = vld [vmem:[%s8375_s18 + $0x58] sm:$0xff] }
0x28a5   :  { %5483 = vmatpush.bf16.msra.mxu1 %v6097_v40 }
0x28a6   :  { %v5292_v59 = vadd.f32 1e-05, %v5288_v14  ;;  %v6094_v14 = vld [vmem:[%s8375_s18 + $0x40] sm:$0xff] }
0x28a8   :  { %6539 = vrsqrt.f32 %v5292_v59  ;;  %vm5302_vm2 = vweird.f32 %v5292_v59 }
0x28ab   :  { %v5281_v18 = vpop.xlane.xlu0 %5280 }
0x28ac   :  { %v5289_v63 = vmul.f32 %v5281_v18, %v7015_v31 }
0x28ae   :  { %v6540_v34 = vpop.eup %6539  ;;  %v5293_v54 = vadd.f32 1e-05, %v5289_v63 }
0x28af   :  { %v5297_v33 = vmul.f32 %v6540_v34, %v5292_v59  ;;  %vm5303_vm1 = vweird.f32 %v6540_v34 }
0x28b0   :  { %6541 = vrsqrt.f32 %v5293_v54  ;;  %vm5304_vm3 = vmor %vm5302_vm2, %vm5303_vm1  ;;  %vm5312_vm10 = vweird.f32 %v5293_v54 }
0x28b1   :  { %v5298_v42 = vmul.f32 %v6540_v34, %v5297_v33 }
0x28b3   :  { %v5299_v8 = vmul.f32 0.5, %v5298_v42 }
0x28b5   :  { %v5300_v62 = vsub.f32 1.5, %v5299_v8 }
0x28b6   :  { %v6542_v60 = vpop.eup %6541 }
0x28b7   :  { %v5301_v38 = vmul.f32 %v6540_v34, %v5300_v62  ;;  %v5307_v44 = vmul.f32 %v6542_v60, %v5293_v54  ;;  %v5284_v36 = vpop.xlane.xlu0 %5283  ;;  %vm5313_vm4 = vweird.f32 %v6542_v60 }
0x28b8   :  { %v5290_v9 = vmul.f32 %v5284_v36, %v7015_v31  ;;  %vm5314_vm11 = vmor %vm5312_vm10, %vm5313_vm4 }
0x28b9   :  { %v5308_v25 = vmul.f32 %v6542_v60, %v5307_v44  ;;  %v5305_v27 = vsel %vm5304_vm3, %v6540_v34, %v5301_v38 }
0x28ba   :  { %v5294_v49 = vadd.f32 1e-05, %v5290_v9  ;;  %v5336_v21 = vmul.f32 %v5305_v27, %v5268_v7 }
0x28bb   :  { %v5309_v53 = vmul.f32 0.5, %v5308_v25  ;;  %v6246_v25 = vld [vmem:[%s8376_s19 + $0x1] ss:$0 sm:$0xff] }
0x28bc   :  { %6543 = vrsqrt.f32 %v5294_v49  ;;  %v5343_v15 = vmul.f32 %v6243_v50, %v5336_v21  ;;  %vm5322_vm13 = vweird.f32 %v5294_v49 }
0x28bd   :  { %v5310_v1 = vsub.f32 1.5, %v5309_v53 }
0x28be   :  { %v5350_v57 = vadd.f32 %v6244_v2, %v5343_v15 }
0x28bf   :  { %v5311_v22 = vmul.f32 %v6542_v60, %v5310_v1  ;;  %v5287_v56 = vpop.xlane.xlu0 %5286 }
0x28c0   :  { %v5291_v6 = vmul.f32 %v5287_v56, %v7015_v31 }
0x28c1   :  { %v5315_v20 = vsel %vm5314_vm11, %v6542_v60, %v5311_v22 }
0x28c2   :  { %v6544_v28 = vpop.eup %6543  ;;  %v5337_v11 = vmul.f32 %v5315_v20, %v5269_v37  ;;  %v5295_v26 = vadd.f32 1e-05, %v5291_v6 }
0x28c3   :  { %v5317_v35 = vmul.f32 %v6544_v28, %v5294_v49  ;;  %vm5323_vm12 = vweird.f32 %v6544_v28 }
0x28c4   :  { %v5344_v58 = vmul.f32 %v6243_v50, %v5337_v11  ;;  %6545 = vrsqrt.f32 %v5295_v26  ;;  %vm5324_vm14 = vmor %vm5322_vm13, %vm5323_vm12  ;;  %vm5332_vm5 = vweird.f32 %v5295_v26 }
0x28c5   :  { %v5318_v19 = vmul.f32 %v6544_v28, %v5317_v35 }
0x28c6   :  { %v8280_v4 = vadd.f32 %v6244_v2, %v5344_v58 }
0x28c7   :  { %v5319_v16 = vmul.f32 0.5, %v5318_v19 }
0x28c8   :  { %v5354_v43 = vpack.c.bf16 %v8280_v4, %v5350_v57 }
0x28c9   :  { %v5320_v7 = vsub.f32 1.5, %v5319_v16 }
0x28ca   :  { %v6546_v30 = vpop.eup %6545  ;;  %5997 = vmatmul.msk.bf16.vlgmr.msra.gmra.mxu0 %vm113_vm0, %v5354_v43 }
0x28cb   :  { %v5321_v5 = vmul.f32 %v6544_v28, %v5320_v7  ;;  %v5327_v41 = vmul.f32 %v6546_v30, %v5295_v26  ;;  %vm5333_vm15 = vweird.f32 %v6546_v30 }
0x28cc   :  { %vm5334_vm6 = vmor %vm5332_vm5, %vm5333_vm15 }
0x28cd   :  { %v5328_v12 = vmul.f32 %v6546_v30, %v5327_v41  ;;  %v5325_v37 = vsel %vm5324_vm14, %v6544_v28, %v5321_v5 }
0x28ce   :  { %v5338_v23 = vmul.f32 %v5325_v37, %v8244_v0  ;;  %v6096_v0 = vld [vmem:[%s8375_s18 + $0x50] sm:$0xff] }
0x28cf   :  { %v5329_v3 = vmul.f32 0.5, %v5328_v12  ;;  %5484 = vmatpush.bf16.msra.mxu1 %v6096_v0 }
0x28d0   :  { %v5345_v32 = vmul.f32 %v6243_v50, %v5338_v23 }
0x28d1   :  { %v5330_v24 = vsub.f32 1.5, %v5329_v3 }
0x28d2   :  { %v5352_v52 = vadd.f32 %v6244_v2, %v5345_v32 }
0x28d3   :  { %v5331_v29 = vmul.f32 %v6546_v30, %v5330_v24 }
0x28d5   :  { %v5335_v55 = vsel %vm5334_vm6, %v6546_v30, %v5331_v29 }
0x28d6   :  { %v5339_v46 = vmul.f32 %v5335_v55, %v8250_v51  ;;  %v6095_v51 = vld [vmem:[%s8375_s18 + $0x48] sm:$0xff] }
0x28d7   :  { %5485 = vmatpush.bf16.msra.mxu1 %v6095_v51 }
0x28d8   :  { %v5346_v61 = vmul.f32 %v6243_v50, %v5339_v46 }
0x28da   :  { %v5353_v13 = vadd.f32 %v6244_v2, %v5346_v61 }
0x28db   :  { %5486 = vmatpush.bf16.msra.mxu1 %v6094_v14 }
0x28dc   :  { %v5355_v39 = vpack.c.bf16 %v5353_v13, %v5352_v52 }
0x28de   :  { %5998 = vmatmul.msk.bf16.gmra.mxu0 %vm113_vm0, %v5355_v39 }
0x2947   :  { %v5393_v59 = vpop.f32.mrf.mxu0 }
0x2948   :  { %v5394_v18 = vadd.f32 %v6245_v45, %v5393_v59 }
0x294a   :  { %v5403_v54 = vmax.f32 %v5394_v18, 0.0 }
0x294f   :  { %v5395_v63 = vpop.f32.mrf.mxu0 }
0x2950   :  { %v5396_v34 = vadd.f32 %v6245_v45, %v5395_v63 }
0x2952   :  { %v5404_v33 = vmax.f32 %v5396_v34, 0.0  ;;  %v6247_v34 = vld [vmem:[%s8377_s20 + $0x1] ss:$0 sm:$0xff] }
0x2954   :  { %v5407_v42 = vpack.c.bf16 %v5404_v33, %v5403_v54 }
0x2956   :  { %5487 = vmatmul.bf16.vlgmr.msra.gmra.mxu1 %v5407_v42 }
0x295b   :  { %v5398_v8 = vpop.f32.mrf.mxu0 }
0x295c   :  { %v5399_v62 = vadd.f32 %v6245_v45, %v5398_v8  ;;  %v6248_v8 = vld [vmem:[%s8378_s21 + $0x1] ss:$0 sm:$0xff] }
0x295e   :  { %v5405_v44 = vmax.f32 %v5399_v62, 0.0 }
0x2963   :  { %v5400_v60 = vpop.f32.mrf.mxu0 }
0x2964   :  { %v5401_v38 = vadd.f32 %v6245_v45, %v5400_v60 }
0x2966   :  { %v5406_v36 = vmax.f32 %v5401_v38, 0.0 }
0x2968   :  { %v5408_v9 = vpack.c.bf16 %v5406_v36, %v5405_v44 }
0x296a   :  { %5492 = vmatmul.bf16.gmra.mxu1 %v5408_v9 }
0x29d3   :  { %v5488_v49 = vpop.f32.mrf.mxu1 }
0x29d4   :  { %v5489_v27 = vadd.f32 %v6246_v25, %v5488_v49 }
0x29d6   :  { %v5498_v53 = vadd.f32 %v5489_v27, %v5350_v57 }
0x29d8   :  { %v5506_v1 = vsel %vm113_vm0, %v5498_v53, 0.0 }
0x29d9   :  { %5507 = vadd.xlane.f32.xlu0 %v5506_v1 }
0x29db   :  { %v5490_v50 = vpop.f32.mrf.mxu1 }
0x29dc   :  { %v5491_v21 = vadd.f32 %v6246_v25, %v5490_v50 }
0x29de   :  { %v5499_v48 = vadd.f32 %v5491_v21, %v8280_v4 }
0x29e0   :  { %v5509_v22 = vsel %vm113_vm0, %v5499_v48, 0.0 }
0x29e1   :  { %5510 = vadd.xlane.f32.xlu2 %v5509_v22 }
0x29e7   :  { %v5493_v56 = vpop.f32.mrf.mxu1 }
0x29e8   :  { %v5494_v6 = vadd.f32 %v6246_v25, %v5493_v56 }
0x29ea   :  { %v5500_v17 = vadd.f32 %v5494_v6, %v5352_v52 }
0x29ec   :  { %v5512_v20 = vsel %vm113_vm0, %v5500_v17, 0.0 }
0x29ed   :  { %5513 = vadd.xlane.f32.xlu1 %v5512_v20 }
0x29ef   :  { %v5495_v28 = vpop.f32.mrf.mxu1 }
0x29f0   :  { %v5496_v2 = vadd.f32 %v6246_v25, %v5495_v28 }
0x29f2   :  { %v5501_v15 = vadd.f32 %v5496_v2, %v5353_v13 }
0x29f4   :  { %v5515_v11 = vsel %vm113_vm0, %v5501_v15, 0.0 }
0x29f5   :  { %5516 = vadd.xlane.f32.xlu0 %v5515_v11 }
0x2a4c   :  { %v5508_v26 = vpop.xlane.xlu0 %5507 }
0x2a4d   :  { %v5518_v35 = vmul.f32 %v5508_v26, %v7015_v31 }
0x2a4f   :  { %v5522_v58 = vsub.f32 %v5498_v53, %v5518_v35 }
0x2a51   :  { %v5526_v10 = vmul.f32 %v5522_v58, %v5522_v58 }
0x2a53   :  { %v5530_v19 = vsel %vm113_vm0, %v5526_v10, 0.0 }
0x2a54   :  { %5531 = vadd.xlane.f32.xlu2 %v5530_v19  ;;  %v5511_v57 = vpop.xlane.xlu2 %5510 }
0x2a55   :  { %v5519_v4 = vmul.f32 %v5511_v57, %v7015_v31 }
0x2a57   :  { %v5523_v16 = vsub.f32 %v5499_v48, %v5519_v4 }
0x2a59   :  { %v5527_v43 = vmul.f32 %v5523_v16, %v5523_v16 }
0x2a5b   :  { %v5533_v47 = vsel %vm113_vm0, %v5527_v43, 0.0 }
0x2a5c   :  { %5534 = vadd.xlane.f32.xlu1 %v5533_v47 }
0x2a60   :  { %v5514_v7 = vpop.xlane.xlu1 %5513 }
0x2a61   :  { %v5520_v30 = vmul.f32 %v5514_v7, %v7015_v31 }
0x2a63   :  { %v8318_v5 = vsub.f32 %v5500_v17, %v5520_v30 }
0x2a65   :  { %v5528_v41 = vmul.f32 %v8318_v5, %v8318_v5 }
0x2a67   :  { %v5536_v12 = vsel %vm113_vm0, %v5528_v41, 0.0 }
0x2a68   :  { %5537 = vadd.xlane.f32.xlu0 %v5536_v12  ;;  %v5517_v37 = vpop.xlane.xlu0 %5516 }
0x2a69   :  { %v5521_v3 = vmul.f32 %v5517_v37, %v7015_v31 }
0x2a6b   :  { %v8324_v24 = vsub.f32 %v5501_v15, %v5521_v3 }
0x2a6d   :  { %v5529_v23 = vmul.f32 %v8324_v24, %v8324_v24 }
0x2a6f   :  { %v5539_v29 = vsel %vm113_vm0, %v5529_v23, 0.0 }
0x2a70   :  { %5540 = vadd.xlane.f32.xlu2 %v5539_v29 }
0x2ac7   :  { %v5532_v55 = vpop.xlane.xlu2 %5531 }
0x2ac8   :  { %v5542_v46 = vmul.f32 %v5532_v55, %v7015_v31 }
0x2aca   :  { %v5546_v32 = vadd.f32 1e-05, %v5542_v46 }
0x2acc   :  { %6547 = vrsqrt.f32 %v5546_v32  ;;  %vm5556_vm8 = vweird.f32 %v5546_v32 }
0x2acf   :  { %v5535_v61 = vpop.xlane.xlu1 %5534 }
0x2ad0   :  { %v5543_v52 = vmul.f32 %v5535_v61, %v7015_v31 }
0x2ad2   :  { %v6548_v13 = vpop.eup %6547  ;;  %v5547_v39 = vadd.f32 1e-05, %v5543_v52 }
0x2ad3   :  { %v5551_v40 = vmul.f32 %v6548_v13, %v5546_v32  ;;  %vm5557_vm7 = vweird.f32 %v6548_v13 }
0x2ad4   :  { %6549 = vrsqrt.f32 %v5547_v39  ;;  %vm5558_vm9 = vmor %vm5556_vm8, %vm5557_vm7  ;;  %vm5566_vm2 = vweird.f32 %v5547_v39 }
0x2ad5   :  { %v5552_v0 = vmul.f32 %v6548_v13, %v5551_v40 }
0x2ad7   :  { %v5553_v51 = vmul.f32 0.5, %v5552_v0 }
0x2ad9   :  { %v5554_v14 = vsub.f32 1.5, %v5553_v51 }
0x2ada   :  { %v6550_v59 = vpop.eup %6549 }
0x2adb   :  { %v5555_v45 = vmul.f32 %v6548_v13, %v5554_v14  ;;  %v5561_v18 = vmul.f32 %v6550_v59, %v5547_v39  ;;  %v5538_v63 = vpop.xlane.xlu0 %5537  ;;  %vm5567_vm1 = vweird.f32 %v6550_v59 }
0x2adc   :  { %v5544_v54 = vmul.f32 %v5538_v63, %v7015_v31  ;;  %vm5568_vm3 = vmor %vm5566_vm2, %vm5567_vm1 }
0x2add   :  { %v5559_v33 = vsel %vm5558_vm9, %v6548_v13, %v5555_v45  ;;  %v5562_v42 = vmul.f32 %v6550_v59, %v5561_v18 }
0x2ade   :  { %v5590_v62 = vmul.f32 %v5559_v33, %v5522_v58  ;;  %v5548_v60 = vadd.f32 1e-05, %v5544_v54 }
0x2adf   :  { %v5563_v38 = vmul.f32 0.5, %v5562_v42 }
0x2ae0   :  { %v5597_v44 = vmul.f32 %v6247_v34, %v5590_v62  ;;  %6551 = vrsqrt.f32 %v5548_v60  ;;  %vm5576_vm10 = vweird.f32 %v5548_v60 }
0x2ae1   :  { %v5564_v36 = vsub.f32 1.5, %v5563_v38 }
0x2ae2   :  { %v5604_v9 = vadd.f32 %v6248_v8, %v5597_v44 }
0x2ae3   :  { %v5565_v25 = vmul.f32 %v6550_v59, %v5564_v36  ;;  %v5541_v49 = vpop.xlane.xlu2 %5540 }
0x2ae4   :  { %5608 = vst.msk [vmem:[%s8424_s16] sm:$0xff] %vm113_vm0, %v5604_v9  ;;  %v5545_v27 = vmul.f32 %v5541_v49, %v7015_v31 }
0x2ae5   :  { %v5569_v53 = vsel %vm5568_vm3, %v6550_v59, %v5565_v25 }
0x2ae6   :  { %v6552_v1 = vpop.eup %6551  ;;  %v5591_v50 = vmul.f32 %v5569_v53, %v5523_v16  ;;  %v5549_v21 = vadd.f32 1e-05, %v5545_v27 }
0x2ae7   :  { %v5571_v48 = vmul.f32 %v6552_v1, %v5548_v60  ;;  %vm5577_vm4 = vweird.f32 %v6552_v1 }
0x2ae8   :  { %v5598_v22 = vmul.f32 %v6247_v34, %v5591_v50  ;;  %6553 = vrsqrt.f32 %v5549_v21  ;;  %vm5578_vm11 = vmor %vm5576_vm10, %vm5577_vm4  ;;  %vm5586_vm13 = vweird.f32 %v5549_v21 }
0x2ae9   :  { %v5572_v56 = vmul.f32 %v6552_v1, %v5571_v48 }
0x2aea   :  { %v5605_v6 = vadd.f32 %v6248_v8, %v5598_v22 }
0x2aeb   :  { %v5573_v17 = vmul.f32 0.5, %v5572_v56 }
0x2aec   :  { %5609 = vst.msk [vmem:[%s8424_s16 + $0x8] sm:$0xff] %vm113_vm0, %v5605_v6 }
0x2aed   :  { %v5574_v20 = vsub.f32 1.5, %v5573_v17 }
0x2aee   :  { %v6554_v28 = vpop.eup %6553 }
0x2aef   :  { %v5575_v2 = vmul.f32 %v6552_v1, %v5574_v20  ;;  %v5581_v31 = vmul.f32 %v6554_v28, %v5549_v21  ;;  %vm5587_vm12 = vweird.f32 %v6554_v28 }
0x2af0   :  { %vm5588_vm14 = vmor %vm5586_vm13, %vm5587_vm12 }
0x2af1   :  { %v5579_v15 = vsel %vm5578_vm11, %v6552_v1, %v5575_v2  ;;  %v5582_v11 = vmul.f32 %v6554_v28, %v5581_v31 }
0x2af2   :  { %v5592_v26 = vmul.f32 %v5579_v15, %v8318_v5 }
0x2af3   :  { %v5583_v35 = vmul.f32 0.5, %v5582_v11 }
0x2af4   :  { %v5599_v58 = vmul.f32 %v6247_v34, %v5592_v26 }
0x2af5   :  { %v5584_v10 = vsub.f32 1.5, %v5583_v35 }
0x2af6   :  { %v5606_v19 = vadd.f32 %v6248_v8, %v5599_v58 }
0x2af7   :  { %v5585_v57 = vmul.f32 %v6554_v28, %v5584_v10 }
0x2af8   :  { %5610 = vst.msk [vmem:[%s8424_s16 + $0x10] sm:$0xff] %vm113_vm0, %v5606_v19 }
0x2af9   :  { %v5589_v4 = vsel %vm5588_vm14, %v6554_v28, %v5585_v57 }
0x2afa   :  { %v5593_v16 = vmul.f32 %v5589_v4, %v8324_v24 }
0x2afc   :  { %v5600_v43 = vmul.f32 %v6247_v34, %v5593_v16 }
0x2afe   :  { %v5607_v47 = vadd.f32 %v6248_v8, %v5600_v43 }
0x2b00   :  { %5611 = vst.msk [vmem:[%s8424_s16 + $0x18] sm:$0xff] %vm113_vm0, %v5607_v47 }

</bundles_post_ra>
